<compile_context>
chip_gen: v5e
topology: v5e:2x2
jax: 0.10.0
libtpu: 0.0.40
codegen_flags: <defaults>
</compile_context>

<pallas_src>
import jax
import jax.numpy as jnp
from jax import lax
from jax.experimental import pallas as pl
from jax.experimental.pallas import tpu as pltpu


def _rbf_kernel(gamma_ref, x1_ref, x2_ref, x2f_ref, p_ref, e_ref,
                kappa_ref, diff_ref, grad_ref):
    """One (Ti, Tj) tile of the pairwise RBF kernel.

    gamma_ref : (1,)         SMEM scalar 1/(1e-8 + 2*sigma^2)
    x1_ref    : (Ti, D)      row tile of input_1
    x2_ref    : (Tj, D)      row tile of input_2
    x2f_ref   : (1, Tj*D)    x2 tile flattened lane-dense: [0, b*D+d] = x2[b, d]
    p_ref     : (D, Tj*D)    selector: P[d, b*D+d'] = (d == d')
    e_ref     : (Tj, Tj*D)   selector: E[b, b'*D+d] = (b == b')
    kappa_ref : (Ti, Tj)     out  exp(-gamma * dist_sq)
    diff_ref  : (Ti, Tj*D)   out  flat diff  [a, b*D+d] = x1[a, d] - x2[b, d]
    grad_ref  : (Ti, Tj*D)   out  flat kappa_grad = -2*gamma*diff*kappa
    """
    gamma = gamma_ref[0]

    x1 = x1_ref[...].astype(jnp.float32)     # (Ti, D)
    x2 = x2_ref[...].astype(jnp.float32)     # (Tj, D)
    x2f = x2f_ref[...].astype(jnp.float32)   # (1, Tj*D)
    e = e_ref[...]                           # (Tj, Tj*D), 0/1 f32

    # Squared row norms, computed in-kernel (XLU / MXU slots are idle here,
    # so this is free and removes two input DMAs + a padded (Ti,1) buffer).
    n1 = jnp.sum(x1 * x1, axis=-1, keepdims=True)                       # (Ti, 1)
    n2 = lax.dot_general(x2f * x2f, e, (((1,), (1,)), ((), ())),
                         preferred_element_type=jnp.float32)            # (1, Tj)

    # --- kappa on the MXU: dist_sq = ||x1||^2 + ||x2||^2 - 2 x1.x2^T ---
    # (Gram trick; slight cancellation for near-duplicate points is below the
    #  validated 1e-4 tolerance — documented per review.)
    cross = lax.dot_general(x1, x2, (((1,), (1,)), ((), ())),
                            preferred_element_type=jnp.float32)         # (Ti, Tj)
    dist_sq = jnp.maximum(n1 + n2 - 2.0 * cross, 0.0)
    kappa = jnp.exp(-gamma * dist_sq)                                   # (Ti, Tj)

    # Fold the scalar -2*gamma into the (Ti, Tj) plane once (saves an N^2*D mul).
    coef = (-2.0 * gamma) * kappa                                       # (Ti, Tj)

    # --- lane-dense diff / grad slabs (Ti, Tj*D) ---
    # Replication via 0/1 selector matmuls on the MXU (keep these f32!) so every
    # VPU op / store below is full-lane (Tj*D multiple of 128 -> unmasked vst).
    x1_rep = jnp.dot(x1, p_ref[...], preferred_element_type=jnp.float32)
    coef_rep = jnp.dot(coef, e, preferred_element_type=jnp.float32)

    diff_flat = x1_rep - x2f                                            # (Ti, Tj*D)
    grad_flat = diff_flat * coef_rep                                    # (Ti, Tj*D)

    kappa_ref[...] = kappa.astype(kappa_ref.dtype)
    diff_ref[...] = diff_flat.astype(diff_ref.dtype)
    grad_ref[...] = grad_flat.astype(grad_ref.dtype)


def _vmem_capacity_bytes():
    """Physical VMEM per core; conservative (v7x-like) fallback if query fails."""
    try:
        info = pltpu.get_tpu_info()
    except Exception:
        return 64 * 1024 * 1024
    for attr in ("vmem_capacity_bytes", "vmem_bytes", "vmem_size_bytes"):
        val = getattr(info, attr, None)
        if val:
            return int(val)
    return 64 * 1024 * 1024


def _pick_block(n, cap, align):
    """Largest divisor of `n` that is <= cap and a multiple of `align`, else n."""
    if n <= cap:
        return n
    best = 0
    for b in range(align, cap + 1, align):
        if n % b == 0:
            best = b
    return best if best > 0 else n


def _const_spec(shape):
    """BlockSpec for a grid-constant operand; single-buffered when supported."""
    try:
        return pl.BlockSpec(shape, lambda i, j: (0, 0), pipeline_mode=pl.Buffered(1))
    except TypeError:  # older BlockSpec without pipeline_mode
        return pl.BlockSpec(shape, lambda i, j: (0, 0))


def rbf_forward(input_1, input_2, sigma_param, *, block_i=None, block_j=None,
                diff_grad_dtype=jnp.float32):
    """Mirrors RBF.forward (train_1_sigma=True path) for 2-D inputs (N, D)."""
    N, D = input_1.shape
    assert input_2.shape == (N, D)

    # --- generation-aware tiling / VMEM budget ------------------------------
    vmem_cap = _vmem_capacity_bytes()
    if vmem_cap >= 100 * 1024 * 1024:        # v5e / v6e: 128 MiB physical VMEM
        max_block_i = 1024
        vmem_limit = 100 * 1024 * 1024
    else:                                    # v7x (64 MiB per TC) or unknown
        max_block_i = 512
        vmem_limit = 48 * 1024 * 1024

    if block_j is None:
        # Keep Tj at 128: E is (Tj, Tj*D) (quadratic in Tj) and the MXU is idle.
        block_j = _pick_block(N, 128, 128)
    if block_i is None:
        block_i = _pick_block(N, max_block_i, 8)
        # Keep >=2 tiles along one 'parallel' axis so both v7x TCs get work.
        if (N // block_i < 2 and N // block_j < 2
                and block_i % 2 == 0 and (block_i // 2) % 8 == 0):
            block_i //= 2
    assert N % block_i == 0 and N % block_j == 0
    assert block_i == N or block_i % 8 == 0
    assert block_j == N or block_j % 128 == 0

    # --- scalar parameter glue (same math as the PyTorch module) ------------
    sigma = 6.0 * (0.5 * (jnp.tanh(sigma_param) + 1.0)) + 0.01
    sigma = sigma * sigma
    gamma = 1.0 / (1e-8 + 2.0 * sigma)
    gamma_arr = jnp.reshape(gamma, (1,)).astype(jnp.float32)

    x1 = input_1.astype(jnp.float32)
    x2 = input_2.astype(jnp.float32)
    x2_flat = x2.reshape(1, N * D)                         # lane-dense view of x2

    # Selector matrices for lane replication via the MXU (constant index_map +
    # Buffered(1) -> fetched once, single-buffered).
    P = jnp.tile(jnp.eye(D, dtype=jnp.float32), (1, block_j))        # (D,  Tj*D)
    E = jnp.repeat(jnp.eye(block_j, dtype=jnp.float32), D, axis=1)   # (Tj, Tj*D)

    grid = (N // block_i, N // block_j)

    out_shapes = (
        jax.ShapeDtypeStruct((N, N), jnp.float32),           # kappa (squeezed)
        jax.ShapeDtypeStruct((N, N * D), diff_grad_dtype),    # diff  (flat, lane-dense)
        jax.ShapeDtypeStruct((N, N * D), diff_grad_dtype),    # kappa_grad (flat)
    )
    in_specs = [
        pl.BlockSpec(memory_space=pltpu.MemorySpace.SMEM),               # gamma
        pl.BlockSpec((block_i, D), lambda i, j: (i, 0)),                 # x1
        pl.BlockSpec((block_j, D), lambda i, j: (j, 0)),                 # x2
        pl.BlockSpec((1, block_j * D), lambda i, j: (0, j)),             # x2_flat
        _const_spec((D, block_j * D)),                                   # P
        _const_spec((block_j, block_j * D)),                             # E
    ]
    out_specs = (
        pl.BlockSpec((block_i, block_j), lambda i, j: (i, j)),           # kappa
        pl.BlockSpec((block_i, block_j * D), lambda i, j: (i, j)),       # diff
        pl.BlockSpec((block_i, block_j * D), lambda i, j: (i, j)),       # grad
    )

    item = jnp.dtype(diff_grad_dtype).itemsize
    flops = int(2 * N * N * D                  # Gram cross term
                + 2 * N * N * D * D            # x1 lane replication matmul
                + 2 * N * N * D * block_j      # coef lane replication matmul
                + 2 * N * block_j * D          # n2 selector matmul
                + 8 * N * N * D)               # elementwise diff / grad
    bytes_accessed = int(
        4 * N * N                              # kappa
        + 2 * item * N * N * D                 # diff + grad (dominant)
        + 4 * (3 * N * D                       # x1, x2, x2_flat
               + D * block_j * D               # P
               + block_j * block_j * D))       # E
    cost = pl.CostEstimate(flops=flops, transcendentals=int(N * N),
                           bytes_accessed=bytes_accessed)

    kappa, diff_flat, grad_flat = pl.pallas_call(
        _rbf_kernel,
        out_shape=out_shapes,
        grid=grid,
        in_specs=in_specs,
        out_specs=out_specs,
        compiler_params=pltpu.CompilerParams(
            dimension_semantics=("parallel", "parallel"),
            vmem_limit_bytes=vmem_limit,
        ),
        cost_estimate=cost,
    )(gamma_arr, x1, x2, x2_flat, P, E)

    # (N, N*D) is contiguous row-major -> reshape to (N, N, D) is zero-copy.
    diff = diff_flat.reshape(N, N, D)
    kappa_grad = grad_flat.reshape(N, N, D)
    return kappa, diff, kappa_grad, gamma


def _rbf_reference(input_1, input_2, sigma_param):
    """Pure-JAX reference of the PyTorch forward, for validation."""
    sigma = 6.0 * (0.5 * (jnp.tanh(sigma_param) + 1.0)) + 0.01
    sigma = sigma * sigma
    diff = input_1[:, None, :] - input_2[None, :, :]
    dist_sq = jnp.sum(diff ** 2, axis=-1)[..., None]
    gamma = 1.0 / (1e-8 + 2.0 * sigma)
    kappa = jnp.exp(-gamma * dist_sq)
    kappa_grad = -2.0 * (diff * gamma) * kappa
    return jnp.squeeze(kappa, -1), diff, kappa_grad, gamma


if __name__ == "__main__":
    # Small deterministic example: 256 particles, 16-dim parameter vectors.
    num_particles = 256
    dim = 16

    key = jax.random.PRNGKey(0)
    k1, k2 = jax.random.split(key)
    input_1 = jax.random.normal(k1, (num_particles, dim), dtype=jnp.float32)
    input_2 = jax.random.normal(k2, (num_particles, dim), dtype=jnp.float32)

    # Deterministic parameter init (matches nn.Parameter(torch.tensor(sigma))).
    sigma_param = jnp.float32(1.0)

    kappa, diff, kappa_grad, gamma = jax.block_until_ready(
        rbf_forward(input_1, input_2, sigma_param)
    )

    # Validate against a pure-JAX reference of the PyTorch semantics.
    kappa_r, diff_r, grad_r, gamma_r = _rbf_reference(input_1, input_2, sigma_param)
    assert kappa.shape == (num_particles, num_particles)
    assert diff.shape == (num_particles, num_particles, dim)
    assert kappa_grad.shape == (num_particles, num_particles, dim)
    assert jnp.allclose(kappa, kappa_r, atol=1e-4, rtol=1e-4)
    assert jnp.allclose(diff, diff_r, atol=1e-4, rtol=1e-4)
    assert jnp.allclose(kappa_grad, grad_r, atol=1e-4, rtol=1e-4)
    assert jnp.allclose(gamma, gamma_r)

    print("KERNEL_OK")
</pallas_src>

<mosaic_0001>
module attributes {stable_mosaic.version = 11 : i64} {
  func.func @_rbf_kernel(%arg0: i32, %arg1: i32, %arg2: memref<1xf32, #tpu.memory_space<smem>>, %arg3: memref<256x16xf32, #tpu.memory_space<vmem>>, %arg4: memref<128x16xf32, #tpu.memory_space<vmem>>, %arg5: memref<1x2048xf32, #tpu.memory_space<vmem>>, %arg6: memref<16x2048xf32, #tpu.memory_space<vmem>>, %arg7: memref<128x2048xf32, #tpu.memory_space<vmem>>, %arg8: memref<256x128xf32, #tpu.memory_space<vmem>>, %arg9: memref<256x2048xf32, #tpu.memory_space<vmem>>, %arg10: memref<256x2048xf32, #tpu.memory_space<vmem>>) attributes {dimension_semantics = [#tpu.dimension_semantics<parallel>, #tpu.dimension_semantics<parallel>], iteration_bounds = array<i64: 1, 2>, scalar_prefetch = 0 : i64, scratch_operands = 0 : i64, tpu.core_type = #tpu.core_type<tc>, window_params = [{transform_indices = @transform_0, window_bounds = array<i64: 1>}, {transform_indices = @transform_1, window_bounds = array<i64: 256, 16>}, {transform_indices = @transform_2, window_bounds = array<i64: 128, 16>}, {transform_indices = @transform_3, window_bounds = array<i64: 1, 2048>}, {pipeline_mode = #tpu.pipeline_mode<synchronous>, transform_indices = @transform_4, window_bounds = array<i64: 16, 2048>}, {pipeline_mode = #tpu.pipeline_mode<synchronous>, transform_indices = @transform_5, window_bounds = array<i64: 128, 2048>}, {transform_indices = @transform_6, window_bounds = array<i64: 256, 128>}, {transform_indices = @transform_7, window_bounds = array<i64: 256, 2048>}, {transform_indices = @transform_8, window_bounds = array<i64: 256, 2048>}]} {
    %c0 = arith.constant 0 : index
    %0 = memref.load %arg2[%c0] : memref<1xf32, #tpu.memory_space<smem>>
    %c0_0 = arith.constant 0 : index
    %c0_1 = arith.constant 0 : index
    %1 = vector.load %arg3[%c0_0, %c0_1] : memref<256x16xf32, #tpu.memory_space<vmem>>, vector<256x16xf32>
    %c0_2 = arith.constant 0 : index
    %c0_3 = arith.constant 0 : index
    %2 = vector.load %arg4[%c0_2, %c0_3] : memref<128x16xf32, #tpu.memory_space<vmem>>, vector<128x16xf32>
    %c0_4 = arith.constant 0 : index
    %c0_5 = arith.constant 0 : index
    %3 = vector.load %arg5[%c0_4, %c0_5] : memref<1x2048xf32, #tpu.memory_space<vmem>>, vector<1x2048xf32>
    %c0_6 = arith.constant 0 : index
    %c0_7 = arith.constant 0 : index
    %4 = vector.load %arg7[%c0_6, %c0_7] : memref<128x2048xf32, #tpu.memory_space<vmem>>, vector<128x2048xf32>
    %5 = arith.mulf %1, %1 : vector<256x16xf32>
    %cst = arith.constant dense<0.000000e+00> : vector<256xf32>
    %6 = vector.multi_reduction <add>, %5, %cst [1] : vector<256x16xf32> to vector<256xf32>
    %7 = vector.shape_cast %6 : vector<256xf32> to vector<256x1xf32>
    %8 = arith.mulf %3, %3 : vector<1x2048xf32>
    %cst_8 = arith.constant dense<0.000000e+00> : vector<1x128xf32>
    %9 = tpu.matmul %8, %4, %cst_8 {dimension_numbers = #tpu.dot_dimension_numbers<[1], [1], [0], [0], [0, 0, 1, 0], [], []>} : vector<1x2048xf32>, vector<128x2048xf32>, vector<1x128xf32> -> vector<1x128xf32>
    %cst_9 = arith.constant dense<0.000000e+00> : vector<256x128xf32>
    %10 = tpu.matmul %1, %2, %cst_9 {dimension_numbers = #tpu.dot_dimension_numbers<[1], [1], [0], [0], [0, 0, 1, 0], [], []>} : vector<256x16xf32>, vector<128x16xf32>, vector<256x128xf32> -> vector<256x128xf32>
    %11 = vector.broadcast %7 : vector<256x1xf32> to vector<256x128xf32>
    %12 = vector.broadcast %9 : vector<1x128xf32> to vector<256x128xf32>
    %13 = arith.addf %11, %12 : vector<256x128xf32>
    %cst_10 = arith.constant 2.000000e+00 : f32
    %14 = vector.broadcast %cst_10 : f32 to vector<256x128xf32>
    %15 = arith.mulf %14, %10 : vector<256x128xf32>
    %16 = arith.subf %13, %15 : vector<256x128xf32>
    %cst_11 = arith.constant 0.000000e+00 : f32
    %17 = vector.broadcast %cst_11 : f32 to vector<256x128xf32>
    %18 = arith.maximumf %16, %17 : vector<256x128xf32>
    %cst_12 = arith.constant 0.000000e+00 : f32
    %19 = arith.subf %cst_12, %0 : f32
    %20 = vector.broadcast %19 : f32 to vector<256x128xf32>
    %21 = arith.mulf %20, %18 : vector<256x128xf32>
    %22 = math.exp %21 : vector<256x128xf32>
    %cst_13 = arith.constant -2.000000e+00 : f32
    %23 = arith.mulf %cst_13, %0 : f32
    %24 = vector.broadcast %23 : f32 to vector<256x128xf32>
    %25 = arith.mulf %24, %22 : vector<256x128xf32>
    %c0_14 = arith.constant 0 : index
    %c0_15 = arith.constant 0 : index
    %26 = vector.load %arg6[%c0_14, %c0_15] : memref<16x2048xf32, #tpu.memory_space<vmem>>, vector<16x2048xf32>
    %cst_16 = arith.constant dense<0.000000e+00> : vector<256x2048xf32>
    %27 = tpu.matmul %1, %26, %cst_16 {dimension_numbers = #tpu.dot_dimension_numbers<[1], [0], [0], [1], [0, 0, 1, 1], [], []>} : vector<256x16xf32>, vector<16x2048xf32>, vector<256x2048xf32> -> vector<256x2048xf32>
    %cst_17 = arith.constant dense<0.000000e+00> : vector<256x2048xf32>
    %28 = tpu.matmul %25, %4, %cst_17 {dimension_numbers = #tpu.dot_dimension_numbers<[1], [0], [0], [1], [0, 0, 1, 1], [], []>} : vector<256x128xf32>, vector<128x2048xf32>, vector<256x2048xf32> -> vector<256x2048xf32>
    %29 = vector.broadcast %3 : vector<1x2048xf32> to vector<256x2048xf32>
    %30 = arith.subf %27, %29 : vector<256x2048xf32>
    %31 = arith.mulf %30, %28 : vector<256x2048xf32>
    %c0_18 = arith.constant 0 : index
    %c0_19 = arith.constant 0 : index
    %32 = vector.load %arg8[%c0_18, %c0_19] : memref<256x128xf32, #tpu.memory_space<vmem>>, vector<256x128xf32>
    tpu.vector_store %arg8[%c0_18, %c0_19], %22 {strides = array<i32>} : memref<256x128xf32, #tpu.memory_space<vmem>>, vector<256x128xf32>,
    %c0_20 = arith.constant 0 : index
    %c0_21 = arith.constant 0 : index
    %33 = vector.load %arg9[%c0_20, %c0_21] : memref<256x2048xf32, #tpu.memory_space<vmem>>, vector<256x2048xf32>
    tpu.vector_store %arg9[%c0_20, %c0_21], %30 {strides = array<i32>} : memref<256x2048xf32, #tpu.memory_space<vmem>>, vector<256x2048xf32>,
    %c0_22 = arith.constant 0 : index
    %c0_23 = arith.constant 0 : index
    %34 = vector.load %arg10[%c0_22, %c0_23] : memref<256x2048xf32, #tpu.memory_space<vmem>>, vector<256x2048xf32>
    tpu.vector_store %arg10[%c0_22, %c0_23], %31 {strides = array<i32>} : memref<256x2048xf32, #tpu.memory_space<vmem>>, vector<256x2048xf32>,
    return
  }
  func.func @transform_0(%arg0: i32, %arg1: i32) -> i32 {
    %c0_i32 = arith.constant 0 : i32
    %c0_i32_0 = arith.constant 0 : i32
    return %c0_i32 : i32
  }
  func.func @transform_1(%arg0: i32, %arg1: i32) -> (i32, i32) {
    %c0_i32 = arith.constant 0 : i32
    %c0_i32_0 = arith.constant 0 : i32
    return %arg0, %c0_i32 : i32, i32
  }
  func.func @transform_2(%arg0: i32, %arg1: i32) -> (i32, i32) {
    %c0_i32 = arith.constant 0 : i32
    %c0_i32_0 = arith.constant 0 : i32
    return %arg1, %c0_i32 : i32, i32
  }
  func.func @transform_3(%arg0: i32, %arg1: i32) -> (i32, i32) {
    %c0_i32 = arith.constant 0 : i32
    %c0_i32_0 = arith.constant 0 : i32
    return %c0_i32, %arg1 : i32, i32
  }
  func.func @transform_4(%arg0: i32, %arg1: i32) -> (i32, i32) {
    %c0_i32 = arith.constant 0 : i32
    %c0_i32_0 = arith.constant 0 : i32
    %c0_i32_1 = arith.constant 0 : i32
    return %c0_i32, %c0_i32_0 : i32, i32
  }
  func.func @transform_5(%arg0: i32, %arg1: i32) -> (i32, i32) {
    %c0_i32 = arith.constant 0 : i32
    %c0_i32_0 = arith.constant 0 : i32
    %c0_i32_1 = arith.constant 0 : i32
    return %c0_i32, %c0_i32_0 : i32, i32
  }
  func.func @transform_6(%arg0: i32, %arg1: i32) -> (i32, i32) {
    %c0_i32 = arith.constant 0 : i32
    return %arg0, %arg1 : i32, i32
  }
  func.func @transform_7(%arg0: i32, %arg1: i32) -> (i32, i32) {
    %c0_i32 = arith.constant 0 : i32
    return %arg0, %arg1 : i32, i32
  }
  func.func @transform_8(%arg0: i32, %arg1: i32) -> (i32, i32) {
    %c0_i32 = arith.constant 0 : i32
    return %arg0, %arg1 : i32, i32
  }
}

</mosaic_0001>

<bundles_post_ra>
// kernel: tpu_custom_call.1
= control target key start
LH: loop header
LB: loop body
LE: loop exit
PB: predicated region body
PF: predicated region fallthrough
CT: control target
= control target key end

     0   :  { %s14328_s0 = inlined_call_operand.<no memory space> [shape: f32[1], index: 0, kind: input, shape index: {}]   ;;  %s14329_s1 = inlined_call_operand.vmem [shape: f32[256,16], index: 1, kind: input, shape index: {}]   ;;  %s14330_s2 = inlined_call_operand.vmem [shape: f32[256,16], index: 2, kind: input, shape index: {}]   ;;  %s14331_s3 = inlined_call_operand.hbm [shape: f32[1,4096], index: 3, kind: input, shape index: {}]   ;;  %s14332_s4 = inlined_call_operand.hbm [shape: f32[16,2048], index: 4, kind: input, shape index: {}]   ;;  %s14333_s5 = inlined_call_operand.hbm [shape: f32[128,2048], index: 5, kind: input, shape index: {}]   ;;  %s14334_s6 = inlined_call_operand.hbm [shape: f32[256,256], index: 6, kind: output, shape index: {0}]   ;;  %s14335_s7 = inlined_call_operand.hbm [shape: f32[256,4096], index: 7, kind: output, shape index: {1}]   ;;  %s14336_s8 = inlined_call_operand.hbm [shape: f32[256,4096], index: 8, kind: output, shape index: {2}]  }
   0x1   :  { %14378 = sst [smem:[#allocation56_spill]] %s14329_s1 }
   0x2   :  { %14379 = sst [smem:[#allocation57_spill]] %s14330_s2 }
   0x3   :  { %14380 = sst [smem:[#allocation58_spill]] %s14331_s3 }
   0x4   :  { %14381 = sst [smem:[#allocation59_spill]] %s14332_s4 }
   0x5   :  { %14382 = sst [smem:[#allocation60_spill]] %s14333_s5 }
   0x6   :  { %14 = sst [smem:[#allocation2]] %s14328_s0 }
   0x7   :  { %15 = vsyncpa [#allocation4], 0 }
   0x8   :  { %17 = vsyncpa [#allocation4 + $0x1], 0 }
   0x9   :  { %18 = vsyncpa [#allocation7], 0 }
   0xa   :  { %19 = vsyncpa [#allocation5], 0 }
   0xb   :  { %21 = vsyncpa [#allocation5 + $0x1], 0 }
   0xc   :  { %22 = vsyncpa [#allocation11], 0 }
   0xd   :  { %24 = vsyncpa [#allocation11 + $0x1], 0  ;;  %s9695_s29 = smov 0   ;;  %s9697_s30 = smov 0  }
   0xe   :  { %s9699_s9 = smov 0   ;;  %s9701_s10 = smov 0  }
   0xf   :  { %s9703_s11 = smov 0   ;;  %s9705_s12 = smov 0  }
  0x10 LB: > { %s9726_s0 = sadd.s32 4294967295, %s9636_s12   ;;  %p7783_p0 = scmp.ge.s32.totalorder %s9636_s12, 1  ;;  %s9636_s12 = sphi %s9705_s12, %s30_s12   ;;  %s9632_s11 = sphi %s9703_s11, %s14477_s11   ;;  %s9628_s10 = sphi %s9701_s10, %s14476_s10   ;;  %s9624_s9 = sphi %s9699_s9, %s14475_s9   ;;  %s9620_s30 = sphi %s9697_s30, %s14474_s30   ;;  %s9616_s29 = sphi %s9695_s29, %s14473_s29  }
  0x11   : > { %p136_p1 = scmp.eq.s32.totalorder %s9726_s0, 0  ;;  %p272_p2 = scmp.lt.s32.totalorder %s9636_s12, 3 }
  0x12   : > { %s14383_s4 = sld [smem:[#allocation59_spill]]  ;;  %s9638_s17 = smov [#allocation6]  }
  0x13   : > { %p9734_p3 = pnand %p7783_p0, %p272_p2  ;;  %s297_s18 = sshll.u32 %s9638_s17, 4  ;;  %s298_s18 = int_to_ptr.vmem [resolvable:$true] %s297_s18 }
  0x14   : > { %p7787_p6 = scmp.ge.s32.totalorder %s9636_s12, 2  ;;  %s14385_s5 = sld [smem:[#allocation60_spill]] }
  0x15   : > { %p8393_p4 = pneg %p9734_p3  ;;  %s9639_s22 = smov 2048  }
  0x16   : > { %s9640_s23 = smov 128   ;;  %s9641_s24 = smov [#allocation8]  }
  0x17   : > { %p8394_p5 = pnand %p8393_p4, %p136_p1  ;;  %s311_s25 = sshll.u32 %s9641_s24, 4  ;;  %s312_s25 = int_to_ptr.vmem [resolvable:$true] %s311_s25 }
  0x18   : > { %s295_s15 = sshll.u32 %s14383_s4, 4  ;;  %s39_s26 = sadd.s32 1, %s9632_s11  ;;  %s296_s15 = int_to_ptr.hbm [resolvable:$true] %s295_s15 }
  0x19   : > { %8396 = dma.hbm_to_vmem [thread:$0]  (!%p8394_p5), %s296_s15, 4096, %s298_s18, [#allocation7], %s9639_s22, %s9639_s22, %s9640_s23  }
  0x1a   : > { %s309_s21 = sshll.u32 %s14385_s5, 4  ;;  %s14337_s27 = sadd.s32 4294967294, %s9636_s12   ;;  %s310_s21 = int_to_ptr.hbm [resolvable:$true] %s309_s21 }
  0x1b   : > { %8399 = dma.hbm_to_vmem [thread:$0]  (!%p8394_p5), %s310_s21, 32768, %s312_s25, [#allocation7], %s9639_s22, %s9639_s22, %s9640_s23  }
  0x1c   : > { %p40_p7 = scmp.ge.s32.totalorder %s39_s26, 2  ;;  %s122_s28 = sadd.s32 1, %s9624_s9 }
  0x1d   : > { %p129_p8 = scmp.ne.s32.totalorder %s9624_s9, %s9620_s30  ;;  %p130_p9 = scmp.eq.s32.totalorder %s9636_s12, 0 }
  0x1e   : > { %s14479_s26 = smov (%p40_p7, %s39_s26), 0  ;;  %p135_p10 = scmp.ne.s32.totalorder %s9620_s30, %s9616_s29 }
  0x1f   : > { %s119_s13 = ssub.s32 %s9632_s11, %s14479_s26  ;;  %p203_p11 = scmp.eq.s32.totalorder %s9726_s0, 1 }
  0x20   : > { %p120_p12 = scmp.eq.s32.totalorder %s119_s13, 0  ;;  %p9761_p13 = por %p136_p1, %p135_p10 }
  0x21   : > { %p9765_p0 = por %p203_p11, %p129_p8  ;;  %p209_p2 = scmp.eq.s32.totalorder %s14337_s27, 1 }
  0x22   : > { %s9772_s17 = scalar_select %p120_p12, %s9624_s9, %s122_s28  }
  0x23   : > { %p131_p4 = por %p130_p9, %p129_p8  ;;  %p9774_p5 = por %p209_p2, %p135_p10 }
  0x24   : > { %s334_s19 = sand.u32 1, %s9624_s9   ;;  %s7789_s20 = sshll.u32 %s9632_s11, 4 }
  0x25   : > { %p8416_p7 = scmp.lt.s32.totalorder %s9636_s12, 2  ;;  %s7788_s21 = sshll.u32 %s334_s19, 4 }
  0x26   : > { %s14389_s3 = sld [smem:[#allocation58_spill]]  ;;  %s338_s13 = scalar_lea.vmem [#allocation3], %s7788_s21 }
  0x27   : > { %s346_s4 = sshll.u32 %s338_s13, 4  ;;  %p8401_p11 = pnand %p8416_p7, %p131_p4  ;;  %s347_s4 = int_to_ptr.vmem [resolvable:$true] %s346_s4 }
  0x28   : > { %s335_s28 = scalar_lea.sflag [#allocation4], %s334_s19 }
  0x2a   : > { %355 = sbr.rel (%p9734_p3) target bundleno = 2583 (0xa17), region = 44 }
  0x2c   : > { %s342_s24 = scalar_lea.hbm %s14389_s3, %s7789_s20 }
  0x2d   : > { %s344_s25 = sshll.u32 %s342_s24, 4  ;;  %s345_s25 = int_to_ptr.hbm [resolvable:$true] %s344_s25 }
  0x2e   : > { %8403 = dma.hbm_to_vmem [thread:$0]  (!%p8401_p11), %s345_s25, 256, %s347_s4, %s335_s28  }
  0x2f   : > { %s9787_s27 = sand.u32 1, %s9620_s30  }
  0x30   : > { %s7791_s5 = sshll.u32 %s9787_s27, 4  ;;  %s358_s22 = scalar_lea.sflag [#allocation4], %s9787_s27 }
  0x31   : > { %s9791_s20 = scalar_lea.vmem [#allocation3], %s7791_s5 }
  0x32   : > { %9599 = dma.done.wait (%p9761_p13), %s358_s22, 256  }
  0x33   : > { %9601 = vsyncadd (%p9761_p13), %s358_s22, 4294967040 }
  0x34   : > { %9603 = dma.done.wait (%p136_p1), [#allocation7], 36864  }
  0x35   : > { %9605 = vsyncadd (%p136_p1), [#allocation7], 4294930432  ;;  %v734_v0 = vld [vmem:[#allocation8 + $0x780] sm:$0xff]  ;;  %v735_v1 = vld [vmem:[#allocation8 + $0x788] sm:$0xff]  ;;  %s14390_s1 = sld [smem:[#allocation56_spill]]  ;;  %vm782_vm0 = vcmask 130048  }
  0x36   : > { %v736_v2 = vld [vmem:[#allocation8 + $0x790] sm:$0xff]  ;;  %915 = vmatpush.xpose.msra.mxu0 %v734_v0  ;;  %935 = vmatpush.xpose.msra.mxu1 %v735_v1  ;;  %v737_v3 = vld [vmem:[#allocation8 + $0x798] sm:$0xff]  ;;  %v718_v4 = vld [vmem:[#allocation8 + $0x700] sm:$0xff]  ;;  %s7797_s19 = sshll.u32 %s9628_s10, 4  ;;  %s14392_s2 = sld [smem:[#allocation57_spill]] }
  0x37   : > { %955 = vmatpush.xpose.msra.mxu2 %v736_v2  ;;  %975 = vmatpush.xpose.msra.mxu3 %v737_v3  ;;  %v719_v5 = vld [vmem:[#allocation8 + $0x708] sm:$0xff]  ;;  %v720_v6 = vld [vmem:[#allocation8 + $0x710] sm:$0xff]  ;;  %v721_v7 = vld [vmem:[#allocation8 + $0x718] sm:$0xff]  ;;  %p10038_p1 = scmp.lt.s32.totalorder %s7797_s19, 31  ;;  %s7795_s28 = sshll.u32 %s9787_s27, 12 }
  0x38   : > { %v702_v8 = vld [vmem:[#allocation8 + $0x680] sm:$0xff]  ;;  %v703_v9 = vld [vmem:[#allocation8 + $0x688] sm:$0xff]  ;;  %v704_v10 = vld [vmem:[#allocation8 + $0x690] sm:$0xff]  ;;  %s10273_s22 = scalar_lea.vmem [#allocation10], %s7795_s28  ;;  %s7794_s16 = sshll.u32 %s9787_s27, 8 }
  0x39   : > { %v705_v11 = vld [vmem:[#allocation8 + $0x698] sm:$0xff]  ;;  %v686_v12 = vld [vmem:[#allocation8 + $0x600] sm:$0xff]  ;;  %v687_v13 = vld [vmem:[#allocation8 + $0x608] sm:$0xff]  ;;  %s14481_s19 = smov (!%p10038_p1, %s7797_s19), 31  ;;  %s14377_s13 = sshll.u32 %s9628_s10, 7 }
  0x3a   : > { %916 = vmatpush.xpose.msra.mxu0 %v718_v4  ;;  %936 = vmatpush.xpose.msra.mxu1 %v719_v5  ;;  %v688_v14 = vld [vmem:[#allocation8 + $0x610] sm:$0xff]  ;;  %v689_v15 = vld [vmem:[#allocation8 + $0x618] sm:$0xff]  ;;  %v670_v16 = vld [vmem:[#allocation8 + $0x580] sm:$0xff]  ;;  %s7798_s4 = sshll.u32 %s14481_s19, 3  ;;  %s7560_s19 = sshll.u32 %s10273_s22, 4  ;;  %s14120_s19 = int_to_ptr.vmem [resolvable:$true] %s7560_s19 }
  0x3b   : > { %956 = vmatpush.xpose.msra.mxu2 %v720_v6  ;;  %976 = vmatpush.xpose.msra.mxu3 %v721_v7  ;;  %v671_v17 = vld [vmem:[#allocation8 + $0x588] sm:$0xff]  ;;  %v672_v18 = vld [vmem:[#allocation8 + $0x590] sm:$0xff]  ;;  %v673_v19 = vld [vmem:[#allocation8 + $0x598] sm:$0xff]  ;;  %s9510_s3 = scalar_lea.hbm %s14335_s7, 8192 }
  0x3c   : > { %v654_v20 = vld [vmem:[#allocation8 + $0x500] sm:$0xff]  ;;  %v655_v21 = vld [vmem:[#allocation8 + $0x508] sm:$0xff]  ;;  %v656_v22 = vld [vmem:[#allocation8 + $0x510] sm:$0xff]  ;;  %s10061_s14 = scalar_lea.vmem %s14392_s2, %s7798_s4  ;;  %s10357_s4 = sld [smem:[#allocation2]] }
  0x3d   : > { %v657_v23 = vld [vmem:[#allocation8 + $0x518] sm:$0xff]  ;;  %v638_v24 = vld [vmem:[#allocation8 + $0x480] sm:$0xff]  ;;  %v639_v25 = vld [vmem:[#allocation8 + $0x488] sm:$0xff] }
  0x3e   : > { %917 = vmatpush.xpose.msra.mxu0 %v702_v8  ;;  %937 = vmatpush.xpose.msra.mxu1 %v703_v9  ;;  %v640_v26 = vld [vmem:[#allocation8 + $0x490] sm:$0xff]  ;;  %v641_v27 = vld [vmem:[#allocation8 + $0x498] sm:$0xff]  ;;  %v622_v28 = vld [vmem:[#allocation8 + $0x400] sm:$0xff] }
  0x3f   : > { %957 = vmatpush.xpose.msra.mxu2 %v704_v10  ;;  %977 = vmatpush.xpose.msra.mxu3 %v705_v11  ;;  %v623_v29 = vld [vmem:[#allocation8 + $0x408] sm:$0xff]  ;;  %v624_v30 = vld [vmem:[#allocation8 + $0x410] sm:$0xff]  ;;  %v625_v31 = vld [vmem:[#allocation8 + $0x418] sm:$0xff] }
  0x40   : > { %v606_v32 = vld [vmem:[#allocation8 + $0x380] sm:$0xff]  ;;  %v607_v33 = vld [vmem:[#allocation8 + $0x388] sm:$0xff]  ;;  %v608_v34 = vld [vmem:[#allocation8 + $0x390] sm:$0xff] }
  0x41   : > { %v609_v35 = vld [vmem:[#allocation8 + $0x398] sm:$0xff]  ;;  %v590_v36 = vld [vmem:[#allocation8 + $0x300] sm:$0xff]  ;;  %v591_v37 = vld [vmem:[#allocation8 + $0x308] sm:$0xff] }
  0x42   : > { %918 = vmatpush.xpose.msra.mxu0 %v686_v12  ;;  %938 = vmatpush.xpose.msra.mxu1 %v687_v13  ;;  %v592_v38 = vld [vmem:[#allocation8 + $0x310] sm:$0xff]  ;;  %v593_v39 = vld [vmem:[#allocation8 + $0x318] sm:$0xff]  ;;  %v574_v40 = vld [vmem:[#allocation8 + $0x280] sm:$0xff]  ;;  %s1621_s5 = ssub.f32 0.0, %s10357_s4  ;;  %s1719_s23 = smul.f32 -2.0, %s10357_s4 }
  0x43   : > { %958 = vmatpush.xpose.msra.mxu2 %v688_v14  ;;  %978 = vmatpush.xpose.msra.mxu3 %v689_v15  ;;  %v575_v41 = vld [vmem:[#allocation8 + $0x288] sm:$0xff]  ;;  %v576_v42 = vld [vmem:[#allocation8 + $0x290] sm:$0xff]  ;;  %v577_v43 = vld [vmem:[#allocation8 + $0x298] sm:$0xff]  ;;  %s12674_s4 = scalar_lea.vmem [#allocation12], %s7795_s28  ;;  %s7520_s28 = sand.u32 1, %s9726_s0  }
  0x44   : > { %v558_v44 = vld [vmem:[#allocation8 + $0x200] sm:$0xff]  ;;  %v559_v45 = vld [vmem:[#allocation8 + $0x208] sm:$0xff]  ;;  %v560_v46 = vld [vmem:[#allocation8 + $0x210] sm:$0xff]  ;;  %s8362_s0 = sshll.u32 %s9628_s10, 3 }
  0x45   : > { %v561_v47 = vld [vmem:[#allocation8 + $0x218] sm:$0xff]  ;;  %v542_v48 = vld [vmem:[#allocation8 + $0x180] sm:$0xff]  ;;  %v543_v49 = vld [vmem:[#allocation8 + $0x188] sm:$0xff]  ;;  %s7539_s25 = scalar_lea.hbm %s14334_s6, %s8362_s0 }
  0x46   : > { %919 = vmatpush.xpose.msra.mxu0 %v670_v16  ;;  %939 = vmatpush.xpose.msra.mxu1 %v671_v17  ;;  %v544_v50 = vld [vmem:[#allocation8 + $0x190] sm:$0xff]  ;;  %v545_v51 = vld [vmem:[#allocation8 + $0x198] sm:$0xff]  ;;  %v526_v52 = vld [vmem:[#allocation8 + $0x100] sm:$0xff] }
  0x47   : > { %959 = vmatpush.xpose.msra.mxu2 %v672_v18  ;;  %979 = vmatpush.xpose.msra.mxu3 %v673_v19  ;;  %v527_v53 = vld [vmem:[#allocation8 + $0x108] sm:$0xff]  ;;  %v528_v54 = vld [vmem:[#allocation8 + $0x110] sm:$0xff]  ;;  %v529_v55 = vld [vmem:[#allocation8 + $0x118] sm:$0xff] }
  0x48   : > { %v510_v56 = vld [vmem:[#allocation8 + $0x80] sm:$0xff]  ;;  %v511_v57 = vld [vmem:[#allocation8 + $0x88] sm:$0xff]  ;;  %v512_v58 = vld [vmem:[#allocation8 + $0x90] sm:$0xff] }
  0x49   : > { %v513_v59 = vld [vmem:[#allocation8 + $0x98] sm:$0xff]  ;;  %v494_v60 = vld [vmem:[#allocation8] sm:$0xff]  ;;  %v495_v61 = vld [vmem:[#allocation8 + $0x8] sm:$0xff] }
  0x4a   : > { %920 = vmatpush.xpose.msra.mxu0 %v654_v20  ;;  %940 = vmatpush.xpose.msra.mxu1 %v655_v21  ;;  %v496_v62 = vld [vmem:[#allocation8 + $0x10] sm:$0xff]  ;;  %v497_v63 = vld [vmem:[#allocation8 + $0x18] sm:$0xff]  ;;  %v738_v0 = vld [vmem:[#allocation8 + $0x7a0] sm:$0xff] }
  0x4b   : > { %960 = vmatpush.xpose.msra.mxu2 %v656_v22  ;;  %980 = vmatpush.xpose.msra.mxu3 %v657_v23  ;;  %v739_v1 = vld [vmem:[#allocation8 + $0x7a8] sm:$0xff]  ;;  %v740_v2 = vld [vmem:[#allocation8 + $0x7b0] sm:$0xff]  ;;  %v741_v3 = vld [vmem:[#allocation8 + $0x7b8] sm:$0xff] }
  0x4c   : > { %v722_v4 = vld [vmem:[#allocation8 + $0x720] sm:$0xff]  ;;  %v723_v5 = vld [vmem:[#allocation8 + $0x728] sm:$0xff]  ;;  %v724_v6 = vld [vmem:[#allocation8 + $0x730] sm:$0xff] }
  0x4d   : > { %v725_v7 = vld [vmem:[#allocation8 + $0x738] sm:$0xff]  ;;  %v706_v8 = vld [vmem:[#allocation8 + $0x6a0] sm:$0xff]  ;;  %v707_v9 = vld [vmem:[#allocation8 + $0x6a8] sm:$0xff] }
  0x4e   : > { %921 = vmatpush.xpose.msra.mxu0 %v638_v24  ;;  %941 = vmatpush.xpose.msra.mxu1 %v639_v25  ;;  %v708_v10 = vld [vmem:[#allocation8 + $0x6b0] sm:$0xff]  ;;  %v709_v11 = vld [vmem:[#allocation8 + $0x6b8] sm:$0xff]  ;;  %v690_v12 = vld [vmem:[#allocation8 + $0x620] sm:$0xff] }
  0x4f   : > { %961 = vmatpush.xpose.msra.mxu2 %v640_v26  ;;  %981 = vmatpush.xpose.msra.mxu3 %v641_v27  ;;  %v691_v13 = vld [vmem:[#allocation8 + $0x628] sm:$0xff]  ;;  %v692_v14 = vld [vmem:[#allocation8 + $0x630] sm:$0xff]  ;;  %v693_v15 = vld [vmem:[#allocation8 + $0x638] sm:$0xff] }
  0x50   : > { %v674_v16 = vld [vmem:[#allocation8 + $0x5a0] sm:$0xff]  ;;  %v675_v17 = vld [vmem:[#allocation8 + $0x5a8] sm:$0xff]  ;;  %v676_v18 = vld [vmem:[#allocation8 + $0x5b0] sm:$0xff] }
  0x51   : > { %v677_v19 = vld [vmem:[#allocation8 + $0x5b8] sm:$0xff]  ;;  %v658_v20 = vld [vmem:[#allocation8 + $0x520] sm:$0xff]  ;;  %v659_v21 = vld [vmem:[#allocation8 + $0x528] sm:$0xff] }
  0x52   : > { %922 = vmatpush.xpose.msra.mxu0 %v622_v28  ;;  %942 = vmatpush.xpose.msra.mxu1 %v623_v29  ;;  %v660_v22 = vld [vmem:[#allocation8 + $0x530] sm:$0xff]  ;;  %v661_v23 = vld [vmem:[#allocation8 + $0x538] sm:$0xff]  ;;  %v642_v24 = vld [vmem:[#allocation8 + $0x4a0] sm:$0xff] }
  0x53   : > { %962 = vmatpush.xpose.msra.mxu2 %v624_v30  ;;  %982 = vmatpush.xpose.msra.mxu3 %v625_v31  ;;  %v643_v25 = vld [vmem:[#allocation8 + $0x4a8] sm:$0xff]  ;;  %v644_v26 = vld [vmem:[#allocation8 + $0x4b0] sm:$0xff]  ;;  %v645_v27 = vld [vmem:[#allocation8 + $0x4b8] sm:$0xff] }
  0x54   : > { %v492_v28 = vld [vmem:[%s9791_s20] sm:$0xff]  ;;  %v627_v31 = vld [vmem:[#allocation8 + $0x428] sm:$0xff] }
  0x55   : > { %v9802_v29 = vmul.f32 %v492_v28, %v492_v28  ;;  %v626_v30 = vld [vmem:[#allocation8 + $0x420] sm:$0xff]  ;;  %v680_v28 = vld [vmem:[#allocation8 + $0x5d0] sm:$0xff] }
  0x56   : > { %923 = vmatpush.xpose.msra.mxu0 %v606_v32  ;;  %943 = vmatpush.xpose.msra.mxu1 %v607_v33  ;;  %v628_v32 = vld [vmem:[#allocation8 + $0x430] sm:$0xff]  ;;  %v629_v33 = vld [vmem:[#allocation8 + $0x438] sm:$0xff] }
  0x57   : > { %963 = vmatpush.xpose.msra.mxu2 %v608_v34  ;;  %983 = vmatpush.xpose.msra.mxu3 %v609_v35  ;;  %v885_v34 = vperm.slane %v9802_v29, 2  ;;  %v883_v35 = vperm.slane %v9802_v29, 0 }
  0x5a   : > { %924 = vmatpush.xpose.msra.mxu0 %v590_v36  ;;  %944 = vmatpush.xpose.msra.mxu1 %v591_v37  ;;  %v884_v36 = vperm.slane %v9802_v29, 1  ;;  %v886_v37 = vperm.slane %v9802_v29, 3 }
  0x5b   : > { %964 = vmatpush.xpose.msra.mxu2 %v592_v38  ;;  %984 = vmatpush.xpose.msra.mxu3 %v593_v39  ;;  %v610_v38 = vld [vmem:[#allocation8 + $0x3a0] sm:$0xff]  ;;  %v611_v39 = vld [vmem:[#allocation8 + $0x3a8] sm:$0xff] }
  0x5e   : > { %925 = vmatpush.xpose.msra.mxu0 %v574_v40  ;;  %945 = vmatpush.xpose.msra.mxu1 %v575_v41  ;;  %v612_v40 = vld [vmem:[#allocation8 + $0x3b0] sm:$0xff]  ;;  %v613_v41 = vld [vmem:[#allocation8 + $0x3b8] sm:$0xff] }
  0x5f   : > { %965 = vmatpush.xpose.msra.mxu2 %v576_v42  ;;  %985 = vmatpush.xpose.msra.mxu3 %v577_v43  ;;  %v594_v42 = vld [vmem:[#allocation8 + $0x320] sm:$0xff]  ;;  %v595_v43 = vld [vmem:[#allocation8 + $0x328] sm:$0xff] }
  0x62   : > { %926 = vmatpush.xpose.msra.mxu0 %v558_v44  ;;  %946 = vmatpush.xpose.msra.mxu1 %v559_v45  ;;  %v596_v44 = vld [vmem:[#allocation8 + $0x330] sm:$0xff]  ;;  %v597_v45 = vld [vmem:[#allocation8 + $0x338] sm:$0xff] }
  0x63   : > { %966 = vmatpush.xpose.msra.mxu2 %v560_v46  ;;  %986 = vmatpush.xpose.msra.mxu3 %v561_v47  ;;  %v578_v46 = vld [vmem:[#allocation8 + $0x2a0] sm:$0xff]  ;;  %v579_v47 = vld [vmem:[#allocation8 + $0x2a8] sm:$0xff] }
  0x66   : > { %927 = vmatpush.xpose.msra.mxu0 %v542_v48  ;;  %947 = vmatpush.xpose.msra.mxu1 %v543_v49  ;;  %v580_v48 = vld [vmem:[#allocation8 + $0x2b0] sm:$0xff]  ;;  %v581_v49 = vld [vmem:[#allocation8 + $0x2b8] sm:$0xff] }
  0x67   : > { %967 = vmatpush.xpose.msra.mxu2 %v544_v50  ;;  %987 = vmatpush.xpose.msra.mxu3 %v545_v51  ;;  %v562_v50 = vld [vmem:[#allocation8 + $0x220] sm:$0xff]  ;;  %v563_v51 = vld [vmem:[#allocation8 + $0x228] sm:$0xff] }
  0x6a   : > { %928 = vmatpush.xpose.msra.mxu0 %v526_v52  ;;  %948 = vmatpush.xpose.msra.mxu1 %v527_v53  ;;  %v564_v52 = vld [vmem:[#allocation8 + $0x230] sm:$0xff]  ;;  %v565_v53 = vld [vmem:[#allocation8 + $0x238] sm:$0xff] }
  0x6b   : > { %968 = vmatpush.xpose.msra.mxu2 %v528_v54  ;;  %988 = vmatpush.xpose.msra.mxu3 %v529_v55  ;;  %v546_v54 = vld [vmem:[#allocation8 + $0x1a0] sm:$0xff]  ;;  %v547_v55 = vld [vmem:[#allocation8 + $0x1a8] sm:$0xff] }
  0x6e   : > { %929 = vmatpush.xpose.msra.mxu0 %v510_v56  ;;  %949 = vmatpush.xpose.msra.mxu1 %v511_v57  ;;  %v548_v56 = vld [vmem:[#allocation8 + $0x1b0] sm:$0xff]  ;;  %v549_v57 = vld [vmem:[#allocation8 + $0x1b8] sm:$0xff] }
  0x6f   : > { %969 = vmatpush.xpose.msra.mxu2 %v512_v58  ;;  %989 = vmatpush.xpose.msra.mxu3 %v513_v59  ;;  %v530_v58 = vld [vmem:[#allocation8 + $0x120] sm:$0xff]  ;;  %v531_v59 = vld [vmem:[#allocation8 + $0x128] sm:$0xff] }
  0x72   : > { %930 = vmatpush.xpose.msra.mxu0 %v494_v60  ;;  %950 = vmatpush.xpose.msra.mxu1 %v495_v61  ;;  %v532_v60 = vld [vmem:[#allocation8 + $0x130] sm:$0xff]  ;;  %v533_v61 = vld [vmem:[#allocation8 + $0x138] sm:$0xff] }
  0x73   : > { %970 = vmatpush.xpose.msra.mxu2 %v496_v62  ;;  %990 = vmatpush.xpose.msra.mxu3 %v497_v63  ;;  %v514_v62 = vld [vmem:[#allocation8 + $0xa0] sm:$0xff]  ;;  %v515_v63 = vld [vmem:[#allocation8 + $0xa8] sm:$0xff] }
  0x75   : > { %931 = vmatmul.f32.vlgmr.msra.gmra.mxu0 %v883_v35  ;;  %951 = vmatmul.f32.vlgmr.msra.gmra.mxu1 %v884_v36  ;;  %v647_v35 = vld [vmem:[#allocation8 + $0x4c8] sm:$0xff]  ;;  %v648_v36 = vld [vmem:[#allocation8 + $0x4d0] sm:$0xff] }
  0x76   : > { %995 = vmatpush.xpose.msrb.mxu0 %v738_v0  ;;  %1015 = vmatpush.xpose.msrb.mxu1 %v739_v1  ;;  %v516_v0 = vld [vmem:[#allocation8 + $0xb0] sm:$0xff]  ;;  %v517_v1 = vld [vmem:[#allocation8 + $0xb8] sm:$0xff] }
  0x77   : > { %1035 = vmatpush.xpose.msrb.mxu2 %v740_v2  ;;  %1055 = vmatpush.xpose.msrb.mxu3 %v741_v3  ;;  %v498_v2 = vld [vmem:[#allocation8 + $0x20] sm:$0xff]  ;;  %v499_v3 = vld [vmem:[#allocation8 + $0x28] sm:$0xff] }
  0x78   : > { %971 = vmatmul.f32.vlgmr.msra.gmra.mxu2 %v885_v34  ;;  %991 = vmatmul.f32.vlgmr.msra.gmra.mxu3 %v886_v37  ;;  %v646_v34 = vld [vmem:[#allocation8 + $0x4c0] sm:$0xff]  ;;  %v649_v37 = vld [vmem:[#allocation8 + $0x4d8] sm:$0xff] }
  0x7a   : > { %996 = vmatpush.xpose.msrb.mxu0 %v722_v4  ;;  %1016 = vmatpush.xpose.msrb.mxu1 %v723_v5  ;;  %v500_v4 = vld [vmem:[#allocation8 + $0x30] sm:$0xff]  ;;  %v501_v5 = vld [vmem:[#allocation8 + $0x38] sm:$0xff] }
  0x7b   : > { %1036 = vmatpush.xpose.msrb.mxu2 %v724_v6  ;;  %1056 = vmatpush.xpose.msrb.mxu3 %v725_v7  ;;  %v742_v6 = vld [vmem:[#allocation8 + $0x7c0] sm:$0xff]  ;;  %v743_v7 = vld [vmem:[#allocation8 + $0x7c8] sm:$0xff] }
  0x7e   : > { %997 = vmatpush.xpose.msrb.mxu0 %v706_v8  ;;  %1017 = vmatpush.xpose.msrb.mxu1 %v707_v9  ;;  %v744_v8 = vld [vmem:[#allocation8 + $0x7d0] sm:$0xff]  ;;  %v745_v9 = vld [vmem:[#allocation8 + $0x7d8] sm:$0xff] }
  0x7f   : > { %1037 = vmatpush.xpose.msrb.mxu2 %v708_v10  ;;  %1057 = vmatpush.xpose.msrb.mxu3 %v709_v11  ;;  %v889_v10 = vperm.slane %v9802_v29, 6  ;;  %v887_v11 = vperm.slane %v9802_v29, 4 }
  0x82   : > { %998 = vmatpush.xpose.msrb.mxu0 %v690_v12  ;;  %1018 = vmatpush.xpose.msrb.mxu1 %v691_v13  ;;  %v890_v12 = vperm.slane %v9802_v29, 7  ;;  %v888_v13 = vperm.slane %v9802_v29, 5  ;;  %v681_v29 = vld [vmem:[#allocation8 + $0x5d8] sm:$0xff] }
  0x83   : > { %1038 = vmatpush.xpose.msrb.mxu2 %v692_v14  ;;  %1058 = vmatpush.xpose.msrb.mxu3 %v693_v15  ;;  %v726_v14 = vld [vmem:[#allocation8 + $0x740] sm:$0xff]  ;;  %v727_v15 = vld [vmem:[#allocation8 + $0x748] sm:$0xff] }
  0x86   : > { %999 = vmatpush.xpose.msrb.mxu0 %v674_v16  ;;  %1019 = vmatpush.xpose.msrb.mxu1 %v675_v17  ;;  %v728_v16 = vld [vmem:[#allocation8 + $0x750] sm:$0xff]  ;;  %v729_v17 = vld [vmem:[#allocation8 + $0x758] sm:$0xff] }
  0x87   : > { %1039 = vmatpush.xpose.msrb.mxu2 %v676_v18  ;;  %1059 = vmatpush.xpose.msrb.mxu3 %v677_v19  ;;  %v710_v18 = vld [vmem:[#allocation8 + $0x6c0] sm:$0xff]  ;;  %v711_v19 = vld [vmem:[#allocation8 + $0x6c8] sm:$0xff] }
  0x8a   : > { %1000 = vmatpush.xpose.msrb.mxu0 %v658_v20  ;;  %1020 = vmatpush.xpose.msrb.mxu1 %v659_v21  ;;  %v712_v20 = vld [vmem:[#allocation8 + $0x6d0] sm:$0xff]  ;;  %v713_v21 = vld [vmem:[#allocation8 + $0x6d8] sm:$0xff] }
  0x8b   : > { %1040 = vmatpush.xpose.msrb.mxu2 %v660_v22  ;;  %1060 = vmatpush.xpose.msrb.mxu3 %v661_v23  ;;  %v694_v22 = vld [vmem:[#allocation8 + $0x640] sm:$0xff]  ;;  %v695_v23 = vld [vmem:[#allocation8 + $0x648] sm:$0xff] }
  0x8e   : > { %1001 = vmatpush.xpose.msrb.mxu0 %v642_v24  ;;  %1021 = vmatpush.xpose.msrb.mxu1 %v643_v25  ;;  %v696_v24 = vld [vmem:[#allocation8 + $0x650] sm:$0xff]  ;;  %v697_v25 = vld [vmem:[#allocation8 + $0x658] sm:$0xff] }
  0x8f   : > { %1041 = vmatpush.xpose.msrb.mxu2 %v644_v26  ;;  %1061 = vmatpush.xpose.msrb.mxu3 %v645_v27  ;;  %v678_v26 = vld [vmem:[#allocation8 + $0x5c0] sm:$0xff]  ;;  %v679_v27 = vld [vmem:[#allocation8 + $0x5c8] sm:$0xff] }
  0x92   : > { %1002 = vmatpush.xpose.msrb.mxu0 %v626_v30  ;;  %1022 = vmatpush.xpose.msrb.mxu1 %v627_v31  ;;  %v662_v30 = vld [vmem:[#allocation8 + $0x540] sm:$0xff]  ;;  %v663_v31 = vld [vmem:[#allocation8 + $0x548] sm:$0xff] }
  0x93   : > { %1042 = vmatpush.xpose.msrb.mxu2 %v628_v32  ;;  %1062 = vmatpush.xpose.msrb.mxu3 %v629_v33  ;;  %v664_v32 = vld [vmem:[#allocation8 + $0x550] sm:$0xff]  ;;  %v665_v33 = vld [vmem:[#allocation8 + $0x558] sm:$0xff] }
  0x96   : > { %1003 = vmatpush.xpose.msrb.mxu0 %v610_v38  ;;  %1023 = vmatpush.xpose.msrb.mxu1 %v611_v39  ;;  %v630_v38 = vld [vmem:[#allocation8 + $0x440] sm:$0xff]  ;;  %v631_v39 = vld [vmem:[#allocation8 + $0x448] sm:$0xff] }
  0x97   : > { %1043 = vmatpush.xpose.msrb.mxu2 %v612_v40  ;;  %1063 = vmatpush.xpose.msrb.mxu3 %v613_v41  ;;  %v632_v40 = vld [vmem:[#allocation8 + $0x450] sm:$0xff]  ;;  %v633_v41 = vld [vmem:[#allocation8 + $0x458] sm:$0xff] }
  0x9a   : > { %1004 = vmatpush.xpose.msrb.mxu0 %v594_v42  ;;  %1024 = vmatpush.xpose.msrb.mxu1 %v595_v43  ;;  %v614_v42 = vld [vmem:[#allocation8 + $0x3c0] sm:$0xff]  ;;  %v615_v43 = vld [vmem:[#allocation8 + $0x3c8] sm:$0xff] }
  0x9b   : > { %1044 = vmatpush.xpose.msrb.mxu2 %v596_v44  ;;  %1064 = vmatpush.xpose.msrb.mxu3 %v597_v45  ;;  %v616_v44 = vld [vmem:[#allocation8 + $0x3d0] sm:$0xff]  ;;  %v617_v45 = vld [vmem:[#allocation8 + $0x3d8] sm:$0xff] }
  0x9e   : > { %1005 = vmatpush.xpose.msrb.mxu0 %v578_v46  ;;  %1025 = vmatpush.xpose.msrb.mxu1 %v579_v47  ;;  %v9815_v46 = vld [vmem:[%s14390_s1 + $0x10] sm:$0xff]  ;;  %v9820_v47 = vld [vmem:[%s14390_s1] sm:$0xff] }
  0x9f   : > { %1045 = vmatpush.xpose.msrb.mxu2 %v580_v48  ;;  %1065 = vmatpush.xpose.msrb.mxu3 %v581_v49  ;;  %v598_v48 = vld [vmem:[#allocation8 + $0x340] sm:$0xff]  ;;  %v599_v49 = vld [vmem:[#allocation8 + $0x348] sm:$0xff] }
  0xa2   : > { %1006 = vmatpush.xpose.msrb.mxu0 %v562_v50  ;;  %1026 = vmatpush.xpose.msrb.mxu1 %v563_v51  ;;  %v600_v50 = vld [vmem:[#allocation8 + $0x350] sm:$0xff]  ;;  %v601_v51 = vld [vmem:[#allocation8 + $0x358] sm:$0xff] }
  0xa3   : > { %1046 = vmatpush.xpose.msrb.mxu2 %v564_v52  ;;  %1066 = vmatpush.xpose.msrb.mxu3 %v565_v53  ;;  %v752_v52 = vmul.f32 %v9815_v46, %v9815_v46  ;;  %v750_v53 = vmul.f32 %v9820_v47, %v9820_v47 }
  0xa6   : > { %1007 = vmatpush.xpose.msrb.mxu0 %v546_v54  ;;  %1027 = vmatpush.xpose.msrb.mxu1 %v547_v55  ;;  %v582_v54 = vld [vmem:[#allocation8 + $0x2c0] sm:$0xff]  ;;  %v583_v55 = vld [vmem:[#allocation8 + $0x2c8] sm:$0xff] }
  0xa7   : > { %1047 = vmatpush.xpose.msrb.mxu2 %v548_v56  ;;  %1067 = vmatpush.xpose.msrb.mxu3 %v549_v57  ;;  %v789_v56 = vsel %vm782_vm0, %v752_v52, 0.0  ;;  %v783_v57 = vsel %vm782_vm0, %v750_v53, 0.0  ;;  %v730_v52 = vld [vmem:[#allocation8 + $0x760] sm:$0xff]  ;;  %v731_v53 = vld [vmem:[#allocation8 + $0x768] sm:$0xff] }
  0xa8   : > { %790 = vadd.xlane.f32.xlu1 %v789_v56  ;;  %784 = vadd.xlane.f32.xlu0 %v783_v57 }
  0xaa   : > { %1008 = vmatpush.xpose.msrb.mxu0 %v530_v58  ;;  %1028 = vmatpush.xpose.msrb.mxu1 %v531_v59  ;;  %v584_v58 = vld [vmem:[#allocation8 + $0x2d0] sm:$0xff]  ;;  %v585_v59 = vld [vmem:[#allocation8 + $0x2d8] sm:$0xff] }
  0xab   : > { %1048 = vmatpush.xpose.msrb.mxu2 %v532_v60  ;;  %1068 = vmatpush.xpose.msrb.mxu3 %v533_v61  ;;  %v9831_v60 = vld [vmem:[%s14390_s1 + $0x20] sm:$0xff]  ;;  %v9836_v61 = vld [vmem:[%s14390_s1 + $0x18] sm:$0xff] }
  0xae   : > { %1009 = vmatpush.xpose.msrb.mxu0 %v514_v62  ;;  %1029 = vmatpush.xpose.msrb.mxu1 %v515_v63  ;;  %v9841_v62 = vld [vmem:[%s14390_s1 + $0x8] sm:$0xff]  ;;  %v566_v63 = vld [vmem:[#allocation8 + $0x240] sm:$0xff] }
  0xaf   : > { %1049 = vmatpush.xpose.msrb.mxu2 %v516_v0  ;;  %1069 = vmatpush.xpose.msrb.mxu3 %v517_v1  ;;  %v567_v0 = vld [vmem:[#allocation8 + $0x248] sm:$0xff]  ;;  %v754_v1 = vmul.f32 %v9831_v60, %v9831_v60 }
  0xb2   : > { %1010 = vmatpush.xpose.msrb.mxu0 %v498_v2  ;;  %1030 = vmatpush.xpose.msrb.mxu1 %v499_v3  ;;  %v753_v2 = vmul.f32 %v9836_v61, %v9836_v61  ;;  %v751_v3 = vmul.f32 %v9841_v62, %v9841_v62 }
  0xb3   : > { %1050 = vmatpush.xpose.msrb.mxu2 %v500_v4  ;;  %1070 = vmatpush.xpose.msrb.mxu3 %v501_v5  ;;  %v568_v4 = vld [vmem:[#allocation8 + $0x250] sm:$0xff]  ;;  %v569_v5 = vld [vmem:[#allocation8 + $0x258] sm:$0xff] }
  0xb5   : > { %1011 = vmatmul.f32.vlgmr.msrb.gmra.mxu0 %v887_v11  ;;  %1031 = vmatmul.f32.vlgmr.msrb.gmra.mxu1 %v888_v13  ;;  %v552_v11 = vld [vmem:[#allocation8 + $0x1d0] sm:$0xff]  ;;  %v9855_v13 = vld [vmem:[%s14390_s1 + $0x28] sm:$0xff] }
  0xb6   : > { %1075 = vmatpush.xpose.msra.mxu0 %v742_v6  ;;  %1095 = vmatpush.xpose.msra.mxu1 %v743_v7  ;;  %v795_v6 = vsel %vm782_vm0, %v754_v1, 0.0  ;;  %v792_v7 = vsel %vm782_vm0, %v753_v2, 0.0  ;;  %v715_v1 = vld [vmem:[#allocation8 + $0x6e8] sm:$0xff]  ;;  %v9920_v2 = vld [vmem:[%s14390_s1 + $0x60] sm:$0xff] }
  0xb7   : > { %1115 = vmatpush.xpose.msra.mxu2 %v744_v8  ;;  %1135 = vmatpush.xpose.msra.mxu3 %v745_v9  ;;  %v786_v8 = vsel %vm782_vm0, %v751_v3, 0.0  ;;  %v550_v9 = vld [vmem:[#allocation8 + $0x1c0] sm:$0xff]  ;;  %v716_v3 = vld [vmem:[#allocation8 + $0x6f0] sm:$0xff] }
  0xb8   : > { %1051 = vmatmul.f32.vlgmr.msrb.gmra.mxu2 %v889_v10  ;;  %1071 = vmatmul.f32.vlgmr.msrb.gmra.mxu3 %v890_v12  ;;  %v551_v10 = vld [vmem:[#allocation8 + $0x1c8] sm:$0xff]  ;;  %v553_v12 = vld [vmem:[#allocation8 + $0x1d8] sm:$0xff] }
  0xb9   : > { %796 = vadd.xlane.f32.xlu2 %v795_v6  ;;  %793 = vadd.xlane.f32.xlu1 %v792_v7  ;;  %v762_v7 = vmul.f32 %v9920_v2, %v9920_v2 }
  0xba   : > { %1076 = vmatpush.xpose.msra.mxu0 %v726_v14  ;;  %1096 = vmatpush.xpose.msra.mxu1 %v727_v15  ;;  %v9860_v14 = vld [vmem:[%s14390_s1 + $0x38] sm:$0xff]  ;;  %v9865_v15 = vld [vmem:[%s14390_s1 + $0x30] sm:$0xff] }
  0xbb   : > { %1116 = vmatpush.xpose.msra.mxu2 %v728_v16  ;;  %1136 = vmatpush.xpose.msra.mxu3 %v729_v17  ;;  %v534_v16 = vld [vmem:[#allocation8 + $0x140] sm:$0xff]  ;;  %v535_v17 = vld [vmem:[#allocation8 + $0x148] sm:$0xff] }
  0xbc   : > { %787 = vadd.xlane.f32.xlu0 %v786_v8  ;;  %v698_v8 = vld [vmem:[#allocation8 + $0x660] sm:$0xff] }
  0xbe   : > { %1077 = vmatpush.xpose.msra.mxu0 %v710_v18  ;;  %1097 = vmatpush.xpose.msra.mxu1 %v711_v19  ;;  %v755_v18 = vmul.f32 %v9855_v13, %v9855_v13  ;;  %v757_v19 = vmul.f32 %v9860_v14, %v9860_v14 }
  0xbf   : > { %1117 = vmatpush.xpose.msra.mxu2 %v712_v20  ;;  %1137 = vmatpush.xpose.msra.mxu3 %v713_v21  ;;  %v756_v20 = vmul.f32 %v9865_v15, %v9865_v15  ;;  %v536_v21 = vld [vmem:[#allocation8 + $0x150] sm:$0xff] }
  0xc2   : > { %1078 = vmatpush.xpose.msra.mxu0 %v694_v22  ;;  %1098 = vmatpush.xpose.msra.mxu1 %v695_v23  ;;  %v537_v22 = vld [vmem:[#allocation8 + $0x158] sm:$0xff]  ;;  %v798_v23 = vsel %vm782_vm0, %v755_v18, 0.0  ;;  %v9934_v18 = vld [vmem:[%s14390_s1 + $0x70] sm:$0xff] }
  0xc3   : > { %1118 = vmatpush.xpose.msra.mxu2 %v696_v24  ;;  %1138 = vmatpush.xpose.msra.mxu3 %v697_v25  ;;  %v804_v24 = vsel %vm782_vm0, %v757_v19, 0.0  ;;  %v801_v25 = vsel %vm782_vm0, %v756_v20, 0.0  ;;  %v9939_v19 = vld [vmem:[%s14390_s1 + $0x80] sm:$0xff] }
  0xc4   : > { %799 = vadd.xlane.f32.xlu2 %v798_v23  ;;  %805 = vadd.xlane.f32.xlu1 %v804_v24  ;;  %v682_v20 = vld [vmem:[#allocation8 + $0x5e0] sm:$0xff]  ;;  %v684_v23 = vld [vmem:[#allocation8 + $0x5f0] sm:$0xff]  ;;  %v685_v24 = vld [vmem:[#allocation8 + $0x5f8] sm:$0xff] }
  0xc5   : > { %802 = vadd.xlane.f32.xlu0 %v801_v25  ;;  %v764_v25 = vmul.f32 %v9934_v18, %v9934_v18 }
  0xc6   : > { %1079 = vmatpush.xpose.msra.mxu0 %v678_v26  ;;  %1099 = vmatpush.xpose.msra.mxu1 %v679_v27  ;;  %v518_v26 = vld [vmem:[#allocation8 + $0xc0] sm:$0xff]  ;;  %v519_v27 = vld [vmem:[#allocation8 + $0xc8] sm:$0xff] }
  0xc7   : > { %1119 = vmatpush.xpose.msra.mxu2 %v680_v28  ;;  %1139 = vmatpush.xpose.msra.mxu3 %v681_v29  ;;  %v493_v28 = vld [vmem:[%s9791_s20 + $0x8] sm:$0xff]  ;;  %v520_v29 = vld [vmem:[#allocation8 + $0xd0] sm:$0xff] }
  0xca   : > { %1080 = vmatpush.xpose.msra.mxu0 %v662_v30  ;;  %1100 = vmatpush.xpose.msra.mxu1 %v663_v31  ;;  %v521_v30 = vld [vmem:[#allocation8 + $0xd8] sm:$0xff]  ;;  %v9877_v31 = vmul.f32 %v493_v28, %v493_v28  ;;  %v666_v28 = vld [vmem:[#allocation8 + $0x560] sm:$0xff] }
  0xcb   : > { %1120 = vmatpush.xpose.msra.mxu2 %v664_v32  ;;  %1140 = vmatpush.xpose.msra.mxu3 %v665_v33  ;;  %v502_v32 = vld [vmem:[#allocation8 + $0x40] sm:$0xff]  ;;  %v503_v33 = vld [vmem:[#allocation8 + $0x48] sm:$0xff] }
  0xce   : > { %1081 = vmatpush.xpose.msra.mxu0 %v646_v34  ;;  %1101 = vmatpush.xpose.msra.mxu1 %v647_v35  ;;  %v504_v34 = vld [vmem:[#allocation8 + $0x50] sm:$0xff]  ;;  %v505_v35 = vld [vmem:[#allocation8 + $0x58] sm:$0xff] }
  0xcf   : > { %1121 = vmatpush.xpose.msra.mxu2 %v648_v36  ;;  %1141 = vmatpush.xpose.msra.mxu3 %v649_v37  ;;  %v9882_v36 = vld [vmem:[%s14390_s1 + $0x40] sm:$0xff]  ;;  %v9887_v37 = vld [vmem:[%s14390_s1 + $0x50] sm:$0xff] }
  0xd2   : > { %1082 = vmatpush.xpose.msra.mxu0 %v630_v38  ;;  %1102 = vmatpush.xpose.msra.mxu1 %v631_v39  ;;  %v746_v38 = vld [vmem:[#allocation8 + $0x7e0] sm:$0xff]  ;;  %v747_v39 = vld [vmem:[#allocation8 + $0x7e8] sm:$0xff] }
  0xd3   : > { %1122 = vmatpush.xpose.msra.mxu2 %v632_v40  ;;  %1142 = vmatpush.xpose.msra.mxu3 %v633_v41  ;;  %v9892_v40 = vld [vmem:[%s14390_s1 + $0x48] sm:$0xff]  ;;  %v748_v41 = vld [vmem:[#allocation8 + $0x7f0] sm:$0xff] }
  0xd6   : > { %1083 = vmatpush.xpose.msra.mxu0 %v614_v42  ;;  %1103 = vmatpush.xpose.msra.mxu1 %v615_v43  ;;  %v749_v42 = vld [vmem:[#allocation8 + $0x7f8] sm:$0xff]  ;;  %v891_v43 = vperm.slane %v9877_v31, 0 }
  0xd7   : > { %1123 = vmatpush.xpose.msra.mxu2 %v616_v44  ;;  %1143 = vmatpush.xpose.msra.mxu3 %v617_v45  ;;  %v893_v44 = vperm.slane %v9877_v31, 2  ;;  %v892_v45 = vperm.slane %v9877_v31, 1 }
  0xda   : > { %1084 = vmatpush.xpose.msra.mxu0 %v598_v48  ;;  %1104 = vmatpush.xpose.msra.mxu1 %v599_v49  ;;  %v894_v48 = vperm.slane %v9877_v31, 3  ;;  %v758_v49 = vmul.f32 %v9882_v36, %v9882_v36 }
  0xdb   : > { %1124 = vmatpush.xpose.msra.mxu2 %v600_v50  ;;  %1144 = vmatpush.xpose.msra.mxu3 %v601_v51  ;;  %v760_v50 = vmul.f32 %v9887_v37, %v9887_v37  ;;  %v759_v51 = vmul.f32 %v9892_v40, %v9892_v40 }
  0xdc   : > { %v807_v56 = vsel %vm782_vm0, %v758_v49, 0.0 }
  0xdd   : > { %v813_v57 = vsel %vm782_vm0, %v760_v50, 0.0  ;;  %808 = vadd.xlane.f32.xlu2 %v807_v56 }
  0xde   : > { %1085 = vmatpush.xpose.msra.mxu0 %v582_v54  ;;  %1105 = vmatpush.xpose.msra.mxu1 %v583_v55  ;;  %v732_v54 = vld [vmem:[#allocation8 + $0x770] sm:$0xff]  ;;  %v733_v55 = vld [vmem:[#allocation8 + $0x778] sm:$0xff] }
  0xdf   : > { %1125 = vmatpush.xpose.msra.mxu2 %v584_v58  ;;  %1145 = vmatpush.xpose.msra.mxu3 %v585_v59  ;;  %v810_v58 = vsel %vm782_vm0, %v759_v51, 0.0  ;;  %v9910_v59 = vld [vmem:[%s14390_s1 + $0x58] sm:$0xff]  ;;  %v634_v51 = vld [vmem:[#allocation8 + $0x460] sm:$0xff] }
  0xe0   : > { %814 = vadd.xlane.f32.xlu1 %v813_v57  ;;  %811 = vadd.xlane.f32.xlu0 %v810_v58  ;;  %v9982_v58 = vld [vmem:[%s14390_s1 + $0xa0] sm:$0xff] }
  0xe2   : > { %1086 = vmatpush.xpose.msra.mxu0 %v566_v63  ;;  %1106 = vmatpush.xpose.msra.mxu1 %v567_v0  ;;  %v9915_v63 = vld [vmem:[%s14390_s1 + $0x68] sm:$0xff]  ;;  %v714_v0 = vld [vmem:[#allocation8 + $0x6e0] sm:$0xff] }
  0xe3   : > { %1126 = vmatpush.xpose.msra.mxu2 %v568_v4  ;;  %1146 = vmatpush.xpose.msra.mxu3 %v569_v5  ;;  %v717_v4 = vld [vmem:[#allocation8 + $0x6f8] sm:$0xff]  ;;  %v761_v5 = vmul.f32 %v9910_v59, %v9910_v59  ;;  %v763_v6 = vmul.f32 %v9915_v63, %v9915_v63 }
  0xe6   : > { %1087 = vmatpush.xpose.msra.mxu0 %v550_v9  ;;  %1107 = vmatpush.xpose.msra.mxu1 %v551_v10  ;;  %v699_v9 = vld [vmem:[#allocation8 + $0x668] sm:$0xff]  ;;  %v700_v10 = vld [vmem:[#allocation8 + $0x670] sm:$0xff] }
  0xe7   : > { %1127 = vmatpush.xpose.msra.mxu2 %v552_v11  ;;  %1147 = vmatpush.xpose.msra.mxu3 %v553_v12  ;;  %v701_v11 = vld [vmem:[#allocation8 + $0x678] sm:$0xff]  ;;  %v816_v12 = vsel %vm782_vm0, %v761_v5, 0.0  ;;  %v620_v5 = vld [vmem:[#allocation8 + $0x3f0] sm:$0xff] }
  0xe8   : > { %817 = vadd.xlane.f32.xlu2 %v816_v12  ;;  %v604_v12 = vld [vmem:[#allocation8 + $0x370] sm:$0xff] }
  0xea   : > { %1088 = vmatpush.xpose.msra.mxu0 %v534_v16  ;;  %1108 = vmatpush.xpose.msra.mxu1 %v535_v17  ;;  %v822_v16 = vsel %vm782_vm0, %v763_v6, 0.0  ;;  %v819_v17 = vsel %vm782_vm0, %v762_v7, 0.0  ;;  %v621_v6 = vld [vmem:[#allocation8 + $0x3f8] sm:$0xff]  ;;  %v770_v7 = vmul.f32 %v9982_v58, %v9982_v58 }
  0xeb   : > { %1128 = vmatpush.xpose.msra.mxu2 %v536_v21  ;;  %1148 = vmatpush.xpose.msra.mxu3 %v537_v22  ;;  %v683_v21 = vld [vmem:[#allocation8 + $0x5e8] sm:$0xff]  ;;  %v9944_v22 = vld [vmem:[%s14390_s1 + $0x78] sm:$0xff] }
  0xec   : > { %823 = vadd.xlane.f32.xlu1 %v822_v16  ;;  %820 = vadd.xlane.f32.xlu0 %v819_v17  ;;  %v605_v16 = vld [vmem:[#allocation8 + $0x378] sm:$0xff]  ;;  %v843_v17 = vsel %vm782_vm0, %v770_v7, 0.0 }
  0xed   : > { %v541_v7 = vld [vmem:[#allocation8 + $0x178] sm:$0xff] }
  0xee   : > { %1089 = vmatpush.xpose.msra.mxu0 %v518_v26  ;;  %1109 = vmatpush.xpose.msra.mxu1 %v519_v27  ;;  %v766_v26 = vmul.f32 %v9939_v19, %v9939_v19  ;;  %v765_v27 = vmul.f32 %v9944_v22, %v9944_v22 }
  0xef   : > { %1129 = vmatpush.xpose.msra.mxu2 %v520_v29  ;;  %1149 = vmatpush.xpose.msra.mxu3 %v521_v30  ;;  %v667_v29 = vld [vmem:[#allocation8 + $0x568] sm:$0xff]  ;;  %v668_v30 = vld [vmem:[#allocation8 + $0x570] sm:$0xff] }
  0xf2   : > { %1090 = vmatpush.xpose.msra.mxu0 %v502_v32  ;;  %1110 = vmatpush.xpose.msra.mxu1 %v503_v33  ;;  %v669_v32 = vld [vmem:[#allocation8 + $0x578] sm:$0xff]  ;;  %v825_v33 = vsel %vm782_vm0, %v764_v25, 0.0  ;;  %v586_v25 = vld [vmem:[#allocation8 + $0x2e0] sm:$0xff] }
  0xf3   : > { %1130 = vmatpush.xpose.msra.mxu2 %v504_v34  ;;  %1150 = vmatpush.xpose.msra.mxu3 %v505_v35  ;;  %v831_v34 = vsel %vm782_vm0, %v766_v26, 0.0  ;;  %v828_v35 = vsel %vm782_vm0, %v765_v27, 0.0  ;;  %v587_v26 = vld [vmem:[#allocation8 + $0x2e8] sm:$0xff]  ;;  %v10016_v27 = vld [vmem:[%s14390_s1 + $0xc0] sm:$0xff] }
  0xf4   : > { %826 = vadd.xlane.f32.xlu2 %v825_v33  ;;  %832 = vadd.xlane.f32.xlu1 %v831_v34  ;;  %v774_v33 = vmul.f32 %v10016_v27, %v10016_v27  ;;  %v570_v34 = vld [vmem:[#allocation8 + $0x260] sm:$0xff] }
  0xf5   : > { %1091 = vmatmul.f32.vlgmr.msra.gmra.mxu0 %v891_v43  ;;  %1111 = vmatmul.f32.vlgmr.msra.gmra.mxu1 %v892_v45  ;;  %v9968_v43 = vld [vmem:[%s14390_s1 + $0x90] sm:$0xff]  ;;  %v653_v45 = vld [vmem:[#allocation8 + $0x4f8] sm:$0xff] }
  0xf6   : > { %1155 = vmatpush.xpose.msrb.mxu0 %v746_v38  ;;  %1175 = vmatpush.xpose.msrb.mxu1 %v747_v39  ;;  %v9958_v38 = vld [vmem:[%s14390_s1 + $0x88] sm:$0xff]  ;;  %v9963_v39 = vld [vmem:[%s14390_s1 + $0x98] sm:$0xff]  ;;  %v768_v50 = vmul.f32 %v9968_v43, %v9968_v43 }
  0xf7   : > { %1195 = vmatpush.xpose.msrb.mxu2 %v748_v41  ;;  %1215 = vmatpush.xpose.msrb.mxu3 %v749_v42  ;;  %v650_v41 = vld [vmem:[#allocation8 + $0x4e0] sm:$0xff]  ;;  %v651_v42 = vld [vmem:[#allocation8 + $0x4e8] sm:$0xff]  ;;  %v769_v49 = vmul.f32 %v9963_v39, %v9963_v39 }
  0xf8   : > { %1131 = vmatmul.f32.vlgmr.msra.gmra.mxu2 %v893_v44  ;;  %1151 = vmatmul.f32.vlgmr.msra.gmra.mxu3 %v894_v48  ;;  %v652_v44 = vld [vmem:[#allocation8 + $0x4f0] sm:$0xff]  ;;  %v767_v48 = vmul.f32 %v9958_v38, %v9958_v38  ;;  %v837_v57 = vsel %vm782_vm0, %v768_v50, 0.0  ;;  %v10036_v50 = vld [vmem:[%s14390_s1 + $0xe0] sm:$0xff] }
  0xf9   : > { %829 = vadd.xlane.f32.xlu0 %v828_v35  ;;  %v840_v56 = vsel %vm782_vm0, %v769_v49, 0.0  ;;  %v571_v35 = vld [vmem:[#allocation8 + $0x268] sm:$0xff]  ;;  %v10031_v49 = vld [vmem:[%s14390_s1 + $0xd0] sm:$0xff] }
  0xfa   : > { %1156 = vmatpush.xpose.msrb.mxu0 %v730_v52  ;;  %1176 = vmatpush.xpose.msrb.mxu1 %v731_v53  ;;  %v635_v52 = vld [vmem:[#allocation8 + $0x468] sm:$0xff]  ;;  %v636_v53 = vld [vmem:[#allocation8 + $0x470] sm:$0xff] }
  0xfb   : > { %1196 = vmatpush.xpose.msrb.mxu2 %v732_v54  ;;  %1216 = vmatpush.xpose.msrb.mxu3 %v733_v55  ;;  %v637_v54 = vld [vmem:[#allocation8 + $0x478] sm:$0xff]  ;;  %v834_v55 = vsel %vm782_vm0, %v767_v48, 0.0  ;;  %v855_v48 = vsel %vm782_vm0, %v774_v33, 0.0  ;;  %v10071_v33 = vld [vmem:[%s14390_s1 + $0xe8] sm:$0xff] }
  0xfc   : > { %835 = vadd.xlane.f32.xlu2 %v834_v55  ;;  %841 = vadd.xlane.f32.xlu1 %v840_v56  ;;  %v557_v55 = vld [vmem:[#allocation8 + $0x1f8] sm:$0xff]  ;;  %v776_v56 = vmul.f32 %v10031_v49, %v10031_v49 }
  0xfe   : > { %1157 = vmatpush.xpose.msrb.mxu0 %v714_v0  ;;  %1177 = vmatpush.xpose.msrb.mxu1 %v715_v1  ;;  %v9987_v0 = vld [vmem:[%s14390_s1 + $0xb0] sm:$0xff]  ;;  %v618_v1 = vld [vmem:[#allocation8 + $0x3e0] sm:$0xff] }
  0xff   : > { %1197 = vmatpush.xpose.msrb.mxu2 %v716_v3  ;;  %1217 = vmatpush.xpose.msrb.mxu3 %v717_v4  ;;  %v619_v3 = vld [vmem:[#allocation8 + $0x3e8] sm:$0xff] }
 0x100   : > { %v9992_v4 = vld [vmem:[%s14390_s1 + $0xa8] sm:$0xff] }
 0x101   : > { %838 = vadd.xlane.f32.xlu0 %v837_v57  ;;  %v778_v57 = vmul.f32 %v10036_v50, %v10036_v50 }
 0x102   : > { %1158 = vmatpush.xpose.msrb.mxu0 %v698_v8  ;;  %1178 = vmatpush.xpose.msrb.mxu1 %v699_v9  ;;  %v772_v8 = vmul.f32 %v9987_v0, %v9987_v0  ;;  %v771_v9 = vmul.f32 %v9992_v4, %v9992_v4 }
 0x103   : > { %1198 = vmatpush.xpose.msrb.mxu2 %v700_v10  ;;  %1218 = vmatpush.xpose.msrb.mxu3 %v701_v11  ;;  %v602_v10 = vld [vmem:[#allocation8 + $0x360] sm:$0xff]  ;;  %v603_v11 = vld [vmem:[#allocation8 + $0x368] sm:$0xff] }
 0x104   : > { %844 = vadd.xlane.f32.xlu2 %v843_v17  ;;  %v525_v17 = vld [vmem:[#allocation8 + $0xf8] sm:$0xff] }
 0x106   : > { %1159 = vmatpush.xpose.msrb.mxu0 %v682_v20  ;;  %1179 = vmatpush.xpose.msrb.mxu1 %v683_v21  ;;  %v849_v20 = vsel %vm782_vm0, %v772_v8, 0.0  ;;  %v846_v21 = vsel %vm782_vm0, %v771_v9, 0.0  ;;  %v861_v8 = vsel %vm782_vm0, %v776_v56, 0.0  ;;  %v867_v9 = vsel %vm782_vm0, %v778_v57, 0.0  ;;  %v489_v57 = vld [vmem:[%s10061_s14 + $0x68] sm:$0xff] }
 0x107   : > { %1199 = vmatpush.xpose.msrb.mxu2 %v684_v23  ;;  %1219 = vmatpush.xpose.msrb.mxu3 %v685_v24  ;;  %v10006_v23 = vld [vmem:[%s14390_s1 + $0xb8] sm:$0xff]  ;;  %v10011_v24 = vld [vmem:[%s14390_s1 + $0xc8] sm:$0xff] }
 0x108   : > { %850 = vadd.xlane.f32.xlu1 %v849_v20  ;;  %v506_v20 = vld [vmem:[#allocation8 + $0x60] sm:$0xff] }
 0x109   : > { %847 = vadd.xlane.f32.xlu0 %v846_v21  ;;  %v507_v21 = vld [vmem:[#allocation8 + $0x68] sm:$0xff] }
 0x10a   : > { %1160 = vmatpush.xpose.msrb.mxu0 %v666_v28  ;;  %1180 = vmatpush.xpose.msrb.mxu1 %v667_v29  ;;  %v588_v28 = vld [vmem:[#allocation8 + $0x2f0] sm:$0xff]  ;;  %v589_v29 = vld [vmem:[#allocation8 + $0x2f8] sm:$0xff] }
 0x10b   : > { %1200 = vmatpush.xpose.msrb.mxu2 %v668_v30  ;;  %1220 = vmatpush.xpose.msrb.mxu3 %v669_v32  ;;  %v773_v30 = vmul.f32 %v10006_v23, %v10006_v23  ;;  %v775_v32 = vmul.f32 %v10011_v24, %v10011_v24 }
 0x10e   : > { %1161 = vmatpush.xpose.msrb.mxu0 %v650_v41  ;;  %1181 = vmatpush.xpose.msrb.mxu1 %v651_v42  ;;  %v572_v41 = vld [vmem:[#allocation8 + $0x270] sm:$0xff]  ;;  %v573_v42 = vld [vmem:[#allocation8 + $0x278] sm:$0xff] }
 0x10f   : > { %1201 = vmatpush.xpose.msrb.mxu2 %v652_v44  ;;  %1221 = vmatpush.xpose.msrb.mxu3 %v653_v45  ;;  %v852_v44 = vsel %vm782_vm0, %v773_v30, 0.0  ;;  %v858_v45 = vsel %vm782_vm0, %v775_v32, 0.0  ;;  %v896_v30 = vperm.slane %v9877_v31, 5  ;;  %v10066_v32 = vld [vmem:[#allocation6 + $0x80] sm:$0xff] }
 0x110   : > { %853 = vadd.xlane.f32.xlu2 %v852_v44  ;;  %859 = vadd.xlane.f32.xlu1 %v858_v45  ;;  %v10087_v44 = vld [vmem:[#allocation6] sm:$0xff]  ;;  %v490_v45 = vld [vmem:[%s10061_s14 + $0x70] sm:$0xff] }
 0x111   : > { %856 = vadd.xlane.f32.xlu0 %v855_v48 }
 0x112   : > { %1162 = vmatpush.xpose.msrb.mxu0 %v634_v51  ;;  %1182 = vmatpush.xpose.msrb.mxu1 %v635_v52  ;;  %v554_v51 = vld [vmem:[#allocation8 + $0x1e0] sm:$0xff]  ;;  %v555_v52 = vld [vmem:[#allocation8 + $0x1e8] sm:$0xff] }
 0x113   : > { %1202 = vmatpush.xpose.msrb.mxu2 %v636_v53  ;;  %1222 = vmatpush.xpose.msrb.mxu3 %v637_v54  ;;  %v10045_v53 = vld [vmem:[%s14390_s1 + $0xd8] sm:$0xff]  ;;  %v556_v54 = vld [vmem:[#allocation8 + $0x1f0] sm:$0xff] }
 0x116   : > { %1163 = vmatpush.xpose.msrb.mxu0 %v618_v1  ;;  %1183 = vmatpush.xpose.msrb.mxu1 %v619_v3  ;;  %v777_v1 = vmul.f32 %v10045_v53, %v10045_v53  ;;  %v538_v3 = vld [vmem:[#allocation8 + $0x160] sm:$0xff] }
 0x117   : > { %1203 = vmatpush.xpose.msrb.mxu2 %v620_v5  ;;  %1223 = vmatpush.xpose.msrb.mxu3 %v621_v6  ;;  %v539_v5 = vld [vmem:[#allocation8 + $0x168] sm:$0xff]  ;;  %v540_v6 = vld [vmem:[#allocation8 + $0x170] sm:$0xff] }
 0x118   : > { %862 = vadd.xlane.f32.xlu2 %v861_v8  ;;  %868 = vadd.xlane.f32.xlu1 %v867_v9  ;;  %v1754_v8 = vld [vmem:[#allocation6 + $0x8] sm:$0xff]  ;;  %v1755_v9 = vld [vmem:[#allocation6 + $0x10] sm:$0xff] }
 0x11a   : > { %1164 = vmatpush.xpose.msrb.mxu0 %v602_v10  ;;  %1184 = vmatpush.xpose.msrb.mxu1 %v603_v11  ;;  %v864_v10 = vsel %vm782_vm0, %v777_v1, 0.0  ;;  %v522_v11 = vld [vmem:[#allocation8 + $0xe0] sm:$0xff] }
 0x11b   : > { %1204 = vmatpush.xpose.msrb.mxu2 %v604_v12  ;;  %1224 = vmatpush.xpose.msrb.mxu3 %v605_v16  ;;  %v523_v12 = vld [vmem:[#allocation8 + $0xe8] sm:$0xff]  ;;  %v524_v16 = vld [vmem:[#allocation8 + $0xf0] sm:$0xff] }
 0x11c   : > { %865 = vadd.xlane.f32.xlu0 %v864_v10  ;;  %v1756_v10 = vld [vmem:[#allocation6 + $0x18] sm:$0xff] }
 0x11e   : > { %1165 = vmatpush.xpose.msrb.mxu0 %v586_v25  ;;  %1185 = vmatpush.xpose.msrb.mxu1 %v587_v26  ;;  %v508_v25 = vld [vmem:[#allocation8 + $0x70] sm:$0xff]  ;;  %v509_v26 = vld [vmem:[#allocation8 + $0x78] sm:$0xff] }
 0x11f   : > { %1205 = vmatpush.xpose.msrb.mxu2 %v588_v28  ;;  %1225 = vmatpush.xpose.msrb.mxu3 %v589_v29  ;;  %v491_v28 = vld [vmem:[%s10061_s14 + $0x78] sm:$0xff]  ;;  %v895_v29 = vperm.slane %v9877_v31, 4 }
 0x122   : > { %1166 = vmatpush.xpose.msrb.mxu0 %v570_v34  ;;  %1186 = vmatpush.xpose.msrb.mxu1 %v571_v35  ;;  %v897_v34 = vperm.slane %v9877_v31, 6  ;;  %v898_v35 = vperm.slane %v9877_v31, 7  ;;  %v779_v31 = vmul.f32 %v10071_v33, %v10071_v33 }
 0x123   : > { %1206 = vmatpush.xpose.msrb.mxu2 %v572_v41  ;;  %1226 = vmatpush.xpose.msrb.mxu3 %v573_v42  ;;  %v10078_v41 = vld [vmem:[%s14390_s1 + $0xf8] sm:$0xff]  ;;  %v10083_v42 = vld [vmem:[%s14390_s1 + $0xf0] sm:$0xff] }
 0x124   : > { %v781_v48 = vmul.f32 %v10078_v41, %v10078_v41  ;;  %v870_v56 = vsel %vm782_vm0, %v779_v31, 0.0 }
 0x125   : > { %871 = vadd.xlane.f32.xlu2 %v870_v56 }
 0x126   : > { %1167 = vmatpush.xpose.msrb.mxu0 %v554_v51  ;;  %1187 = vmatpush.xpose.msrb.mxu1 %v555_v52  ;;  %v1770_v51 = vld [vmem:[#allocation6 + $0x88] sm:$0xff]  ;;  %v780_v52 = vmul.f32 %v10083_v42, %v10083_v42  ;;  %v876_v1 = vsel %vm782_vm0, %v781_v48, 0.0 }
 0x127   : > { %1207 = vmatpush.xpose.msrb.mxu2 %v556_v54  ;;  %1227 = vmatpush.xpose.msrb.mxu3 %v557_v55  ;;  %v1771_v54 = vld [vmem:[#allocation6 + $0x90] sm:$0xff]  ;;  %v1772_v55 = vld [vmem:[#allocation6 + $0x98] sm:$0xff] }
 0x128   : > { %877 = vadd.xlane.f32.xlu1 %v876_v1 }
 0x12a   : > { %1168 = vmatpush.xpose.msrb.mxu0 %v538_v3  ;;  %1188 = vmatpush.xpose.msrb.mxu1 %v539_v5  ;;  %v873_v3 = vsel %vm782_vm0, %v780_v52, 0.0  ;;  %v488_v5 = vld [vmem:[%s10061_s14 + $0x60] sm:$0xff] }
 0x12b   : > { %1208 = vmatpush.xpose.msrb.mxu2 %v540_v6  ;;  %1228 = vmatpush.xpose.msrb.mxu3 %v541_v7  ;;  %v487_v6 = vld [vmem:[%s10061_s14 + $0x58] sm:$0xff]  ;;  %v486_v7 = vld [vmem:[%s10061_s14 + $0x50] sm:$0xff] }
 0x12c   : > { %874 = vadd.xlane.f32.xlu0 %v873_v3 }
 0x12e   : > { %1169 = vmatpush.xpose.msrb.mxu0 %v522_v11  ;;  %1189 = vmatpush.xpose.msrb.mxu1 %v523_v12  ;;  %v484_v11 = vld [vmem:[%s10061_s14 + $0x40] sm:$0xff]  ;;  %v482_v12 = vld [vmem:[%s10061_s14 + $0x30] sm:$0xff] }
 0x12f   : > { %1209 = vmatpush.xpose.msrb.mxu2 %v524_v16  ;;  %1229 = vmatpush.xpose.msrb.mxu3 %v525_v17  ;;  %v480_v16 = vld [vmem:[%s10061_s14 + $0x20] sm:$0xff]  ;;  %v478_v17 = vld [vmem:[%s10061_s14 + $0x10] sm:$0xff] }
 0x132   : > { %1170 = vmatpush.xpose.msrb.mxu0 %v506_v20  ;;  %1190 = vmatpush.xpose.msrb.mxu1 %v507_v21  ;;  %v477_v20 = vld [vmem:[%s10061_s14 + $0x8] sm:$0xff]  ;;  %v1773_v21 = vld [vmem:[#allocation6 + $0xa0] sm:$0xff] }
 0x133   : > { %1210 = vmatpush.xpose.msrb.mxu2 %v508_v25  ;;  %1230 = vmatpush.xpose.msrb.mxu3 %v509_v26  ;;  %v1774_v25 = vld [vmem:[#allocation6 + $0xa8] sm:$0xff]  ;;  %v992_v26 = vpop.f32.mrf.mxu3 }
 0x135   : > { %1171 = vmatmul.f32.vlgmr.msrb.gmra.mxu0 %v895_v29  ;;  %1191 = vmatmul.f32.vlgmr.msrb.gmra.mxu1 %v896_v30 }
 0x136   : > { %7799 = vmatpush.xpose.msk.msra.mxu0 %vm782_vm0, %v491_v28  ;;  %1211 = vmatmul.f32.vlgmr.msrb.gmra.mxu2 %v897_v34  ;;  %v932_v34 = vpop.f32.mrf.mxu0 }
 0x137   : > { %8372 = vmatpush.msra.mxu2 %v10066_v32  ;;  %1231 = vmatmul.f32.vlgmr.msrb.gmra.mxu3 %v898_v35 }
 0x138   : > { %8373 = vmatpush.msra.mxu3 %v10066_v32  ;;  %8371 = vmatpush.msra.mxu1 %v10066_v32 }
 0x139   : > { %8375 = vmatpush.msra.mxu2 %v10087_v44 }
 0x13a   : > { %7800 = vmatpush.xpose.msk.msra.mxu0 %vm782_vm0, %v490_v45  ;;  %8376 = vmatpush.msra.mxu3 %v10087_v44 }
 0x13b   : > { %1912 = vmatpush.msrb.mxu2 %v1770_v51  ;;  %8374 = vmatpush.msra.mxu1 %v10087_v44  ;;  %v1072_v29 = vpop.f32.mrf.mxu3 }
 0x13c   : > { %2025 = vmatpush.msrb.mxu3 %v1771_v54 }
 0x13d   : > { %2138 = vmatpush.msrb.mxu1 %v1772_v55  ;;  %1913 = vmatpush.msrb.mxu2 %v1754_v8 }
 0x13e   : > { %7801 = vmatpush.xpose.msk.msra.mxu0 %vm782_vm0, %v489_v57  ;;  %7849 = vmatmul.msk.f32.vlgmr.msra.gmra.mxu1 %vm782_vm0, %v9815_v46  ;;  %v1012_v52 = vpop.f32.mrf.mxu0 }
 0x13f   : > { %7859 = vmatmul.msk.f32.vlgmr.msra.gmra.mxu2 %vm782_vm0, %v9920_v2  ;;  %7869 = vmatmul.msk.f32.vlgmr.msra.gmra.mxu3 %vm782_vm0, %v9987_v0  ;;  %v485_v0 = vld [vmem:[%s10061_s14 + $0x48] sm:$0xff] }
 0x140   : > { %2026 = vmatpush.msrb.mxu3 %v1755_v9  ;;  %2139 = vmatpush.msrb.mxu1 %v1756_v10 }
 0x141   : > { %2251 = vmatpush.msra.mxu2 %v1773_v21 }
 0x142   : > { %7802 = vmatpush.xpose.msk.msra.mxu0 %vm782_vm0, %v488_v5  ;;  %2364 = vmatpush.msra.mxu3 %v1774_v25 }
 0x146   : > { %7803 = vmatpush.xpose.msk.msra.mxu0 %vm782_vm0, %v487_v6  ;;  %7850 = vmatmul.msk.f32.gmra.mxu1 %vm782_vm0, %v9836_v61 }
 0x147   : > { %7860 = vmatmul.msk.f32.gmra.mxu2 %vm782_vm0, %v9915_v63  ;;  %7870 = vmatmul.msk.f32.gmra.mxu3 %vm782_vm0, %v10006_v23  ;;  %v483_v23 = vld [vmem:[%s10061_s14 + $0x38] sm:$0xff] }
 0x14a   : > { %7804 = vmatpush.xpose.msk.msra.mxu0 %vm782_vm0, %v486_v7 }
 0x14e   : > { %7805 = vmatpush.xpose.msk.msra.mxu0 %vm782_vm0, %v485_v0  ;;  %7851 = vmatmul.msk.f32.gmra.mxu1 %vm782_vm0, %v9831_v60 }
 0x14f   : > { %7861 = vmatmul.msk.f32.gmra.mxu2 %vm782_vm0, %v9934_v18  ;;  %7871 = vmatmul.msk.f32.gmra.mxu3 %vm782_vm0, %v10016_v27  ;;  %v481_v27 = vld [vmem:[%s10061_s14 + $0x28] sm:$0xff] }
 0x152   : > { %7806 = vmatpush.xpose.msk.msra.mxu0 %vm782_vm0, %v484_v11 }
 0x156   : > { %7807 = vmatpush.xpose.msk.msra.mxu0 %vm782_vm0, %v483_v23  ;;  %7852 = vmatmul.msk.f32.gmra.mxu1 %vm782_vm0, %v9855_v13 }
 0x157   : > { %7862 = vmatmul.msk.f32.gmra.mxu2 %vm782_vm0, %v9944_v22  ;;  %7872 = vmatmul.msk.f32.gmra.mxu3 %vm782_vm0, %v10011_v24  ;;  %v479_v24 = vld [vmem:[%s10061_s14 + $0x18] sm:$0xff] }
 0x15a   : > { %7808 = vmatpush.xpose.msk.msra.mxu0 %vm782_vm0, %v482_v12 }
 0x15e   : > { %7809 = vmatpush.xpose.msk.msra.mxu0 %vm782_vm0, %v481_v27  ;;  %7853 = vmatmul.msk.f32.gmra.mxu1 %vm782_vm0, %v9865_v15 }
 0x15f   : > { %7863 = vmatmul.msk.f32.gmra.mxu2 %vm782_vm0, %v9939_v19  ;;  %7873 = vmatmul.msk.f32.gmra.mxu3 %vm782_vm0, %v10031_v49  ;;  %v476_v49 = vld [vmem:[%s10061_s14] sm:$0xff]  ;;  %s10413_s14 = scalar_lea.vmem [#allocation9], %s7794_s16  ;;  %s7542_s16 = sshll.u32 %s7539_s25, 4  ;;  %s7543_s16 = int_to_ptr.hbm [resolvable:$true] %s7542_s16 }
 0x162   : > { %7810 = vmatpush.xpose.msk.msra.mxu0 %vm782_vm0, %v480_v16 }
 0x166   : > { %7811 = vmatpush.xpose.msk.msra.mxu0 %vm782_vm0, %v479_v24  ;;  %7854 = vmatmul.msk.f32.gmra.mxu1 %vm782_vm0, %v9860_v14 }
 0x167   : > { %7864 = vmatmul.msk.f32.gmra.mxu2 %vm782_vm0, %v9958_v38  ;;  %7874 = vmatmul.msk.f32.gmra.mxu3 %vm782_vm0, %v10045_v53  ;;  %v1776_v53 = vld [vmem:[#allocation6 + $0xb8] sm:$0xff] }
 0x168   : > { %2590 = vmatpush.msra.mxu1 %v1776_v53 }
 0x16a   : > { %7812 = vmatpush.xpose.msk.msra.mxu0 %vm782_vm0, %v478_v17 }
 0x16e   : > { %7813 = vmatpush.xpose.msk.msra.mxu0 %vm782_vm0, %v477_v20  ;;  %7855 = vmatmul.msk.f32.gmra.mxu1 %vm782_vm0, %v9882_v36 }
 0x16f   : > { %7865 = vmatmul.msk.f32.gmra.mxu2 %vm782_vm0, %v9968_v43  ;;  %7875 = vmatmul.msk.f32.gmra.mxu3 %vm782_vm0, %v10036_v50  ;;  %v952_v50 = vpop.f32.mrf.mxu1 }
 0x170   : > { %v953_v35 = vadd.f32 %v952_v50, %v932_v34 }
 0x172   : > { %7814 = vmatpush.xpose.msk.msra.mxu0 %vm782_vm0, %v476_v49  ;;  %v1092_v0 = vpop.f32.mrf.mxu0 }
 0x175   : > { %7815 = vmatmul.msk.f32.vlgmr.msra.gmra.mxu0 %vm782_vm0, %v9820_v47 }
 0x176   : > { %1799 = vmatpush.msrb.mxu0 %v10066_v32  ;;  %7856 = vmatmul.msk.f32.gmra.mxu1 %vm782_vm0, %v9892_v40 }
 0x177   : > { %7866 = vmatmul.msk.f32.gmra.mxu2 %vm782_vm0, %v9963_v39  ;;  %7876 = vmatmul.msk.f32.gmra.mxu3 %vm782_vm0, %v10071_v33  ;;  %v1032_v28 = vpop.f32.mrf.mxu1 }
 0x178   : > { %1800 = vmatpush.msrb.mxu0 %v10087_v44 }
 0x17d   : > { %7816 = vmatmul.msk.f32.gmra.mxu0 %vm782_vm0, %v9841_v62 }
 0x17e   : > { %7857 = vmatmul.msk.f32.gmra.mxu1 %vm782_vm0, %v9887_v37 }
 0x17f   : > { %7867 = vmatmul.msk.f32.gmra.mxu2 %vm782_vm0, %v9982_v58  ;;  %7877 = vmatmul.msk.f32.gmra.mxu3 %vm782_vm0, %v10083_v42 }
 0x185   : > { %7817 = vmatmul.msk.f32.gmra.mxu0 %vm782_vm0, %v9815_v46 }
 0x186   : > { %7858 = vmatmul.msk.f32.gmra.mxu1 %vm782_vm0, %v9910_v59 }
 0x187   : > { %7868 = vmatmul.msk.f32.gmra.mxu2 %vm782_vm0, %v9992_v4  ;;  %7878 = vmatmul.msk.f32.gmra.mxu3 %vm782_vm0, %v10078_v41 }
 0x18d   : > { %7818 = vmatmul.msk.f32.gmra.mxu0 %vm782_vm0, %v9836_v61 }
 0x18e   : > { %7943 = vmatmul.msk.f32.vlgmr.msrb.gmra.mxu1 %vm782_vm0, %v9820_v47 }
 0x18f   : > { %7879 = vmatmul.msk.f32.vlgmr.msrb.gmra.mxu2 %vm782_vm0, %v9820_v47  ;;  %7911 = vmatmul.msk.f32.vlgmr.msrb.gmra.mxu3 %vm782_vm0, %v9820_v47  ;;  %v972_v47 = vpop.f32.mrf.mxu2 }
 0x190   : > { %v973_v45 = vadd.f32 %v972_v47, %v953_v35 }
 0x195   : > { %7819 = vmatmul.msk.f32.gmra.mxu0 %vm782_vm0, %v9831_v60 }
 0x196   : > { %7944 = vmatmul.msk.f32.gmra.mxu1 %vm782_vm0, %v9841_v62 }
 0x197   : > { %7880 = vmatmul.msk.f32.gmra.mxu2 %vm782_vm0, %v9841_v62  ;;  %7912 = vmatmul.msk.f32.gmra.mxu3 %vm782_vm0, %v9841_v62  ;;  %v1052_v62 = vpop.f32.mrf.mxu2 }
 0x19d   : > { %7820 = vmatmul.msk.f32.gmra.mxu0 %vm782_vm0, %v9855_v13 }
 0x19e   : > { %7945 = vmatmul.msk.f32.gmra.mxu1 %vm782_vm0, %v9815_v46 }
 0x19f   : > { %7881 = vmatmul.msk.f32.gmra.mxu2 %vm782_vm0, %v9815_v46  ;;  %7913 = vmatmul.msk.f32.gmra.mxu3 %vm782_vm0, %v9815_v46  ;;  %v10233_v46 = vpop.f32.mrf.mxu1  ;;  %v10243_v30 = vpop.f32.mrf.mxu2 }
 0x1a5   : > { %7821 = vmatmul.msk.f32.gmra.mxu0 %vm782_vm0, %v9865_v15 }
 0x1a6   : > { %7946 = vmatmul.msk.f32.gmra.mxu1 %vm782_vm0, %v9836_v61 }
 0x1a7   : > { %7882 = vmatmul.msk.f32.gmra.mxu2 %vm782_vm0, %v9836_v61  ;;  %7914 = vmatmul.msk.f32.gmra.mxu3 %vm782_vm0, %v9836_v61  ;;  %v10245_v61 = vpop.f32.mrf.mxu3 }
 0x1ad   : > { %7822 = vmatmul.msk.f32.gmra.mxu0 %vm782_vm0, %v9860_v14 }
 0x1ae   : > { %7947 = vmatmul.msk.f32.gmra.mxu1 %vm782_vm0, %v9831_v60 }
 0x1af   : > { %7883 = vmatmul.msk.f32.gmra.mxu2 %vm782_vm0, %v9831_v60  ;;  %7915 = vmatmul.msk.f32.gmra.mxu3 %vm782_vm0, %v9831_v60  ;;  %v10258_v60 = vld [vmem:[%s9791_s20] sm:$0xff] }
 0x1b0   : > { %v10261_v33 = vperm.slane %v10258_v60, 0 }
 0x1b2   : > { %v10247_v32 = vpop.f32.mrf.mxu1 }
 0x1b5   : > { %7823 = vmatmul.msk.f32.gmra.mxu0 %vm782_vm0, %v9882_v36 }
 0x1b6   : > { %7948 = vmatmul.msk.f32.gmra.mxu1 %vm782_vm0, %v9855_v13 }
 0x1b7   : > { %7884 = vmatmul.msk.f32.gmra.mxu2 %vm782_vm0, %v9855_v13  ;;  %7916 = vmatmul.msk.f32.gmra.mxu3 %vm782_vm0, %v9855_v13  ;;  %v993_v13 = vadd.f32 %v992_v26, %v973_v45  ;;  %v1172_v26 = vpop.f32.mrf.mxu0 }
 0x1b9   : > { %v10264_v41 = vpop.f32.mrf.mxu2  ;;  %v1013_v55 = vadd.f32 %v1012_v52, %v993_v13 }
 0x1ba   : > { %v10266_v42 = vpop.f32.mrf.mxu3 }
 0x1bb   : > { %v1808_v44 = vpop.f32.mrf.mxu1  ;;  %v1033_v1 = vadd.f32 %v1032_v28, %v1013_v55 }
 0x1bc   : > { %v5467_v31 = vsub.f32 %v1808_v44, %v10261_v33 }
 0x1bd   : > { %7824 = vmatmul.msk.f32.gmra.mxu0 %vm782_vm0, %v9892_v40  ;;  %v1053_v9 = vadd.f32 %v1052_v62, %v1033_v1 }
 0x1be   : > { %6523 = vst [vmem:[%s10273_s22 + $0x100] sm:$0xff] %v5467_v31  ;;  %7949 = vmatmul.msk.f32.gmra.mxu1 %vm782_vm0, %v9865_v15 }
 0x1bf   : > { %7885 = vmatmul.msk.f32.gmra.mxu2 %vm782_vm0, %v9865_v15  ;;  %7917 = vmatmul.msk.f32.gmra.mxu3 %vm782_vm0, %v9865_v15  ;;  %v1073_v10 = vadd.f32 %v1072_v29, %v1053_v9 }
 0x1c1   : > { %v1093_v24 = vadd.f32 %v1092_v0, %v1073_v10 }
 0x1c2   : > { %v1838_v48 = vpop.f32.mrf.mxu2  ;;  %v1868_v51 = vpop.f32.mrf.mxu3 }
 0x1c3   : > { %v1811_v54 = vpop.f32.mrf.mxu1  ;;  %v5627_v15 = vsub.f32 %v1838_v48, %v10261_v33  ;;  %v5787_v56 = vsub.f32 %v1868_v51, %v10261_v33 }
 0x1c4   : > { %v5483_v57 = vsub.f32 %v1811_v54, %v10261_v33 }
 0x1c5   : > { %7825 = vmatmul.msk.f32.gmra.mxu0 %vm782_vm0, %v9887_v37  ;;  %6683 = vst [vmem:[%s10273_s22 + $0x600] sm:$0xff] %v5627_v15 }
 0x1c6   : > { %7950 = vmatmul.msk.f32.gmra.mxu1 %vm782_vm0, %v9860_v14  ;;  %6843 = vst [vmem:[%s10273_s22 + $0xb00] sm:$0xff] %v5787_v56 }
 0x1c7   : > { %7886 = vmatmul.msk.f32.gmra.mxu2 %vm782_vm0, %v9860_v14  ;;  %7918 = vmatmul.msk.f32.gmra.mxu3 %vm782_vm0, %v9860_v14  ;;  %6539 = vst [vmem:[%s10273_s22 + $0x180] sm:$0xff] %v5483_v57 }
 0x1ca   : > { %v1841_v3 = vpop.f32.mrf.mxu2  ;;  %v1871_v5 = vpop.f32.mrf.mxu3 }
 0x1cb   : > { %v5643_v6 = vsub.f32 %v1841_v3, %v10261_v33  ;;  %v5803_v7 = vsub.f32 %v1871_v5, %v10261_v33  ;;  %v1814_v8 = vpop.f32.mrf.mxu1  ;;  %v10383_v5 = vstv %s1621_s5  ;;  %s7540_s5 = sshll.u32 %s10413_s14, 4  ;;  %s14135_s5 = int_to_ptr.vmem [resolvable:$true] %s7540_s5 }
 0x1cc   : > { %v5499_v14 = vsub.f32 %v1814_v8, %v10261_v33 }
 0x1cd   : > { %7826 = vmatmul.msk.f32.gmra.mxu0 %vm782_vm0, %v9910_v59  ;;  %6699 = vst [vmem:[%s10273_s22 + $0x680] sm:$0xff] %v5643_v6 }
 0x1ce   : > { %7951 = vmatmul.msk.f32.gmra.mxu1 %vm782_vm0, %v9882_v36  ;;  %6859 = vst [vmem:[%s10273_s22 + $0xb80] sm:$0xff] %v5803_v7 }
 0x1cf   : > { %7887 = vmatmul.msk.f32.gmra.mxu2 %vm782_vm0, %v9882_v36  ;;  %6555 = vst [vmem:[%s10273_s22 + $0x200] sm:$0xff] %v5499_v14  ;;  %7919 = vmatmul.msk.f32.gmra.mxu3 %vm782_vm0, %v9882_v36  ;;  %v1113_v36 = vadd.f32 %v10233_v46, %v1093_v24  ;;  %v1758_v24 = vld [vmem:[#allocation6 + $0x28] sm:$0xff] }
 0x1d0   : > { %2365 = vmatpush.msra.mxu3 %v1758_v24 }
 0x1d1   : > { %v1133_v20 = vadd.f32 %v10243_v30, %v1113_v36 }
 0x1d2   : > { %v1844_v11 = vpop.f32.mrf.mxu2  ;;  %v1874_v23 = vpop.f32.mrf.mxu3 }
 0x1d3   : > { %v5659_v12 = vsub.f32 %v1844_v11, %v10261_v33  ;;  %v5819_v27 = vsub.f32 %v1874_v23, %v10261_v33  ;;  %v1817_v16 = vpop.f32.mrf.mxu1  ;;  %v1153_v28 = vadd.f32 %v10245_v61, %v1133_v20  ;;  %v791_v20 = vpop.xlane.xlu1 %790 }
 0x1d4   : > { %v5515_v17 = vsub.f32 %v1817_v16, %v10261_v33  ;;  %v1757_v16 = vld [vmem:[#allocation6 + $0x20] sm:$0xff] }
 0x1d5   : > { %7827 = vmatmul.msk.f32.gmra.mxu0 %vm782_vm0, %v9920_v2  ;;  %6715 = vst [vmem:[%s10273_s22 + $0x700] sm:$0xff] %v5659_v12  ;;  %2252 = vmatpush.msra.mxu2 %v1757_v16 }
 0x1d6   : > { %6875 = vst [vmem:[%s10273_s22 + $0xc00] sm:$0xff] %v5819_v27  ;;  %7952 = vmatmul.msk.f32.gmra.mxu1 %vm782_vm0, %v9892_v40 }
 0x1d7   : > { %6571 = vst [vmem:[%s10273_s22 + $0x280] sm:$0xff] %v5515_v17  ;;  %7888 = vmatmul.msk.f32.gmra.mxu2 %vm782_vm0, %v9892_v40  ;;  %7920 = vmatmul.msk.f32.gmra.mxu3 %vm782_vm0, %v9892_v40  ;;  %v1173_v40 = vadd.f32 %v1172_v26, %v1153_v28 }
 0x1d9   : > { %v1193_v34 = vadd.f32 %v10247_v32, %v1173_v40 }
 0x1da   : > { %v1847_v49 = vpop.f32.mrf.mxu2  ;;  %v1877_v21 = vpop.f32.mrf.mxu3 }
 0x1db   : > { %v5675_v25 = vsub.f32 %v1847_v49, %v10261_v33  ;;  %v5835_v53 = vsub.f32 %v1877_v21, %v10261_v33  ;;  %v1820_v50 = vpop.f32.mrf.mxu1  ;;  %v1213_v44 = vadd.f32 %v10264_v41, %v1193_v34 }
 0x1dc   : > { %v5531_v47 = vsub.f32 %v1820_v50, %v10261_v33 }
 0x1dd   : > { %7828 = vmatmul.msk.f32.gmra.mxu0 %vm782_vm0, %v9915_v63  ;;  %6731 = vst [vmem:[%s10273_s22 + $0x780] sm:$0xff] %v5675_v25 }
 0x1de   : > { %6891 = vst [vmem:[%s10273_s22 + $0xc80] sm:$0xff] %v5835_v53  ;;  %7953 = vmatmul.msk.f32.gmra.mxu1 %vm782_vm0, %v9887_v37 }
 0x1df   : > { %6587 = vst [vmem:[%s10273_s22 + $0x300] sm:$0xff] %v5531_v47  ;;  %7889 = vmatmul.msk.f32.gmra.mxu2 %vm782_vm0, %v9887_v37  ;;  %7921 = vmatmul.msk.f32.gmra.mxu3 %vm782_vm0, %v9887_v37  ;;  %v1233_v37 = vadd.f32 %v10266_v42, %v1213_v44 }
 0x1e1   : > { %v10366_v51 = vperm.slane %v1233_v37, 0 }
 0x1e2   : > { %v1850_v62 = vpop.f32.mrf.mxu2  ;;  %v1880_v29 = vpop.f32.mrf.mxu3 }
 0x1e3   : > { %v5691_v46 = vsub.f32 %v1850_v62, %v10261_v33  ;;  %v5851_v30 = vsub.f32 %v1880_v29, %v10261_v33  ;;  %v1823_v61 = vpop.f32.mrf.mxu1  ;;  %v1495_v25 = vadd.f32 %v10366_v51, %v791_v20  ;;  %v1760_v62 = vld [vmem:[#allocation6 + $0x38] sm:$0xff] }
 0x1e4   : > { %v5547_v35 = vsub.f32 %v1823_v61, %v10261_v33  ;;  %2591 = vmatpush.msra.mxu1 %v1760_v62  ;;  %v10429_v61 = vperm.slane %v10258_v60, 3 }
 0x1e5   : > { %7829 = vmatmul.msk.f32.gmra.mxu0 %vm782_vm0, %v9934_v18  ;;  %6747 = vst [vmem:[%s10273_s22 + $0x800] sm:$0xff] %v5691_v46 }
 0x1e6   : > { %6907 = vst [vmem:[%s10273_s22 + $0xd00] sm:$0xff] %v5851_v30  ;;  %7954 = vmatmul.msk.f32.gmra.mxu1 %vm782_vm0, %v9910_v59 }
 0x1e7   : > { %6603 = vst [vmem:[%s10273_s22 + $0x380] sm:$0xff] %v5547_v35  ;;  %7890 = vmatmul.msk.f32.gmra.mxu2 %vm782_vm0, %v9910_v59  ;;  %7922 = vmatmul.msk.f32.gmra.mxu3 %vm782_vm0, %v9910_v59  ;;  %v785_v59 = vpop.xlane.xlu0 %784 }
 0x1e8   : > { %v1493_v52 = vadd.f32 %v10366_v51, %v785_v59 }
 0x1ea   : > { %v1853_v32 = vpop.f32.mrf.mxu2  ;;  %v1883_v41 = vpop.f32.mrf.mxu3 }
 0x1eb   : > { %v5707_v31 = vsub.f32 %v1853_v32, %v10261_v33  ;;  %v5867_v45 = vsub.f32 %v1883_v41, %v10261_v33  ;;  %v1826_v13 = vpop.f32.mrf.mxu1 }
 0x1ec   : > { %v5563_v48 = vsub.f32 %v1826_v13, %v10261_v33 }
 0x1ed   : > { %7830 = vmatmul.msk.f32.gmra.mxu0 %vm782_vm0, %v9944_v22  ;;  %6763 = vst [vmem:[%s10273_s22 + $0x880] sm:$0xff] %v5707_v31 }
 0x1ee   : > { %6923 = vst [vmem:[%s10273_s22 + $0xd80] sm:$0xff] %v5867_v45  ;;  %7955 = vmatmul.msk.f32.gmra.mxu1 %vm782_vm0, %v9920_v2 }
 0x1ef   : > { %6619 = vst [vmem:[%s10273_s22 + $0x400] sm:$0xff] %v5563_v48  ;;  %7891 = vmatmul.msk.f32.gmra.mxu2 %vm782_vm0, %v9920_v2  ;;  %7923 = vmatmul.msk.f32.gmra.mxu3 %vm782_vm0, %v9920_v2 }
 0x1f2   : > { %v1396_v42 = vpop.f32.mrf.mxu0  ;;  %v1856_v55 = vpop.f32.mrf.mxu2 }
 0x1f3   : > { %v1525_v54 = vmul.f32 2.0, %v1396_v42  ;;  %v1886_v15 = vpop.f32.mrf.mxu3  ;;  %v5723_v56 = vsub.f32 %v1856_v55, %v10261_v33  ;;  %v1829_v1 = vpop.f32.mrf.mxu1  ;;  %v10448_v55 = vperm.slane %v10258_v60, 1 }
 0x1f4   : > { %v5883_v57 = vsub.f32 %v1886_v15, %v10261_v33  ;;  %v5579_v2 = vsub.f32 %v1829_v1, %v10261_v33  ;;  %v10451_v15 = vperm.slane %v10258_v60, 2 }
 0x1f5   : > { %v1557_v3 = vsub.f32 %v1493_v52, %v1525_v54  ;;  %7831 = vmatmul.msk.f32.gmra.mxu0 %vm782_vm0, %v9939_v19  ;;  %6779 = vst [vmem:[%s10273_s22 + $0x900] sm:$0xff] %v5723_v56  ;;  %v788_v19 = vpop.xlane.xlu0 %787  ;;  %v8542_v54 = vld [vmem:[%s14390_s1 + $0x80] sm:$0xff]  ;;  %v797_v56 = vpop.xlane.xlu2 %796 }
 0x1f6   : > { %6939 = vst [vmem:[%s10273_s22 + $0xe00] sm:$0xff] %v5883_v57  ;;  %7956 = vmatmul.msk.f32.gmra.mxu1 %vm782_vm0, %v9915_v63  ;;  %v1494_v14 = vadd.f32 %v10366_v51, %v788_v19 }
 0x1f7   : > { %v1589_v6 = vmax.f32 %v1557_v3, 0.0  ;;  %6635 = vst [vmem:[%s10273_s22 + $0x480] sm:$0xff] %v5579_v2  ;;  %7892 = vmatmul.msk.f32.gmra.mxu2 %vm782_vm0, %v9915_v63  ;;  %7924 = vmatmul.msk.f32.gmra.mxu3 %vm782_vm0, %v9915_v63  ;;  %v1497_v3 = vadd.f32 %v10366_v51, %v797_v56 }
 0x1f9   : > { %v1623_v7 = vmul.f32 %v10383_v5, %v1589_v6 }
 0x1fa   : > { %v1399_v8 = vpop.f32.mrf.mxu0  ;;  %v1859_v10 = vpop.f32.mrf.mxu2 }
 0x1fb   : > { %v1655_v9 = vmul.f32 1.442695, %v1623_v7  ;;  %v1526_v0 = vmul.f32 2.0, %v1399_v8  ;;  %v1889_v11 = vpop.f32.mrf.mxu3  ;;  %v5739_v23 = vsub.f32 %v1859_v10, %v10261_v33  ;;  %v1832_v27 = vpop.f32.mrf.mxu1 }
 0x1fc   : > { %v5899_v12 = vsub.f32 %v1889_v11, %v10261_v33  ;;  %v5595_v17 = vsub.f32 %v1832_v27, %v10261_v33  ;;  %v8543_v11 = vld [vmem:[%s14390_s1 + $0x88] sm:$0xff] }
 0x1fd   : > { %8477 = vpow2.f32 %v1655_v9  ;;  %v1558_v63 = vsub.f32 %v1494_v14, %v1526_v0  ;;  %7832 = vmatmul.msk.f32.gmra.mxu0 %vm782_vm0, %v9958_v38  ;;  %6795 = vst [vmem:[%s10273_s22 + $0x980] sm:$0xff] %v5739_v23 }
 0x1fe   : > { %6955 = vst [vmem:[%s10273_s22 + $0xe80] sm:$0xff] %v5899_v12  ;;  %7957 = vmatmul.msk.f32.gmra.mxu1 %vm782_vm0, %v9934_v18 }
 0x1ff   : > { %v1590_v36 = vmax.f32 %v1558_v63, 0.0  ;;  %6651 = vst [vmem:[%s10273_s22 + $0x500] sm:$0xff] %v5595_v17  ;;  %7893 = vmatmul.msk.f32.gmra.mxu2 %vm782_vm0, %v9934_v18  ;;  %7925 = vmatmul.msk.f32.gmra.mxu3 %vm782_vm0, %v9934_v18 }
 0x201   : > { %v1624_v49 = vmul.f32 %v10383_v5, %v1590_v36 }
 0x202   : > { %v1402_v38 = vpop.f32.mrf.mxu0  ;;  %v1862_v47 = vpop.f32.mrf.mxu2 }
 0x203   : > { %v8478_v21 = vpop.eup %8477  ;;  %v1657_v53 = vmul.f32 1.442695, %v1624_v49  ;;  %v1527_v50 = vmul.f32 2.0, %v1402_v38  ;;  %v1892_v26 = vpop.f32.mrf.mxu3  ;;  %v5755_v28 = vsub.f32 %v1862_v47, %v10261_v33 }
 0x204   : > { %6459 = vst [vmem:[%s10413_s14] sm:$0xff] %v8478_v21  ;;  %v5915_v40 = vsub.f32 %v1892_v26, %v10261_v33  ;;  %v1835_v18 = vpop.f32.mrf.mxu1 }
 0x205   : > { %8479 = vpow2.f32 %v1657_v53  ;;  %v1559_v29 = vsub.f32 %v1495_v25, %v1527_v50  ;;  %7833 = vmatmul.msk.f32.gmra.mxu0 %vm782_vm0, %v9968_v43  ;;  %v5611_v46 = vsub.f32 %v1835_v18, %v10261_v33  ;;  %6811 = vst [vmem:[%s10273_s22 + $0xa00] sm:$0xff] %v5755_v28  ;;  %v794_v43 = vpop.xlane.xlu1 %793  ;;  %v8544_v50 = vld [vmem:[%s14390_s1 + $0x90] sm:$0xff] }
 0x206   : > { %6971 = vst [vmem:[%s10273_s22 + $0xf00] sm:$0xff] %v5915_v40  ;;  %7958 = vmatmul.msk.f32.gmra.mxu1 %vm782_vm0, %v9944_v22  ;;  %v1496_v37 = vadd.f32 %v10366_v51, %v794_v43 }
 0x207   : > { %v1591_v30 = vmax.f32 %v1559_v29, 0.0  ;;  %6667 = vst [vmem:[%s10273_s22 + $0x580] sm:$0xff] %v5611_v46  ;;  %7894 = vmatmul.msk.f32.gmra.mxu2 %vm782_vm0, %v9944_v22  ;;  %7926 = vmatmul.msk.f32.gmra.mxu3 %vm782_vm0, %v9944_v22 }
 0x209   : > { %v1625_v34 = vmul.f32 %v10383_v5, %v1591_v30 }
 0x20a   : > { %v1405_v35 = vpop.f32.mrf.mxu0  ;;  %v1865_v31 = vpop.f32.mrf.mxu2 }
 0x20b   : > { %v8480_v44 = vpop.eup %8479  ;;  %v1659_v32 = vmul.f32 1.442695, %v1625_v34  ;;  %v1528_v41 = vmul.f32 2.0, %v1405_v35  ;;  %v1895_v45 = vpop.f32.mrf.mxu3  ;;  %v5771_v13 = vsub.f32 %v1865_v31, %v10261_v33 }
 0x20c   : > { %6460 = vst [vmem:[%s10413_s14 + $0x8] sm:$0xff] %v8480_v44  ;;  %v5931_v48 = vsub.f32 %v1895_v45, %v10261_v33  ;;  %v2141_v59 = vpop.f32.mrf.mxu1  ;;  %v10498_v44 = vld [vmem:[%s14390_s1 + $0xb0] sm:$0xff] }
 0x20d   : > { %8481 = vpow2.f32 %v1659_v32  ;;  %v1560_v22 = vsub.f32 %v1496_v37, %v1528_v41  ;;  %7834 = vmatmul.msk.f32.gmra.mxu0 %vm782_vm0, %v9963_v39  ;;  %v5438_v42 = vsub.f32 %v2141_v59, %v10429_v61  ;;  %6827 = vst [vmem:[%s10273_s22 + $0xa80] sm:$0xff] %v5771_v13  ;;  %v8546_v41 = vld [vmem:[%s14390_s1 + $0x98] sm:$0xff]  ;;  %v806_v45 = vpop.xlane.xlu1 %805 }
 0x20e   : > { %6987 = vst [vmem:[%s10273_s22 + $0xf80] sm:$0xff] %v5931_v48  ;;  %7959 = vmatmul.msk.f32.gmra.mxu1 %vm782_vm0, %v8542_v54  ;;  %v1500_v59 = vadd.f32 %v10366_v51, %v806_v45 }
 0x20f   : > { %v1592_v52 = vmax.f32 %v1560_v22, 0.0  ;;  %6494 = vst [vmem:[%s10273_s22 + $0x18] sm:$0xff] %v5438_v42  ;;  %7895 = vmatmul.msk.f32.gmra.mxu2 %vm782_vm0, %v8542_v54  ;;  %7927 = vmatmul.msk.f32.gmra.mxu3 %vm782_vm0, %v8542_v54 }
 0x211   : > { %v1626_v39 = vmul.f32 %v10383_v5, %v1592_v52 }
 0x212   : > { %v1408_v57 = vpop.f32.mrf.mxu0  ;;  %v1915_v7 = vpop.f32.mrf.mxu2 }
 0x213   : > { %v8482_v1 = vpop.eup %8481  ;;  %v1661_v2 = vmul.f32 1.442695, %v1626_v39  ;;  %v1529_v6 = vmul.f32 2.0, %v1408_v57  ;;  %v2028_v60 = vpop.f32.mrf.mxu3  ;;  %v5436_v19 = vsub.f32 %v1915_v7, %v10448_v55  ;;  %v8548_v7 = vld [vmem:[%s14390_s1 + $0xa0] sm:$0xff] }
 0x214   : > { %6461 = vst [vmem:[%s10413_s14 + $0x10] sm:$0xff] %v8482_v1  ;;  %v5437_v8 = vsub.f32 %v2028_v60, %v10451_v15  ;;  %v2144_v14 = vpop.f32.mrf.mxu1 }
 0x215   : > { %8483 = vpow2.f32 %v1661_v2  ;;  %v1561_v9 = vsub.f32 %v1497_v3, %v1529_v6  ;;  %7835 = vmatmul.msk.f32.gmra.mxu0 %vm782_vm0, %v9982_v58  ;;  %v5454_v0 = vsub.f32 %v2144_v14, %v10429_v61  ;;  %6492 = vst [vmem:[%s10273_s22 + $0x8] sm:$0xff] %v5436_v19  ;;  %v800_v58 = vpop.xlane.xlu2 %799  ;;  %v10520_v3 = vld [vmem:[%s14390_s1 + $0xb8] sm:$0xff] }
 0x216   : > { %6493 = vst [vmem:[%s10273_s22 + $0x10] sm:$0xff] %v5437_v8  ;;  %7960 = vmatmul.msk.f32.gmra.mxu1 %vm782_vm0, %v8543_v11  ;;  %v1498_v16 = vadd.f32 %v10366_v51, %v800_v58 }
 0x217   : > { %v1593_v10 = vmax.f32 %v1561_v9, 0.0  ;;  %6510 = vst [vmem:[%s10273_s22 + $0x98] sm:$0xff] %v5454_v0  ;;  %7896 = vmatmul.msk.f32.gmra.mxu2 %vm782_vm0, %v8543_v11  ;;  %7928 = vmatmul.msk.f32.gmra.mxu3 %vm782_vm0, %v8543_v11 }
 0x219   : > { %v1627_v23 = vmul.f32 %v10383_v5, %v1593_v10 }
 0x21a   : > { %v1411_v12 = vpop.f32.mrf.mxu0  ;;  %v1918_v17 = vpop.f32.mrf.mxu2 }
 0x21b   : > { %v8484_v27 = vpop.eup %8483  ;;  %v1663_v24 = vmul.f32 1.442695, %v1627_v23  ;;  %v1530_v63 = vmul.f32 2.0, %v1411_v12  ;;  %v2031_v36 = vpop.f32.mrf.mxu3  ;;  %v5452_v20 = vsub.f32 %v1918_v17, %v10448_v55 }
 0x21c   : > { %6462 = vst [vmem:[%s10413_s14 + $0x18] sm:$0xff] %v8484_v27  ;;  %v5453_v49 = vsub.f32 %v2031_v36, %v10451_v15  ;;  %v2147_v38 = vpop.f32.mrf.mxu1  ;;  %v8550_v36 = vld [vmem:[%s14390_s1 + $0xa8] sm:$0xff] }
 0x21d   : > { %8485 = vpow2.f32 %v1663_v24  ;;  %v1562_v21 = vsub.f32 %v1498_v16, %v1530_v63  ;;  %7836 = vmatmul.msk.f32.gmra.mxu0 %vm782_vm0, %v9992_v4  ;;  %v5470_v25 = vsub.f32 %v2147_v38, %v10429_v61  ;;  %6508 = vst [vmem:[%s10273_s22 + $0x88] sm:$0xff] %v5452_v20  ;;  %v803_v4 = vpop.xlane.xlu0 %802  ;;  %v809_v19 = vpop.xlane.xlu2 %808  ;;  %v10542_v24 = vld [vmem:[%s14390_s1 + $0xc0] sm:$0xff] }
 0x21e   : > { %6509 = vst [vmem:[%s10273_s22 + $0x90] sm:$0xff] %v5453_v49  ;;  %7961 = vmatmul.msk.f32.gmra.mxu1 %vm782_vm0, %v8544_v50  ;;  %v1499_v40 = vadd.f32 %v10366_v51, %v803_v4  ;;  %v1501_v9 = vadd.f32 %v10366_v51, %v809_v19 }
 0x21f   : > { %v1594_v53 = vmax.f32 %v1562_v21, 0.0  ;;  %6526 = vst [vmem:[%s10273_s22 + $0x118] sm:$0xff] %v5470_v25  ;;  %7897 = vmatmul.msk.f32.gmra.mxu2 %vm782_vm0, %v8544_v50  ;;  %7929 = vmatmul.msk.f32.gmra.mxu3 %vm782_vm0, %v8544_v50 }
 0x221   : > { %v1628_v47 = vmul.f32 %v10383_v5, %v1594_v53 }
 0x222   : > { %v1414_v26 = vpop.f32.mrf.mxu0  ;;  %v1921_v29 = vpop.f32.mrf.mxu2 }
 0x223   : > { %v8486_v28 = vpop.eup %8485  ;;  %v1665_v18 = vmul.f32 1.442695, %v1628_v47  ;;  %v1531_v62 = vmul.f32 2.0, %v1414_v26  ;;  %v2034_v46 = vpop.f32.mrf.mxu3  ;;  %v5468_v30 = vsub.f32 %v1921_v29, %v10448_v55 }
 0x224   : > { %6463 = vst [vmem:[%s10413_s14 + $0x20] sm:$0xff] %v8486_v28  ;;  %v5469_v34 = vsub.f32 %v2034_v46, %v10451_v15  ;;  %v2150_v43 = vpop.f32.mrf.mxu1 }
 0x225   : > { %8487 = vpow2.f32 %v1665_v18  ;;  %v1563_v35 = vsub.f32 %v1499_v40, %v1531_v62  ;;  %7837 = vmatmul.msk.f32.gmra.mxu0 %vm782_vm0, %v10498_v44  ;;  %v5486_v37 = vsub.f32 %v2150_v43, %v10429_v61  ;;  %6524 = vst [vmem:[%s10273_s22 + $0x108] sm:$0xff] %v5468_v30  ;;  %v812_v49 = vpop.xlane.xlu0 %811  ;;  %v10564_v62 = vld [vmem:[%s14390_s1 + $0xc8] sm:$0xff] }
 0x226   : > { %6525 = vst [vmem:[%s10273_s22 + $0x110] sm:$0xff] %v5469_v34  ;;  %7962 = vmatmul.msk.f32.gmra.mxu1 %vm782_vm0, %v8546_v41  ;;  %v1502_v25 = vadd.f32 %v10366_v51, %v812_v49  ;;  %v815_v34 = vpop.xlane.xlu1 %814 }
 0x227   : > { %v1595_v32 = vmax.f32 %v1563_v35, 0.0  ;;  %6542 = vst [vmem:[%s10273_s22 + $0x198] sm:$0xff] %v5486_v37  ;;  %7898 = vmatmul.msk.f32.gmra.mxu2 %vm782_vm0, %v8546_v41  ;;  %7930 = vmatmul.msk.f32.gmra.mxu3 %vm782_vm0, %v8546_v41  ;;  %v1503_v37 = vadd.f32 %v10366_v51, %v815_v34 }
 0x229   : > { %v1629_v31 = vmul.f32 %v10383_v5, %v1595_v32 }
 0x22a   : > { %v1417_v13 = vpop.f32.mrf.mxu0  ;;  %v1924_v52 = vpop.f32.mrf.mxu2 }
 0x22b   : > { %v8488_v48 = vpop.eup %8487  ;;  %v1667_v22 = vmul.f32 1.442695, %v1629_v31  ;;  %v1532_v42 = vmul.f32 2.0, %v1417_v13  ;;  %v2037_v54 = vpop.f32.mrf.mxu3  ;;  %v5484_v56 = vsub.f32 %v1924_v52, %v10448_v55 }
 0x22c   : > { %6464 = vst [vmem:[%s10413_s14 + $0x28] sm:$0xff] %v8488_v48  ;;  %v5485_v39 = vsub.f32 %v2037_v54, %v10451_v15  ;;  %v2153_v57 = vpop.f32.mrf.mxu1 }
 0x22d   : > { %8489 = vpow2.f32 %v1667_v22  ;;  %v1564_v1 = vsub.f32 %v1500_v59, %v1532_v42  ;;  %7838 = vmatmul.msk.f32.gmra.mxu0 %vm782_vm0, %v10520_v3  ;;  %v5502_v2 = vsub.f32 %v2153_v57, %v10429_v61  ;;  %6540 = vst [vmem:[%s10273_s22 + $0x188] sm:$0xff] %v5484_v56  ;;  %v10586_v22 = vld [vmem:[%s14390_s1 + $0xd0] sm:$0xff]  ;;  %v818_v56 = vpop.xlane.xlu2 %817 }
 0x22e   : > { %6541 = vst [vmem:[%s10273_s22 + $0x190] sm:$0xff] %v5485_v39  ;;  %7963 = vmatmul.msk.f32.gmra.mxu1 %vm782_vm0, %v8548_v7 }
 0x22f   : > { %v1596_v6 = vmax.f32 %v1564_v1, 0.0  ;;  %6558 = vst [vmem:[%s10273_s22 + $0x218] sm:$0xff] %v5502_v2  ;;  %7899 = vmatmul.msk.f32.gmra.mxu2 %vm782_vm0, %v8548_v7  ;;  %7931 = vmatmul.msk.f32.gmra.mxu3 %vm782_vm0, %v8548_v7  ;;  %v1504_v1 = vadd.f32 %v10366_v51, %v818_v56 }
 0x231   : > { %v1630_v60 = vmul.f32 %v10383_v5, %v1596_v6 }
 0x232   : > { %v1420_v8 = vpop.f32.mrf.mxu0  ;;  %v1927_v11 = vpop.f32.mrf.mxu2 }
 0x233   : > { %v8490_v14 = vpop.eup %8489  ;;  %v1669_v0 = vmul.f32 1.442695, %v1630_v60  ;;  %v1533_v10 = vmul.f32 2.0, %v1420_v8  ;;  %v2040_v23 = vpop.f32.mrf.mxu3  ;;  %v5500_v58 = vsub.f32 %v1927_v11, %v10448_v55 }
 0x234   : > { %6465 = vst [vmem:[%s10413_s14 + $0x30] sm:$0xff] %v8490_v14  ;;  %v5501_v12 = vsub.f32 %v2040_v23, %v10451_v15  ;;  %v2156_v27 = vpop.f32.mrf.mxu1  ;;  %v821_v23 = vpop.xlane.xlu0 %820 }
 0x235   : > { %8491 = vpow2.f32 %v1669_v0  ;;  %v1565_v16 = vsub.f32 %v1501_v9, %v1533_v10  ;;  %7839 = vmatmul.msk.f32.gmra.mxu0 %vm782_vm0, %v10542_v24  ;;  %v5518_v63 = vsub.f32 %v2156_v27, %v10429_v61  ;;  %6556 = vst [vmem:[%s10273_s22 + $0x208] sm:$0xff] %v5500_v58  ;;  %v10608_v9 = vld [vmem:[%s14390_s1 + $0xd8] sm:$0xff]  ;;  %v1505_v27 = vadd.f32 %v10366_v51, %v821_v23 }
 0x236   : > { %6557 = vst [vmem:[%s10273_s22 + $0x210] sm:$0xff] %v5501_v12  ;;  %7964 = vmatmul.msk.f32.gmra.mxu1 %vm782_vm0, %v8550_v36 }
 0x237   : > { %v1597_v17 = vmax.f32 %v1565_v16, 0.0  ;;  %6574 = vst [vmem:[%s10273_s22 + $0x298] sm:$0xff] %v5518_v63  ;;  %7900 = vmatmul.msk.f32.gmra.mxu2 %vm782_vm0, %v8550_v36  ;;  %7932 = vmatmul.msk.f32.gmra.mxu3 %vm782_vm0, %v8550_v36 }
 0x239   : > { %v1631_v20 = vmul.f32 %v10383_v5, %v1597_v17 }
 0x23a   : > { %v1423_v38 = vpop.f32.mrf.mxu0  ;;  %v1930_v47 = vpop.f32.mrf.mxu2 }
 0x23b   : > { %v8492_v21 = vpop.eup %8491  ;;  %v1671_v53 = vmul.f32 1.442695, %v1631_v20  ;;  %v1534_v50 = vmul.f32 2.0, %v1423_v38  ;;  %v2043_v4 = vpop.f32.mrf.mxu3  ;;  %v5516_v26 = vsub.f32 %v1930_v47, %v10448_v55 }
 0x23c   : > { %6466 = vst [vmem:[%s10413_s14 + $0x38] sm:$0xff] %v8492_v21  ;;  %v5517_v28 = vsub.f32 %v2043_v4, %v10451_v15  ;;  %v2159_v40 = vpop.f32.mrf.mxu1  ;;  %v10630_v21 = vld [vmem:[%s14390_s1 + $0xe0] sm:$0xff]  ;;  %v824_v47 = vpop.xlane.xlu1 %823 }
 0x23d   : > { %8493 = vpow2.f32 %v1671_v53  ;;  %v1566_v18 = vsub.f32 %v1502_v25, %v1534_v50  ;;  %7840 = vmatmul.msk.f32.gmra.mxu0 %vm782_vm0, %v10564_v62  ;;  %v5534_v29 = vsub.f32 %v2159_v40, %v10429_v61  ;;  %6572 = vst [vmem:[%s10273_s22 + $0x288] sm:$0xff] %v5516_v26 }
 0x23e   : > { %6573 = vst [vmem:[%s10273_s22 + $0x290] sm:$0xff] %v5517_v28  ;;  %7965 = vmatmul.msk.f32.gmra.mxu1 %vm782_vm0, %v10498_v44  ;;  %v1506_v28 = vadd.f32 %v10366_v51, %v824_v47 }
 0x23f   : > { %v1598_v46 = vmax.f32 %v1566_v18, 0.0  ;;  %6590 = vst [vmem:[%s10273_s22 + $0x318] sm:$0xff] %v5534_v29  ;;  %7901 = vmatmul.msk.f32.gmra.mxu2 %vm782_vm0, %v10498_v44  ;;  %7933 = vmatmul.msk.f32.gmra.mxu3 %vm782_vm0, %v10498_v44 }
 0x241   : > { %v1632_v30 = vmul.f32 %v10383_v5, %v1598_v46 }
 0x242   : > { %v1426_v43 = vpop.f32.mrf.mxu0  ;;  %v1933_v31 = vpop.f32.mrf.mxu2 }
 0x243   : > { %v8494_v35 = vpop.eup %8493  ;;  %v1673_v32 = vmul.f32 1.442695, %v1632_v30  ;;  %v1535_v41 = vmul.f32 2.0, %v1426_v43  ;;  %v2046_v45 = vpop.f32.mrf.mxu3  ;;  %v5532_v13 = vsub.f32 %v1933_v31, %v10448_v55 }
 0x244   : > { %6467 = vst [vmem:[%s10413_s14 + $0x40] sm:$0xff] %v8494_v35  ;;  %v5533_v48 = vsub.f32 %v2046_v45, %v10451_v15  ;;  %v2162_v59 = vpop.f32.mrf.mxu1  ;;  %v10652_v35 = vld [vmem:[%s14390_s1 + $0xe8] sm:$0xff]  ;;  %v827_v31 = vpop.xlane.xlu2 %826 }
 0x245   : > { %8495 = vpow2.f32 %v1673_v32  ;;  %v1567_v44 = vsub.f32 %v1503_v37, %v1535_v41  ;;  %7841 = vmatmul.msk.f32.gmra.mxu0 %vm782_vm0, %v10586_v22  ;;  %v5550_v42 = vsub.f32 %v2162_v59, %v10429_v61  ;;  %6588 = vst [vmem:[%s10273_s22 + $0x308] sm:$0xff] %v5532_v13 }
 0x246   : > { %6589 = vst [vmem:[%s10273_s22 + $0x310] sm:$0xff] %v5533_v48  ;;  %7966 = vmatmul.msk.f32.gmra.mxu1 %vm782_vm0, %v10520_v3  ;;  %v1507_v48 = vadd.f32 %v10366_v51, %v827_v31 }
 0x247   : > { %v1599_v52 = vmax.f32 %v1567_v44, 0.0  ;;  %6606 = vst [vmem:[%s10273_s22 + $0x398] sm:$0xff] %v5550_v42  ;;  %7902 = vmatmul.msk.f32.gmra.mxu2 %vm782_vm0, %v10520_v3  ;;  %7934 = vmatmul.msk.f32.gmra.mxu3 %vm782_vm0, %v10520_v3 }
 0x249   : > { %v1633_v54 = vmul.f32 %v10383_v5, %v1599_v52 }
 0x24a   : > { %v1429_v39 = vpop.f32.mrf.mxu0  ;;  %v1936_v7 = vpop.f32.mrf.mxu2 }
 0x24b   : > { %v8496_v57 = vpop.eup %8495  ;;  %v1675_v2 = vmul.f32 1.442695, %v1633_v54  ;;  %v1536_v6 = vmul.f32 2.0, %v1429_v39  ;;  %v5548_v60 = vsub.f32 %v1936_v7, %v10448_v55  ;;  %v2049_v19 = vpop.f32.mrf.mxu3 }
 0x24c   : > { %6468 = vst [vmem:[%s10413_s14 + $0x48] sm:$0xff] %v8496_v57  ;;  %v2165_v8 = vpop.f32.mrf.mxu1  ;;  %v5549_v3 = vsub.f32 %v2049_v19, %v10451_v15  ;;  %v10674_v57 = vld [vmem:[%s14390_s1 + $0xf0] sm:$0xff] }
 0x24d   : > { %8497 = vpow2.f32 %v1675_v2  ;;  %v1568_v14 = vsub.f32 %v1504_v1, %v1536_v6  ;;  %7842 = vmatmul.msk.f32.gmra.mxu0 %vm782_vm0, %v10608_v9  ;;  %v5566_v0 = vsub.f32 %v2165_v8, %v10429_v61  ;;  %6604 = vst [vmem:[%s10273_s22 + $0x388] sm:$0xff] %v5548_v60  ;;  %v1775_v6 = vld [vmem:[#allocation6 + $0xb0] sm:$0xff]  ;;  %v830_v60 = vpop.xlane.xlu0 %829 }
 0x24e   : > { %6605 = vst [vmem:[%s10273_s22 + $0x390] sm:$0xff] %v5549_v3  ;;  %7967 = vmatmul.msk.f32.gmra.mxu1 %vm782_vm0, %v10542_v24  ;;  %2477 = vmatpush.msra.mxu0 %v1775_v6  ;;  %v1759_v8 = vld [vmem:[#allocation6 + $0x30] sm:$0xff]  ;;  %v1508_v3 = vadd.f32 %v10366_v51, %v830_v60 }
 0x24f   : > { %v1600_v10 = vmax.f32 %v1568_v14, 0.0  ;;  %6622 = vst [vmem:[%s10273_s22 + $0x418] sm:$0xff] %v5566_v0  ;;  %7903 = vmatmul.msk.f32.gmra.mxu2 %vm782_vm0, %v10542_v24  ;;  %7935 = vmatmul.msk.f32.gmra.mxu3 %vm782_vm0, %v10542_v24 }
 0x250   : > { %2478 = vmatpush.msra.mxu0 %v1759_v8 }
 0x251   : > { %v1634_v11 = vmul.f32 %v10383_v5, %v1600_v10 }
 0x252   : > { %v1432_v58 = vpop.f32.mrf.mxu0  ;;  %v1939_v17 = vpop.f32.mrf.mxu2 }
 0x253   : > { %v8498_v12 = vpop.eup %8497  ;;  %v1677_v16 = vmul.f32 1.442695, %v1634_v11  ;;  %v1537_v63 = vmul.f32 2.0, %v1432_v58  ;;  %v5564_v36 = vsub.f32 %v1939_v17, %v10448_v55  ;;  %v2052_v20 = vpop.f32.mrf.mxu3 }
 0x254   : > { %6469 = vst [vmem:[%s10413_s14 + $0x50] sm:$0xff] %v8498_v12  ;;  %v2168_v49 = vpop.f32.mrf.mxu1  ;;  %v5565_v24 = vsub.f32 %v2052_v20, %v10451_v15  ;;  %v833_v20 = vpop.xlane.xlu1 %832 }
 0x255   : > { %8499 = vpow2.f32 %v1677_v16  ;;  %v1569_v38 = vsub.f32 %v1505_v27, %v1537_v63  ;;  %7843 = vmatmul.msk.f32.gmra.mxu0 %vm782_vm0, %v10630_v21  ;;  %v5582_v25 = vsub.f32 %v2168_v49, %v10429_v61  ;;  %6620 = vst [vmem:[%s10273_s22 + $0x408] sm:$0xff] %v5564_v36  ;;  %v10696_v16 = vld [vmem:[%s14390_s1 + $0xf8] sm:$0xff] }
 0x256   : > { %6621 = vst [vmem:[%s10273_s22 + $0x410] sm:$0xff] %v5565_v24  ;;  %7968 = vmatmul.msk.f32.gmra.mxu1 %vm782_vm0, %v10564_v62  ;;  %v1509_v24 = vadd.f32 %v10366_v51, %v833_v20 }
 0x257   : > { %v1601_v53 = vmax.f32 %v1569_v38, 0.0  ;;  %6638 = vst [vmem:[%s10273_s22 + $0x498] sm:$0xff] %v5582_v25  ;;  %7904 = vmatmul.msk.f32.gmra.mxu2 %vm782_vm0, %v10564_v62  ;;  %7936 = vmatmul.msk.f32.gmra.mxu3 %vm782_vm0, %v10564_v62 }
 0x259   : > { %v1635_v50 = vmul.f32 %v10383_v5, %v1601_v53 }
 0x25a   : > { %v1435_v4 = vpop.f32.mrf.mxu0  ;;  %v1942_v29 = vpop.f32.mrf.mxu2 }
 0x25b   : > { %v8500_v26 = vpop.eup %8499  ;;  %v1679_v40 = vmul.f32 1.442695, %v1635_v50  ;;  %v1538_v18 = vmul.f32 2.0, %v1435_v4  ;;  %v5580_v46 = vsub.f32 %v1942_v29, %v10448_v55  ;;  %v2055_v30 = vpop.f32.mrf.mxu3 }
 0x25c   : > { %6470 = vst [vmem:[%s10413_s14 + $0x58] sm:$0xff] %v8500_v26  ;;  %v2171_v34 = vpop.f32.mrf.mxu1  ;;  %v5581_v62 = vsub.f32 %v2055_v30, %v10451_v15  ;;  %v836_v30 = vpop.xlane.xlu2 %835 }
 0x25d   : > { %8501 = vpow2.f32 %v1679_v40  ;;  %v1570_v43 = vsub.f32 %v1506_v28, %v1538_v18  ;;  %7844 = vmatmul.msk.f32.gmra.mxu0 %vm782_vm0, %v10652_v35  ;;  %v5598_v37 = vsub.f32 %v2171_v34, %v10429_v61  ;;  %6636 = vst [vmem:[%s10273_s22 + $0x488] sm:$0xff] %v5580_v46  ;;  %v10718_v40 = vld [vmem:[%s14390_s1] sm:$0xff] }
 0x25e   : > { %6637 = vst [vmem:[%s10273_s22 + $0x490] sm:$0xff] %v5581_v62  ;;  %7969 = vmatmul.msk.f32.gmra.mxu1 %vm782_vm0, %v10586_v22  ;;  %v1510_v62 = vadd.f32 %v10366_v51, %v836_v30 }
 0x25f   : > { %v1602_v32 = vmax.f32 %v1570_v43, 0.0  ;;  %6654 = vst [vmem:[%s10273_s22 + $0x518] sm:$0xff] %v5598_v37  ;;  %7905 = vmatmul.msk.f32.gmra.mxu2 %vm782_vm0, %v10586_v22  ;;  %7937 = vmatmul.msk.f32.gmra.mxu3 %vm782_vm0, %v10586_v22 }
 0x261   : > { %v1636_v41 = vmul.f32 %v10383_v5, %v1602_v32 }
 0x262   : > { %v1438_v45 = vpop.f32.mrf.mxu0  ;;  %v1945_v42 = vpop.f32.mrf.mxu2 }
 0x263   : > { %v8502_v13 = vpop.eup %8501  ;;  %v1681_v59 = vmul.f32 1.442695, %v1636_v41  ;;  %v1539_v44 = vmul.f32 2.0, %v1438_v45  ;;  %v5596_v52 = vsub.f32 %v1945_v42, %v10448_v55  ;;  %v2058_v54 = vpop.f32.mrf.mxu3  ;;  %v10740_v42 = vld [vmem:[%s14390_s1 + $0x8] sm:$0xff] }
 0x264   : > { %6471 = vst [vmem:[%s10413_s14 + $0x60] sm:$0xff] %v8502_v13  ;;  %v2174_v56 = vpop.f32.mrf.mxu1  ;;  %v5597_v22 = vsub.f32 %v2058_v54, %v10451_v15 }
 0x265   : > { %8503 = vpow2.f32 %v1681_v59  ;;  %v1571_v39 = vsub.f32 %v1507_v48, %v1539_v44  ;;  %7845 = vmatmul.msk.f32.gmra.mxu0 %vm782_vm0, %v10674_v57  ;;  %v5614_v1 = vsub.f32 %v2174_v56, %v10429_v61  ;;  %6652 = vst [vmem:[%s10273_s22 + $0x508] sm:$0xff] %v5596_v52  ;;  %v1777_v48 = vld [vmem:[#allocation6 + $0xc0] sm:$0xff]  ;;  %v1778_v59 = vld [vmem:[#allocation6 + $0xc8] sm:$0xff] }
 0x266   : > { %6653 = vst [vmem:[%s10273_s22 + $0x510] sm:$0xff] %v5597_v22  ;;  %7970 = vmatmul.msk.f32.gmra.mxu1 %vm782_vm0, %v10608_v9  ;;  %2703 = vmatpush.msrb.mxu2 %v1777_v48 }
 0x267   : > { %v1603_v2 = vmax.f32 %v1571_v39, 0.0  ;;  %6670 = vst [vmem:[%s10273_s22 + $0x598] sm:$0xff] %v5614_v1  ;;  %7906 = vmatmul.msk.f32.gmra.mxu2 %vm782_vm0, %v10608_v9  ;;  %7938 = vmatmul.msk.f32.gmra.mxu3 %vm782_vm0, %v10608_v9  ;;  %v839_v39 = vpop.xlane.xlu0 %838 }
 0x268   : > { %2816 = vmatpush.msrb.mxu3 %v1778_v59 }
 0x269   : > { %v1637_v7 = vmul.f32 %v10383_v5, %v1603_v2  ;;  %v1511_v2 = vadd.f32 %v10366_v51, %v839_v39 }
 0x26a   : > { %v1441_v19 = vpop.f32.mrf.mxu0  ;;  %v1948_v11 = vpop.f32.mrf.mxu2 }
 0x26b   : > { %v8504_v14 = vpop.eup %8503  ;;  %v1683_v0 = vmul.f32 1.442695, %v1637_v7  ;;  %v1540_v10 = vmul.f32 2.0, %v1441_v19  ;;  %v5612_v23 = vsub.f32 %v1948_v11, %v10448_v55  ;;  %v2061_v58 = vpop.f32.mrf.mxu3 }
 0x26c   : > { %6472 = vst [vmem:[%s10413_s14 + $0x68] sm:$0xff] %v8504_v14  ;;  %v2177_v12 = vpop.f32.mrf.mxu1  ;;  %v5613_v27 = vsub.f32 %v2061_v58, %v10451_v15 }
 0x26d   : > { %8505 = vpow2.f32 %v1683_v0  ;;  %v1572_v9 = vsub.f32 %v1508_v3, %v1540_v10  ;;  %7846 = vmatmul.msk.f32.gmra.mxu0 %vm782_vm0, %v10696_v16  ;;  %v5630_v63 = vsub.f32 %v2177_v12, %v10429_v61  ;;  %6668 = vst [vmem:[%s10273_s22 + $0x588] sm:$0xff] %v5612_v23  ;;  %v1779_v3 = vld [vmem:[#allocation6 + $0xd0] sm:$0xff]  ;;  %v1780_v0 = vld [vmem:[#allocation6 + $0xd8] sm:$0xff]  ;;  %v842_v12 = vpop.xlane.xlu1 %841 }
 0x26e   : > { %6669 = vst [vmem:[%s10273_s22 + $0x590] sm:$0xff] %v5613_v27  ;;  %7971 = vmatmul.msk.f32.gmra.mxu1 %vm782_vm0, %v10630_v21 }
 0x26f   : > { %v1604_v17 = vmax.f32 %v1572_v9, 0.0  ;;  %6686 = vst [vmem:[%s10273_s22 + $0x618] sm:$0xff] %v5630_v63  ;;  %7907 = vmatmul.msk.f32.gmra.mxu2 %vm782_vm0, %v10630_v21  ;;  %7939 = vmatmul.msk.f32.gmra.mxu3 %vm782_vm0, %v10630_v21  ;;  %v1512_v63 = vadd.f32 %v10366_v51, %v842_v12 }
 0x270   : > { %3042 = vmatpush.msrb.mxu1 %v1780_v0 }
 0x271   : > { %v1638_v36 = vmul.f32 %v10383_v5, %v1604_v17 }
 0x272   : > { %v1444_v49 = vpop.f32.mrf.mxu0  ;;  %v1951_v50 = vpop.f32.mrf.mxu2 }
 0x273   : > { %v8506_v38 = vpop.eup %8505  ;;  %v1685_v25 = vmul.f32 1.442695, %v1638_v36  ;;  %v1541_v53 = vmul.f32 2.0, %v1444_v49  ;;  %v5628_v47 = vsub.f32 %v1951_v50, %v10448_v55  ;;  %v2064_v4 = vpop.f32.mrf.mxu3 }
 0x274   : > { %6473 = vst [vmem:[%s10413_s14 + $0x70] sm:$0xff] %v8506_v38  ;;  %v2180_v26 = vpop.f32.mrf.mxu1  ;;  %v5629_v21 = vsub.f32 %v2064_v4, %v10451_v15  ;;  %v845_v4 = vpop.xlane.xlu2 %844 }
 0x275   : > { %8507 = vpow2.f32 %v1685_v25  ;;  %v1573_v28 = vsub.f32 %v1509_v24, %v1541_v53  ;;  %7847 = vmatmul.msk.f32.vlgmr.msrb.gmra.mxu0 %vm782_vm0, %v10718_v40  ;;  %v5646_v18 = vsub.f32 %v2180_v26, %v10429_v61  ;;  %6684 = vst [vmem:[%s10273_s22 + $0x608] sm:$0xff] %v5628_v47 }
 0x276   : > { %6685 = vst [vmem:[%s10273_s22 + $0x610] sm:$0xff] %v5629_v21  ;;  %7972 = vmatmul.msk.f32.gmra.mxu1 %vm782_vm0, %v10652_v35  ;;  %2929 = vmatpush.msrb.mxu0 %v1779_v3  ;;  %v1513_v21 = vadd.f32 %v10366_v51, %v845_v4 }
 0x277   : > { %v1605_v29 = vmax.f32 %v1573_v28, 0.0  ;;  %6702 = vst [vmem:[%s10273_s22 + $0x698] sm:$0xff] %v5646_v18  ;;  %7908 = vmatmul.msk.f32.gmra.mxu2 %vm782_vm0, %v10652_v35  ;;  %7940 = vmatmul.msk.f32.gmra.mxu3 %vm782_vm0, %v10652_v35 }
 0x279   : > { %v1639_v46 = vmul.f32 %v10383_v5, %v1605_v29 }
 0x27a   : > { %v1447_v34 = vpop.f32.mrf.mxu0  ;;  %v1954_v41 = vpop.f32.mrf.mxu2 }
 0x27b   : > { %v8508_v43 = vpop.eup %8507  ;;  %v1687_v37 = vmul.f32 1.442695, %v1639_v46  ;;  %v1542_v32 = vmul.f32 2.0, %v1447_v34  ;;  %v5644_v31 = vsub.f32 %v1954_v41, %v10448_v55  ;;  %v2067_v45 = vpop.f32.mrf.mxu3 }
 0x27c   : > { %6474 = vst [vmem:[%s10413_s14 + $0x78] sm:$0xff] %v8508_v43  ;;  %v2183_v13 = vpop.f32.mrf.mxu1  ;;  %v5645_v44 = vsub.f32 %v2067_v45, %v10451_v15  ;;  %v848_v45 = vpop.xlane.xlu0 %847 }
 0x27d   : > { %8509 = vpow2.f32 %v1687_v37  ;;  %v1574_v35 = vsub.f32 %v1510_v62, %v1542_v32  ;;  %7848 = vmatmul.msk.f32.gmra.mxu0 %vm782_vm0, %v10740_v42  ;;  %v5662_v52 = vsub.f32 %v2183_v13, %v10429_v61  ;;  %6700 = vst [vmem:[%s10273_s22 + $0x688] sm:$0xff] %v5644_v31  ;;  %v8560_v32 = vld [vmem:[%s14390_s1 + $0x10] sm:$0xff]  ;;  %v1514_v59 = vadd.f32 %v10366_v51, %v848_v45 }
 0x27e   : > { %6701 = vst [vmem:[%s10273_s22 + $0x690] sm:$0xff] %v5645_v44  ;;  %7973 = vmatmul.msk.f32.gmra.mxu1 %vm782_vm0, %v10674_v57 }
 0x27f   : > { %v1606_v54 = vmax.f32 %v1574_v35, 0.0  ;;  %6718 = vst [vmem:[%s10273_s22 + $0x718] sm:$0xff] %v5662_v52  ;;  %7909 = vmatmul.msk.f32.gmra.mxu2 %vm782_vm0, %v10674_v57  ;;  %7941 = vmatmul.msk.f32.gmra.mxu3 %vm782_vm0, %v10674_v57 }
 0x281   : > { %v1640_v56 = vmul.f32 %v10383_v5, %v1606_v54 }
 0x282   : > { %v1450_v22 = vpop.f32.mrf.mxu0  ;;  %v1957_v60 = vpop.f32.mrf.mxu2 }
 0x283   : > { %v8510_v1 = vpop.eup %8509  ;;  %v1689_v6 = vmul.f32 1.442695, %v1640_v56  ;;  %v1543_v7 = vmul.f32 2.0, %v1450_v22  ;;  %v5660_v19 = vsub.f32 %v1957_v60, %v10448_v55  ;;  %v2070_v8 = vpop.f32.mrf.mxu3 }
 0x284   : > { %6475 = vst [vmem:[%s10413_s14 + $0x80] sm:$0xff] %v8510_v1  ;;  %v2186_v14 = vpop.f32.mrf.mxu1  ;;  %v5661_v10 = vsub.f32 %v2070_v8, %v10451_v15  ;;  %v851_v60 = vpop.xlane.xlu1 %850 }
 0x285   : > { %8511 = vpow2.f32 %v1689_v6  ;;  %v1575_v57 = vsub.f32 %v1511_v2, %v1543_v7  ;;  %v5678_v11 = vsub.f32 %v2186_v14, %v10429_v61  ;;  %8039 = vmatmul.msk.f32.vlgmr.msra.gmra.mxu0 %vm782_vm0, %v10718_v40  ;;  %6716 = vst [vmem:[%s10273_s22 + $0x708] sm:$0xff] %v5660_v19  ;;  %v8561_v2 = vld [vmem:[%s14390_s1 + $0x18] sm:$0xff]  ;;  %v1515_v14 = vadd.f32 %v10366_v51, %v851_v60 }
 0x286   : > { %6717 = vst [vmem:[%s10273_s22 + $0x710] sm:$0xff] %v5661_v10  ;;  %7974 = vmatmul.msk.f32.gmra.mxu1 %vm782_vm0, %v10696_v16 }
 0x287   : > { %v1607_v23 = vmax.f32 %v1575_v57, 0.0  ;;  %6734 = vst [vmem:[%s10273_s22 + $0x798] sm:$0xff] %v5678_v11  ;;  %7910 = vmatmul.msk.f32.gmra.mxu2 %vm782_vm0, %v10696_v16  ;;  %7942 = vmatmul.msk.f32.gmra.mxu3 %vm782_vm0, %v10696_v16 }
 0x289   : > { %v1641_v58 = vmul.f32 %v10383_v5, %v1607_v23 }
 0x28a   : > { %v1453_v9 = vpop.f32.mrf.mxu0  ;;  %v1960_v20 = vpop.f32.mrf.mxu2 }
 0x28b   : > { %v8512_v27 = vpop.eup %8511  ;;  %v1691_v17 = vmul.f32 1.442695, %v1641_v58  ;;  %v1544_v36 = vmul.f32 2.0, %v1453_v9  ;;  %v5676_v49 = vsub.f32 %v1960_v20, %v10448_v55  ;;  %v2073_v38 = vpop.f32.mrf.mxu3 }
 0x28c   : > { %6476 = vst [vmem:[%s10413_s14 + $0x88] sm:$0xff] %v8512_v27  ;;  %v2189_v24 = vpop.f32.mrf.mxu1  ;;  %v5677_v16 = vsub.f32 %v2073_v38, %v10451_v15  ;;  %v8562_v27 = vld [vmem:[%s14390_s1 + $0x20] sm:$0xff] }
 0x28d   : > { %8513 = vpow2.f32 %v1691_v17  ;;  %v1576_v25 = vsub.f32 %v1512_v63, %v1544_v36  ;;  %v5694_v53 = vsub.f32 %v2189_v24, %v10429_v61  ;;  %8040 = vmatmul.msk.f32.gmra.mxu0 %vm782_vm0, %v10740_v42  ;;  %6732 = vst [vmem:[%s10273_s22 + $0x788] sm:$0xff] %v5676_v49  ;;  %v854_v36 = vpop.xlane.xlu2 %853 }
 0x28e   : > { %6733 = vst [vmem:[%s10273_s22 + $0x790] sm:$0xff] %v5677_v16  ;;  %8071 = vmatmul.msk.f32.vlgmr.msra.gmra.mxu1 %vm782_vm0, %v10718_v40  ;;  %v1516_v38 = vadd.f32 %v10366_v51, %v854_v36 }
 0x28f   : > { %v1608_v50 = vmax.f32 %v1576_v25, 0.0  ;;  %6750 = vst [vmem:[%s10273_s22 + $0x818] sm:$0xff] %v5694_v53  ;;  %7975 = vmatmul.msk.f32.vlgmr.msra.gmra.mxu2 %vm782_vm0, %v10718_v40  ;;  %8007 = vmatmul.msk.f32.vlgmr.msra.gmra.mxu3 %vm782_vm0, %v10718_v40 }
 0x291   : > { %v1642_v47 = vmul.f32 %v10383_v5, %v1608_v50 }
 0x292   : > { %v1456_v26 = vpop.f32.mrf.mxu0  ;;  %v1963_v46 = vpop.f32.mrf.mxu2 }
 0x293   : > { %v8514_v28 = vpop.eup %8513  ;;  %v1693_v18 = vmul.f32 1.442695, %v1642_v47  ;;  %v1545_v29 = vmul.f32 2.0, %v1456_v26  ;;  %v5692_v30 = vsub.f32 %v1963_v46, %v10448_v55  ;;  %v2076_v34 = vpop.f32.mrf.mxu3 }
 0x294   : > { %6477 = vst [vmem:[%s10413_s14 + $0x90] sm:$0xff] %v8514_v28  ;;  %v2192_v43 = vpop.f32.mrf.mxu1  ;;  %v5693_v40 = vsub.f32 %v2076_v34, %v10451_v15  ;;  %v857_v46 = vpop.xlane.xlu0 %856 }
 0x295   : > { %8515 = vpow2.f32 %v1693_v18  ;;  %v1577_v62 = vsub.f32 %v1513_v21, %v1545_v29  ;;  %v5710_v37 = vsub.f32 %v2192_v43, %v10429_v61  ;;  %8041 = vmatmul.msk.f32.gmra.mxu0 %vm782_vm0, %v8560_v32  ;;  %6748 = vst [vmem:[%s10273_s22 + $0x808] sm:$0xff] %v5692_v30  ;;  %v8563_v21 = vld [vmem:[%s14390_s1 + $0x28] sm:$0xff]  ;;  %v1517_v43 = vadd.f32 %v10366_v51, %v857_v46 }
 0x296   : > { %6749 = vst [vmem:[%s10273_s22 + $0x810] sm:$0xff] %v5693_v40  ;;  %8072 = vmatmul.msk.f32.gmra.mxu1 %vm782_vm0, %v10740_v42 }
 0x297   : > { %v1609_v41 = vmax.f32 %v1577_v62, 0.0  ;;  %6766 = vst [vmem:[%s10273_s22 + $0x898] sm:$0xff] %v5710_v37  ;;  %7976 = vmatmul.msk.f32.gmra.mxu2 %vm782_vm0, %v10740_v42  ;;  %8008 = vmatmul.msk.f32.gmra.mxu3 %vm782_vm0, %v10740_v42 }
 0x299   : > { %v1643_v31 = vmul.f32 %v10383_v5, %v1609_v41 }
 0x29a   : > { %v1459_v13 = vpop.f32.mrf.mxu0  ;;  %v1966_v52 = vpop.f32.mrf.mxu2 }
 0x29b   : > { %v8516_v48 = vpop.eup %8515  ;;  %v1695_v35 = vmul.f32 1.442695, %v1643_v31  ;;  %v1546_v44 = vmul.f32 2.0, %v1459_v13  ;;  %v5708_v54 = vsub.f32 %v1966_v52, %v10448_v55  ;;  %v2079_v56 = vpop.f32.mrf.mxu3 }
 0x29c   : > { %6478 = vst [vmem:[%s10413_s14 + $0x98] sm:$0xff] %v8516_v48  ;;  %v2195_v39 = vpop.f32.mrf.mxu1  ;;  %v5709_v42 = vsub.f32 %v2079_v56, %v10451_v15  ;;  %v860_v52 = vpop.xlane.xlu1 %859 }
 0x29d   : > { %8517 = vpow2.f32 %v1695_v35  ;;  %v1578_v22 = vsub.f32 %v1514_v59, %v1546_v44  ;;  %v5726_v1 = vsub.f32 %v2195_v39, %v10429_v61  ;;  %8042 = vmatmul.msk.f32.gmra.mxu0 %vm782_vm0, %v8561_v2  ;;  %6764 = vst [vmem:[%s10273_s22 + $0x888] sm:$0xff] %v5708_v54  ;;  %v8564_v59 = vld [vmem:[%s14390_s1 + $0x30] sm:$0xff]  ;;  %v1518_v39 = vadd.f32 %v10366_v51, %v860_v52 }
 0x29e   : > { %6765 = vst [vmem:[%s10273_s22 + $0x890] sm:$0xff] %v5709_v42  ;;  %8073 = vmatmul.msk.f32.gmra.mxu1 %vm782_vm0, %v8560_v32 }
 0x29f   : > { %v1610_v6 = vmax.f32 %v1578_v22, 0.0  ;;  %6782 = vst [vmem:[%s10273_s22 + $0x918] sm:$0xff] %v5726_v1  ;;  %7977 = vmatmul.msk.f32.gmra.mxu2 %vm782_vm0, %v8560_v32  ;;  %8009 = vmatmul.msk.f32.gmra.mxu3 %vm782_vm0, %v8560_v32 }
 0x2a1   : > { %v1644_v7 = vmul.f32 %v10383_v5, %v1610_v6 }
 0x2a2   : > { %v1462_v19 = vpop.f32.mrf.mxu0  ;;  %v1969_v57 = vpop.f32.mrf.mxu2 }
 0x2a3   : > { %v8518_v8 = vpop.eup %8517  ;;  %v1697_v3 = vmul.f32 1.442695, %v1644_v7  ;;  %v1547_v0 = vmul.f32 2.0, %v1462_v19  ;;  %v5724_v10 = vsub.f32 %v1969_v57, %v10448_v55  ;;  %v2082_v11 = vpop.f32.mrf.mxu3 }
 0x2a4   : > { %6479 = vst [vmem:[%s10413_s14 + $0xa0] sm:$0xff] %v8518_v8  ;;  %v2198_v23 = vpop.f32.mrf.mxu1  ;;  %v5725_v12 = vsub.f32 %v2082_v11, %v10451_v15  ;;  %v863_v57 = vpop.xlane.xlu2 %862 }
 0x2a5   : > { %8519 = vpow2.f32 %v1697_v3  ;;  %v1579_v58 = vsub.f32 %v1515_v14, %v1547_v0  ;;  %v5742_v9 = vsub.f32 %v2198_v23, %v10429_v61  ;;  %8043 = vmatmul.msk.f32.gmra.mxu0 %vm782_vm0, %v8562_v27  ;;  %6780 = vst [vmem:[%s10273_s22 + $0x908] sm:$0xff] %v5724_v10  ;;  %v8565_v14 = vld [vmem:[%s14390_s1 + $0x38] sm:$0xff]  ;;  %v1519_v23 = vadd.f32 %v10366_v51, %v863_v57 }
 0x2a6   : > { %6781 = vst [vmem:[%s10273_s22 + $0x910] sm:$0xff] %v5725_v12  ;;  %8074 = vmatmul.msk.f32.gmra.mxu1 %vm782_vm0, %v8561_v2 }
 0x2a7   : > { %v1611_v63 = vmax.f32 %v1579_v58, 0.0  ;;  %6798 = vst [vmem:[%s10273_s22 + $0x998] sm:$0xff] %v5742_v9  ;;  %7978 = vmatmul.msk.f32.gmra.mxu2 %vm782_vm0, %v8561_v2  ;;  %8010 = vmatmul.msk.f32.gmra.mxu3 %vm782_vm0, %v8561_v2 }
 0x2a9   : > { %v1645_v17 = vmul.f32 %v10383_v5, %v1611_v63 }
 0x2aa   : > { %v1465_v20 = vpop.f32.mrf.mxu0  ;;  %v1972_v16 = vpop.f32.mrf.mxu2 }
 0x2ab   : > { %v8520_v49 = vpop.eup %8519  ;;  %v1699_v24 = vmul.f32 1.442695, %v1645_v17  ;;  %v1548_v25 = vmul.f32 2.0, %v1465_v20  ;;  %v5740_v53 = vsub.f32 %v1972_v16, %v10448_v55  ;;  %v2085_v50 = vpop.f32.mrf.mxu3 }
 0x2ac   : > { %6480 = vst [vmem:[%s10413_s14 + $0xa8] sm:$0xff] %v8520_v49  ;;  %v2201_v47 = vpop.f32.mrf.mxu1  ;;  %v5741_v26 = vsub.f32 %v2085_v50, %v10451_v15  ;;  %v866_v16 = vpop.xlane.xlu0 %865 }
 0x2ad   : > { %8521 = vpow2.f32 %v1699_v24  ;;  %v1580_v4 = vsub.f32 %v1516_v38, %v1548_v25  ;;  %v5758_v28 = vsub.f32 %v2201_v47, %v10429_v61  ;;  %8044 = vmatmul.msk.f32.gmra.mxu0 %vm782_vm0, %v8563_v21  ;;  %6796 = vst [vmem:[%s10273_s22 + $0x988] sm:$0xff] %v5740_v53  ;;  %v8566_v38 = vld [vmem:[%s14390_s1 + $0x40] sm:$0xff]  ;;  %v1520_v47 = vadd.f32 %v10366_v51, %v866_v16 }
 0x2ae   : > { %6797 = vst [vmem:[%s10273_s22 + $0x990] sm:$0xff] %v5741_v26  ;;  %8075 = vmatmul.msk.f32.gmra.mxu1 %vm782_vm0, %v8562_v27 }
 0x2af   : > { %v1612_v18 = vmax.f32 %v1580_v4, 0.0  ;;  %6814 = vst [vmem:[%s10273_s22 + $0xa18] sm:$0xff] %v5758_v28  ;;  %7979 = vmatmul.msk.f32.gmra.mxu2 %vm782_vm0, %v8562_v27  ;;  %8011 = vmatmul.msk.f32.gmra.mxu3 %vm782_vm0, %v8562_v27 }
 0x2b1   : > { %v1646_v29 = vmul.f32 %v10383_v5, %v1612_v18 }
 0x2b2   : > { %v1468_v30 = vpop.f32.mrf.mxu0  ;;  %v1975_v37 = vpop.f32.mrf.mxu2 }
 0x2b3   : > { %v8522_v34 = vpop.eup %8521  ;;  %v1701_v62 = vmul.f32 1.442695, %v1646_v29  ;;  %v1549_v40 = vmul.f32 2.0, %v1468_v30  ;;  %v5756_v32 = vsub.f32 %v1975_v37, %v10448_v55  ;;  %v2088_v41 = vpop.f32.mrf.mxu3 }
 0x2b4   : > { %6481 = vst [vmem:[%s10413_s14 + $0xb0] sm:$0xff] %v8522_v34  ;;  %v2204_v31 = vpop.f32.mrf.mxu1  ;;  %v5757_v13 = vsub.f32 %v2088_v41, %v10451_v15  ;;  %v869_v37 = vpop.xlane.xlu1 %868 }
 0x2b5   : > { %8523 = vpow2.f32 %v1701_v62  ;;  %v1581_v45 = vsub.f32 %v1517_v43, %v1549_v40  ;;  %v5774_v48 = vsub.f32 %v2204_v31, %v10429_v61  ;;  %8045 = vmatmul.msk.f32.gmra.mxu0 %vm782_vm0, %v8564_v59  ;;  %6812 = vst [vmem:[%s10273_s22 + $0xa08] sm:$0xff] %v5756_v32  ;;  %v8567_v43 = vld [vmem:[%s14390_s1 + $0x48] sm:$0xff]  ;;  %v1521_v31 = vadd.f32 %v10366_v51, %v869_v37 }
 0x2b6   : > { %6813 = vst [vmem:[%s10273_s22 + $0xa10] sm:$0xff] %v5757_v13  ;;  %8076 = vmatmul.msk.f32.gmra.mxu1 %vm782_vm0, %v8563_v21 }
 0x2b7   : > { %v1613_v35 = vmax.f32 %v1581_v45, 0.0  ;;  %6830 = vst [vmem:[%s10273_s22 + $0xa98] sm:$0xff] %v5774_v48  ;;  %7980 = vmatmul.msk.f32.gmra.mxu2 %vm782_vm0, %v8563_v21  ;;  %8012 = vmatmul.msk.f32.gmra.mxu3 %vm782_vm0, %v8563_v21 }
 0x2b9   : > { %v1647_v44 = vmul.f32 %v10383_v5, %v1613_v35 }
 0x2ba   : > { %v1471_v54 = vpop.f32.mrf.mxu0  ;;  %v1978_v1 = vpop.f32.mrf.mxu2 }
 0x2bb   : > { %v8524_v56 = vpop.eup %8523  ;;  %v1703_v22 = vmul.f32 1.442695, %v1647_v44  ;;  %v1550_v42 = vmul.f32 2.0, %v1471_v54  ;;  %v5772_v2 = vsub.f32 %v1978_v1, %v10448_v55  ;;  %v2091_v6 = vpop.f32.mrf.mxu3 }
 0x2bc   : > { %6482 = vst [vmem:[%s10413_s14 + $0xb8] sm:$0xff] %v8524_v56  ;;  %v2207_v7 = vpop.f32.mrf.mxu1  ;;  %v5773_v19 = vsub.f32 %v2091_v6, %v10451_v15 }
 0x2bd   : > { %8525 = vpow2.f32 %v1703_v22  ;;  %v1582_v60 = vsub.f32 %v1518_v39, %v1550_v42  ;;  %v5790_v8 = vsub.f32 %v2207_v7, %v10429_v61  ;;  %8046 = vmatmul.msk.f32.gmra.mxu0 %vm782_vm0, %v8565_v14  ;;  %6828 = vst [vmem:[%s10273_s22 + $0xa88] sm:$0xff] %v5772_v2  ;;  %v8568_v39 = vld [vmem:[%s14390_s1 + $0x50] sm:$0xff]  ;;  %v872_v42 = vpop.xlane.xlu2 %871 }
 0x2be   : > { %6829 = vst [vmem:[%s10273_s22 + $0xa90] sm:$0xff] %v5773_v19  ;;  %8077 = vmatmul.msk.f32.gmra.mxu1 %vm782_vm0, %v8564_v59  ;;  %v1522_v7 = vadd.f32 %v10366_v51, %v872_v42 }
 0x2bf   : > { %v1614_v3 = vmax.f32 %v1582_v60, 0.0  ;;  %6846 = vst [vmem:[%s10273_s22 + $0xb18] sm:$0xff] %v5790_v8  ;;  %7981 = vmatmul.msk.f32.gmra.mxu2 %vm782_vm0, %v8564_v59  ;;  %8013 = vmatmul.msk.f32.gmra.mxu3 %vm782_vm0, %v8564_v59 }
 0x2c1   : > { %v1648_v0 = vmul.f32 %v10383_v5, %v1614_v3 }
 0x2c2   : > { %v1474_v10 = vpop.f32.mrf.mxu0  ;;  %v1981_v9 = vpop.f32.mrf.mxu2 }
 0x2c3   : > { %v8526_v11 = vpop.eup %8525  ;;  %v1705_v58 = vmul.f32 1.442695, %v1648_v0  ;;  %v1551_v12 = vmul.f32 2.0, %v1474_v10  ;;  %v5788_v27 = vsub.f32 %v1981_v9, %v10448_v55  ;;  %v2094_v63 = vpop.f32.mrf.mxu3 }
 0x2c4   : > { %6483 = vst [vmem:[%s10413_s14 + $0xc0] sm:$0xff] %v8526_v11  ;;  %v2210_v17 = vpop.f32.mrf.mxu1  ;;  %v5789_v20 = vsub.f32 %v2094_v63, %v10451_v15 }
 0x2c5   : > { %8527 = vpow2.f32 %v1705_v58  ;;  %v1583_v36 = vsub.f32 %v1519_v23, %v1551_v12  ;;  %v5806_v49 = vsub.f32 %v2210_v17, %v10429_v61  ;;  %8047 = vmatmul.msk.f32.gmra.mxu0 %vm782_vm0, %v8566_v38  ;;  %6844 = vst [vmem:[%s10273_s22 + $0xb08] sm:$0xff] %v5788_v27  ;;  %v8569_v23 = vld [vmem:[%s14390_s1 + $0x58] sm:$0xff]  ;;  %v875_v12 = vpop.xlane.xlu0 %874 }
 0x2c6   : > { %6845 = vst [vmem:[%s10273_s22 + $0xb10] sm:$0xff] %v5789_v20  ;;  %8078 = vmatmul.msk.f32.gmra.mxu1 %vm782_vm0, %v8565_v14  ;;  %v1523_v17 = vadd.f32 %v10366_v51, %v875_v12 }
 0x2c7   : > { %v1615_v24 = vmax.f32 %v1583_v36, 0.0  ;;  %6862 = vst [vmem:[%s10273_s22 + $0xb98] sm:$0xff] %v5806_v49  ;;  %7982 = vmatmul.msk.f32.gmra.mxu2 %vm782_vm0, %v8565_v14  ;;  %8014 = vmatmul.msk.f32.gmra.mxu3 %vm782_vm0, %v8565_v14 }
 0x2c9   : > { %v1649_v25 = vmul.f32 %v10383_v5, %v1615_v24 }
 0x2ca   : > { %v1477_v53 = vpop.f32.mrf.mxu0  ;;  %v1984_v28 = vpop.f32.mrf.mxu2 }
 0x2cb   : > { %v8528_v50 = vpop.eup %8527  ;;  %v1707_v4 = vmul.f32 1.442695, %v1649_v25  ;;  %v1552_v26 = vmul.f32 2.0, %v1477_v53  ;;  %v5804_v21 = vsub.f32 %v1984_v28, %v10448_v55  ;;  %v2097_v18 = vpop.f32.mrf.mxu3 }
 0x2cc   : > { %6484 = vst [vmem:[%s10413_s14 + $0xc8] sm:$0xff] %v8528_v50  ;;  %v2213_v29 = vpop.f32.mrf.mxu1  ;;  %v5805_v30 = vsub.f32 %v2097_v18, %v10451_v15 }
 0x2cd   : > { %8529 = vpow2.f32 %v1707_v4  ;;  %v1584_v46 = vsub.f32 %v1520_v47, %v1552_v26  ;;  %v5822_v34 = vsub.f32 %v2213_v29, %v10429_v61  ;;  %8048 = vmatmul.msk.f32.gmra.mxu0 %vm782_vm0, %v8567_v43  ;;  %6860 = vst [vmem:[%s10273_s22 + $0xb88] sm:$0xff] %v5804_v21  ;;  %v8570_v47 = vld [vmem:[%s14390_s1 + $0x60] sm:$0xff]  ;;  %v878_v26 = vpop.xlane.xlu1 %877 }
 0x2ce   : > { %6861 = vst [vmem:[%s10273_s22 + $0xb90] sm:$0xff] %v5805_v30  ;;  %8079 = vmatmul.msk.f32.gmra.mxu1 %vm782_vm0, %v8566_v38  ;;  %v1524_v29 = vadd.f32 %v10366_v51, %v878_v26  ;;  %v8571_v51 = vld [vmem:[%s14390_s1 + $0x68] sm:$0xff] }
 0x2cf   : > { %v1616_v62 = vmax.f32 %v1584_v46, 0.0  ;;  %6878 = vst [vmem:[%s10273_s22 + $0xc18] sm:$0xff] %v5822_v34  ;;  %7983 = vmatmul.msk.f32.gmra.mxu2 %vm782_vm0, %v8566_v38  ;;  %8015 = vmatmul.msk.f32.gmra.mxu3 %vm782_vm0, %v8566_v38 }
 0x2d1   : > { %v1650_v40 = vmul.f32 %v10383_v5, %v1616_v62 }
 0x2d2   : > { %v1480_v32 = vpop.f32.mrf.mxu0  ;;  %v1987_v48 = vpop.f32.mrf.mxu2 }
 0x2d3   : > { %v8530_v41 = vpop.eup %8529  ;;  %v1709_v45 = vmul.f32 1.442695, %v1650_v40  ;;  %v1553_v13 = vmul.f32 2.0, %v1480_v32  ;;  %v5820_v59 = vsub.f32 %v1987_v48, %v10448_v55  ;;  %v2100_v35 = vpop.f32.mrf.mxu3  ;;  %v1762_v48 = vld [vmem:[#allocation6 + $0x48] sm:$0xff] }
 0x2d4   : > { %6485 = vst [vmem:[%s10413_s14 + $0xd0] sm:$0xff] %v8530_v41  ;;  %v2216_v44 = vpop.f32.mrf.mxu1  ;;  %v5821_v54 = vsub.f32 %v2100_v35, %v10451_v15  ;;  %2817 = vmatpush.msrb.mxu3 %v1762_v48 }
 0x2d5   : > { %8531 = vpow2.f32 %v1709_v45  ;;  %v1585_v52 = vsub.f32 %v1521_v31, %v1553_v13  ;;  %v5838_v56 = vsub.f32 %v2216_v44, %v10429_v61  ;;  %8049 = vmatmul.msk.f32.gmra.mxu0 %vm782_vm0, %v8568_v39  ;;  %6876 = vst [vmem:[%s10273_s22 + $0xc08] sm:$0xff] %v5820_v59  ;;  %v1761_v13 = vld [vmem:[#allocation6 + $0x40] sm:$0xff] }
 0x2d6   : > { %6877 = vst [vmem:[%s10273_s22 + $0xc10] sm:$0xff] %v5821_v54  ;;  %8080 = vmatmul.msk.f32.gmra.mxu1 %vm782_vm0, %v8567_v43  ;;  %2704 = vmatpush.msrb.mxu2 %v1761_v13  ;;  %v8578_v13 = vld [vmem:[%s14390_s1 + $0x98] sm:$0xff] }
 0x2d7   : > { %v1617_v22 = vmax.f32 %v1585_v52, 0.0  ;;  %6894 = vst [vmem:[%s10273_s22 + $0xc98] sm:$0xff] %v5838_v56  ;;  %7984 = vmatmul.msk.f32.gmra.mxu2 %vm782_vm0, %v8567_v43  ;;  %8016 = vmatmul.msk.f32.gmra.mxu3 %vm782_vm0, %v8567_v43 }
 0x2d9   : > { %v1651_v1 = vmul.f32 %v10383_v5, %v1617_v22 }
 0x2da   : > { %v1483_v2 = vpop.f32.mrf.mxu0  ;;  %v1990_v8 = vpop.f32.mrf.mxu2 }
 0x2db   : > { %v8532_v6 = vpop.eup %8531  ;;  %v1711_v60 = vmul.f32 1.442695, %v1651_v1  ;;  %v1554_v19 = vmul.f32 2.0, %v1483_v2  ;;  %v5836_v14 = vsub.f32 %v1990_v8, %v10448_v55  ;;  %v2103_v3 = vpop.f32.mrf.mxu3  ;;  %v8572_v1 = vld [vmem:[%s14390_s1 + $0x70] sm:$0xff] }
 0x2dc   : > { %6486 = vst [vmem:[%s10413_s14 + $0xd8] sm:$0xff] %v8532_v6  ;;  %v2219_v0 = vpop.f32.mrf.mxu1  ;;  %v5837_v10 = vsub.f32 %v2103_v3, %v10451_v15  ;;  %v1763_v2 = vld [vmem:[#allocation6 + $0x50] sm:$0xff]  ;;  %v1764_v6 = vld [vmem:[#allocation6 + $0x58] sm:$0xff] }
 0x2dd   : > { %8533 = vpow2.f32 %v1711_v60  ;;  %v1586_v57 = vsub.f32 %v1522_v7, %v1554_v19  ;;  %v5854_v11 = vsub.f32 %v2219_v0, %v10429_v61  ;;  %8050 = vmatmul.msk.f32.gmra.mxu0 %vm782_vm0, %v8569_v23  ;;  %6892 = vst [vmem:[%s10273_s22 + $0xc88] sm:$0xff] %v5836_v14  ;;  %3043 = vmatpush.msrb.mxu1 %v1764_v6 }
 0x2de   : > { %6893 = vst [vmem:[%s10273_s22 + $0xc90] sm:$0xff] %v5837_v10  ;;  %8081 = vmatmul.msk.f32.gmra.mxu1 %vm782_vm0, %v8568_v39  ;;  %2930 = vmatpush.msrb.mxu0 %v1763_v2 }
 0x2df   : > { %v1618_v58 = vmax.f32 %v1586_v57, 0.0  ;;  %6910 = vst [vmem:[%s10273_s22 + $0xd18] sm:$0xff] %v5854_v11  ;;  %7985 = vmatmul.msk.f32.gmra.mxu2 %vm782_vm0, %v8568_v39  ;;  %8017 = vmatmul.msk.f32.gmra.mxu3 %vm782_vm0, %v8568_v39  ;;  %v8573_v11 = vld [vmem:[%s14390_s1 + $0x78] sm:$0xff] }
 0x2e1   : > { %v1652_v9 = vmul.f32 %v10383_v5, %v1618_v58 }
 0x2e2   : > { %v1486_v27 = vpop.f32.mrf.mxu0  ;;  %v1993_v49 = vpop.f32.mrf.mxu2 }
 0x2e3   : > { %v8534_v63 = vpop.eup %8533  ;;  %v1713_v36 = vmul.f32 1.442695, %v1652_v9  ;;  %v1555_v20 = vmul.f32 2.0, %v1486_v27  ;;  %v5852_v38 = vsub.f32 %v1993_v49, %v10448_v55  ;;  %v2106_v24 = vpop.f32.mrf.mxu3  ;;  %v8575_v49 = vld [vmem:[%s14390_s1 + $0x80] sm:$0xff] }
 0x2e4   : > { %6487 = vst [vmem:[%s10413_s14 + $0xe0] sm:$0xff] %v8534_v63  ;;  %v2222_v25 = vpop.f32.mrf.mxu1  ;;  %v5853_v53 = vsub.f32 %v2106_v24, %v10451_v15 }
 0x2e5   : > { %8535 = vpow2.f32 %v1713_v36  ;;  %v1587_v16 = vsub.f32 %v1523_v17, %v1555_v20  ;;  %v5870_v50 = vsub.f32 %v2222_v25, %v10429_v61  ;;  %8051 = vmatmul.msk.f32.gmra.mxu0 %vm782_vm0, %v8570_v47  ;;  %6908 = vst [vmem:[%s10273_s22 + $0xd08] sm:$0xff] %v5852_v38 }
 0x2e6   : > { %6909 = vst [vmem:[%s10273_s22 + $0xd10] sm:$0xff] %v5853_v53  ;;  %8082 = vmatmul.msk.f32.gmra.mxu1 %vm782_vm0, %v8569_v23 }
 0x2e7   : > { %v1619_v4 = vmax.f32 %v1587_v16, 0.0  ;;  %6926 = vst [vmem:[%s10273_s22 + $0xd98] sm:$0xff] %v5870_v50  ;;  %7986 = vmatmul.msk.f32.gmra.mxu2 %vm782_vm0, %v8569_v23  ;;  %8018 = vmatmul.msk.f32.gmra.mxu3 %vm782_vm0, %v8569_v23 }
 0x2e9   : > { %v1653_v28 = vmul.f32 %v10383_v5, %v1619_v4  ;;  %v8576_v4 = vld [vmem:[%s14390_s1 + $0x88] sm:$0xff] }
 0x2ea   : > { %v1489_v21 = vpop.f32.mrf.mxu0  ;;  %v1996_v34 = vpop.f32.mrf.mxu2 }
 0x2eb   : > { %v8536_v18 = vpop.eup %8535  ;;  %v1715_v46 = vmul.f32 1.442695, %v1653_v28  ;;  %v1556_v30 = vmul.f32 2.0, %v1489_v21  ;;  %v5868_v43 = vsub.f32 %v1996_v34, %v10448_v55  ;;  %v2109_v62 = vpop.f32.mrf.mxu3 }
 0x2ec   : > { %6488 = vst [vmem:[%s10413_s14 + $0xe8] sm:$0xff] %v8536_v18  ;;  %v2225_v40 = vpop.f32.mrf.mxu1  ;;  %v5869_v32 = vsub.f32 %v2109_v62, %v10451_v15 }
 0x2ed   : > { %8537 = vpow2.f32 %v1715_v46  ;;  %v1588_v37 = vsub.f32 %v1524_v29, %v1556_v30  ;;  %v5886_v41 = vsub.f32 %v2225_v40, %v10429_v61  ;;  %8052 = vmatmul.msk.f32.gmra.mxu0 %vm782_vm0, %v8571_v51  ;;  %6924 = vst [vmem:[%s10273_s22 + $0xd88] sm:$0xff] %v5868_v43  ;;  %v8577_v43 = vld [vmem:[%s14390_s1 + $0x90] sm:$0xff] }
 0x2ee   : > { %6925 = vst [vmem:[%s10273_s22 + $0xd90] sm:$0xff] %v5869_v32  ;;  %8083 = vmatmul.msk.f32.gmra.mxu1 %vm782_vm0, %v8570_v47 }
 0x2ef   : > { %v1620_v31 = vmax.f32 %v1588_v37, 0.0  ;;  %6942 = vst [vmem:[%s10273_s22 + $0xe18] sm:$0xff] %v5886_v41  ;;  %7987 = vmatmul.msk.f32.gmra.mxu2 %vm782_vm0, %v8570_v47  ;;  %8019 = vmatmul.msk.f32.gmra.mxu3 %vm782_vm0, %v8570_v47 }
 0x2f1   : > { %v1654_v45 = vmul.f32 %v10383_v5, %v1620_v31 }
 0x2f2   : > { %v1802_v59 = vpop.f32.mrf.mxu0  ;;  %v1999_v54 = vpop.f32.mrf.mxu2 }
 0x2f3   : > { %v8538_v35 = vpop.eup %8537  ;;  %v1717_v44 = vmul.f32 1.442695, %v1654_v45  ;;  %v5435_v52 = vsub.f32 %v1802_v59, %v10261_v33  ;;  %v5884_v56 = vsub.f32 %v1999_v54, %v10448_v55  ;;  %v2112_v5 = vpop.f32.mrf.mxu3 }
 0x2f4   : > { %6489 = vst [vmem:[%s10413_s14 + $0xf0] sm:$0xff] %v8538_v35  ;;  %v2228_v39 = vpop.f32.mrf.mxu1  ;;  %v5885_v22 = vsub.f32 %v2112_v5, %v10451_v15 }
 0x2f5   : > { %8539 = vpow2.f32 %v1717_v44  ;;  %6491 = vst [vmem:[%s10273_s22] sm:$0xff] %v5435_v52  ;;  %v5902_v42 = vsub.f32 %v2228_v39, %v10429_v61  ;;  %8053 = vmatmul.msk.f32.gmra.mxu0 %vm782_vm0, %v8572_v1  ;;  %v8579_v39 = vld [vmem:[%s14390_s1 + $0xa0] sm:$0xff] }
 0x2f6   : > { %6940 = vst [vmem:[%s10273_s22 + $0xe08] sm:$0xff] %v5884_v56  ;;  %8084 = vmatmul.msk.f32.gmra.mxu1 %vm782_vm0, %v8571_v51 }
 0x2f7   : > { %6941 = vst [vmem:[%s10273_s22 + $0xe10] sm:$0xff] %v5885_v22  ;;  %7988 = vmatmul.msk.f32.gmra.mxu2 %vm782_vm0, %v8571_v51  ;;  %8020 = vmatmul.msk.f32.gmra.mxu3 %vm782_vm0, %v8571_v51 }
 0x2f8   : > { %6958 = vst [vmem:[%s10273_s22 + $0xe98] sm:$0xff] %v5902_v42 }
 0x2fa   : > { %v1805_v7 = vpop.f32.mrf.mxu0  ;;  %v2002_v8 = vpop.f32.mrf.mxu2 }
 0x2fb   : > { %v8540_v60 = vpop.eup %8539  ;;  %v5451_v19 = vsub.f32 %v1805_v7, %v10261_v33  ;;  %v5900_v14 = vsub.f32 %v2002_v8, %v10448_v55  ;;  %v2115_v3 = vpop.f32.mrf.mxu3  ;;  %v8574_v33 = vld [vmem:[%s9791_s20] sm:$0xff]  ;;  %v8580_v8 = vld [vmem:[%s14390_s1 + $0xa8] sm:$0xff] }
 0x2fc   : > { %6490 = vst [vmem:[%s10413_s14 + $0xf8] sm:$0xff] %v8540_v60  ;;  %v2231_v0 = vpop.f32.mrf.mxu1  ;;  %v5901_v57 = vsub.f32 %v2115_v3, %v10451_v15  ;;  %v11012_v23 = vperm.slane %v8574_v33, 6  ;;  %v11033_v38 = vperm.slane %v8574_v33, 7  ;;  %v11048_v28 = vperm.slane %v8574_v33, 4 }
 0x2fd   : > { %6507 = vst [vmem:[%s10273_s22 + $0x80] sm:$0xff] %v5451_v19  ;;  %v5918_v10 = vsub.f32 %v2231_v0, %v10429_v61  ;;  %8054 = vmatmul.msk.f32.gmra.mxu0 %vm782_vm0, %v8573_v11 }
 0x2fe   : > { %6956 = vst [vmem:[%s10273_s22 + $0xe88] sm:$0xff] %v5900_v14  ;;  %8085 = vmatmul.msk.f32.gmra.mxu1 %vm782_vm0, %v8572_v1 }
 0x2ff   : > { %6957 = vst [vmem:[%s10273_s22 + $0xe90] sm:$0xff] %v5901_v57  ;;  %7989 = vmatmul.msk.f32.gmra.mxu2 %vm782_vm0, %v8572_v1  ;;  %8021 = vmatmul.msk.f32.gmra.mxu3 %vm782_vm0, %v8572_v1 }
 0x300   : > { %6974 = vst [vmem:[%s10273_s22 + $0xf18] sm:$0xff] %v5918_v10 }
 0x302   : > { %v2480_v58 = vpop.f32.mrf.mxu0  ;;  %v2005_v9 = vpop.f32.mrf.mxu2 }
 0x303   : > { %v5441_v12 = vsub.f32 %v2480_v58, %v11012_v23  ;;  %v5916_v27 = vsub.f32 %v2005_v9, %v10448_v55  ;;  %v2118_v63 = vpop.f32.mrf.mxu3 }
 0x304   : > { %v2234_v17 = vpop.f32.mrf.mxu1  ;;  %v5917_v36 = vsub.f32 %v2118_v63, %v10451_v15 }
 0x305   : > { %6497 = vst [vmem:[%s10273_s22 + $0x30] sm:$0xff] %v5441_v12  ;;  %v5934_v20 = vsub.f32 %v2234_v17, %v10429_v61  ;;  %8055 = vmatmul.msk.f32.gmra.mxu0 %vm782_vm0, %v8575_v49  ;;  %v8581_v12 = vld [vmem:[%s14390_s1 + $0xb0] sm:$0xff] }
 0x306   : > { %6972 = vst [vmem:[%s10273_s22 + $0xf08] sm:$0xff] %v5916_v27  ;;  %8086 = vmatmul.msk.f32.gmra.mxu1 %vm782_vm0, %v8573_v11 }
 0x307   : > { %6973 = vst [vmem:[%s10273_s22 + $0xf10] sm:$0xff] %v5917_v36  ;;  %7990 = vmatmul.msk.f32.gmra.mxu2 %vm782_vm0, %v8573_v11  ;;  %8022 = vmatmul.msk.f32.gmra.mxu3 %vm782_vm0, %v8573_v11 }
 0x308   : > { %6990 = vst [vmem:[%s10273_s22 + $0xf98] sm:$0xff] %v5934_v20 }
 0x30a   : > { %v2483_v61 = vpop.f32.mrf.mxu0  ;;  %v2008_v25 = vpop.f32.mrf.mxu2 }
 0x30b   : > { %v5457_v24 = vsub.f32 %v2483_v61, %v11012_v23  ;;  %v5932_v16 = vsub.f32 %v2008_v25, %v10448_v55  ;;  %v2121_v53 = vpop.f32.mrf.mxu3  ;;  %v11052_v55 = vperm.slane %v8574_v33, 5 }
 0x30c   : > { %v2593_v50 = vpop.f32.mrf.mxu1  ;;  %v5933_v47 = vsub.f32 %v2121_v53, %v10451_v15 }
 0x30d   : > { %6513 = vst [vmem:[%s10273_s22 + $0xb0] sm:$0xff] %v5457_v24  ;;  %8056 = vmatmul.msk.f32.gmra.mxu0 %vm782_vm0, %v8576_v4  ;;  %v5442_v26 = vsub.f32 %v2593_v50, %v11033_v38  ;;  %v8582_v24 = vld [vmem:[%s14390_s1 + $0xb8] sm:$0xff] }
 0x30e   : > { %6988 = vst [vmem:[%s10273_s22 + $0xf88] sm:$0xff] %v5932_v16  ;;  %8087 = vmatmul.msk.f32.gmra.mxu1 %vm782_vm0, %v8575_v49 }
 0x30f   : > { %6989 = vst [vmem:[%s10273_s22 + $0xf90] sm:$0xff] %v5933_v47  ;;  %7991 = vmatmul.msk.f32.gmra.mxu2 %vm782_vm0, %v8575_v49  ;;  %8023 = vmatmul.msk.f32.gmra.mxu3 %vm782_vm0, %v8575_v49 }
 0x310   : > { %6498 = vst [vmem:[%s10273_s22 + $0x38] sm:$0xff] %v5442_v26 }
 0x312   : > { %v2486_v15 = vpop.f32.mrf.mxu0  ;;  %v2254_v18 = vpop.f32.mrf.mxu2 }
 0x313   : > { %v5473_v21 = vsub.f32 %v2486_v15, %v11012_v23  ;;  %v5439_v29 = vsub.f32 %v2254_v18, %v11048_v28  ;;  %v2367_v46 = vpop.f32.mrf.mxu3 }
 0x314   : > { %v2596_v30 = vpop.f32.mrf.mxu1  ;;  %v5440_v34 = vsub.f32 %v2367_v46, %v11052_v55 }
 0x315   : > { %6529 = vst [vmem:[%s10273_s22 + $0x130] sm:$0xff] %v5473_v21  ;;  %8057 = vmatmul.msk.f32.gmra.mxu0 %vm782_vm0, %v8577_v43  ;;  %v5458_v62 = vsub.f32 %v2596_v30, %v11033_v38  ;;  %v8583_v21 = vld [vmem:[%s14390_s1 + $0xc0] sm:$0xff] }
 0x316   : > { %6495 = vst [vmem:[%s10273_s22 + $0x20] sm:$0xff] %v5439_v29  ;;  %8088 = vmatmul.msk.f32.gmra.mxu1 %vm782_vm0, %v8576_v4 }
 0x317   : > { %6496 = vst [vmem:[%s10273_s22 + $0x28] sm:$0xff] %v5440_v34  ;;  %7992 = vmatmul.msk.f32.gmra.mxu2 %vm782_vm0, %v8576_v4  ;;  %8024 = vmatmul.msk.f32.gmra.mxu3 %vm782_vm0, %v8576_v4 }
 0x318   : > { %6514 = vst [vmem:[%s10273_s22 + $0xb8] sm:$0xff] %v5458_v62 }
 0x31a   : > { %v2489_v40 = vpop.f32.mrf.mxu0  ;;  %v2257_v32 = vpop.f32.mrf.mxu2 }
 0x31b   : > { %v5489_v37 = vsub.f32 %v2489_v40, %v11012_v23  ;;  %v5455_v41 = vsub.f32 %v2257_v32, %v11048_v28  ;;  %v2370_v51 = vpop.f32.mrf.mxu3 }
 0x31c   : > { %v2599_v31 = vpop.f32.mrf.mxu1  ;;  %v5456_v45 = vsub.f32 %v2370_v51, %v11052_v55 }
 0x31d   : > { %6545 = vst [vmem:[%s10273_s22 + $0x1b0] sm:$0xff] %v5489_v37  ;;  %8058 = vmatmul.msk.f32.gmra.mxu0 %vm782_vm0, %v8578_v13  ;;  %v5474_v48 = vsub.f32 %v2599_v31, %v11033_v38  ;;  %v8584_v37 = vld [vmem:[%s14390_s1 + $0xc8] sm:$0xff] }
 0x31e   : > { %6511 = vst [vmem:[%s10273_s22 + $0xa0] sm:$0xff] %v5455_v41  ;;  %8089 = vmatmul.msk.f32.gmra.mxu1 %vm782_vm0, %v8577_v43 }
 0x31f   : > { %6512 = vst [vmem:[%s10273_s22 + $0xa8] sm:$0xff] %v5456_v45  ;;  %7993 = vmatmul.msk.f32.gmra.mxu2 %vm782_vm0, %v8577_v43  ;;  %8025 = vmatmul.msk.f32.gmra.mxu3 %vm782_vm0, %v8577_v43 }
 0x320   : > { %6530 = vst [vmem:[%s10273_s22 + $0x138] sm:$0xff] %v5474_v48 }
 0x322   : > { %v2492_v59 = vpop.f32.mrf.mxu0  ;;  %v2260_v44 = vpop.f32.mrf.mxu2 }
 0x323   : > { %v5505_v35 = vsub.f32 %v2492_v59, %v11012_v23  ;;  %v5471_v52 = vsub.f32 %v2260_v44, %v11048_v28  ;;  %v2373_v54 = vpop.f32.mrf.mxu3 }
 0x324   : > { %v2602_v56 = vpop.f32.mrf.mxu1  ;;  %v5472_v5 = vsub.f32 %v2373_v54, %v11052_v55 }
 0x325   : > { %6561 = vst [vmem:[%s10273_s22 + $0x230] sm:$0xff] %v5505_v35  ;;  %8059 = vmatmul.msk.f32.gmra.mxu0 %vm782_vm0, %v8579_v39  ;;  %v5490_v22 = vsub.f32 %v2602_v56, %v11033_v38  ;;  %v8585_v35 = vld [vmem:[%s14390_s1 + $0xd0] sm:$0xff] }
 0x326   : > { %6527 = vst [vmem:[%s10273_s22 + $0x120] sm:$0xff] %v5471_v52  ;;  %8090 = vmatmul.msk.f32.gmra.mxu1 %vm782_vm0, %v8578_v13 }
 0x327   : > { %6528 = vst [vmem:[%s10273_s22 + $0x128] sm:$0xff] %v5472_v5  ;;  %7994 = vmatmul.msk.f32.gmra.mxu2 %vm782_vm0, %v8578_v13  ;;  %8026 = vmatmul.msk.f32.gmra.mxu3 %vm782_vm0, %v8578_v13 }
 0x328   : > { %6546 = vst [vmem:[%s10273_s22 + $0x1b8] sm:$0xff] %v5490_v22 }
 0x32a   : > { %v2495_v42 = vpop.f32.mrf.mxu0  ;;  %v2263_v2 = vpop.f32.mrf.mxu2 }
 0x32b   : > { %v5521_v1 = vsub.f32 %v2495_v42, %v11012_v23  ;;  %v5487_v6 = vsub.f32 %v2263_v2, %v11048_v28  ;;  %v2376_v7 = vpop.f32.mrf.mxu3 }
 0x32c   : > { %v2605_v60 = vpop.f32.mrf.mxu1  ;;  %v5488_v19 = vsub.f32 %v2376_v7, %v11052_v55 }
 0x32d   : > { %6577 = vst [vmem:[%s10273_s22 + $0x2b0] sm:$0xff] %v5521_v1  ;;  %8060 = vmatmul.msk.f32.gmra.mxu0 %vm782_vm0, %v8580_v8  ;;  %v5506_v14 = vsub.f32 %v2605_v60, %v11033_v38  ;;  %v8586_v1 = vld [vmem:[%s14390_s1 + $0xd8] sm:$0xff] }
 0x32e   : > { %6543 = vst [vmem:[%s10273_s22 + $0x1a0] sm:$0xff] %v5487_v6  ;;  %8091 = vmatmul.msk.f32.gmra.mxu1 %vm782_vm0, %v8579_v39 }
 0x32f   : > { %6544 = vst [vmem:[%s10273_s22 + $0x1a8] sm:$0xff] %v5488_v19  ;;  %7995 = vmatmul.msk.f32.gmra.mxu2 %vm782_vm0, %v8579_v39  ;;  %8027 = vmatmul.msk.f32.gmra.mxu3 %vm782_vm0, %v8579_v39 }
 0x330   : > { %6562 = vst [vmem:[%s10273_s22 + $0x238] sm:$0xff] %v5506_v14 }
 0x332   : > { %v2498_v3 = vpop.f32.mrf.mxu0  ;;  %v2266_v57 = vpop.f32.mrf.mxu2 }
 0x333   : > { %v5537_v0 = vsub.f32 %v2498_v3, %v11012_v23  ;;  %v5503_v10 = vsub.f32 %v2266_v57, %v11048_v28  ;;  %v2379_v11 = vpop.f32.mrf.mxu3 }
 0x334   : > { %v2608_v33 = vpop.f32.mrf.mxu1  ;;  %v5504_v58 = vsub.f32 %v2379_v11, %v11052_v55 }
 0x335   : > { %6593 = vst [vmem:[%s10273_s22 + $0x330] sm:$0xff] %v5537_v0  ;;  %8061 = vmatmul.msk.f32.gmra.mxu0 %vm782_vm0, %v8581_v12  ;;  %v5522_v9 = vsub.f32 %v2608_v33, %v11033_v38  ;;  %v8587_v0 = vld [vmem:[%s14390_s1 + $0xe0] sm:$0xff] }
 0x336   : > { %6559 = vst [vmem:[%s10273_s22 + $0x220] sm:$0xff] %v5503_v10  ;;  %8092 = vmatmul.msk.f32.gmra.mxu1 %vm782_vm0, %v8580_v8 }
 0x337   : > { %6560 = vst [vmem:[%s10273_s22 + $0x228] sm:$0xff] %v5504_v58  ;;  %7996 = vmatmul.msk.f32.gmra.mxu2 %vm782_vm0, %v8580_v8  ;;  %8028 = vmatmul.msk.f32.gmra.mxu3 %vm782_vm0, %v8580_v8 }
 0x338   : > { %6578 = vst [vmem:[%s10273_s22 + $0x2b8] sm:$0xff] %v5522_v9 }
 0x33a   : > { %v2501_v27 = vpop.f32.mrf.mxu0  ;;  %v2269_v17 = vpop.f32.mrf.mxu2 }
 0x33b   : > { %v5553_v63 = vsub.f32 %v2501_v27, %v11012_v23  ;;  %v5519_v36 = vsub.f32 %v2269_v17, %v11048_v28  ;;  %v2382_v20 = vpop.f32.mrf.mxu3 }
 0x33c   : > { %v2611_v49 = vpop.f32.mrf.mxu1  ;;  %v5520_v61 = vsub.f32 %v2382_v20, %v11052_v55  ;;  %v1782_v20 = vld [vmem:[#allocation6 + $0xe8] sm:$0xff] }
 0x33d   : > { %6609 = vst [vmem:[%s10273_s22 + $0x3b0] sm:$0xff] %v5553_v63  ;;  %8062 = vmatmul.msk.f32.gmra.mxu0 %vm782_vm0, %v8582_v24  ;;  %v5538_v25 = vsub.f32 %v2611_v49, %v11033_v38  ;;  %v8588_v63 = vld [vmem:[%s14390_s1 + $0xe8] sm:$0xff]  ;;  %3268 = vmatpush.msra.mxu3 %v1782_v20 }
 0x33e   : > { %6575 = vst [vmem:[%s10273_s22 + $0x2a0] sm:$0xff] %v5519_v36  ;;  %8093 = vmatmul.msk.f32.gmra.mxu1 %vm782_vm0, %v8581_v12  ;;  %v1781_v36 = vld [vmem:[#allocation6 + $0xe0] sm:$0xff] }
 0x33f   : > { %6576 = vst [vmem:[%s10273_s22 + $0x2a8] sm:$0xff] %v5520_v61  ;;  %7997 = vmatmul.msk.f32.gmra.mxu2 %vm782_vm0, %v8581_v12  ;;  %8029 = vmatmul.msk.f32.gmra.mxu3 %vm782_vm0, %v8581_v12 }
 0x340   : > { %6594 = vst [vmem:[%s10273_s22 + $0x338] sm:$0xff] %v5538_v25  ;;  %3155 = vmatpush.msra.mxu2 %v1781_v36 }
 0x342   : > { %v2504_v16 = vpop.f32.mrf.mxu0  ;;  %v2272_v50 = vpop.f32.mrf.mxu2 }
 0x343   : > { %v5569_v53 = vsub.f32 %v2504_v16, %v11012_v23  ;;  %v5535_v47 = vsub.f32 %v2272_v50, %v11048_v28  ;;  %v2385_v4 = vpop.f32.mrf.mxu3 }
 0x344   : > { %v2614_v26 = vpop.f32.mrf.mxu1  ;;  %v5536_v15 = vsub.f32 %v2385_v4, %v11052_v55 }
 0x345   : > { %6625 = vst [vmem:[%s10273_s22 + $0x430] sm:$0xff] %v5569_v53  ;;  %8063 = vmatmul.msk.f32.gmra.mxu0 %vm782_vm0, %v8583_v21  ;;  %v5554_v18 = vsub.f32 %v2614_v26, %v11033_v38  ;;  %v1783_v26 = vld [vmem:[#allocation6 + $0xf0] sm:$0xff] }
 0x346   : > { %6591 = vst [vmem:[%s10273_s22 + $0x320] sm:$0xff] %v5535_v47  ;;  %8094 = vmatmul.msk.f32.gmra.mxu1 %vm782_vm0, %v8582_v24  ;;  %v8589_v47 = vld [vmem:[%s14390_s1 + $0xf0] sm:$0xff]  ;;  %3381 = vmatpush.msra.mxu0 %v1783_v26 }
 0x347   : > { %6592 = vst [vmem:[%s10273_s22 + $0x328] sm:$0xff] %v5536_v15  ;;  %7998 = vmatmul.msk.f32.gmra.mxu2 %vm782_vm0, %v8582_v24  ;;  %8030 = vmatmul.msk.f32.gmra.mxu3 %vm782_vm0, %v8582_v24  ;;  %v1784_v15 = vld [vmem:[#allocation6 + $0xf8] sm:$0xff] }
 0x348   : > { %6610 = vst [vmem:[%s10273_s22 + $0x3b8] sm:$0xff] %v5554_v18  ;;  %3494 = vmatpush.msra.mxu1 %v1784_v15 }
 0x34a   : > { %v2507_v29 = vpop.f32.mrf.mxu0  ;;  %v2275_v30 = vpop.f32.mrf.mxu2 }
 0x34b   : > { %v5585_v46 = vsub.f32 %v2507_v29, %v11012_v23  ;;  %v5551_v34 = vsub.f32 %v2275_v30, %v11048_v28  ;;  %v2388_v43 = vpop.f32.mrf.mxu3 }
 0x34c   : > { %v2617_v62 = vpop.f32.mrf.mxu1  ;;  %v5552_v40 = vsub.f32 %v2388_v43, %v11052_v55 }
 0x34d   : > { %6641 = vst [vmem:[%s10273_s22 + $0x4b0] sm:$0xff] %v5585_v46  ;;  %8064 = vmatmul.msk.f32.gmra.mxu0 %vm782_vm0, %v8584_v37  ;;  %v5570_v32 = vsub.f32 %v2617_v62, %v11033_v38  ;;  %v8590_v62 = vld [vmem:[%s14390_s1 + $0xf8] sm:$0xff] }
 0x34e   : > { %6607 = vst [vmem:[%s10273_s22 + $0x3a0] sm:$0xff] %v5551_v34  ;;  %8095 = vmatmul.msk.f32.gmra.mxu1 %vm782_vm0, %v8583_v21 }
 0x34f   : > { %6608 = vst [vmem:[%s10273_s22 + $0x3a8] sm:$0xff] %v5552_v40  ;;  %7999 = vmatmul.msk.f32.gmra.mxu2 %vm782_vm0, %v8583_v21  ;;  %8031 = vmatmul.msk.f32.gmra.mxu3 %vm782_vm0, %v8583_v21 }
 0x350   : > { %6626 = vst [vmem:[%s10273_s22 + $0x438] sm:$0xff] %v5570_v32 }
 0x352   : > { %v2510_v41 = vpop.f32.mrf.mxu0  ;;  %v2278_v31 = vpop.f32.mrf.mxu2 }
 0x353   : > { %v5601_v51 = vsub.f32 %v2510_v41, %v11012_v23  ;;  %v5567_v45 = vsub.f32 %v2278_v31, %v11048_v28  ;;  %v2391_v13 = vpop.f32.mrf.mxu3 }
 0x354   : > { %v2620_v48 = vpop.f32.mrf.mxu1  ;;  %v5568_v59 = vsub.f32 %v2391_v13, %v11052_v55 }
 0x355   : > { %6657 = vst [vmem:[%s10273_s22 + $0x530] sm:$0xff] %v5601_v51  ;;  %8065 = vmatmul.msk.f32.gmra.mxu0 %vm782_vm0, %v8585_v35  ;;  %v5586_v44 = vsub.f32 %v2620_v48, %v11033_v38 }
 0x356   : > { %6623 = vst [vmem:[%s10273_s22 + $0x420] sm:$0xff] %v5567_v45  ;;  %8096 = vmatmul.msk.f32.gmra.mxu1 %vm782_vm0, %v8584_v37 }
 0x357   : > { %6624 = vst [vmem:[%s10273_s22 + $0x428] sm:$0xff] %v5568_v59  ;;  %8000 = vmatmul.msk.f32.gmra.mxu2 %vm782_vm0, %v8584_v37  ;;  %8032 = vmatmul.msk.f32.gmra.mxu3 %vm782_vm0, %v8584_v37  ;;  %v8591_v59 = vld [vmem:[%s14390_s1] sm:$0xff] }
 0x358   : > { %6642 = vst [vmem:[%s10273_s22 + $0x4b8] sm:$0xff] %v5586_v44 }
 0x35a   : > { %v2513_v52 = vpop.f32.mrf.mxu0  ;;  %v2281_v56 = vpop.f32.mrf.mxu2 }
 0x35b   : > { %v5617_v54 = vsub.f32 %v2513_v52, %v11012_v23  ;;  %v5583_v5 = vsub.f32 %v2281_v56, %v11048_v28  ;;  %v2394_v39 = vpop.f32.mrf.mxu3 }
 0x35c   : > { %v2623_v22 = vpop.f32.mrf.mxu1  ;;  %v5584_v42 = vsub.f32 %v2394_v39, %v11052_v55 }
 0x35d   : > { %6673 = vst [vmem:[%s10273_s22 + $0x5b0] sm:$0xff] %v5617_v54  ;;  %8066 = vmatmul.msk.f32.gmra.mxu0 %vm782_vm0, %v8586_v1  ;;  %v5602_v2 = vsub.f32 %v2623_v22, %v11033_v38 }
 0x35e   : > { %6639 = vst [vmem:[%s10273_s22 + $0x4a0] sm:$0xff] %v5583_v5  ;;  %8097 = vmatmul.msk.f32.gmra.mxu1 %vm782_vm0, %v8585_v35 }
 0x35f   : > { %6640 = vst [vmem:[%s10273_s22 + $0x4a8] sm:$0xff] %v5584_v42  ;;  %8001 = vmatmul.msk.f32.gmra.mxu2 %vm782_vm0, %v8585_v35  ;;  %8033 = vmatmul.msk.f32.gmra.mxu3 %vm782_vm0, %v8585_v35  ;;  %v8592_v42 = vld [vmem:[%s14390_s1 + $0x8] sm:$0xff] }
 0x360   : > { %6658 = vst [vmem:[%s10273_s22 + $0x538] sm:$0xff] %v5602_v2 }
 0x362   : > { %v2516_v6 = vpop.f32.mrf.mxu0  ;;  %v2284_v60 = vpop.f32.mrf.mxu2 }
 0x363   : > { %v5633_v7 = vsub.f32 %v2516_v6, %v11012_v23  ;;  %v5599_v19 = vsub.f32 %v2284_v60, %v11048_v28  ;;  %v2397_v8 = vpop.f32.mrf.mxu3 }
 0x364   : > { %v2626_v14 = vpop.f32.mrf.mxu1  ;;  %v5600_v3 = vsub.f32 %v2397_v8, %v11052_v55 }
 0x365   : > { %6689 = vst [vmem:[%s10273_s22 + $0x630] sm:$0xff] %v5633_v7  ;;  %8067 = vmatmul.msk.f32.gmra.mxu0 %vm782_vm0, %v8587_v0  ;;  %v5618_v57 = vsub.f32 %v2626_v14, %v11033_v38 }
 0x366   : > { %6655 = vst [vmem:[%s10273_s22 + $0x520] sm:$0xff] %v5599_v19  ;;  %8098 = vmatmul.msk.f32.gmra.mxu1 %vm782_vm0, %v8586_v1 }
 0x367   : > { %6656 = vst [vmem:[%s10273_s22 + $0x528] sm:$0xff] %v5600_v3  ;;  %8002 = vmatmul.msk.f32.gmra.mxu2 %vm782_vm0, %v8586_v1  ;;  %8034 = vmatmul.msk.f32.gmra.mxu3 %vm782_vm0, %v8586_v1  ;;  %v8593_v3 = vld [vmem:[%s14390_s1 + $0x10] sm:$0xff] }
 0x368   : > { %6674 = vst [vmem:[%s10273_s22 + $0x5b8] sm:$0xff] %v5618_v57 }
 0x36a   : > { %v2519_v10 = vpop.f32.mrf.mxu0  ;;  %v2287_v33 = vpop.f32.mrf.mxu2 }
 0x36b   : > { %v5649_v11 = vsub.f32 %v2519_v10, %v11012_v23  ;;  %v5615_v58 = vsub.f32 %v2287_v33, %v11048_v28  ;;  %v2400_v12 = vpop.f32.mrf.mxu3 }
 0x36c   : > { %v2629_v9 = vpop.f32.mrf.mxu1  ;;  %v5616_v27 = vsub.f32 %v2400_v12, %v11052_v55 }
 0x36d   : > { %6705 = vst [vmem:[%s10273_s22 + $0x6b0] sm:$0xff] %v5649_v11  ;;  %8068 = vmatmul.msk.f32.gmra.mxu0 %vm782_vm0, %v8588_v63  ;;  %v5634_v17 = vsub.f32 %v2629_v9, %v11033_v38 }
 0x36e   : > { %6671 = vst [vmem:[%s10273_s22 + $0x5a0] sm:$0xff] %v5615_v58  ;;  %8099 = vmatmul.msk.f32.gmra.mxu1 %vm782_vm0, %v8587_v0 }
 0x36f   : > { %6672 = vst [vmem:[%s10273_s22 + $0x5a8] sm:$0xff] %v5616_v27  ;;  %8003 = vmatmul.msk.f32.gmra.mxu2 %vm782_vm0, %v8587_v0  ;;  %8035 = vmatmul.msk.f32.gmra.mxu3 %vm782_vm0, %v8587_v0  ;;  %v8594_v27 = vld [vmem:[%s14390_s1 + $0x18] sm:$0xff] }
 0x370   : > { %6690 = vst [vmem:[%s10273_s22 + $0x638] sm:$0xff] %v5634_v17 }
 0x372   : > { %v2522_v49 = vpop.f32.mrf.mxu0  ;;  %v2290_v24 = vpop.f32.mrf.mxu2 }
 0x373   : > { %v5665_v61 = vsub.f32 %v2522_v49, %v11012_v23  ;;  %v5631_v25 = vsub.f32 %v2290_v24, %v11048_v28  ;;  %v2403_v16 = vpop.f32.mrf.mxu3 }
 0x374   : > { %v2632_v53 = vpop.f32.mrf.mxu1  ;;  %v5632_v50 = vsub.f32 %v2403_v16, %v11052_v55  ;;  %v8595_v16 = vld [vmem:[%s14390_s1 + $0x20] sm:$0xff] }
 0x375   : > { %6721 = vst [vmem:[%s10273_s22 + $0x730] sm:$0xff] %v5665_v61  ;;  %8069 = vmatmul.msk.f32.gmra.mxu0 %vm782_vm0, %v8589_v47  ;;  %v5650_v4 = vsub.f32 %v2632_v53, %v11033_v38 }
 0x376   : > { %6687 = vst [vmem:[%s10273_s22 + $0x620] sm:$0xff] %v5631_v25  ;;  %8100 = vmatmul.msk.f32.gmra.mxu1 %vm782_vm0, %v8588_v63 }
 0x377   : > { %6688 = vst [vmem:[%s10273_s22 + $0x628] sm:$0xff] %v5632_v50  ;;  %8004 = vmatmul.msk.f32.gmra.mxu2 %vm782_vm0, %v8588_v63  ;;  %8036 = vmatmul.msk.f32.gmra.mxu3 %vm782_vm0, %v8588_v63 }
 0x378   : > { %6706 = vst [vmem:[%s10273_s22 + $0x6b8] sm:$0xff] %v5650_v4 }
 0x37a   : > { %v2525_v21 = vpop.f32.mrf.mxu0  ;;  %v2293_v29 = vpop.f32.mrf.mxu2 }
 0x37b   : > { %v5681_v18 = vsub.f32 %v2525_v21, %v11012_v23  ;;  %v5647_v46 = vsub.f32 %v2293_v29, %v11048_v28  ;;  %v2406_v30 = vpop.f32.mrf.mxu3  ;;  %v8596_v29 = vld [vmem:[%s14390_s1 + $0x28] sm:$0xff] }
 0x37c   : > { %v2635_v34 = vpop.f32.mrf.mxu1  ;;  %v5648_v43 = vsub.f32 %v2406_v30, %v11052_v55 }
 0x37d   : > { %6737 = vst [vmem:[%s10273_s22 + $0x7b0] sm:$0xff] %v5681_v18  ;;  %8070 = vmatmul.msk.f32.gmra.mxu0 %vm782_vm0, %v8590_v62  ;;  %v5666_v40 = vsub.f32 %v2635_v34, %v11033_v38 }
 0x37e   : > { %6703 = vst [vmem:[%s10273_s22 + $0x6a0] sm:$0xff] %v5647_v46  ;;  %8101 = vmatmul.msk.f32.gmra.mxu1 %vm782_vm0, %v8589_v47 }
 0x37f   : > { %6704 = vst [vmem:[%s10273_s22 + $0x6a8] sm:$0xff] %v5648_v43  ;;  %8005 = vmatmul.msk.f32.gmra.mxu2 %vm782_vm0, %v8589_v47  ;;  %8037 = vmatmul.msk.f32.gmra.mxu3 %vm782_vm0, %v8589_v47 }
 0x380   : > { %6722 = vst [vmem:[%s10273_s22 + $0x738] sm:$0xff] %v5666_v40 }
 0x382   : > { %v2528_v37 = vpop.f32.mrf.mxu0  ;;  %v2296_v41 = vpop.f32.mrf.mxu2 }
 0x383   : > { %v5697_v32 = vsub.f32 %v2528_v37, %v11012_v23  ;;  %v5663_v51 = vsub.f32 %v2296_v41, %v11048_v28  ;;  %v2409_v31 = vpop.f32.mrf.mxu3  ;;  %v8597_v41 = vld [vmem:[%s14390_s1 + $0x30] sm:$0xff] }
 0x384   : > { %v2638_v45 = vpop.f32.mrf.mxu1  ;;  %v5664_v13 = vsub.f32 %v2409_v31, %v11052_v55 }
 0x385   : > { %6753 = vst [vmem:[%s10273_s22 + $0x830] sm:$0xff] %v5697_v32  ;;  %v5682_v48 = vsub.f32 %v2638_v45, %v11033_v38  ;;  %8167 = vmatmul.msk.f32.vlgmr.msrb.gmra.mxu0 %vm782_vm0, %v8591_v59 }
 0x386   : > { %6719 = vst [vmem:[%s10273_s22 + $0x720] sm:$0xff] %v5663_v51  ;;  %8102 = vmatmul.msk.f32.gmra.mxu1 %vm782_vm0, %v8590_v62 }
 0x387   : > { %6720 = vst [vmem:[%s10273_s22 + $0x728] sm:$0xff] %v5664_v13  ;;  %8006 = vmatmul.msk.f32.gmra.mxu2 %vm782_vm0, %v8590_v62  ;;  %8038 = vmatmul.msk.f32.gmra.mxu3 %vm782_vm0, %v8590_v62 }
 0x388   : > { %6738 = vst [vmem:[%s10273_s22 + $0x7b8] sm:$0xff] %v5682_v48 }
 0x38a   : > { %v2531_v35 = vpop.f32.mrf.mxu0  ;;  %v2299_v52 = vpop.f32.mrf.mxu2 }
 0x38b   : > { %v5713_v44 = vsub.f32 %v2531_v35, %v11012_v23  ;;  %v5679_v54 = vsub.f32 %v2299_v52, %v11048_v28  ;;  %v2412_v56 = vpop.f32.mrf.mxu3  ;;  %v8598_v52 = vld [vmem:[%s14390_s1 + $0x38] sm:$0xff] }
 0x38c   : > { %v2641_v5 = vpop.f32.mrf.mxu1  ;;  %v5680_v39 = vsub.f32 %v2412_v56, %v11052_v55 }
 0x38d   : > { %6769 = vst [vmem:[%s10273_s22 + $0x8b0] sm:$0xff] %v5713_v44  ;;  %v5698_v22 = vsub.f32 %v2641_v5, %v11033_v38  ;;  %8168 = vmatmul.msk.f32.gmra.mxu0 %vm782_vm0, %v8592_v42 }
 0x38e   : > { %6735 = vst [vmem:[%s10273_s22 + $0x7a0] sm:$0xff] %v5679_v54  ;;  %8199 = vmatmul.msk.f32.vlgmr.msrb.gmra.mxu1 %vm782_vm0, %v8591_v59 }
 0x38f   : > { %6736 = vst [vmem:[%s10273_s22 + $0x7a8] sm:$0xff] %v5680_v39  ;;  %8103 = vmatmul.msk.f32.vlgmr.msrb.gmra.mxu2 %vm782_vm0, %v8591_v59  ;;  %8135 = vmatmul.msk.f32.vlgmr.msrb.gmra.mxu3 %vm782_vm0, %v8591_v59 }
 0x390   : > { %6754 = vst [vmem:[%s10273_s22 + $0x838] sm:$0xff] %v5698_v22 }
 0x392   : > { %v2534_v1 = vpop.f32.mrf.mxu0  ;;  %v2302_v6 = vpop.f32.mrf.mxu2 }
 0x393   : > { %v5729_v2 = vsub.f32 %v2534_v1, %v11012_v23  ;;  %v5695_v7 = vsub.f32 %v2302_v6, %v11048_v28  ;;  %v2415_v60 = vpop.f32.mrf.mxu3  ;;  %v8599_v6 = vld [vmem:[%s14390_s1 + $0x40] sm:$0xff] }
 0x394   : > { %v2644_v19 = vpop.f32.mrf.mxu1  ;;  %v5696_v8 = vsub.f32 %v2415_v60, %v11052_v55 }
 0x395   : > { %6785 = vst [vmem:[%s10273_s22 + $0x930] sm:$0xff] %v5729_v2  ;;  %v5714_v14 = vsub.f32 %v2644_v19, %v11033_v38  ;;  %8169 = vmatmul.msk.f32.gmra.mxu0 %vm782_vm0, %v8593_v3 }
 0x396   : > { %6751 = vst [vmem:[%s10273_s22 + $0x820] sm:$0xff] %v5695_v7  ;;  %8200 = vmatmul.msk.f32.gmra.mxu1 %vm782_vm0, %v8592_v42 }
 0x397   : > { %6752 = vst [vmem:[%s10273_s22 + $0x828] sm:$0xff] %v5696_v8  ;;  %8104 = vmatmul.msk.f32.gmra.mxu2 %vm782_vm0, %v8592_v42  ;;  %8136 = vmatmul.msk.f32.gmra.mxu3 %vm782_vm0, %v8592_v42 }
 0x398   : > { %6770 = vst [vmem:[%s10273_s22 + $0x8b8] sm:$0xff] %v5714_v14 }
 0x39a   : > { %v2537_v0 = vpop.f32.mrf.mxu0  ;;  %v2305_v10 = vpop.f32.mrf.mxu2 }
 0x39b   : > { %v5745_v57 = vsub.f32 %v2537_v0, %v11012_v23  ;;  %v5711_v11 = vsub.f32 %v2305_v10, %v11048_v28  ;;  %v2418_v33 = vpop.f32.mrf.mxu3  ;;  %v8600_v10 = vld [vmem:[%s14390_s1 + $0x48] sm:$0xff] }
 0x39c   : > { %v2647_v58 = vpop.f32.mrf.mxu1  ;;  %v5712_v12 = vsub.f32 %v2418_v33, %v11052_v55 }
 0x39d   : > { %6801 = vst [vmem:[%s10273_s22 + $0x9b0] sm:$0xff] %v5745_v57  ;;  %v5730_v9 = vsub.f32 %v2647_v58, %v11033_v38  ;;  %8170 = vmatmul.msk.f32.gmra.mxu0 %vm782_vm0, %v8594_v27 }
 0x39e   : > { %6767 = vst [vmem:[%s10273_s22 + $0x8a0] sm:$0xff] %v5711_v11  ;;  %8201 = vmatmul.msk.f32.gmra.mxu1 %vm782_vm0, %v8593_v3 }
 0x39f   : > { %6768 = vst [vmem:[%s10273_s22 + $0x8a8] sm:$0xff] %v5712_v12  ;;  %8105 = vmatmul.msk.f32.gmra.mxu2 %vm782_vm0, %v8593_v3  ;;  %8137 = vmatmul.msk.f32.gmra.mxu3 %vm782_vm0, %v8593_v3 }
 0x3a0   : > { %6786 = vst [vmem:[%s10273_s22 + $0x938] sm:$0xff] %v5730_v9 }
 0x3a2   : > { %v2540_v63 = vpop.f32.mrf.mxu0  ;;  %v2308_v36 = vpop.f32.mrf.mxu2 }
 0x3a3   : > { %v5761_v17 = vsub.f32 %v2540_v63, %v11012_v23  ;;  %v5727_v20 = vsub.f32 %v2308_v36, %v11048_v28  ;;  %v2421_v49 = vpop.f32.mrf.mxu3  ;;  %v8601_v36 = vld [vmem:[%s14390_s1 + $0x50] sm:$0xff] }
 0x3a4   : > { %v2650_v61 = vpop.f32.mrf.mxu1  ;;  %v5728_v24 = vsub.f32 %v2421_v49, %v11052_v55 }
 0x3a5   : > { %6817 = vst [vmem:[%s10273_s22 + $0xa30] sm:$0xff] %v5761_v17  ;;  %v5746_v25 = vsub.f32 %v2650_v61, %v11033_v38  ;;  %8171 = vmatmul.msk.f32.gmra.mxu0 %vm782_vm0, %v8595_v16 }
 0x3a6   : > { %6783 = vst [vmem:[%s10273_s22 + $0x920] sm:$0xff] %v5727_v20  ;;  %8202 = vmatmul.msk.f32.gmra.mxu1 %vm782_vm0, %v8594_v27 }
 0x3a7   : > { %6784 = vst [vmem:[%s10273_s22 + $0x928] sm:$0xff] %v5728_v24  ;;  %8106 = vmatmul.msk.f32.gmra.mxu2 %vm782_vm0, %v8594_v27  ;;  %8138 = vmatmul.msk.f32.gmra.mxu3 %vm782_vm0, %v8594_v27 }
 0x3a8   : > { %6802 = vst [vmem:[%s10273_s22 + $0x9b8] sm:$0xff] %v5746_v25 }
 0x3aa   : > { %v2543_v53 = vpop.f32.mrf.mxu0  ;;  %v2311_v47 = vpop.f32.mrf.mxu2 }
 0x3ab   : > { %v5777_v50 = vsub.f32 %v2543_v53, %v11012_v23  ;;  %v5743_v4 = vsub.f32 %v2311_v47, %v11048_v28  ;;  %v2424_v26 = vpop.f32.mrf.mxu3  ;;  %v8602_v47 = vld [vmem:[%s14390_s1 + $0x58] sm:$0xff] }
 0x3ac   : > { %v2653_v15 = vpop.f32.mrf.mxu1  ;;  %v5744_v21 = vsub.f32 %v2424_v26, %v11052_v55 }
 0x3ad   : > { %6833 = vst [vmem:[%s10273_s22 + $0xab0] sm:$0xff] %v5777_v50  ;;  %v5762_v18 = vsub.f32 %v2653_v15, %v11033_v38  ;;  %8172 = vmatmul.msk.f32.gmra.mxu0 %vm782_vm0, %v8596_v29 }
 0x3ae   : > { %6799 = vst [vmem:[%s10273_s22 + $0x9a0] sm:$0xff] %v5743_v4  ;;  %8203 = vmatmul.msk.f32.gmra.mxu1 %vm782_vm0, %v8595_v16 }
 0x3af   : > { %6800 = vst [vmem:[%s10273_s22 + $0x9a8] sm:$0xff] %v5744_v21  ;;  %8107 = vmatmul.msk.f32.gmra.mxu2 %vm782_vm0, %v8595_v16  ;;  %8139 = vmatmul.msk.f32.gmra.mxu3 %vm782_vm0, %v8595_v16 }
 0x3b0   : > { %6818 = vst [vmem:[%s10273_s22 + $0xa38] sm:$0xff] %v5762_v18 }
 0x3b2   : > { %v2546_v46 = vpop.f32.mrf.mxu0  ;;  %v2314_v34 = vpop.f32.mrf.mxu2 }
 0x3b3   : > { %v5793_v30 = vsub.f32 %v2546_v46, %v11012_v23  ;;  %v5759_v43 = vsub.f32 %v2314_v34, %v11048_v28  ;;  %v2427_v62 = vpop.f32.mrf.mxu3  ;;  %v8603_v34 = vld [vmem:[%s14390_s1 + $0x60] sm:$0xff] }
 0x3b4   : > { %v2656_v40 = vpop.f32.mrf.mxu1  ;;  %v5760_v37 = vsub.f32 %v2427_v62, %v11052_v55 }
 0x3b5   : > { %6849 = vst [vmem:[%s10273_s22 + $0xb30] sm:$0xff] %v5793_v30  ;;  %v5778_v32 = vsub.f32 %v2656_v40, %v11033_v38  ;;  %8173 = vmatmul.msk.f32.gmra.mxu0 %vm782_vm0, %v8597_v41 }
 0x3b6   : > { %6815 = vst [vmem:[%s10273_s22 + $0xa20] sm:$0xff] %v5759_v43  ;;  %8204 = vmatmul.msk.f32.gmra.mxu1 %vm782_vm0, %v8596_v29 }
 0x3b7   : > { %6816 = vst [vmem:[%s10273_s22 + $0xa28] sm:$0xff] %v5760_v37  ;;  %8108 = vmatmul.msk.f32.gmra.mxu2 %vm782_vm0, %v8596_v29  ;;  %8140 = vmatmul.msk.f32.gmra.mxu3 %vm782_vm0, %v8596_v29 }
 0x3b8   : > { %6834 = vst [vmem:[%s10273_s22 + $0xab8] sm:$0xff] %v5778_v32 }
 0x3ba   : > { %v2549_v51 = vpop.f32.mrf.mxu0  ;;  %v2317_v45 = vpop.f32.mrf.mxu2 }
 0x3bb   : > { %v5809_v31 = vsub.f32 %v2549_v51, %v11012_v23  ;;  %v5775_v13 = vsub.f32 %v2317_v45, %v11048_v28  ;;  %v2430_v48 = vpop.f32.mrf.mxu3  ;;  %v8604_v45 = vld [vmem:[%s14390_s1 + $0x68] sm:$0xff] }
 0x3bc   : > { %v2659_v59 = vpop.f32.mrf.mxu1  ;;  %v5776_v35 = vsub.f32 %v2430_v48, %v11052_v55  ;;  %v1766_v48 = vld [vmem:[#allocation6 + $0x68] sm:$0xff] }
 0x3bd   : > { %6865 = vst [vmem:[%s10273_s22 + $0xbb0] sm:$0xff] %v5809_v31  ;;  %v5794_v44 = vsub.f32 %v2659_v59, %v11033_v38  ;;  %8174 = vmatmul.msk.f32.gmra.mxu0 %vm782_vm0, %v8598_v52  ;;  %3269 = vmatpush.msra.mxu3 %v1766_v48 }
 0x3be   : > { %6831 = vst [vmem:[%s10273_s22 + $0xaa0] sm:$0xff] %v5775_v13  ;;  %8205 = vmatmul.msk.f32.gmra.mxu1 %vm782_vm0, %v8597_v41  ;;  %v1765_v13 = vld [vmem:[#allocation6 + $0x60] sm:$0xff] }
 0x3bf   : > { %6832 = vst [vmem:[%s10273_s22 + $0xaa8] sm:$0xff] %v5776_v35  ;;  %8109 = vmatmul.msk.f32.gmra.mxu2 %vm782_vm0, %v8597_v41  ;;  %8141 = vmatmul.msk.f32.gmra.mxu3 %vm782_vm0, %v8597_v41 }
 0x3c0   : > { %6850 = vst [vmem:[%s10273_s22 + $0xb38] sm:$0xff] %v5794_v44  ;;  %3156 = vmatpush.msra.mxu2 %v1765_v13  ;;  %v8637_v13 = vld [vmem:[#allocation8 + $0x498] sm:$0xff] }
 0x3c2   : > { %v2552_v54 = vpop.f32.mrf.mxu0  ;;  %v2320_v5 = vpop.f32.mrf.mxu2 }
 0x3c3   : > { %v5825_v56 = vsub.f32 %v2552_v54, %v11012_v23  ;;  %v5791_v39 = vsub.f32 %v2320_v5, %v11048_v28  ;;  %v2433_v22 = vpop.f32.mrf.mxu3  ;;  %v8606_v54 = vld [vmem:[#allocation8 + $0x788] sm:$0xff] }
 0x3c4   : > { %v2662_v42 = vpop.f32.mrf.mxu1  ;;  %v5792_v1 = vsub.f32 %v2433_v22, %v11052_v55  ;;  %3706 = vmatpush.msrb.mxu3 %v8606_v54  ;;  %v8640_v54 = vld [vmem:[#allocation8 + $0x418] sm:$0xff] }
 0x3c5   : > { %6881 = vst [vmem:[%s10273_s22 + $0xc30] sm:$0xff] %v5825_v56  ;;  %v5810_v2 = vsub.f32 %v2662_v42, %v11033_v38  ;;  %8175 = vmatmul.msk.f32.gmra.mxu0 %vm782_vm0, %v8599_v6 }
 0x3c6   : > { %6847 = vst [vmem:[%s10273_s22 + $0xb20] sm:$0xff] %v5791_v39  ;;  %8206 = vmatmul.msk.f32.gmra.mxu1 %vm782_vm0, %v8598_v52 }
 0x3c7   : > { %6848 = vst [vmem:[%s10273_s22 + $0xb28] sm:$0xff] %v5792_v1  ;;  %8110 = vmatmul.msk.f32.gmra.mxu2 %vm782_vm0, %v8598_v52  ;;  %8142 = vmatmul.msk.f32.gmra.mxu3 %vm782_vm0, %v8598_v52  ;;  %v8605_v52 = vld [vmem:[#allocation8 + $0x780] sm:$0xff]  ;;  %v8607_v1 = vld [vmem:[%s14390_s1 + $0x70] sm:$0xff] }
 0x3c8   : > { %6866 = vst [vmem:[%s10273_s22 + $0xbb8] sm:$0xff] %v5810_v2  ;;  %3593 = vmatpush.msrb.mxu2 %v8605_v52  ;;  %v8608_v2 = vld [vmem:[#allocation8 + $0x700] sm:$0xff] }
 0x3ca   : > { %v2555_v7 = vpop.f32.mrf.mxu0  ;;  %v2323_v19 = vpop.f32.mrf.mxu2  ;;  %3594 = vmatpush.msrb.mxu2 %v8608_v2 }
 0x3cb   : > { %v5841_v60 = vsub.f32 %v2555_v7, %v11012_v23  ;;  %v5807_v8 = vsub.f32 %v2323_v19, %v11048_v28  ;;  %v2436_v14 = vpop.f32.mrf.mxu3  ;;  %v8610_v7 = vld [vmem:[#allocation8 + $0x680] sm:$0xff]  ;;  %v1768_v19 = vld [vmem:[#allocation6 + $0x78] sm:$0xff] }
 0x3cc   : > { %v2665_v3 = vpop.f32.mrf.mxu1  ;;  %v5808_v0 = vsub.f32 %v2436_v14, %v11052_v55  ;;  %3595 = vmatpush.msrb.mxu2 %v8610_v7  ;;  %3495 = vmatpush.msra.mxu1 %v1768_v19  ;;  %v8647_v19 = vld [vmem:[#allocation8 + $0x308] sm:$0xff] }
 0x3cd   : > { %6897 = vst [vmem:[%s10273_s22 + $0xcb0] sm:$0xff] %v5841_v60  ;;  %v5826_v57 = vsub.f32 %v2665_v3, %v11033_v38  ;;  %8176 = vmatmul.msk.f32.gmra.mxu0 %vm782_vm0, %v8600_v10  ;;  %v1767_v60 = vld [vmem:[#allocation6 + $0x70] sm:$0xff] }
 0x3ce   : > { %6863 = vst [vmem:[%s10273_s22 + $0xba0] sm:$0xff] %v5807_v8  ;;  %8207 = vmatmul.msk.f32.gmra.mxu1 %vm782_vm0, %v8599_v6  ;;  %v8611_v8 = vld [vmem:[#allocation8 + $0x688] sm:$0xff]  ;;  %3382 = vmatpush.msra.mxu0 %v1767_v60  ;;  %v8612_v3 = vld [vmem:[#allocation8 + $0x790] sm:$0xff]  ;;  %v8646_v60 = vld [vmem:[#allocation8 + $0x300] sm:$0xff] }
 0x3cf   : > { %6864 = vst [vmem:[%s10273_s22 + $0xba8] sm:$0xff] %v5808_v0  ;;  %8111 = vmatmul.msk.f32.gmra.mxu2 %vm782_vm0, %v8599_v6  ;;  %8143 = vmatmul.msk.f32.gmra.mxu3 %vm782_vm0, %v8599_v6  ;;  %v8609_v6 = vld [vmem:[#allocation8 + $0x708] sm:$0xff] }
 0x3d0   : > { %6882 = vst [vmem:[%s10273_s22 + $0xc38] sm:$0xff] %v5826_v57  ;;  %3707 = vmatpush.msrb.mxu3 %v8609_v6  ;;  %3819 = vmatpush.msrb.mxu0 %v8612_v3  ;;  %v8644_v6 = vld [vmem:[%s14390_s1 + $0x88] sm:$0xff] }
 0x3d2   : > { %v2558_v11 = vpop.f32.mrf.mxu0  ;;  %v2326_v58 = vpop.f32.mrf.mxu2  ;;  %3708 = vmatpush.msrb.mxu3 %v8611_v8 }
 0x3d3   : > { %v5857_v33 = vsub.f32 %v2558_v11, %v11012_v23  ;;  %v5823_v12 = vsub.f32 %v2326_v58, %v11048_v28  ;;  %v2439_v9 = vpop.f32.mrf.mxu3  ;;  %v8614_v11 = vld [vmem:[#allocation8 + $0x600] sm:$0xff] }
 0x3d4   : > { %v2668_v27 = vpop.f32.mrf.mxu1  ;;  %v5824_v63 = vsub.f32 %v2439_v9, %v11052_v55  ;;  %3596 = vmatpush.msrb.mxu2 %v8614_v11  ;;  %v8615_v9 = vld [vmem:[#allocation8 + $0x710] sm:$0xff] }
 0x3d5   : > { %6913 = vst [vmem:[%s10273_s22 + $0xd30] sm:$0xff] %v5857_v33  ;;  %v5842_v17 = vsub.f32 %v2668_v27, %v11033_v38  ;;  %8177 = vmatmul.msk.f32.gmra.mxu0 %vm782_vm0, %v8601_v36  ;;  %v8616_v27 = vld [vmem:[#allocation8 + $0x608] sm:$0xff]  ;;  %v8652_v11 = vld [vmem:[#allocation8 + $0x290] sm:$0xff] }
 0x3d6   : > { %6879 = vst [vmem:[%s10273_s22 + $0xc20] sm:$0xff] %v5823_v12  ;;  %8208 = vmatmul.msk.f32.gmra.mxu1 %vm782_vm0, %v8600_v10  ;;  %3820 = vmatpush.msrb.mxu0 %v8615_v9  ;;  %v8654_v9 = vld [vmem:[#allocation8 + $0x200] sm:$0xff] }
 0x3d7   : > { %6880 = vst [vmem:[%s10273_s22 + $0xc28] sm:$0xff] %v5824_v63  ;;  %8112 = vmatmul.msk.f32.gmra.mxu2 %vm782_vm0, %v8600_v10  ;;  %8144 = vmatmul.msk.f32.gmra.mxu3 %vm782_vm0, %v8600_v10  ;;  %v8613_v10 = vld [vmem:[#allocation8 + $0x798] sm:$0xff] }
 0x3d8   : > { %6898 = vst [vmem:[%s10273_s22 + $0xcb8] sm:$0xff] %v5842_v17  ;;  %3932 = vmatpush.msrb.mxu1 %v8613_v10  ;;  %3709 = vmatpush.msrb.mxu3 %v8616_v27  ;;  %v8617_v17 = vld [vmem:[%s14390_s1 + $0x78] sm:$0xff]  ;;  %v8651_v10 = vld [vmem:[#allocation8 + $0x288] sm:$0xff] }
 0x3da   : > { %v2561_v20 = vpop.f32.mrf.mxu0  ;;  %v2329_v61 = vpop.f32.mrf.mxu2 }
 0x3db   : > { %v5873_v49 = vsub.f32 %v2561_v20, %v11012_v23  ;;  %v5839_v24 = vsub.f32 %v2329_v61, %v11048_v28  ;;  %v2442_v25 = vpop.f32.mrf.mxu3  ;;  %v8619_v20 = vld [vmem:[#allocation8 + $0x690] sm:$0xff]  ;;  %v11501_v61 = vld [vmem:[%s9791_s20 + $0x8] sm:$0xff] }
 0x3dc   : > { %v2671_v16 = vpop.f32.mrf.mxu1  ;;  %v5840_v53 = vsub.f32 %v2442_v25, %v11052_v55  ;;  %3821 = vmatpush.msrb.mxu0 %v8619_v20  ;;  %v8622_v25 = vld [vmem:[#allocation8 + $0x588] sm:$0xff]  ;;  %v11542_v8 = vperm.slane %v11501_v61, 0  ;;  %v11547_v3 = vperm.slane %v11501_v61, 1 }
 0x3dd   : > { %6929 = vst [vmem:[%s10273_s22 + $0xdb0] sm:$0xff] %v5873_v49  ;;  %v5858_v50 = vsub.f32 %v2671_v16, %v11033_v38  ;;  %8178 = vmatmul.msk.f32.gmra.mxu0 %vm782_vm0, %v8602_v47  ;;  %v8620_v49 = vld [vmem:[#allocation8 + $0x580] sm:$0xff]  ;;  %3710 = vmatpush.msrb.mxu3 %v8622_v25  ;;  %v8623_v16 = vld [vmem:[#allocation8 + $0x698] sm:$0xff] }
 0x3de   : > { %6895 = vst [vmem:[%s10273_s22 + $0xca0] sm:$0xff] %v5839_v24  ;;  %8209 = vmatmul.msk.f32.gmra.mxu1 %vm782_vm0, %v8601_v36  ;;  %3597 = vmatpush.msrb.mxu2 %v8620_v49  ;;  %v11504_v24 = vperm.slane %v11501_v61, 2  ;;  %v8657_v49 = vld [vmem:[%s14390_s1 + $0x90] sm:$0xff]  ;;  %v8658_v25 = vld [vmem:[#allocation8 + $0x218] sm:$0xff] }
 0x3df   : > { %6896 = vst [vmem:[%s10273_s22 + $0xca8] sm:$0xff] %v5840_v53  ;;  %8113 = vmatmul.msk.f32.gmra.mxu2 %vm782_vm0, %v8601_v36  ;;  %8145 = vmatmul.msk.f32.gmra.mxu3 %vm782_vm0, %v8601_v36  ;;  %v8618_v36 = vld [vmem:[#allocation8 + $0x718] sm:$0xff]  ;;  %v8624_v53 = vld [vmem:[#allocation8 + $0x610] sm:$0xff] }
 0x3e0   : > { %6914 = vst [vmem:[%s10273_s22 + $0xd38] sm:$0xff] %v5858_v50  ;;  %3933 = vmatpush.msrb.mxu1 %v8618_v36  ;;  %3822 = vmatpush.msrb.mxu0 %v8624_v53  ;;  %v8656_v36 = vld [vmem:[#allocation8 + $0x210] sm:$0xff]  ;;  %v8660_v53 = vld [vmem:[#allocation8 + $0x188] sm:$0xff] }
 0x3e2   : > { %v2564_v4 = vpop.f32.mrf.mxu0  ;;  %v2332_v15 = vpop.f32.mrf.mxu2  ;;  %3934 = vmatpush.msrb.mxu1 %v8623_v16  ;;  %v8659_v16 = vld [vmem:[#allocation8 + $0x180] sm:$0xff] }
 0x3e3   : > { %v5889_v26 = vsub.f32 %v2564_v4, %v11012_v23  ;;  %v5855_v21 = vsub.f32 %v2332_v15, %v11048_v28  ;;  %v2445_v18 = vpop.f32.mrf.mxu3  ;;  %v8626_v4 = vld [vmem:[#allocation8 + $0x500] sm:$0xff] }
 0x3e4   : > { %v2674_v29 = vpop.f32.mrf.mxu1  ;;  %v5856_v46 = vsub.f32 %v2445_v18, %v11052_v55  ;;  %3598 = vmatpush.msrb.mxu2 %v8626_v4  ;;  %v8628_v18 = vld [vmem:[#allocation8 + $0x508] sm:$0xff]  ;;  %v8663_v4 = vld [vmem:[#allocation8 + $0x100] sm:$0xff] }
 0x3e5   : > { %6945 = vst [vmem:[%s10273_s22 + $0xe30] sm:$0xff] %v5889_v26  ;;  %v5874_v30 = vsub.f32 %v2674_v29, %v11033_v38  ;;  %8179 = vmatmul.msk.f32.gmra.mxu0 %vm782_vm0, %v8603_v34  ;;  %3711 = vmatpush.msrb.mxu3 %v8628_v18 }
 0x3e6   : > { %6911 = vst [vmem:[%s10273_s22 + $0xd20] sm:$0xff] %v5855_v21  ;;  %8210 = vmatmul.msk.f32.gmra.mxu1 %vm782_vm0, %v8602_v47  ;;  %v8627_v21 = vld [vmem:[#allocation8 + $0x590] sm:$0xff] }
 0x3e7   : > { %6912 = vst [vmem:[%s10273_s22 + $0xd28] sm:$0xff] %v5856_v46  ;;  %8114 = vmatmul.msk.f32.gmra.mxu2 %vm782_vm0, %v8602_v47  ;;  %8146 = vmatmul.msk.f32.gmra.mxu3 %vm782_vm0, %v8602_v47  ;;  %v8625_v47 = vld [vmem:[#allocation8 + $0x618] sm:$0xff] }
 0x3e8   : > { %6930 = vst [vmem:[%s10273_s22 + $0xdb8] sm:$0xff] %v5874_v30  ;;  %3935 = vmatpush.msrb.mxu1 %v8625_v47  ;;  %3823 = vmatpush.msrb.mxu0 %v8627_v21  ;;  %v8662_v47 = vld [vmem:[#allocation8 + $0x198] sm:$0xff]  ;;  %v8665_v21 = vld [vmem:[#allocation8 + $0x110] sm:$0xff] }
 0x3ea   : > { %v2567_v43 = vpop.f32.mrf.mxu0  ;;  %v2335_v40 = vpop.f32.mrf.mxu2 }
 0x3eb   : > { %v5905_v62 = vsub.f32 %v2567_v43, %v11012_v23  ;;  %v5871_v37 = vsub.f32 %v2335_v40, %v11048_v28  ;;  %v2448_v32 = vpop.f32.mrf.mxu3  ;;  %v8630_v43 = vld [vmem:[#allocation8 + $0x480] sm:$0xff] }
 0x3ec   : > { %v2677_v41 = vpop.f32.mrf.mxu1  ;;  %v5872_v51 = vsub.f32 %v2448_v32, %v11052_v55  ;;  %3599 = vmatpush.msrb.mxu2 %v8630_v43  ;;  %v8632_v32 = vld [vmem:[#allocation8 + $0x488] sm:$0xff] }
 0x3ed   : > { %6961 = vst [vmem:[%s10273_s22 + $0xeb0] sm:$0xff] %v5905_v62  ;;  %v5890_v31 = vsub.f32 %v2677_v41, %v11033_v38  ;;  %8180 = vmatmul.msk.f32.gmra.mxu0 %vm782_vm0, %v8604_v45  ;;  %3712 = vmatpush.msrb.mxu3 %v8632_v32  ;;  %v8633_v41 = vld [vmem:[#allocation8 + $0x510] sm:$0xff] }
 0x3ee   : > { %6927 = vst [vmem:[%s10273_s22 + $0xda0] sm:$0xff] %v5871_v37  ;;  %8211 = vmatmul.msk.f32.gmra.mxu1 %vm782_vm0, %v8603_v34  ;;  %v8631_v37 = vld [vmem:[%s14390_s1 + $0x80] sm:$0xff]  ;;  %3824 = vmatpush.msrb.mxu0 %v8633_v41  ;;  %v8670_v41 = vld [vmem:[%s14390_s1 + $0x98] sm:$0xff] }
 0x3ef   : > { %6928 = vst [vmem:[%s10273_s22 + $0xda8] sm:$0xff] %v5872_v51  ;;  %8115 = vmatmul.msk.f32.gmra.mxu2 %vm782_vm0, %v8603_v34  ;;  %8147 = vmatmul.msk.f32.gmra.mxu3 %vm782_vm0, %v8603_v34  ;;  %v8629_v34 = vld [vmem:[#allocation8 + $0x598] sm:$0xff] }
 0x3f0   : > { %6946 = vst [vmem:[%s10273_s22 + $0xe38] sm:$0xff] %v5890_v31  ;;  %3936 = vmatpush.msrb.mxu1 %v8629_v34  ;;  %v8634_v51 = vld [vmem:[#allocation8 + $0x518] sm:$0xff]  ;;  %v8635_v31 = vld [vmem:[#allocation8 + $0x400] sm:$0xff] }
 0x3f1   : > { %3600 = vmatpush.msrb.mxu2 %v8635_v31  ;;  %v8671_v31 = vld [vmem:[#allocation8 + $0x98] sm:$0xff] }
 0x3f2   : > { %v2570_v59 = vpop.f32.mrf.mxu0  ;;  %v2338_v44 = vpop.f32.mrf.mxu2  ;;  %3937 = vmatpush.msrb.mxu1 %v8634_v51 }
 0x3f3   : > { %v5921_v35 = vsub.f32 %v2570_v59, %v11012_v23  ;;  %v5887_v56 = vsub.f32 %v2338_v44, %v11048_v28  ;;  %v2451_v5 = vpop.f32.mrf.mxu3  ;;  %v8638_v59 = vld [vmem:[#allocation8 + $0x408] sm:$0xff] }
 0x3f4   : > { %v2680_v39 = vpop.f32.mrf.mxu1  ;;  %v5888_v22 = vsub.f32 %v2451_v5, %v11052_v55  ;;  %3938 = vmatpush.msrb.mxu1 %v8637_v13  ;;  %3713 = vmatpush.msrb.mxu3 %v8638_v59  ;;  %v8673_v13 = vld [vmem:[#allocation8 + $0x8] sm:$0xff]  ;;  %v8675_v59 = vld [vmem:[#allocation8 + $0x18] sm:$0xff] }
 0x3f5   : > { %6977 = vst [vmem:[%s10273_s22 + $0xf30] sm:$0xff] %v5921_v35  ;;  %v5906_v42 = vsub.f32 %v2680_v39, %v11033_v38  ;;  %8181 = vmatmul.msk.f32.gmra.mxu0 %vm782_vm0, %v8607_v1  ;;  %v8639_v35 = vld [vmem:[#allocation8 + $0x410] sm:$0xff] }
 0x3f6   : > { %6943 = vst [vmem:[%s10273_s22 + $0xe20] sm:$0xff] %v5887_v56  ;;  %8212 = vmatmul.msk.f32.gmra.mxu1 %vm782_vm0, %v8604_v45  ;;  %v8641_v56 = vld [vmem:[#allocation8 + $0x380] sm:$0xff] }
 0x3f7   : > { %6944 = vst [vmem:[%s10273_s22 + $0xe28] sm:$0xff] %v5888_v22  ;;  %8116 = vmatmul.msk.f32.gmra.mxu2 %vm782_vm0, %v8604_v45  ;;  %8148 = vmatmul.msk.f32.gmra.mxu3 %vm782_vm0, %v8604_v45  ;;  %v11526_v45 = vperm.slane %v11501_v61, 3 }
 0x3f8   : > { %6962 = vst [vmem:[%s10273_s22 + $0xeb8] sm:$0xff] %v5906_v42  ;;  %3939 = vmatpush.msrb.mxu1 %v8640_v54  ;;  %3601 = vmatpush.msrb.mxu2 %v8641_v56  ;;  %v8642_v42 = vld [vmem:[#allocation8 + $0x388] sm:$0xff] }
 0x3f9   : > { %3714 = vmatpush.msrb.mxu3 %v8642_v42 }
 0x3fa   : > { %v2573_v14 = vpop.f32.mrf.mxu0  ;;  %v2341_v57 = vpop.f32.mrf.mxu2  ;;  %3602 = vmatpush.msrb.mxu2 %v8646_v60 }
 0x3fb   : > { %v5937_v0 = vsub.f32 %v2573_v14, %v11012_v23  ;;  %v5903_v33 = vsub.f32 %v2341_v57, %v11048_v28  ;;  %v2454_v58 = vpop.f32.mrf.mxu3  ;;  %3715 = vmatpush.msrb.mxu3 %v8647_v19  ;;  %v8649_v14 = vld [vmem:[#allocation8 + $0x318] sm:$0xff] }
 0x3fc   : > { %v2683_v12 = vpop.f32.mrf.mxu1  ;;  %v5904_v63 = vsub.f32 %v2454_v58, %v11052_v55 }
 0x3fd   : > { %6993 = vst [vmem:[%s10273_s22 + $0xfb0] sm:$0xff] %v5937_v0  ;;  %v5922_v23 = vsub.f32 %v2683_v12, %v11033_v38  ;;  %8182 = vmatmul.msk.f32.gmra.mxu0 %vm782_vm0, %v8617_v17  ;;  %v8650_v0 = vld [vmem:[#allocation8 + $0x280] sm:$0xff]  ;;  %3716 = vmatpush.msrb.mxu3 %v8651_v10  ;;  %v8653_v12 = vld [vmem:[#allocation8 + $0x298] sm:$0xff] }
 0x3fe   : > { %6959 = vst [vmem:[%s10273_s22 + $0xea0] sm:$0xff] %v5903_v33  ;;  %8213 = vmatmul.msk.f32.gmra.mxu1 %vm782_vm0, %v8607_v1  ;;  %3603 = vmatpush.msrb.mxu2 %v8650_v0 }
 0x3ff   : > { %6960 = vst [vmem:[%s10273_s22 + $0xea8] sm:$0xff] %v5904_v63  ;;  %8117 = vmatmul.msk.f32.gmra.mxu2 %vm782_vm0, %v8607_v1  ;;  %8149 = vmatmul.msk.f32.gmra.mxu3 %vm782_vm0, %v8607_v1  ;;  %v8643_v1 = vld [vmem:[#allocation8 + $0x390] sm:$0xff] }
 0x400   : > { %6978 = vst [vmem:[%s10273_s22 + $0xf38] sm:$0xff] %v5922_v23  ;;  %3604 = vmatpush.msrb.mxu2 %v8654_v9  ;;  %v8678_v9 = vld [vmem:[%s14390_s1 + $0xb0] sm:$0xff] }
 0x402   : > { %v2932_v50 = vpop.f32.mrf.mxu0  ;;  %v2344_v15 = vpop.f32.mrf.mxu2  ;;  %3605 = vmatpush.msrb.mxu2 %v8659_v16 }
 0x403   : > { %v5445_v26 = vsub.f32 %v2932_v50, %v11504_v24  ;;  %v5919_v29 = vsub.f32 %v2344_v15, %v11048_v28  ;;  %v2457_v46 = vpop.f32.mrf.mxu3  ;;  %v8661_v50 = vld [vmem:[#allocation8 + $0x190] sm:$0xff]  ;;  %v8664_v15 = vld [vmem:[#allocation8 + $0x108] sm:$0xff] }
 0x404   : > { %v2686_v30 = vpop.f32.mrf.mxu1  ;;  %v5920_v62 = vsub.f32 %v2457_v46, %v11052_v55  ;;  %3606 = vmatpush.msrb.mxu2 %v8663_v4  ;;  %v8666_v46 = vld [vmem:[#allocation8 + $0x118] sm:$0xff] }
 0x405   : > { %6501 = vst [vmem:[%s10273_s22 + $0x50] sm:$0xff] %v5445_v26  ;;  %v5938_v40 = vsub.f32 %v2686_v30, %v11033_v38  ;;  %8183 = vmatmul.msk.f32.gmra.mxu0 %vm782_vm0, %v8631_v37  ;;  %v8636_v38 = vld [vmem:[#allocation8 + $0x490] sm:$0xff]  ;;  %v8667_v30 = vld [vmem:[#allocation8 + $0x80] sm:$0xff] }
 0x406   : > { %6975 = vst [vmem:[%s10273_s22 + $0xf20] sm:$0xff] %v5919_v29  ;;  %8214 = vmatmul.msk.f32.gmra.mxu1 %vm782_vm0, %v8617_v17  ;;  %3825 = vmatpush.msrb.mxu0 %v8636_v38  ;;  %v8672_v38 = vld [vmem:[#allocation8] sm:$0xff] }
 0x407   : > { %6976 = vst [vmem:[%s10273_s22 + $0xf28] sm:$0xff] %v5920_v62  ;;  %8118 = vmatmul.msk.f32.gmra.mxu2 %vm782_vm0, %v8617_v17  ;;  %8150 = vmatmul.msk.f32.gmra.mxu3 %vm782_vm0, %v8617_v17  ;;  %v8655_v17 = vld [vmem:[#allocation8 + $0x208] sm:$0xff] }
 0x408   : > { %6994 = vst [vmem:[%s10273_s22 + $0xfb8] sm:$0xff] %v5938_v40  ;;  %3826 = vmatpush.msrb.mxu0 %v8639_v35  ;;  %3717 = vmatpush.msrb.mxu3 %v8655_v17  ;;  %v8668_v40 = vld [vmem:[#allocation8 + $0x88] sm:$0xff] }
 0x409   : > { %3607 = vmatpush.msrb.mxu2 %v8667_v30 }
 0x40a   : > { %v2935_v48 = vpop.f32.mrf.mxu0  ;;  %v2347_v52 = vpop.f32.mrf.mxu2  ;;  %3827 = vmatpush.msrb.mxu0 %v8643_v1  ;;  %3718 = vmatpush.msrb.mxu3 %v8660_v53 }
 0x40b   : > { %v5461_v44 = vsub.f32 %v2935_v48, %v11504_v24  ;;  %v5935_v5 = vsub.f32 %v2347_v52, %v11048_v28  ;;  %v2460_v39 = vpop.f32.mrf.mxu3  ;;  %v8645_v28 = vld [vmem:[#allocation8 + $0x398] sm:$0xff]  ;;  %3608 = vmatpush.msrb.mxu2 %v8672_v38  ;;  %v8674_v48 = vld [vmem:[#allocation8 + $0x10] sm:$0xff] }
 0x40c   : > { %v3045_v22 = vpop.f32.mrf.mxu1  ;;  %v5936_v2 = vsub.f32 %v2460_v39, %v11052_v55  ;;  %3940 = vmatpush.msrb.mxu1 %v8645_v28  ;;  %v8648_v55 = vld [vmem:[#allocation8 + $0x310] sm:$0xff]  ;;  %3719 = vmatpush.msrb.mxu3 %v8664_v15 }
 0x40d   : > { %6517 = vst [vmem:[%s10273_s22 + $0xd0] sm:$0xff] %v5461_v44  ;;  %8184 = vmatmul.msk.f32.gmra.mxu0 %vm782_vm0, %v8644_v6  ;;  %v5446_v7 = vsub.f32 %v3045_v22, %v11526_v45  ;;  %v8676_v22 = vld [vmem:[%s14390_s1 + $0xa0] sm:$0xff] }
 0x40e   : > { %6991 = vst [vmem:[%s10273_s22 + $0xfa0] sm:$0xff] %v5935_v5  ;;  %8215 = vmatmul.msk.f32.gmra.mxu1 %vm782_vm0, %v8631_v37  ;;  %3828 = vmatpush.msrb.mxu0 %v8648_v55  ;;  %v8677_v55 = vld [vmem:[%s14390_s1 + $0xa8] sm:$0xff] }
 0x40f   : > { %6992 = vst [vmem:[%s10273_s22 + $0xfa8] sm:$0xff] %v5936_v2  ;;  %8119 = vmatmul.msk.f32.gmra.mxu2 %vm782_vm0, %v8631_v37  ;;  %3941 = vmatpush.msrb.mxu1 %v8649_v14 }
 0x410   : > { %6502 = vst [vmem:[%s10273_s22 + $0x58] sm:$0xff] %v5446_v7  ;;  %8151 = vmatmul.msk.f32.gmra.mxu3 %vm782_vm0, %v8631_v37  ;;  %3829 = vmatpush.msrb.mxu0 %v8652_v11  ;;  %v8669_v37 = vld [vmem:[#allocation8 + $0x90] sm:$0xff] }
 0x411   : > { %3942 = vmatpush.msrb.mxu1 %v8653_v12  ;;  %3720 = vmatpush.msrb.mxu3 %v8668_v40 }
 0x412   : > { %v2938_v57 = vpop.f32.mrf.mxu0  ;;  %v2706_v58 = vpop.f32.mrf.mxu2  ;;  %3830 = vmatpush.msrb.mxu0 %v8656_v36 }
 0x413   : > { %v5477_v33 = vsub.f32 %v2938_v57, %v11504_v24  ;;  %v5443_v27 = vsub.f32 %v2706_v58, %v11542_v8  ;;  %v2819_v63 = vpop.f32.mrf.mxu3  ;;  %3943 = vmatpush.msrb.mxu1 %v8658_v25  ;;  %3721 = vmatpush.msrb.mxu3 %v8673_v13  ;;  %v8679_v25 = vld [vmem:[%s14390_s1 + $0xb8] sm:$0xff] }
 0x414   : > { %v3048_v23 = vpop.f32.mrf.mxu1  ;;  %v5444_v20 = vsub.f32 %v2819_v63, %v11547_v3  ;;  %3831 = vmatpush.msrb.mxu0 %v8661_v50 }
 0x415   : > { %6533 = vst [vmem:[%s10273_s22 + $0x150] sm:$0xff] %v5477_v33  ;;  %8185 = vmatmul.msk.f32.gmra.mxu0 %vm782_vm0, %v8657_v49  ;;  %v5462_v61 = vsub.f32 %v3048_v23, %v11526_v45  ;;  %3944 = vmatpush.msrb.mxu1 %v8662_v47 }
 0x416   : > { %6499 = vst [vmem:[%s10273_s22 + $0x40] sm:$0xff] %v5443_v27  ;;  %8216 = vmatmul.msk.f32.gmra.mxu1 %vm782_vm0, %v8644_v6  ;;  %3832 = vmatpush.msrb.mxu0 %v8665_v21 }
 0x417   : > { %6500 = vst [vmem:[%s10273_s22 + $0x48] sm:$0xff] %v5444_v20  ;;  %8120 = vmatmul.msk.f32.gmra.mxu2 %vm782_vm0, %v8644_v6  ;;  %3945 = vmatpush.msrb.mxu1 %v8666_v46 }
 0x418   : > { %6518 = vst [vmem:[%s10273_s22 + $0xd8] sm:$0xff] %v5462_v61  ;;  %8152 = vmatmul.msk.f32.gmra.mxu3 %vm782_vm0, %v8644_v6  ;;  %3833 = vmatpush.msrb.mxu0 %v8669_v37 }
 0x419   : > { %3946 = vmatpush.msrb.mxu1 %v8671_v31 }
 0x41a   : > { %v2941_v26 = vpop.f32.mrf.mxu0  ;;  %v2709_v29 = vpop.f32.mrf.mxu2  ;;  %3834 = vmatpush.msrb.mxu0 %v8674_v48 }
 0x41b   : > { %v5493_v18 = vsub.f32 %v2941_v26, %v11504_v24  ;;  %v5459_v34 = vsub.f32 %v2709_v29, %v11542_v8  ;;  %v2822_v43 = vpop.f32.mrf.mxu3  ;;  %3947 = vmatpush.msrb.mxu1 %v8675_v59 }
 0x41c   : > { %v3051_v62 = vpop.f32.mrf.mxu1  ;;  %v5460_v32 = vsub.f32 %v2822_v43, %v11547_v3 }
 0x41d   : > { %6549 = vst [vmem:[%s10273_s22 + $0x1d0] sm:$0xff] %v5493_v18  ;;  %8186 = vmatmul.msk.f32.gmra.mxu0 %vm782_vm0, %v8670_v41  ;;  %v5478_v51 = vsub.f32 %v3051_v62, %v11526_v45  ;;  %v8680_v18 = vld [vmem:[%s14390_s1 + $0xc0] sm:$0xff] }
 0x41e   : > { %6515 = vst [vmem:[%s10273_s22 + $0xc0] sm:$0xff] %v5459_v34  ;;  %8217 = vmatmul.msk.f32.gmra.mxu1 %vm782_vm0, %v8657_v49 }
 0x41f   : > { %6516 = vst [vmem:[%s10273_s22 + $0xc8] sm:$0xff] %v5460_v32  ;;  %8121 = vmatmul.msk.f32.gmra.mxu2 %vm782_vm0, %v8657_v49  ;;  %v8681_v32 = vld [vmem:[%s14390_s1 + $0xc8] sm:$0xff] }
 0x420   : > { %6534 = vst [vmem:[%s10273_s22 + $0x158] sm:$0xff] %v5478_v51  ;;  %8153 = vmatmul.msk.f32.gmra.mxu3 %vm782_vm0, %v8657_v49 }
 0x422   : > { %v2944_v35 = vpop.f32.mrf.mxu0  ;;  %v2712_v52 = vpop.f32.mrf.mxu2 }
 0x423   : > { %v5509_v44 = vsub.f32 %v2944_v35, %v11504_v24  ;;  %v5475_v54 = vsub.f32 %v2712_v52, %v11542_v8  ;;  %v2825_v56 = vpop.f32.mrf.mxu3 }
 0x424   : > { %v3054_v5 = vpop.f32.mrf.mxu1  ;;  %v5476_v39 = vsub.f32 %v2825_v56, %v11547_v3 }
 0x425   : > { %6565 = vst [vmem:[%s10273_s22 + $0x250] sm:$0xff] %v5509_v44  ;;  %8187 = vmatmul.msk.f32.gmra.mxu0 %vm782_vm0, %v8676_v22  ;;  %v5494_v42 = vsub.f32 %v3054_v5, %v11526_v45  ;;  %v8682_v44 = vld [vmem:[%s14390_s1 + $0xd0] sm:$0xff] }
 0x426   : > { %6531 = vst [vmem:[%s10273_s22 + $0x140] sm:$0xff] %v5475_v54  ;;  %8218 = vmatmul.msk.f32.gmra.mxu1 %vm782_vm0, %v8670_v41 }
 0x427   : > { %6532 = vst [vmem:[%s10273_s22 + $0x148] sm:$0xff] %v5476_v39  ;;  %8122 = vmatmul.msk.f32.gmra.mxu2 %vm782_vm0, %v8670_v41 }
 0x428   : > { %6550 = vst [vmem:[%s10273_s22 + $0x1d8] sm:$0xff] %v5494_v42  ;;  %8154 = vmatmul.msk.f32.gmra.mxu3 %vm782_vm0, %v8670_v41 }
 0x42a   : > { %v2947_v1 = vpop.f32.mrf.mxu0  ;;  %v2715_v6 = vpop.f32.mrf.mxu2 }
 0x42b   : > { %v5525_v2 = vsub.f32 %v2947_v1, %v11504_v24  ;;  %v5491_v7 = vsub.f32 %v2715_v6, %v11542_v8  ;;  %v2828_v28 = vpop.f32.mrf.mxu3 }
 0x42c   : > { %v3057_v60 = vpop.f32.mrf.mxu1  ;;  %v5492_v19 = vsub.f32 %v2828_v28, %v11547_v3 }
 0x42d   : > { %6581 = vst [vmem:[%s10273_s22 + $0x2d0] sm:$0xff] %v5525_v2  ;;  %8188 = vmatmul.msk.f32.gmra.mxu0 %vm782_vm0, %v8677_v55  ;;  %v5510_v14 = vsub.f32 %v3057_v60, %v11526_v45  ;;  %v8683_v2 = vld [vmem:[%s14390_s1 + $0xd8] sm:$0xff] }
 0x42e   : > { %6547 = vst [vmem:[%s10273_s22 + $0x1c0] sm:$0xff] %v5491_v7  ;;  %8219 = vmatmul.msk.f32.gmra.mxu1 %vm782_vm0, %v8676_v22 }
 0x42f   : > { %6548 = vst [vmem:[%s10273_s22 + $0x1c8] sm:$0xff] %v5492_v19  ;;  %8123 = vmatmul.msk.f32.gmra.mxu2 %vm782_vm0, %v8676_v22 }
 0x430   : > { %6566 = vst [vmem:[%s10273_s22 + $0x258] sm:$0xff] %v5510_v14  ;;  %8155 = vmatmul.msk.f32.gmra.mxu3 %vm782_vm0, %v8676_v22 }
 0x432   : > { %v2950_v0 = vpop.f32.mrf.mxu0  ;;  %v2718_v10 = vpop.f32.mrf.mxu2 }
 0x433   : > { %v5541_v57 = vsub.f32 %v2950_v0, %v11504_v24  ;;  %v5507_v11 = vsub.f32 %v2718_v10, %v11542_v8  ;;  %v2831_v33 = vpop.f32.mrf.mxu3 }
 0x434   : > { %v3060_v58 = vpop.f32.mrf.mxu1  ;;  %v5508_v12 = vsub.f32 %v2831_v33, %v11547_v3 }
 0x435   : > { %6597 = vst [vmem:[%s10273_s22 + $0x350] sm:$0xff] %v5541_v57  ;;  %8189 = vmatmul.msk.f32.gmra.mxu0 %vm782_vm0, %v8678_v9  ;;  %v5526_v27 = vsub.f32 %v3060_v58, %v11526_v45  ;;  %v8684_v57 = vld [vmem:[%s14390_s1 + $0xe0] sm:$0xff] }
 0x436   : > { %6563 = vst [vmem:[%s10273_s22 + $0x240] sm:$0xff] %v5507_v11  ;;  %8220 = vmatmul.msk.f32.gmra.mxu1 %vm782_vm0, %v8677_v55 }
 0x437   : > { %6564 = vst [vmem:[%s10273_s22 + $0x248] sm:$0xff] %v5508_v12  ;;  %8124 = vmatmul.msk.f32.gmra.mxu2 %vm782_vm0, %v8677_v55 }
 0x438   : > { %6582 = vst [vmem:[%s10273_s22 + $0x2d8] sm:$0xff] %v5526_v27  ;;  %8156 = vmatmul.msk.f32.gmra.mxu3 %vm782_vm0, %v8677_v55 }
 0x43a   : > { %v2953_v63 = vpop.f32.mrf.mxu0  ;;  %v2721_v17 = vpop.f32.mrf.mxu2 }
 0x43b   : > { %v5557_v23 = vsub.f32 %v2953_v63, %v11504_v24  ;;  %v5523_v36 = vsub.f32 %v2721_v17, %v11542_v8  ;;  %v2834_v20 = vpop.f32.mrf.mxu3 }
 0x43c   : > { %v3063_v49 = vpop.f32.mrf.mxu1  ;;  %v5524_v61 = vsub.f32 %v2834_v20, %v11547_v3 }
 0x43d   : > { %6613 = vst [vmem:[%s10273_s22 + $0x3d0] sm:$0xff] %v5557_v23  ;;  %8190 = vmatmul.msk.f32.gmra.mxu0 %vm782_vm0, %v8679_v25  ;;  %v5542_v16 = vsub.f32 %v3063_v49, %v11526_v45  ;;  %v8685_v23 = vld [vmem:[%s14390_s1 + $0xe8] sm:$0xff] }
 0x43e   : > { %6579 = vst [vmem:[%s10273_s22 + $0x2c0] sm:$0xff] %v5523_v36  ;;  %8221 = vmatmul.msk.f32.gmra.mxu1 %vm782_vm0, %v8678_v9 }
 0x43f   : > { %6580 = vst [vmem:[%s10273_s22 + $0x2c8] sm:$0xff] %v5524_v61  ;;  %8125 = vmatmul.msk.f32.gmra.mxu2 %vm782_vm0, %v8678_v9 }
 0x440   : > { %6598 = vst [vmem:[%s10273_s22 + $0x358] sm:$0xff] %v5542_v16  ;;  %8157 = vmatmul.msk.f32.gmra.mxu3 %vm782_vm0, %v8678_v9 }
 0x442   : > { %v2956_v53 = vpop.f32.mrf.mxu0  ;;  %v2724_v47 = vpop.f32.mrf.mxu2 }
 0x443   : > { %v5573_v50 = vsub.f32 %v2956_v53, %v11504_v24  ;;  %v5539_v4 = vsub.f32 %v2724_v47, %v11542_v8  ;;  %v2837_v26 = vpop.f32.mrf.mxu3 }
 0x444   : > { %v3066_v15 = vpop.f32.mrf.mxu1  ;;  %v5540_v21 = vsub.f32 %v2837_v26, %v11547_v3 }
 0x445   : > { %6629 = vst [vmem:[%s10273_s22 + $0x450] sm:$0xff] %v5573_v50  ;;  %8191 = vmatmul.msk.f32.gmra.mxu0 %vm782_vm0, %v8680_v18  ;;  %v5558_v29 = vsub.f32 %v3066_v15, %v11526_v45  ;;  %v8686_v50 = vld [vmem:[%s14390_s1 + $0xf0] sm:$0xff] }
 0x446   : > { %6595 = vst [vmem:[%s10273_s22 + $0x340] sm:$0xff] %v5539_v4  ;;  %8222 = vmatmul.msk.f32.gmra.mxu1 %vm782_vm0, %v8679_v25 }
 0x447   : > { %6596 = vst [vmem:[%s10273_s22 + $0x348] sm:$0xff] %v5540_v21  ;;  %8126 = vmatmul.msk.f32.gmra.mxu2 %vm782_vm0, %v8679_v25 }
 0x448   : > { %6614 = vst [vmem:[%s10273_s22 + $0x3d8] sm:$0xff] %v5558_v29  ;;  %8158 = vmatmul.msk.f32.gmra.mxu3 %vm782_vm0, %v8679_v25 }
 0x44a   : > { %v2959_v46 = vpop.f32.mrf.mxu0  ;;  %v2727_v34 = vpop.f32.mrf.mxu2 }
 0x44b   : > { %v5589_v30 = vsub.f32 %v2959_v46, %v11504_v24  ;;  %v5555_v43 = vsub.f32 %v2727_v34, %v11542_v8  ;;  %v2840_v62 = vpop.f32.mrf.mxu3 }
 0x44c   : > { %v3069_v40 = vpop.f32.mrf.mxu1  ;;  %v5556_v37 = vsub.f32 %v2840_v62, %v11547_v3 }
 0x44d   : > { %6645 = vst [vmem:[%s10273_s22 + $0x4d0] sm:$0xff] %v5589_v30  ;;  %8192 = vmatmul.msk.f32.gmra.mxu0 %vm782_vm0, %v8681_v32  ;;  %v5574_v41 = vsub.f32 %v3069_v40, %v11526_v45  ;;  %v8687_v30 = vld [vmem:[%s14390_s1 + $0xf8] sm:$0xff] }
 0x44e   : > { %6611 = vst [vmem:[%s10273_s22 + $0x3c0] sm:$0xff] %v5555_v43  ;;  %8223 = vmatmul.msk.f32.gmra.mxu1 %vm782_vm0, %v8680_v18 }
 0x44f   : > { %6612 = vst [vmem:[%s10273_s22 + $0x3c8] sm:$0xff] %v5556_v37  ;;  %8127 = vmatmul.msk.f32.gmra.mxu2 %vm782_vm0, %v8680_v18 }
 0x450   : > { %6630 = vst [vmem:[%s10273_s22 + $0x458] sm:$0xff] %v5574_v41  ;;  %8159 = vmatmul.msk.f32.gmra.mxu3 %vm782_vm0, %v8680_v18 }
 0x452   : > { %v2962_v51 = vpop.f32.mrf.mxu0  ;;  %v2730_v38 = vpop.f32.mrf.mxu2 }
 0x453   : > { %v5605_v31 = vsub.f32 %v2962_v51, %v11504_v24  ;;  %v5571_v13 = vsub.f32 %v2730_v38, %v11542_v8  ;;  %v2843_v48 = vpop.f32.mrf.mxu3  ;;  %v8688_v38 = vld [vmem:[%s14390_s1] sm:$0xff] }
 0x454   : > { %v3072_v59 = vpop.f32.mrf.mxu1  ;;  %v5572_v35 = vsub.f32 %v2843_v48, %v11547_v3  ;;  %v8690_v48 = vld [vmem:[#allocation8 + $0x730] sm:$0xff] }
 0x455   : > { %6661 = vst [vmem:[%s10273_s22 + $0x550] sm:$0xff] %v5605_v31  ;;  %8193 = vmatmul.msk.f32.gmra.mxu0 %vm782_vm0, %v8682_v44  ;;  %v5590_v52 = vsub.f32 %v3072_v59, %v11526_v45 }
 0x456   : > { %6627 = vst [vmem:[%s10273_s22 + $0x440] sm:$0xff] %v5571_v13  ;;  %8224 = vmatmul.msk.f32.gmra.mxu1 %vm782_vm0, %v8681_v32  ;;  %v8689_v13 = vld [vmem:[#allocation8 + $0x7b0] sm:$0xff] }
 0x457   : > { %6628 = vst [vmem:[%s10273_s22 + $0x448] sm:$0xff] %v5572_v35  ;;  %8128 = vmatmul.msk.f32.gmra.mxu2 %vm782_vm0, %v8681_v32  ;;  %v8691_v35 = vld [vmem:[#allocation8 + $0x6b0] sm:$0xff] }
 0x458   : > { %6646 = vst [vmem:[%s10273_s22 + $0x4d8] sm:$0xff] %v5590_v52  ;;  %8160 = vmatmul.msk.f32.gmra.mxu3 %vm782_vm0, %v8681_v32 }
 0x45a   : > { %v2965_v54 = vpop.f32.mrf.mxu0  ;;  %v2733_v5 = vpop.f32.mrf.mxu2 }
 0x45b   : > { %v5621_v56 = vsub.f32 %v2965_v54, %v11504_v24  ;;  %v5587_v39 = vsub.f32 %v2733_v5, %v11542_v8  ;;  %v2846_v22 = vpop.f32.mrf.mxu3 }
 0x45c   : > { %v3075_v42 = vpop.f32.mrf.mxu1  ;;  %v5588_v1 = vsub.f32 %v2846_v22, %v11547_v3 }
 0x45d   : > { %6677 = vst [vmem:[%s10273_s22 + $0x5d0] sm:$0xff] %v5621_v56  ;;  %8194 = vmatmul.msk.f32.gmra.mxu0 %vm782_vm0, %v8683_v2  ;;  %v5606_v6 = vsub.f32 %v3075_v42, %v11526_v45 }
 0x45e   : > { %6643 = vst [vmem:[%s10273_s22 + $0x4c0] sm:$0xff] %v5587_v39  ;;  %8225 = vmatmul.msk.f32.gmra.mxu1 %vm782_vm0, %v8682_v44  ;;  %v8692_v39 = vld [vmem:[#allocation8 + $0x630] sm:$0xff] }
 0x45f   : > { %6644 = vst [vmem:[%s10273_s22 + $0x4c8] sm:$0xff] %v5588_v1  ;;  %8129 = vmatmul.msk.f32.gmra.mxu2 %vm782_vm0, %v8682_v44  ;;  %v8693_v1 = vld [vmem:[%s14390_s1 + $0x8] sm:$0xff] }
 0x460   : > { %6662 = vst [vmem:[%s10273_s22 + $0x558] sm:$0xff] %v5606_v6  ;;  %8161 = vmatmul.msk.f32.gmra.mxu3 %vm782_vm0, %v8682_v44  ;;  %v8695_v6 = vld [vmem:[#allocation8 + $0x7b8] sm:$0xff] }
 0x462   : > { %v2968_v7 = vpop.f32.mrf.mxu0  ;;  %v2736_v60 = vpop.f32.mrf.mxu2 }
 0x463   : > { %v5637_v28 = vsub.f32 %v2968_v7, %v11504_v24  ;;  %v5603_v19 = vsub.f32 %v2736_v60, %v11542_v8  ;;  %v2849_v55 = vpop.f32.mrf.mxu3  ;;  %v8696_v7 = vld [vmem:[#allocation8 + $0x7a0] sm:$0xff]  ;;  %v8697_v60 = vld [vmem:[#allocation8 + $0x7a8] sm:$0xff] }
 0x464   : > { %v3078_v14 = vpop.f32.mrf.mxu1  ;;  %v5604_v0 = vsub.f32 %v2849_v55, %v11547_v3 }
 0x465   : > { %6693 = vst [vmem:[%s10273_s22 + $0x650] sm:$0xff] %v5637_v28  ;;  %8195 = vmatmul.msk.f32.gmra.mxu0 %vm782_vm0, %v8684_v57  ;;  %v5622_v10 = vsub.f32 %v3078_v14, %v11526_v45 }
 0x466   : > { %6659 = vst [vmem:[%s10273_s22 + $0x540] sm:$0xff] %v5603_v19  ;;  %8226 = vmatmul.msk.f32.gmra.mxu1 %vm782_vm0, %v8683_v2  ;;  %v8698_v19 = vld [vmem:[#allocation8 + $0x738] sm:$0xff] }
 0x467   : > { %6660 = vst [vmem:[%s10273_s22 + $0x548] sm:$0xff] %v5604_v0  ;;  %8130 = vmatmul.msk.f32.gmra.mxu2 %vm782_vm0, %v8683_v2  ;;  %v8699_v0 = vld [vmem:[#allocation8 + $0x720] sm:$0xff] }
 0x468   : > { %6678 = vst [vmem:[%s10273_s22 + $0x5d8] sm:$0xff] %v5622_v10  ;;  %8162 = vmatmul.msk.f32.gmra.mxu3 %vm782_vm0, %v8683_v2  ;;  %v8694_v2 = vld [vmem:[#allocation8 + $0x5b0] sm:$0xff] }
 0x46a   : > { %v2971_v11 = vpop.f32.mrf.mxu0  ;;  %v2739_v58 = vpop.f32.mrf.mxu2 }
 0x46b   : > { %v5653_v33 = vsub.f32 %v2971_v11, %v11504_v24  ;;  %v5619_v12 = vsub.f32 %v2739_v58, %v11542_v8  ;;  %v2852_v9 = vpop.f32.mrf.mxu3  ;;  %v8701_v58 = vld [vmem:[#allocation8 + $0x728] sm:$0xff] }
 0x46c   : > { %v3081_v27 = vpop.f32.mrf.mxu1  ;;  %v5620_v63 = vsub.f32 %v2852_v9, %v11547_v3 }
 0x46d   : > { %6709 = vst [vmem:[%s10273_s22 + $0x6d0] sm:$0xff] %v5653_v33  ;;  %8196 = vmatmul.msk.f32.gmra.mxu0 %vm782_vm0, %v8685_v23  ;;  %v5638_v17 = vsub.f32 %v3081_v27, %v11526_v45 }
 0x46e   : > { %6675 = vst [vmem:[%s10273_s22 + $0x5c0] sm:$0xff] %v5619_v12  ;;  %8227 = vmatmul.msk.f32.gmra.mxu1 %vm782_vm0, %v8684_v57  ;;  %v8702_v12 = vld [vmem:[#allocation8 + $0x6b8] sm:$0xff] }
 0x46f   : > { %6676 = vst [vmem:[%s10273_s22 + $0x5c8] sm:$0xff] %v5620_v63  ;;  %8131 = vmatmul.msk.f32.gmra.mxu2 %vm782_vm0, %v8684_v57  ;;  %v8703_v63 = vld [vmem:[%s14390_s1 + $0x10] sm:$0xff] }
 0x470   : > { %6694 = vst [vmem:[%s10273_s22 + $0x658] sm:$0xff] %v5638_v17  ;;  %8163 = vmatmul.msk.f32.gmra.mxu3 %vm782_vm0, %v8684_v57  ;;  %v8700_v57 = vld [vmem:[#allocation8 + $0x530] sm:$0xff]  ;;  %v8705_v17 = vld [vmem:[#allocation8 + $0x6a8] sm:$0xff] }
 0x472   : > { %v2974_v36 = vpop.f32.mrf.mxu0  ;;  %v2742_v49 = vpop.f32.mrf.mxu2 }
 0x473   : > { %v5669_v20 = vsub.f32 %v2974_v36, %v11504_v24  ;;  %v5635_v61 = vsub.f32 %v2742_v49, %v11542_v8  ;;  %v2855_v25 = vpop.f32.mrf.mxu3  ;;  %v8706_v36 = vld [vmem:[#allocation8 + $0x638] sm:$0xff]  ;;  %v8708_v49 = vld [vmem:[#allocation8 + $0x628] sm:$0xff] }
 0x474   : > { %v3084_v16 = vpop.f32.mrf.mxu1  ;;  %v5636_v53 = vsub.f32 %v2855_v25, %v11547_v3 }
 0x475   : > { %6725 = vst [vmem:[%s10273_s22 + $0x750] sm:$0xff] %v5669_v20  ;;  %8197 = vmatmul.msk.f32.gmra.mxu0 %vm782_vm0, %v8686_v50  ;;  %v5654_v47 = vsub.f32 %v3084_v16, %v11526_v45  ;;  %v8707_v20 = vld [vmem:[#allocation8 + $0x620] sm:$0xff]  ;;  %v8710_v16 = vld [vmem:[#allocation8 + $0x5a8] sm:$0xff] }
 0x476   : > { %6691 = vst [vmem:[%s10273_s22 + $0x640] sm:$0xff] %v5635_v61  ;;  %8228 = vmatmul.msk.f32.gmra.mxu1 %vm782_vm0, %v8685_v23  ;;  %v8709_v61 = vld [vmem:[#allocation8 + $0x5a0] sm:$0xff] }
 0x477   : > { %6692 = vst [vmem:[%s10273_s22 + $0x648] sm:$0xff] %v5636_v53  ;;  %8132 = vmatmul.msk.f32.gmra.mxu2 %vm782_vm0, %v8685_v23  ;;  %v8711_v53 = vld [vmem:[#allocation8 + $0x5b8] sm:$0xff] }
 0x478   : > { %6710 = vst [vmem:[%s10273_s22 + $0x6d8] sm:$0xff] %v5654_v47  ;;  %8164 = vmatmul.msk.f32.gmra.mxu3 %vm782_vm0, %v8685_v23  ;;  %v8704_v23 = vld [vmem:[#allocation8 + $0x6a0] sm:$0xff] }
 0x47a   : > { %v2977_v4 = vpop.f32.mrf.mxu0  ;;  %v2745_v15 = vpop.f32.mrf.mxu2 }
 0x47b   : > { %v5685_v26 = vsub.f32 %v2977_v4, %v11504_v24  ;;  %v5651_v21 = vsub.f32 %v2745_v15, %v11542_v8  ;;  %v2858_v18 = vpop.f32.mrf.mxu3  ;;  %v8712_v4 = vld [vmem:[#allocation8 + $0x520] sm:$0xff] }
 0x47c   : > { %v3087_v29 = vpop.f32.mrf.mxu1  ;;  %v5652_v46 = vsub.f32 %v2858_v18, %v11547_v3 }
 0x47d   : > { %6741 = vst [vmem:[%s10273_s22 + $0x7d0] sm:$0xff] %v5685_v26  ;;  %8198 = vmatmul.msk.f32.gmra.mxu0 %vm782_vm0, %v8687_v30  ;;  %v5670_v34 = vsub.f32 %v3087_v29, %v11526_v45  ;;  %v8713_v26 = vld [vmem:[#allocation8 + $0x4b0] sm:$0xff]  ;;  %v8714_v29 = vld [vmem:[#allocation8 + $0x528] sm:$0xff] }
 0x47e   : > { %6707 = vst [vmem:[%s10273_s22 + $0x6c0] sm:$0xff] %v5651_v21  ;;  %8229 = vmatmul.msk.f32.gmra.mxu1 %vm782_vm0, %v8686_v50 }
 0x47f   : > { %6708 = vst [vmem:[%s10273_s22 + $0x6c8] sm:$0xff] %v5652_v46  ;;  %8133 = vmatmul.msk.f32.gmra.mxu2 %vm782_vm0, %v8686_v50  ;;  %v8715_v46 = vld [vmem:[#allocation8 + $0x538] sm:$0xff] }
 0x480   : > { %6726 = vst [vmem:[%s10273_s22 + $0x758] sm:$0xff] %v5670_v34  ;;  %8165 = vmatmul.msk.f32.gmra.mxu3 %vm782_vm0, %v8686_v50 }
 0x482   : > { %v2980_v43 = vpop.f32.mrf.mxu0  ;;  %v2748_v40 = vpop.f32.mrf.mxu2 }
 0x483   : > { %v5701_v62 = vsub.f32 %v2980_v43, %v11504_v24  ;;  %v5667_v37 = vsub.f32 %v2748_v40, %v11542_v8  ;;  %v2861_v32 = vpop.f32.mrf.mxu3  ;;  %v8716_v43 = vld [vmem:[%s14390_s1 + $0x18] sm:$0xff]  ;;  %v8718_v40 = vld [vmem:[#allocation8 + $0x4a8] sm:$0xff] }
 0x484   : > { %v3090_v41 = vpop.f32.mrf.mxu1  ;;  %v5668_v51 = vsub.f32 %v2861_v32, %v11547_v3  ;;  %v8720_v32 = vld [vmem:[#allocation8 + $0x420] sm:$0xff] }
 0x485   : > { %6757 = vst [vmem:[%s10273_s22 + $0x850] sm:$0xff] %v5701_v62  ;;  %v5686_v31 = vsub.f32 %v3090_v41, %v11526_v45  ;;  %8295 = vmatmul.msk.f32.vlgmr.msra.gmra.mxu0 %vm782_vm0, %v8688_v38  ;;  %v8717_v62 = vld [vmem:[#allocation8 + $0x4a0] sm:$0xff]  ;;  %v8721_v41 = vld [vmem:[#allocation8 + $0x428] sm:$0xff] }
 0x486   : > { %6723 = vst [vmem:[%s10273_s22 + $0x740] sm:$0xff] %v5667_v37  ;;  %4271 = vmatpush.msra.mxu0 %v8689_v13  ;;  %8230 = vmatmul.msk.f32.gmra.mxu1 %vm782_vm0, %v8687_v30  ;;  %v8719_v37 = vld [vmem:[#allocation8 + $0x4b8] sm:$0xff]  ;;  %v8724_v13 = vld [vmem:[#allocation8 + $0x3a0] sm:$0xff] }
 0x487   : > { %6724 = vst [vmem:[%s10273_s22 + $0x748] sm:$0xff] %v5668_v51  ;;  %8134 = vmatmul.msk.f32.gmra.mxu2 %vm782_vm0, %v8687_v30  ;;  %v8722_v51 = vld [vmem:[#allocation8 + $0x430] sm:$0xff] }
 0x488   : > { %6742 = vst [vmem:[%s10273_s22 + $0x7d8] sm:$0xff] %v5686_v31  ;;  %4272 = vmatpush.msra.mxu0 %v8690_v48  ;;  %8166 = vmatmul.msk.f32.gmra.mxu3 %vm782_vm0, %v8687_v30 }
 0x48a   : > { %v2983_v59 = vpop.f32.mrf.mxu0  ;;  %4273 = vmatpush.msra.mxu0 %v8691_v35  ;;  %v2751_v52 = vpop.f32.mrf.mxu2  ;;  %v8725_v35 = vld [vmem:[#allocation8 + $0x3a8] sm:$0xff] }
 0x48b   : > { %v5717_v44 = vsub.f32 %v2983_v59, %v11504_v24  ;;  %v5683_v54 = vsub.f32 %v2751_v52, %v11542_v8  ;;  %v2864_v56 = vpop.f32.mrf.mxu3 }
 0x48c   : > { %v3093_v5 = vpop.f32.mrf.mxu1  ;;  %4274 = vmatpush.msra.mxu0 %v8692_v39  ;;  %v5684_v22 = vsub.f32 %v2864_v56, %v11547_v3  ;;  %v8728_v39 = vld [vmem:[#allocation8 + $0x320] sm:$0xff] }
 0x48d   : > { %6773 = vst [vmem:[%s10273_s22 + $0x8d0] sm:$0xff] %v5717_v44  ;;  %v5702_v42 = vsub.f32 %v3093_v5, %v11526_v45  ;;  %8296 = vmatmul.msk.f32.gmra.mxu0 %vm782_vm0, %v8693_v1  ;;  %v8726_v44 = vld [vmem:[#allocation8 + $0x3b0] sm:$0xff]  ;;  %v8727_v5 = vld [vmem:[#allocation8 + $0x3b8] sm:$0xff] }
 0x48e   : > { %6739 = vst [vmem:[%s10273_s22 + $0x7c0] sm:$0xff] %v5683_v54  ;;  %4275 = vmatpush.msra.mxu0 %v8694_v2  ;;  %8327 = vmatmul.msk.f32.vlgmr.msra.gmra.mxu1 %vm782_vm0, %v8688_v38  ;;  %v8730_v2 = vld [vmem:[#allocation8 + $0x328] sm:$0xff] }
 0x48f   : > { %6740 = vst [vmem:[%s10273_s22 + $0x7c8] sm:$0xff] %v5684_v22  ;;  %8231 = vmatmul.msk.f32.vlgmr.msra.gmra.mxu2 %vm782_vm0, %v8688_v38  ;;  %4384 = vmatpush.msra.mxu1 %v8695_v6  ;;  %v8731_v6 = vld [vmem:[#allocation8 + $0x330] sm:$0xff] }
 0x490   : > { %6758 = vst [vmem:[%s10273_s22 + $0x858] sm:$0xff] %v5702_v42  ;;  %8263 = vmatmul.msk.f32.vlgmr.msra.gmra.mxu3 %vm782_vm0, %v8688_v38  ;;  %4045 = vmatpush.msra.mxu2 %v8696_v7  ;;  %v8723_v38 = vld [vmem:[#allocation8 + $0x438] sm:$0xff] }
 0x491   : > { %4158 = vmatpush.msra.mxu3 %v8697_v60  ;;  %4385 = vmatpush.msra.mxu1 %v8698_v19  ;;  %v8732_v7 = vld [vmem:[#allocation8 + $0x338] sm:$0xff]  ;;  %v8734_v60 = vld [vmem:[#allocation8 + $0x2a8] sm:$0xff]  ;;  %v8735_v19 = vld [vmem:[#allocation8 + $0x2b0] sm:$0xff] }
 0x492   : > { %v2986_v28 = vpop.f32.mrf.mxu0  ;;  %v2754_v14 = vpop.f32.mrf.mxu2  ;;  %4046 = vmatpush.msra.mxu2 %v8699_v0  ;;  %4276 = vmatpush.msra.mxu0 %v8700_v57  ;;  %v8737_v0 = vld [vmem:[#allocation8 + $0x220] sm:$0xff] }
 0x493   : > { %v5733_v55 = vsub.f32 %v2986_v28, %v11504_v24  ;;  %v5699_v10 = vsub.f32 %v2754_v14, %v11542_v8  ;;  %v2867_v11 = vpop.f32.mrf.mxu3  ;;  %4159 = vmatpush.msra.mxu3 %v8701_v58  ;;  %4386 = vmatpush.msra.mxu1 %v8702_v12  ;;  %v8733_v28 = vld [vmem:[#allocation8 + $0x2a0] sm:$0xff]  ;;  %v8736_v14 = vld [vmem:[#allocation8 + $0x2b8] sm:$0xff] }
 0x494   : > { %v3096_v33 = vpop.f32.mrf.mxu1  ;;  %v5700_v9 = vsub.f32 %v2867_v11, %v11547_v3  ;;  %4047 = vmatpush.msra.mxu2 %v8704_v23  ;;  %4277 = vmatpush.msra.mxu0 %v8713_v26  ;;  %v8738_v11 = vld [vmem:[#allocation8 + $0x228] sm:$0xff] }
 0x495   : > { %6789 = vst [vmem:[%s10273_s22 + $0x950] sm:$0xff] %v5733_v55  ;;  %v5718_v27 = vsub.f32 %v3096_v33, %v11526_v45  ;;  %8297 = vmatmul.msk.f32.gmra.mxu0 %vm782_vm0, %v8703_v63  ;;  %4160 = vmatpush.msra.mxu3 %v8705_v17  ;;  %v8739_v33 = vld [vmem:[#allocation8 + $0x230] sm:$0xff] }
 0x496   : > { %6755 = vst [vmem:[%s10273_s22 + $0x840] sm:$0xff] %v5699_v10  ;;  %4387 = vmatpush.msra.mxu1 %v8706_v36  ;;  %4048 = vmatpush.msra.mxu2 %v8707_v20  ;;  %v8742_v36 = vld [vmem:[%s14390_s1 + $0x28] sm:$0xff] }
 0x497   : > { %6756 = vst [vmem:[%s10273_s22 + $0x848] sm:$0xff] %v5700_v9  ;;  %8328 = vmatmul.msk.f32.gmra.mxu1 %vm782_vm0, %v8693_v1  ;;  %8232 = vmatmul.msk.f32.gmra.mxu2 %vm782_vm0, %v8693_v1  ;;  %v8743_v20 = vld [vmem:[#allocation8 + $0x1a8] sm:$0xff] }
 0x498   : > { %6774 = vst [vmem:[%s10273_s22 + $0x8d8] sm:$0xff] %v5718_v27  ;;  %4161 = vmatpush.msra.mxu3 %v8708_v49  ;;  %4049 = vmatpush.msra.mxu2 %v8709_v61  ;;  %v8740_v27 = vld [vmem:[#allocation8 + $0x238] sm:$0xff]  ;;  %v8744_v49 = vld [vmem:[#allocation8 + $0x1b0] sm:$0xff] }
 0x499   : > { %8264 = vmatmul.msk.f32.gmra.mxu3 %vm782_vm0, %v8693_v1  ;;  %4388 = vmatpush.msra.mxu1 %v8711_v53  ;;  %v8729_v1 = vld [vmem:[%s14390_s1 + $0x20] sm:$0xff]  ;;  %v8745_v61 = vld [vmem:[#allocation8 + $0x1b8] sm:$0xff]  ;;  %v8748_v53 = vld [vmem:[#allocation8 + $0x130] sm:$0xff] }
 0x49a   : > { %v2989_v25 = vpop.f32.mrf.mxu0  ;;  %4162 = vmatpush.msra.mxu3 %v8710_v16  ;;  %v2757_v47 = vpop.f32.mrf.mxu2  ;;  %4050 = vmatpush.msra.mxu2 %v8712_v4  ;;  %v8747_v16 = vld [vmem:[#allocation8 + $0x128] sm:$0xff]  ;;  %v8750_v4 = vld [vmem:[#allocation8 + $0xa0] sm:$0xff] }
 0x49b   : > { %v5749_v50 = vsub.f32 %v2989_v25, %v11504_v24  ;;  %v5715_v15 = vsub.f32 %v2757_v47, %v11542_v8  ;;  %v2870_v21 = vpop.f32.mrf.mxu3  ;;  %4389 = vmatpush.msra.mxu1 %v8715_v46  ;;  %4278 = vmatpush.msra.mxu0 %v8722_v51  ;;  %v8746_v25 = vld [vmem:[#allocation8 + $0x120] sm:$0xff]  ;;  %v8749_v47 = vld [vmem:[#allocation8 + $0x138] sm:$0xff] }
 0x49c   : > { %v3099_v18 = vpop.f32.mrf.mxu1  ;;  %4163 = vmatpush.msra.mxu3 %v8714_v29  ;;  %v5716_v30 = vsub.f32 %v2870_v21, %v11547_v3  ;;  %4051 = vmatpush.msra.mxu2 %v8717_v62  ;;  %v8751_v21 = vld [vmem:[#allocation8 + $0xa8] sm:$0xff]  ;;  %v8758_v51 = vld [vmem:[#allocation8 + $0x38] sm:$0xff] }
 0x49d   : > { %6805 = vst [vmem:[%s10273_s22 + $0x9d0] sm:$0xff] %v5749_v50  ;;  %v5734_v34 = vsub.f32 %v3099_v18, %v11526_v45  ;;  %8298 = vmatmul.msk.f32.gmra.mxu0 %vm782_vm0, %v8716_v43  ;;  %4390 = vmatpush.msra.mxu1 %v8719_v37  ;;  %v8752_v18 = vld [vmem:[#allocation8 + $0xb0] sm:$0xff] }
 0x49e   : > { %6771 = vst [vmem:[%s10273_s22 + $0x8c0] sm:$0xff] %v5715_v15  ;;  %4164 = vmatpush.msra.mxu3 %v8718_v40  ;;  %4052 = vmatpush.msra.mxu2 %v8720_v32  ;;  %v8755_v37 = vld [vmem:[%s14390_s1 + $0x30] sm:$0xff]  ;;  %v8756_v32 = vld [vmem:[#allocation8 + $0x28] sm:$0xff] }
 0x49f   : > { %6772 = vst [vmem:[%s10273_s22 + $0x8c8] sm:$0xff] %v5716_v30  ;;  %8329 = vmatmul.msk.f32.gmra.mxu1 %vm782_vm0, %v8703_v63  ;;  %8233 = vmatmul.msk.f32.gmra.mxu2 %vm782_vm0, %v8703_v63 }
 0x4a0   : > { %6790 = vst [vmem:[%s10273_s22 + $0x958] sm:$0xff] %v5734_v34  ;;  %4165 = vmatpush.msra.mxu3 %v8721_v41  ;;  %4391 = vmatpush.msra.mxu1 %v8723_v38  ;;  %v8753_v34 = vld [vmem:[#allocation8 + $0xb8] sm:$0xff]  ;;  %v8757_v41 = vld [vmem:[#allocation8 + $0x30] sm:$0xff] }
 0x4a1   : > { %8265 = vmatmul.msk.f32.gmra.mxu3 %vm782_vm0, %v8703_v63  ;;  %4053 = vmatpush.msra.mxu2 %v8724_v13  ;;  %v8741_v63 = vld [vmem:[#allocation8 + $0x1a0] sm:$0xff] }
 0x4a2   : > { %v2992_v31 = vpop.f32.mrf.mxu0  ;;  %v2760_v59 = vpop.f32.mrf.mxu2  ;;  %4166 = vmatpush.msra.mxu3 %v8725_v35  ;;  %4279 = vmatpush.msra.mxu0 %v8726_v44 }
 0x4a3   : > { %v5765_v48 = vsub.f32 %v2992_v31, %v11504_v24  ;;  %v5731_v52 = vsub.f32 %v2760_v59, %v11542_v8  ;;  %v2873_v54 = vpop.f32.mrf.mxu3  ;;  %4392 = vmatpush.msra.mxu1 %v8727_v5  ;;  %4054 = vmatpush.msra.mxu2 %v8728_v39 }
 0x4a4   : > { %v3102_v56 = vpop.f32.mrf.mxu1  ;;  %v5732_v22 = vsub.f32 %v2873_v54, %v11547_v3  ;;  %4167 = vmatpush.msra.mxu3 %v8730_v2  ;;  %4280 = vmatpush.msra.mxu0 %v8731_v6  ;;  %v8759_v54 = vld [vmem:[%s14390_s1 + $0x38] sm:$0xff] }
 0x4a5   : > { %6821 = vst [vmem:[%s10273_s22 + $0xa50] sm:$0xff] %v5765_v48  ;;  %v5750_v42 = vsub.f32 %v3102_v56, %v11526_v45  ;;  %8299 = vmatmul.msk.f32.gmra.mxu0 %vm782_vm0, %v8729_v1  ;;  %4393 = vmatpush.msra.mxu1 %v8732_v7  ;;  %v8760_v7 = vld [vmem:[%s14390_s1 + $0x40] sm:$0xff] }
 0x4a6   : > { %6787 = vst [vmem:[%s10273_s22 + $0x940] sm:$0xff] %v5731_v52  ;;  %4055 = vmatpush.msra.mxu2 %v8733_v28  ;;  %4168 = vmatpush.msra.mxu3 %v8734_v60 }
 0x4a7   : > { %6788 = vst [vmem:[%s10273_s22 + $0x948] sm:$0xff] %v5732_v22  ;;  %8330 = vmatmul.msk.f32.gmra.mxu1 %vm782_vm0, %v8716_v43  ;;  %8234 = vmatmul.msk.f32.gmra.mxu2 %vm782_vm0, %v8716_v43 }
 0x4a8   : > { %6806 = vst [vmem:[%s10273_s22 + $0x9d8] sm:$0xff] %v5750_v42  ;;  %4281 = vmatpush.msra.mxu0 %v8735_v19  ;;  %4394 = vmatpush.msra.mxu1 %v8736_v14 }
 0x4a9   : > { %8266 = vmatmul.msk.f32.gmra.mxu3 %vm782_vm0, %v8716_v43  ;;  %4056 = vmatpush.msra.mxu2 %v8737_v0  ;;  %v8754_v43 = vld [vmem:[#allocation8 + $0x20] sm:$0xff] }
 0x4aa   : > { %v2995_v55 = vpop.f32.mrf.mxu0  ;;  %v2763_v10 = vpop.f32.mrf.mxu2  ;;  %4169 = vmatpush.msra.mxu3 %v8738_v11  ;;  %4282 = vmatpush.msra.mxu0 %v8739_v33  ;;  %v8761_v11 = vld [vmem:[%s14390_s1 + $0x48] sm:$0xff] }
 0x4ab   : > { %v5781_v57 = vsub.f32 %v2995_v55, %v11504_v24  ;;  %v5747_v58 = vsub.f32 %v2763_v10, %v11542_v8  ;;  %v2876_v12 = vpop.f32.mrf.mxu3  ;;  %4395 = vmatpush.msra.mxu1 %v8740_v27  ;;  %4057 = vmatpush.msra.mxu2 %v8741_v63 }
 0x4ac   : > { %v3105_v9 = vpop.f32.mrf.mxu1  ;;  %v5748_v23 = vsub.f32 %v2876_v12, %v11547_v3  ;;  %4170 = vmatpush.msra.mxu3 %v8743_v20  ;;  %4283 = vmatpush.msra.mxu0 %v8744_v49 }
 0x4ad   : > { %6837 = vst [vmem:[%s10273_s22 + $0xad0] sm:$0xff] %v5781_v57  ;;  %v5766_v17 = vsub.f32 %v3105_v9, %v11526_v45  ;;  %8300 = vmatmul.msk.f32.gmra.mxu0 %vm782_vm0, %v8742_v36  ;;  %4396 = vmatpush.msra.mxu1 %v8745_v61 }
 0x4ae   : > { %6803 = vst [vmem:[%s10273_s22 + $0x9c0] sm:$0xff] %v5747_v58  ;;  %4058 = vmatpush.msra.mxu2 %v8746_v25  ;;  %4171 = vmatpush.msra.mxu3 %v8747_v16 }
 0x4af   : > { %6804 = vst [vmem:[%s10273_s22 + $0x9c8] sm:$0xff] %v5748_v23  ;;  %8331 = vmatmul.msk.f32.gmra.mxu1 %vm782_vm0, %v8729_v1  ;;  %8235 = vmatmul.msk.f32.gmra.mxu2 %vm782_vm0, %v8729_v1 }
 0x4b0   : > { %6822 = vst [vmem:[%s10273_s22 + $0xa58] sm:$0xff] %v5766_v17  ;;  %4284 = vmatpush.msra.mxu0 %v8748_v53  ;;  %4397 = vmatpush.msra.mxu1 %v8749_v47 }
 0x4b1   : > { %8267 = vmatmul.msk.f32.gmra.mxu3 %vm782_vm0, %v8729_v1  ;;  %4059 = vmatpush.msra.mxu2 %v8750_v4  ;;  %v8763_v4 = vld [vmem:[%s14390_s1 + $0x58] sm:$0xff] }
 0x4b2   : > { %v2998_v50 = vpop.f32.mrf.mxu0  ;;  %v2766_v15 = vpop.f32.mrf.mxu2  ;;  %4172 = vmatpush.msra.mxu3 %v8751_v21  ;;  %4285 = vmatpush.msra.mxu0 %v8752_v18 }
 0x4b3   : > { %v5797_v26 = vsub.f32 %v2998_v50, %v11504_v24  ;;  %v5763_v29 = vsub.f32 %v2766_v15, %v11542_v8  ;;  %v2879_v46 = vpop.f32.mrf.mxu3  ;;  %4398 = vmatpush.msra.mxu1 %v8753_v34  ;;  %4060 = vmatpush.msra.mxu2 %v8754_v43  ;;  %v8764_v43 = vld [vmem:[%s14390_s1 + $0x60] sm:$0xff] }
 0x4b4   : > { %v3108_v30 = vpop.f32.mrf.mxu1  ;;  %v5764_v62 = vsub.f32 %v2879_v46, %v11547_v3  ;;  %4173 = vmatpush.msra.mxu3 %v8756_v32  ;;  %4286 = vmatpush.msra.mxu0 %v8757_v41 }
 0x4b5   : > { %6853 = vst [vmem:[%s10273_s22 + $0xb50] sm:$0xff] %v5797_v26  ;;  %v5782_v40 = vsub.f32 %v3108_v30, %v11526_v45  ;;  %8301 = vmatmul.msk.f32.gmra.mxu0 %vm782_vm0, %v8755_v37  ;;  %4399 = vmatpush.msra.mxu1 %v8758_v51 }
 0x4b6   : > { %6819 = vst [vmem:[%s10273_s22 + $0xa40] sm:$0xff] %v5763_v29 }
 0x4b7   : > { %6820 = vst [vmem:[%s10273_s22 + $0xa48] sm:$0xff] %v5764_v62  ;;  %8332 = vmatmul.msk.f32.gmra.mxu1 %vm782_vm0, %v8742_v36  ;;  %8236 = vmatmul.msk.f32.gmra.mxu2 %vm782_vm0, %v8742_v36 }
 0x4b8   : > { %6838 = vst [vmem:[%s10273_s22 + $0xad8] sm:$0xff] %v5782_v40 }
 0x4b9   : > { %8268 = vmatmul.msk.f32.gmra.mxu3 %vm782_vm0, %v8742_v36  ;;  %v8762_v36 = vld [vmem:[%s14390_s1 + $0x50] sm:$0xff] }
 0x4ba   : > { %v3001_v31 = vpop.f32.mrf.mxu0  ;;  %v2769_v13 = vpop.f32.mrf.mxu2 }
 0x4bb   : > { %v5813_v38 = vsub.f32 %v3001_v31, %v11504_v24  ;;  %v5779_v48 = vsub.f32 %v2769_v13, %v11542_v8  ;;  %v2882_v59 = vpop.f32.mrf.mxu3  ;;  %v8765_v13 = vld [vmem:[%s14390_s1 + $0x68] sm:$0xff] }
 0x4bc   : > { %v3111_v35 = vpop.f32.mrf.mxu1  ;;  %v5780_v44 = vsub.f32 %v2882_v59, %v11547_v3 }
 0x4bd   : > { %6869 = vst [vmem:[%s10273_s22 + $0xbd0] sm:$0xff] %v5813_v38  ;;  %v5798_v52 = vsub.f32 %v3111_v35, %v11526_v45  ;;  %8302 = vmatmul.msk.f32.gmra.mxu0 %vm782_vm0, %v8759_v54 }
 0x4be   : > { %6835 = vst [vmem:[%s10273_s22 + $0xac0] sm:$0xff] %v5779_v48 }
 0x4bf   : > { %6836 = vst [vmem:[%s10273_s22 + $0xac8] sm:$0xff] %v5780_v44  ;;  %8333 = vmatmul.msk.f32.gmra.mxu1 %vm782_vm0, %v8755_v37  ;;  %8237 = vmatmul.msk.f32.gmra.mxu2 %vm782_vm0, %v8755_v37 }
 0x4c0   : > { %6854 = vst [vmem:[%s10273_s22 + $0xb58] sm:$0xff] %v5798_v52 }
 0x4c1   : > { %8269 = vmatmul.msk.f32.gmra.mxu3 %vm782_vm0, %v8755_v37 }
 0x4c2   : > { %v3004_v56 = vpop.f32.mrf.mxu0  ;;  %v2772_v39 = vpop.f32.mrf.mxu2 }
 0x4c3   : > { %v5829_v5 = vsub.f32 %v3004_v56, %v11504_v24  ;;  %v5795_v22 = vsub.f32 %v2772_v39, %v11542_v8  ;;  %v2885_v42 = vpop.f32.mrf.mxu3  ;;  %v8766_v39 = vld [vmem:[%s14390_s1 + $0x70] sm:$0xff] }
 0x4c4   : > { %v3114_v1 = vpop.f32.mrf.mxu1  ;;  %v5796_v2 = vsub.f32 %v2885_v42, %v11547_v3 }
 0x4c5   : > { %6885 = vst [vmem:[%s10273_s22 + $0xc50] sm:$0xff] %v5829_v5  ;;  %v5814_v6 = vsub.f32 %v3114_v1, %v11526_v45  ;;  %8303 = vmatmul.msk.f32.gmra.mxu0 %vm782_vm0, %v8760_v7 }
 0x4c6   : > { %6851 = vst [vmem:[%s10273_s22 + $0xb40] sm:$0xff] %v5795_v22 }
 0x4c7   : > { %6852 = vst [vmem:[%s10273_s22 + $0xb48] sm:$0xff] %v5796_v2  ;;  %8334 = vmatmul.msk.f32.gmra.mxu1 %vm782_vm0, %v8759_v54  ;;  %8238 = vmatmul.msk.f32.gmra.mxu2 %vm782_vm0, %v8759_v54 }
 0x4c8   : > { %6870 = vst [vmem:[%s10273_s22 + $0xbd8] sm:$0xff] %v5814_v6 }
 0x4c9   : > { %8270 = vmatmul.msk.f32.gmra.mxu3 %vm782_vm0, %v8759_v54 }
 0x4ca   : > { %v3007_v28 = vpop.f32.mrf.mxu0  ;;  %v2775_v19 = vpop.f32.mrf.mxu2 }
 0x4cb   : > { %v5845_v60 = vsub.f32 %v3007_v28, %v11504_v24  ;;  %v5811_v55 = vsub.f32 %v2775_v19, %v11542_v8  ;;  %v2888_v14 = vpop.f32.mrf.mxu3  ;;  %v8767_v19 = vld [vmem:[%s14390_s1 + $0x78] sm:$0xff] }
 0x4cc   : > { %v3117_v0 = vpop.f32.mrf.mxu1  ;;  %v5812_v57 = vsub.f32 %v2888_v14, %v11547_v3 }
 0x4cd   : > { %6901 = vst [vmem:[%s10273_s22 + $0xcd0] sm:$0xff] %v5845_v60  ;;  %v5830_v10 = vsub.f32 %v3117_v0, %v11526_v45  ;;  %8304 = vmatmul.msk.f32.gmra.mxu0 %vm782_vm0, %v8761_v11 }
 0x4ce   : > { %6867 = vst [vmem:[%s10273_s22 + $0xbc0] sm:$0xff] %v5811_v55  ;;  %v8768_v55 = vld [vmem:[%s9791_s20 + $0x8] sm:$0xff]  ;;  %s7559_s20 = scalar_lea.hbm %s14335_s7, %s14377_s13 }
 0x4cf   : > { %6868 = vst [vmem:[%s10273_s22 + $0xbc8] sm:$0xff] %v5812_v57  ;;  %8335 = vmatmul.msk.f32.gmra.mxu1 %vm782_vm0, %v8760_v7  ;;  %8239 = vmatmul.msk.f32.gmra.mxu2 %vm782_vm0, %v8760_v7  ;;  %s7562_s21 = sshll.u32 %s7559_s20, 4  ;;  %s14137_s20 = scalar_lea.sflag [#allocation11], %s7520_s28  ;;  %s14122_s21 = int_to_ptr.hbm [resolvable:$true] %s7562_s21 }
 0x4d0   : > { %6886 = vst [vmem:[%s10273_s22 + $0xc58] sm:$0xff] %v5830_v10  ;;  %s9504_s13 = sshra.s32 %s14122_s21, 4  ;;  %s9505_s13 = int_to_ptr.hbm [resolvable:$true] %s9504_s13 }
 0x4d1   : > { %8271 = vmatmul.msk.f32.gmra.mxu3 %vm782_vm0, %v8760_v7  ;;  %p9511_p10 = scmp.lt.s32.totalorder %s9505_s13, %s14335_s7 }
 0x4d2   : > { %v3010_v33 = vpop.f32.mrf.mxu0  ;;  %v2778_v12 = vpop.f32.mrf.mxu2 }
 0x4d3   : > { %v5861_v58 = vsub.f32 %v3010_v33, %v11504_v24  ;;  %v5827_v9 = vsub.f32 %v2778_v12, %v11542_v8  ;;  %v2891_v27 = vpop.f32.mrf.mxu3 }
 0x4d4   : > { %v3120_v63 = vpop.f32.mrf.mxu1  ;;  %v5828_v23 = vsub.f32 %v2891_v27, %v11547_v3  ;;  %v12017_v27 = vperm.slane %v8768_v55, 7 }
 0x4d5   : > { %6917 = vst [vmem:[%s10273_s22 + $0xd50] sm:$0xff] %v5861_v58  ;;  %v5846_v17 = vsub.f32 %v3120_v63, %v11526_v45  ;;  %8305 = vmatmul.msk.f32.gmra.mxu0 %vm782_vm0, %v8762_v36 }
 0x4d6   : > { %6883 = vst [vmem:[%s10273_s22 + $0xc40] sm:$0xff] %v5827_v9  ;;  %v8769_v9 = vld [vmem:[%s14390_s1 + $0x80] sm:$0xff] }
 0x4d7   : > { %6884 = vst [vmem:[%s10273_s22 + $0xc48] sm:$0xff] %v5828_v23  ;;  %8336 = vmatmul.msk.f32.gmra.mxu1 %vm782_vm0, %v8761_v11  ;;  %8240 = vmatmul.msk.f32.gmra.mxu2 %vm782_vm0, %v8761_v11 }
 0x4d8   : > { %6902 = vst [vmem:[%s10273_s22 + $0xcd8] sm:$0xff] %v5846_v17 }
 0x4d9   : > { %8272 = vmatmul.msk.f32.gmra.mxu3 %vm782_vm0, %v8761_v11 }
 0x4da   : > { %v3013_v20 = vpop.f32.mrf.mxu0  ;;  %v2781_v61 = vpop.f32.mrf.mxu2 }
 0x4db   : > { %v5877_v49 = vsub.f32 %v3013_v20, %v11504_v24  ;;  %v5843_v25 = vsub.f32 %v2781_v61, %v11542_v8  ;;  %v2894_v16 = vpop.f32.mrf.mxu3  ;;  %v8770_v61 = vld [vmem:[%s14390_s1 + $0x88] sm:$0xff] }
 0x4dc   : > { %v3123_v53 = vpop.f32.mrf.mxu1  ;;  %v5844_v50 = vsub.f32 %v2894_v16, %v11547_v3  ;;  %v12032_v16 = vperm.slane %v8768_v55, 4 }
 0x4dd   : > { %6933 = vst [vmem:[%s10273_s22 + $0xdd0] sm:$0xff] %v5877_v49  ;;  %v5862_v47 = vsub.f32 %v3123_v53, %v11526_v45  ;;  %8306 = vmatmul.msk.f32.gmra.mxu0 %vm782_vm0, %v8763_v4 }
 0x4de   : > { %6899 = vst [vmem:[%s10273_s22 + $0xcc0] sm:$0xff] %v5843_v25 }
 0x4df   : > { %6900 = vst [vmem:[%s10273_s22 + $0xcc8] sm:$0xff] %v5844_v50  ;;  %8337 = vmatmul.msk.f32.gmra.mxu1 %vm782_vm0, %v8762_v36  ;;  %8241 = vmatmul.msk.f32.gmra.mxu2 %vm782_vm0, %v8762_v36 }
 0x4e0   : > { %6918 = vst [vmem:[%s10273_s22 + $0xd58] sm:$0xff] %v5862_v47 }
 0x4e1   : > { %8273 = vmatmul.msk.f32.gmra.mxu3 %vm782_vm0, %v8762_v36 }
 0x4e2   : > { %v3016_v26 = vpop.f32.mrf.mxu0  ;;  %v2784_v21 = vpop.f32.mrf.mxu2 }
 0x4e3   : > { %v5893_v15 = vsub.f32 %v3016_v26, %v11504_v24  ;;  %v5859_v18 = vsub.f32 %v2784_v21, %v11542_v8  ;;  %v2897_v29 = vpop.f32.mrf.mxu3  ;;  %v8771_v21 = vld [vmem:[%s14390_s1 + $0x90] sm:$0xff] }
 0x4e4   : > { %v3126_v46 = vpop.f32.mrf.mxu1  ;;  %v5860_v30 = vsub.f32 %v2897_v29, %v11547_v3 }
 0x4e5   : > { %6949 = vst [vmem:[%s10273_s22 + $0xe50] sm:$0xff] %v5893_v15  ;;  %v5878_v34 = vsub.f32 %v3126_v46, %v11526_v45  ;;  %8307 = vmatmul.msk.f32.gmra.mxu0 %vm782_vm0, %v8764_v43 }
 0x4e6   : > { %6915 = vst [vmem:[%s10273_s22 + $0xd40] sm:$0xff] %v5859_v18 }
 0x4e7   : > { %6916 = vst [vmem:[%s10273_s22 + $0xd48] sm:$0xff] %v5860_v30  ;;  %8338 = vmatmul.msk.f32.gmra.mxu1 %vm782_vm0, %v8763_v4  ;;  %8242 = vmatmul.msk.f32.gmra.mxu2 %vm782_vm0, %v8763_v4 }
 0x4e8   : > { %6934 = vst [vmem:[%s10273_s22 + $0xdd8] sm:$0xff] %v5878_v34 }
 0x4e9   : > { %8274 = vmatmul.msk.f32.gmra.mxu3 %vm782_vm0, %v8763_v4 }
 0x4ea   : > { %v3019_v62 = vpop.f32.mrf.mxu0  ;;  %v2787_v37 = vpop.f32.mrf.mxu2 }
 0x4eb   : > { %v5909_v40 = vsub.f32 %v3019_v62, %v11504_v24  ;;  %v5875_v32 = vsub.f32 %v2787_v37, %v11542_v8  ;;  %v2900_v41 = vpop.f32.mrf.mxu3  ;;  %v8772_v37 = vld [vmem:[%s14390_s1 + $0x98] sm:$0xff] }
 0x4ec   : > { %v3129_v51 = vpop.f32.mrf.mxu1  ;;  %v5876_v31 = vsub.f32 %v2900_v41, %v11547_v3 }
 0x4ed   : > { %6965 = vst [vmem:[%s10273_s22 + $0xed0] sm:$0xff] %v5909_v40  ;;  %v5894_v38 = vsub.f32 %v3129_v51, %v11526_v45  ;;  %8308 = vmatmul.msk.f32.gmra.mxu0 %vm782_vm0, %v8765_v13 }
 0x4ee   : > { %6931 = vst [vmem:[%s10273_s22 + $0xdc0] sm:$0xff] %v5875_v32 }
 0x4ef   : > { %6932 = vst [vmem:[%s10273_s22 + $0xdc8] sm:$0xff] %v5876_v31  ;;  %8339 = vmatmul.msk.f32.gmra.mxu1 %vm782_vm0, %v8764_v43  ;;  %8243 = vmatmul.msk.f32.gmra.mxu2 %vm782_vm0, %v8764_v43 }
 0x4f0   : > { %6950 = vst [vmem:[%s10273_s22 + $0xe58] sm:$0xff] %v5894_v38 }
 0x4f1   : > { %8275 = vmatmul.msk.f32.gmra.mxu3 %vm782_vm0, %v8764_v43 }
 0x4f2   : > { %v3022_v48 = vpop.f32.mrf.mxu0  ;;  %v2790_v35 = vpop.f32.mrf.mxu2 }
 0x4f3   : > { %v5925_v59 = vsub.f32 %v3022_v48, %v11504_v24  ;;  %v5891_v44 = vsub.f32 %v2790_v35, %v11542_v8  ;;  %v2903_v52 = vpop.f32.mrf.mxu3  ;;  %v8773_v35 = vld [vmem:[%s14390_s1 + $0xa0] sm:$0xff] }
 0x4f4   : > { %v3132_v54 = vpop.f32.mrf.mxu1  ;;  %v5892_v56 = vsub.f32 %v2903_v52, %v11547_v3 }
 0x4f5   : > { %6981 = vst [vmem:[%s10273_s22 + $0xf50] sm:$0xff] %v5925_v59  ;;  %v5910_v5 = vsub.f32 %v3132_v54, %v11526_v45  ;;  %8309 = vmatmul.msk.f32.gmra.mxu0 %vm782_vm0, %v8766_v39 }
 0x4f6   : > { %6947 = vst [vmem:[%s10273_s22 + $0xe40] sm:$0xff] %v5891_v44 }
 0x4f7   : > { %6948 = vst [vmem:[%s10273_s22 + $0xe48] sm:$0xff] %v5892_v56  ;;  %8340 = vmatmul.msk.f32.gmra.mxu1 %vm782_vm0, %v8765_v13  ;;  %8244 = vmatmul.msk.f32.gmra.mxu2 %vm782_vm0, %v8765_v13 }
 0x4f8   : > { %6966 = vst [vmem:[%s10273_s22 + $0xed8] sm:$0xff] %v5910_v5 }
 0x4f9   : > { %8276 = vmatmul.msk.f32.gmra.mxu3 %vm782_vm0, %v8765_v13 }
 0x4fa   : > { %v3025_v22 = vpop.f32.mrf.mxu0  ;;  %v2793_v1 = vpop.f32.mrf.mxu2 }
 0x4fb   : > { %v5941_v42 = vsub.f32 %v3025_v22, %v11504_v24  ;;  %v5907_v2 = vsub.f32 %v2793_v1, %v11542_v8  ;;  %v2906_v6 = vpop.f32.mrf.mxu3  ;;  %v11996_v24 = vperm.slane %v8768_v55, 6  ;;  %v8774_v1 = vld [vmem:[%s14390_s1 + $0xa8] sm:$0xff] }
 0x4fc   : > { %v3135_v7 = vpop.f32.mrf.mxu1  ;;  %v5908_v28 = vsub.f32 %v2906_v6, %v11547_v3 }
 0x4fd   : > { %6997 = vst [vmem:[%s10273_s22 + $0xfd0] sm:$0xff] %v5941_v42  ;;  %v5926_v60 = vsub.f32 %v3135_v7, %v11526_v45  ;;  %8310 = vmatmul.msk.f32.gmra.mxu0 %vm782_vm0, %v8767_v19 }
 0x4fe   : > { %6963 = vst [vmem:[%s10273_s22 + $0xec0] sm:$0xff] %v5907_v2 }
 0x4ff   : > { %6964 = vst [vmem:[%s10273_s22 + $0xec8] sm:$0xff] %v5908_v28  ;;  %8341 = vmatmul.msk.f32.gmra.mxu1 %vm782_vm0, %v8766_v39  ;;  %8245 = vmatmul.msk.f32.gmra.mxu2 %vm782_vm0, %v8766_v39 }
 0x500   : > { %6982 = vst [vmem:[%s10273_s22 + $0xf58] sm:$0xff] %v5926_v60 }
 0x501   : > { %8277 = vmatmul.msk.f32.gmra.mxu3 %vm782_vm0, %v8766_v39 }
 0x502   : > { %v3384_v14 = vpop.f32.mrf.mxu0  ;;  %v2796_v57 = vpop.f32.mrf.mxu2 }
 0x503   : > { %v5449_v0 = vsub.f32 %v3384_v14, %v11996_v24  ;;  %v5923_v10 = vsub.f32 %v2796_v57, %v11542_v8  ;;  %v2909_v11 = vpop.f32.mrf.mxu3 }
 0x504   : > { %v3138_v33 = vpop.f32.mrf.mxu1  ;;  %v5924_v58 = vsub.f32 %v2909_v11, %v11547_v3 }
 0x505   : > { %6505 = vst [vmem:[%s10273_s22 + $0x70] sm:$0xff] %v5449_v0  ;;  %v5942_v12 = vsub.f32 %v3138_v33, %v11526_v45  ;;  %8311 = vmatmul.msk.f32.gmra.mxu0 %vm782_vm0, %v8769_v9  ;;  %v8775_v0 = vld [vmem:[%s14390_s1 + $0xb0] sm:$0xff] }
 0x506   : > { %6979 = vst [vmem:[%s10273_s22 + $0xf40] sm:$0xff] %v5923_v10 }
 0x507   : > { %6980 = vst [vmem:[%s10273_s22 + $0xf48] sm:$0xff] %v5924_v58  ;;  %8342 = vmatmul.msk.f32.gmra.mxu1 %vm782_vm0, %v8767_v19  ;;  %8246 = vmatmul.msk.f32.gmra.mxu2 %vm782_vm0, %v8767_v19 }
 0x508   : > { %6998 = vst [vmem:[%s10273_s22 + $0xfd8] sm:$0xff] %v5942_v12 }
 0x509   : > { %8278 = vmatmul.msk.f32.gmra.mxu3 %vm782_vm0, %v8767_v19 }
 0x50a   : > { %v3387_v45 = vpop.f32.mrf.mxu0  ;;  %v2799_v23 = vpop.f32.mrf.mxu2 }
 0x50b   : > { %v5465_v63 = vsub.f32 %v3387_v45, %v11996_v24  ;;  %v5939_v17 = vsub.f32 %v2799_v23, %v11542_v8  ;;  %v2912_v36 = vpop.f32.mrf.mxu3  ;;  %v12036_v8 = vperm.slane %v8768_v55, 5 }
 0x50c   : > { %v3497_v20 = vpop.f32.mrf.mxu1  ;;  %v5940_v49 = vsub.f32 %v2912_v36, %v11547_v3 }
 0x50d   : > { %6521 = vst [vmem:[%s10273_s22 + $0xf0] sm:$0xff] %v5465_v63  ;;  %8312 = vmatmul.msk.f32.gmra.mxu0 %vm782_vm0, %v8770_v61  ;;  %v5450_v25 = vsub.f32 %v3497_v20, %v12017_v27  ;;  %v8776_v63 = vld [vmem:[%s14390_s1 + $0xb8] sm:$0xff] }
 0x50e   : > { %6995 = vst [vmem:[%s10273_s22 + $0xfc0] sm:$0xff] %v5939_v17 }
 0x50f   : > { %6996 = vst [vmem:[%s10273_s22 + $0xfc8] sm:$0xff] %v5940_v49  ;;  %8343 = vmatmul.msk.f32.gmra.mxu1 %vm782_vm0, %v8769_v9  ;;  %8247 = vmatmul.msk.f32.gmra.mxu2 %vm782_vm0, %v8769_v9 }
 0x510   : > { %6506 = vst [vmem:[%s10273_s22 + $0x78] sm:$0xff] %v5450_v25 }
 0x511   : > { %8279 = vmatmul.msk.f32.gmra.mxu3 %vm782_vm0, %v8769_v9 }
 0x512   : > { %v3390_v3 = vpop.f32.mrf.mxu0  ;;  %v3158_v50 = vpop.f32.mrf.mxu2 }
 0x513   : > { %v5481_v53 = vsub.f32 %v3390_v3, %v11996_v24  ;;  %v5447_v47 = vsub.f32 %v3158_v50, %v12032_v16  ;;  %v3271_v4 = vpop.f32.mrf.mxu3 }
 0x514   : > { %v3500_v26 = vpop.f32.mrf.mxu1  ;;  %v5448_v15 = vsub.f32 %v3271_v4, %v12036_v8 }
 0x515   : > { %6537 = vst [vmem:[%s10273_s22 + $0x170] sm:$0xff] %v5481_v53  ;;  %8313 = vmatmul.msk.f32.gmra.mxu0 %vm782_vm0, %v8771_v21  ;;  %v5466_v18 = vsub.f32 %v3500_v26, %v12017_v27  ;;  %v8777_v53 = vld [vmem:[%s14390_s1 + $0xc0] sm:$0xff] }
 0x516   : > { %6503 = vst [vmem:[%s10273_s22 + $0x60] sm:$0xff] %v5447_v47 }
 0x517   : > { %6504 = vst [vmem:[%s10273_s22 + $0x68] sm:$0xff] %v5448_v15  ;;  %8344 = vmatmul.msk.f32.gmra.mxu1 %vm782_vm0, %v8770_v61  ;;  %8248 = vmatmul.msk.f32.gmra.mxu2 %vm782_vm0, %v8770_v61 }
 0x518   : > { %6522 = vst [vmem:[%s10273_s22 + $0xf8] sm:$0xff] %v5466_v18 }
 0x519   : > { %8280 = vmatmul.msk.f32.gmra.mxu3 %vm782_vm0, %v8770_v61 }
 0x51a   : > { %v3393_v29 = vpop.f32.mrf.mxu0  ;;  %v3161_v30 = vpop.f32.mrf.mxu2 }
 0x51b   : > { %v5497_v46 = vsub.f32 %v3393_v29, %v11996_v24  ;;  %v5463_v34 = vsub.f32 %v3161_v30, %v12032_v16 }
 0x51c   : > { %v3274_v43 = vpop.f32.mrf.mxu3  ;;  %v3503_v62 = vpop.f32.mrf.mxu1 }
 0x51d   : > { %6553 = vst [vmem:[%s10273_s22 + $0x1f0] sm:$0xff] %v5497_v46  ;;  %v5464_v40 = vsub.f32 %v3274_v43, %v12036_v8  ;;  %8314 = vmatmul.msk.f32.gmra.mxu0 %vm782_vm0, %v8772_v37  ;;  %v5482_v32 = vsub.f32 %v3503_v62, %v12017_v27  ;;  %v8778_v46 = vld [vmem:[%s14390_s1 + $0xc8] sm:$0xff] }
 0x51e   : > { %6519 = vst [vmem:[%s10273_s22 + $0xe0] sm:$0xff] %v5463_v34 }
 0x51f   : > { %6520 = vst [vmem:[%s10273_s22 + $0xe8] sm:$0xff] %v5464_v40  ;;  %8345 = vmatmul.msk.f32.gmra.mxu1 %vm782_vm0, %v8771_v21  ;;  %8249 = vmatmul.msk.f32.gmra.mxu2 %vm782_vm0, %v8771_v21 }
 0x520   : > { %6538 = vst [vmem:[%s10273_s22 + $0x178] sm:$0xff] %v5482_v32 }
 0x521   : > { %8281 = vmatmul.msk.f32.gmra.mxu3 %vm782_vm0, %v8771_v21 }
 0x522   : > { %v3396_v41 = vpop.f32.mrf.mxu0  ;;  %v3164_v31 = vpop.f32.mrf.mxu2 }
 0x523   : > { %v5513_v51 = vsub.f32 %v3396_v41, %v11996_v24  ;;  %v5479_v38 = vsub.f32 %v3164_v31, %v12032_v16 }
 0x524   : > { %v3277_v13 = vpop.f32.mrf.mxu3  ;;  %v3506_v48 = vpop.f32.mrf.mxu1 }
 0x525   : > { %6569 = vst [vmem:[%s10273_s22 + $0x270] sm:$0xff] %v5513_v51  ;;  %v5480_v59 = vsub.f32 %v3277_v13, %v12036_v8  ;;  %8315 = vmatmul.msk.f32.gmra.mxu0 %vm782_vm0, %v8773_v35  ;;  %v5498_v44 = vsub.f32 %v3506_v48, %v12017_v27  ;;  %v8779_v51 = vld [vmem:[%s14390_s1 + $0xd0] sm:$0xff] }
 0x526   : > { %6535 = vst [vmem:[%s10273_s22 + $0x160] sm:$0xff] %v5479_v38 }
 0x527   : > { %6536 = vst [vmem:[%s10273_s22 + $0x168] sm:$0xff] %v5480_v59  ;;  %8346 = vmatmul.msk.f32.gmra.mxu1 %vm782_vm0, %v8772_v37  ;;  %8250 = vmatmul.msk.f32.gmra.mxu2 %vm782_vm0, %v8772_v37 }
 0x528   : > { %6554 = vst [vmem:[%s10273_s22 + $0x1f8] sm:$0xff] %v5498_v44 }
 0x529   : > { %8282 = vmatmul.msk.f32.gmra.mxu3 %vm782_vm0, %v8772_v37 }
 0x52a   : > { %v3399_v52 = vpop.f32.mrf.mxu0  ;;  %v3167_v56 = vpop.f32.mrf.mxu2 }
 0x52b   : > { %v5529_v54 = vsub.f32 %v3399_v52, %v11996_v24  ;;  %v5495_v5 = vsub.f32 %v3167_v56, %v12032_v16 }
 0x52c   : > { %v3280_v39 = vpop.f32.mrf.mxu3  ;;  %v3509_v22 = vpop.f32.mrf.mxu1 }
 0x52d   : > { %6585 = vst [vmem:[%s10273_s22 + $0x2f0] sm:$0xff] %v5529_v54  ;;  %v5496_v42 = vsub.f32 %v3280_v39, %v12036_v8  ;;  %8316 = vmatmul.msk.f32.gmra.mxu0 %vm782_vm0, %v8774_v1  ;;  %v5514_v2 = vsub.f32 %v3509_v22, %v12017_v27  ;;  %v8780_v54 = vld [vmem:[%s14390_s1 + $0xd8] sm:$0xff] }
 0x52e   : > { %6551 = vst [vmem:[%s10273_s22 + $0x1e0] sm:$0xff] %v5495_v5 }
 0x52f   : > { %6552 = vst [vmem:[%s10273_s22 + $0x1e8] sm:$0xff] %v5496_v42  ;;  %8347 = vmatmul.msk.f32.gmra.mxu1 %vm782_vm0, %v8773_v35  ;;  %8251 = vmatmul.msk.f32.gmra.mxu2 %vm782_vm0, %v8773_v35 }
 0x530   : > { %6570 = vst [vmem:[%s10273_s22 + $0x278] sm:$0xff] %v5514_v2 }
 0x531   : > { %8283 = vmatmul.msk.f32.gmra.mxu3 %vm782_vm0, %v8773_v35 }
 0x532   : > { %v3402_v6 = vpop.f32.mrf.mxu0  ;;  %v3170_v28 = vpop.f32.mrf.mxu2 }
 0x533   : > { %v5545_v7 = vsub.f32 %v3402_v6, %v11996_v24  ;;  %v5511_v60 = vsub.f32 %v3170_v28, %v12032_v16 }
 0x534   : > { %v3283_v19 = vpop.f32.mrf.mxu3  ;;  %v3512_v55 = vpop.f32.mrf.mxu1 }
 0x535   : > { %6601 = vst [vmem:[%s10273_s22 + $0x370] sm:$0xff] %v5545_v7  ;;  %v5512_v14 = vsub.f32 %v3283_v19, %v12036_v8  ;;  %8317 = vmatmul.msk.f32.gmra.mxu0 %vm782_vm0, %v8775_v0  ;;  %v5530_v57 = vsub.f32 %v3512_v55, %v12017_v27  ;;  %v8781_v7 = vld [vmem:[%s14390_s1 + $0xe0] sm:$0xff] }
 0x536   : > { %6567 = vst [vmem:[%s10273_s22 + $0x260] sm:$0xff] %v5511_v60 }
 0x537   : > { %6568 = vst [vmem:[%s10273_s22 + $0x268] sm:$0xff] %v5512_v14  ;;  %8348 = vmatmul.msk.f32.gmra.mxu1 %vm782_vm0, %v8774_v1  ;;  %8252 = vmatmul.msk.f32.gmra.mxu2 %vm782_vm0, %v8774_v1 }
 0x538   : > { %6586 = vst [vmem:[%s10273_s22 + $0x2f8] sm:$0xff] %v5530_v57 }
 0x539   : > { %8284 = vmatmul.msk.f32.gmra.mxu3 %vm782_vm0, %v8774_v1 }
 0x53a   : > { %v3405_v10 = vpop.f32.mrf.mxu0  ;;  %v3173_v33 = vpop.f32.mrf.mxu2 }
 0x53b   : > { %v5561_v11 = vsub.f32 %v3405_v10, %v11996_v24  ;;  %v5527_v58 = vsub.f32 %v3173_v33, %v12032_v16 }
 0x53c   : > { %v3286_v12 = vpop.f32.mrf.mxu3  ;;  %v3515_v9 = vpop.f32.mrf.mxu1 }
 0x53d   : > { %6617 = vst [vmem:[%s10273_s22 + $0x3f0] sm:$0xff] %v5561_v11  ;;  %v5528_v45 = vsub.f32 %v3286_v12, %v12036_v8  ;;  %8318 = vmatmul.msk.f32.gmra.mxu0 %vm782_vm0, %v8776_v63  ;;  %v5546_v23 = vsub.f32 %v3515_v9, %v12017_v27  ;;  %v8782_v11 = vld [vmem:[%s14390_s1 + $0xe8] sm:$0xff] }
 0x53e   : > { %6583 = vst [vmem:[%s10273_s22 + $0x2e0] sm:$0xff] %v5527_v58 }
 0x53f   : > { %6584 = vst [vmem:[%s10273_s22 + $0x2e8] sm:$0xff] %v5528_v45  ;;  %8349 = vmatmul.msk.f32.gmra.mxu1 %vm782_vm0, %v8775_v0  ;;  %8253 = vmatmul.msk.f32.gmra.mxu2 %vm782_vm0, %v8775_v0 }
 0x540   : > { %6602 = vst [vmem:[%s10273_s22 + $0x378] sm:$0xff] %v5546_v23 }
 0x541   : > { %8285 = vmatmul.msk.f32.gmra.mxu3 %vm782_vm0, %v8775_v0 }
 0x542   : > { %v3408_v17 = vpop.f32.mrf.mxu0  ;;  %v3176_v20 = vpop.f32.mrf.mxu2 }
 0x543   : > { %v5577_v36 = vsub.f32 %v3408_v17, %v11996_v24  ;;  %v5543_v49 = vsub.f32 %v3176_v20, %v12032_v16 }
 0x544   : > { %v3289_v61 = vpop.f32.mrf.mxu3  ;;  %v3518_v25 = vpop.f32.mrf.mxu1 }
 0x545   : > { %6633 = vst [vmem:[%s10273_s22 + $0x470] sm:$0xff] %v5577_v36  ;;  %v5544_v3 = vsub.f32 %v3289_v61, %v12036_v8  ;;  %8319 = vmatmul.msk.f32.gmra.mxu0 %vm782_vm0, %v8777_v53  ;;  %v5562_v50 = vsub.f32 %v3518_v25, %v12017_v27  ;;  %v8783_v36 = vld [vmem:[%s14390_s1 + $0xf0] sm:$0xff] }
 0x546   : > { %6599 = vst [vmem:[%s10273_s22 + $0x360] sm:$0xff] %v5543_v49 }
 0x547   : > { %6600 = vst [vmem:[%s10273_s22 + $0x368] sm:$0xff] %v5544_v3  ;;  %8350 = vmatmul.msk.f32.gmra.mxu1 %vm782_vm0, %v8776_v63  ;;  %8254 = vmatmul.msk.f32.gmra.mxu2 %vm782_vm0, %v8776_v63 }
 0x548   : > { %6618 = vst [vmem:[%s10273_s22 + $0x3f8] sm:$0xff] %v5562_v50 }
 0x549   : > { %8286 = vmatmul.msk.f32.gmra.mxu3 %vm782_vm0, %v8776_v63 }
 0x54a   : > { %v3411_v47 = vpop.f32.mrf.mxu0  ;;  %v3179_v26 = vpop.f32.mrf.mxu2 }
 0x54b   : > { %v5593_v4 = vsub.f32 %v3411_v47, %v11996_v24  ;;  %v5559_v15 = vsub.f32 %v3179_v26, %v12032_v16 }
 0x54c   : > { %v3292_v21 = vpop.f32.mrf.mxu3  ;;  %v3521_v18 = vpop.f32.mrf.mxu1 }
 0x54d   : > { %6649 = vst [vmem:[%s10273_s22 + $0x4f0] sm:$0xff] %v5593_v4  ;;  %v5560_v29 = vsub.f32 %v3292_v21, %v12036_v8  ;;  %8320 = vmatmul.msk.f32.gmra.mxu0 %vm782_vm0, %v8778_v46  ;;  %v5578_v30 = vsub.f32 %v3521_v18, %v12017_v27  ;;  %v8784_v4 = vld [vmem:[%s14390_s1 + $0xf8] sm:$0xff]  ;;  %v8785_v18 = vld [vmem:[%s10413_s14] sm:$0xff]  ;;  %s9506_s1 = scalar_lea.hbm %s9505_s13, 4096 }
 0x54e   : > { %6615 = vst [vmem:[%s10273_s22 + $0x3e0] sm:$0xff] %v5559_v15  ;;  %v12247_v15 = vstv %s1719_s23  ;;  %p9507_p3 = scmp.ne.s32.totalorder %s9505_s13, %s9506_s1  ;;  %p9512_p12 = scmp.lt.s32.totalorder %s9510_s3, %s9506_s1 }
 0x54f   : > { %6616 = vst [vmem:[%s10273_s22 + $0x3e8] sm:$0xff] %v5560_v29  ;;  %8351 = vmatmul.msk.f32.gmra.mxu1 %vm782_vm0, %v8777_v53  ;;  %8255 = vmatmul.msk.f32.gmra.mxu2 %vm782_vm0, %v8777_v53  ;;  %v12254_v29 = vmul.f32 %v8785_v18, %v12247_v15 }
 0x550   : > { %6634 = vst [vmem:[%s10273_s22 + $0x478] sm:$0xff] %v5578_v30  ;;  %p9508_p8 = pnand %p9507_p3, %p9765_p0  ;;  %p9513_p13 = por %p9512_p12, %p9511_p10 }
 0x551   : > { %8287 = vmatmul.msk.f32.gmra.mxu3 %vm782_vm0, %v8777_v53 }
 0x552   : > { %v3414_v34 = vpop.f32.mrf.mxu0  ;;  %v3182_v62 = vpop.f32.mrf.mxu2  ;;  %p9509_p9 = pneg %p9508_p8 }
 0x553   : > { %v5609_v43 = vsub.f32 %v3414_v34, %v11996_v24  ;;  %v5575_v40 = vsub.f32 %v3182_v62, %v12032_v16 }
 0x554   : > { %v3295_v37 = vpop.f32.mrf.mxu3  ;;  %v3524_v32 = vpop.f32.mrf.mxu1  ;;  %p9514_p2 = pnand %p9513_p13, %p9509_p9 }
 0x555   : > { %6665 = vst [vmem:[%s10273_s22 + $0x570] sm:$0xff] %v5609_v43  ;;  %v5576_v41 = vsub.f32 %v3295_v37, %v12036_v8  ;;  %8321 = vmatmul.msk.f32.gmra.mxu0 %vm782_vm0, %v8779_v51  ;;  %v5594_v31 = vsub.f32 %v3524_v32, %v12017_v27  ;;  %v8786_v32 = vld [vmem:[#allocation8 + $0x7d0] sm:$0xff] }
 0x556   : > { %6631 = vst [vmem:[%s10273_s22 + $0x460] sm:$0xff] %v5575_v40 }
 0x557   : > { %6632 = vst [vmem:[%s10273_s22 + $0x468] sm:$0xff] %v5576_v41  ;;  %8352 = vmatmul.msk.f32.gmra.mxu1 %vm782_vm0, %v8778_v46  ;;  %8256 = vmatmul.msk.f32.gmra.mxu2 %vm782_vm0, %v8778_v46  ;;  %v8787_v41 = vld [vmem:[#allocation8 + $0x750] sm:$0xff] }
 0x558   : > { %6650 = vst [vmem:[%s10273_s22 + $0x4f8] sm:$0xff] %v5594_v31  ;;  %v8788_v31 = vld [vmem:[#allocation8 + $0x6d0] sm:$0xff] }
 0x559   : > { %8288 = vmatmul.msk.f32.gmra.mxu3 %vm782_vm0, %v8778_v46 }
 0x55a   : > { %v3417_v38 = vpop.f32.mrf.mxu0  ;;  %v3185_v48 = vpop.f32.mrf.mxu2 }
 0x55b   : > { %v5625_v13 = vsub.f32 %v3417_v38, %v11996_v24  ;;  %v5591_v59 = vsub.f32 %v3185_v48, %v12032_v16  ;;  %v8789_v38 = vld [vmem:[%s10413_s14 + $0x8] sm:$0xff] }
 0x55c   : > { %v3298_v35 = vpop.f32.mrf.mxu3  ;;  %v3527_v44 = vpop.f32.mrf.mxu1 }
 0x55d   : > { %6681 = vst [vmem:[%s10273_s22 + $0x5f0] sm:$0xff] %v5625_v13  ;;  %v5592_v52 = vsub.f32 %v3298_v35, %v12036_v8  ;;  %8322 = vmatmul.msk.f32.gmra.mxu0 %vm782_vm0, %v8780_v54  ;;  %v5610_v56 = vsub.f32 %v3527_v44, %v12017_v27  ;;  %v12270_v13 = vmul.f32 %v8789_v38, %v12247_v15  ;;  %v8820_v38 = vld [vmem:[#allocation8 + $0x458] sm:$0xff] }
 0x55e   : > { %6647 = vst [vmem:[%s10273_s22 + $0x4e0] sm:$0xff] %v5591_v59 }
 0x55f   : > { %6648 = vst [vmem:[%s10273_s22 + $0x4e8] sm:$0xff] %v5592_v52  ;;  %8353 = vmatmul.msk.f32.gmra.mxu1 %vm782_vm0, %v8779_v51  ;;  %8257 = vmatmul.msk.f32.gmra.mxu2 %vm782_vm0, %v8779_v51 }
 0x560   : > { %6666 = vst [vmem:[%s10273_s22 + $0x578] sm:$0xff] %v5610_v56 }
 0x561   : > { %8289 = vmatmul.msk.f32.gmra.mxu3 %vm782_vm0, %v8779_v51 }
 0x562   : > { %v3420_v5 = vpop.f32.mrf.mxu0  ;;  %v3188_v22 = vpop.f32.mrf.mxu2 }
 0x563   : > { %v5641_v39 = vsub.f32 %v3420_v5, %v11996_v24  ;;  %v5607_v42 = vsub.f32 %v3188_v22, %v12032_v16  ;;  %v8792_v22 = vld [vmem:[#allocation8 + $0x7d8] sm:$0xff] }
 0x564   : > { %v3301_v1 = vpop.f32.mrf.mxu3  ;;  %v3530_v2 = vpop.f32.mrf.mxu1 }
 0x565   : > { %6697 = vst [vmem:[%s10273_s22 + $0x670] sm:$0xff] %v5641_v39  ;;  %v5608_v6 = vsub.f32 %v3301_v1, %v12036_v8  ;;  %8323 = vmatmul.msk.f32.gmra.mxu0 %vm782_vm0, %v8781_v7  ;;  %v5626_v28 = vsub.f32 %v3530_v2, %v12017_v27  ;;  %v8791_v39 = vld [vmem:[#allocation8 + $0x5d0] sm:$0xff]  ;;  %v8794_v2 = vld [vmem:[#allocation8 + $0x7c8] sm:$0xff] }
 0x566   : > { %6663 = vst [vmem:[%s10273_s22 + $0x560] sm:$0xff] %v5607_v42  ;;  %v8793_v42 = vld [vmem:[#allocation8 + $0x7c0] sm:$0xff] }
 0x567   : > { %6664 = vst [vmem:[%s10273_s22 + $0x568] sm:$0xff] %v5608_v6  ;;  %8354 = vmatmul.msk.f32.gmra.mxu1 %vm782_vm0, %v8780_v54  ;;  %8258 = vmatmul.msk.f32.gmra.mxu2 %vm782_vm0, %v8780_v54  ;;  %v8795_v6 = vld [vmem:[#allocation8 + $0x758] sm:$0xff] }
 0x568   : > { %6682 = vst [vmem:[%s10273_s22 + $0x5f8] sm:$0xff] %v5626_v28 }
 0x569   : > { %8290 = vmatmul.msk.f32.gmra.mxu3 %vm782_vm0, %v8780_v54  ;;  %v8790_v54 = vld [vmem:[#allocation8 + $0x650] sm:$0xff] }
 0x56a   : > { %v3423_v60 = vpop.f32.mrf.mxu0  ;;  %v3191_v55 = vpop.f32.mrf.mxu2 }
 0x56b   : > { %v5657_v19 = vsub.f32 %v3423_v60, %v11996_v24  ;;  %v5623_v14 = vsub.f32 %v3191_v55, %v12032_v16  ;;  %v8797_v55 = vld [vmem:[#allocation8 + $0x740] sm:$0xff] }
 0x56c   : > { %v3304_v0 = vpop.f32.mrf.mxu3  ;;  %v3533_v57 = vpop.f32.mrf.mxu1 }
 0x56d   : > { %6713 = vst [vmem:[%s10273_s22 + $0x6f0] sm:$0xff] %v5657_v19  ;;  %v5624_v10 = vsub.f32 %v3304_v0, %v12036_v8  ;;  %8324 = vmatmul.msk.f32.gmra.mxu0 %vm782_vm0, %v8782_v11  ;;  %v5642_v33 = vsub.f32 %v3533_v57, %v12017_v27 }
 0x56e   : > { %6679 = vst [vmem:[%s10273_s22 + $0x5e0] sm:$0xff] %v5623_v14  ;;  %v8798_v14 = vld [vmem:[#allocation8 + $0x550] sm:$0xff] }
 0x56f   : > { %6680 = vst [vmem:[%s10273_s22 + $0x5e8] sm:$0xff] %v5624_v10  ;;  %8355 = vmatmul.msk.f32.gmra.mxu1 %vm782_vm0, %v8781_v7  ;;  %8259 = vmatmul.msk.f32.gmra.mxu2 %vm782_vm0, %v8781_v7 }
 0x570   : > { %6698 = vst [vmem:[%s10273_s22 + $0x678] sm:$0xff] %v5642_v33  ;;  %v8800_v33 = vld [vmem:[#allocation8 + $0x6d8] sm:$0xff] }
 0x571   : > { %8291 = vmatmul.msk.f32.gmra.mxu3 %vm782_vm0, %v8781_v7  ;;  %v8796_v7 = vld [vmem:[%s10413_s14 + $0x10] sm:$0xff] }
 0x572   : > { %v3426_v58 = vpop.f32.mrf.mxu0  ;;  %v3194_v9 = vpop.f32.mrf.mxu2  ;;  %v12286_v28 = vmul.f32 %v8796_v7, %v12247_v15  ;;  %v8827_v7 = vld [vmem:[#allocation8 + $0x348] sm:$0xff] }
 0x573   : > { %v5673_v12 = vsub.f32 %v3426_v58, %v11996_v24  ;;  %v5639_v45 = vsub.f32 %v3194_v9, %v12032_v16  ;;  %v8801_v9 = vld [vmem:[#allocation8 + $0x6c0] sm:$0xff] }
 0x574   : > { %v3307_v63 = vpop.f32.mrf.mxu3  ;;  %v3536_v23 = vpop.f32.mrf.mxu1 }
 0x575   : > { %6729 = vst [vmem:[%s10273_s22 + $0x770] sm:$0xff] %v5673_v12  ;;  %v5640_v17 = vsub.f32 %v3307_v63, %v12036_v8  ;;  %8325 = vmatmul.msk.f32.gmra.mxu0 %vm782_vm0, %v8783_v36  ;;  %v5658_v20 = vsub.f32 %v3536_v23, %v12017_v27  ;;  %v8803_v63 = vld [vmem:[#allocation8 + $0x658] sm:$0xff]  ;;  %v8804_v23 = vld [vmem:[#allocation8 + $0x640] sm:$0xff] }
 0x576   : > { %6695 = vst [vmem:[%s10273_s22 + $0x660] sm:$0xff] %v5639_v45  ;;  %v8802_v45 = vld [vmem:[#allocation8 + $0x6c8] sm:$0xff] }
 0x577   : > { %6696 = vst [vmem:[%s10273_s22 + $0x668] sm:$0xff] %v5640_v17  ;;  %8356 = vmatmul.msk.f32.gmra.mxu1 %vm782_vm0, %v8782_v11  ;;  %8260 = vmatmul.msk.f32.gmra.mxu2 %vm782_vm0, %v8782_v11  ;;  %v8805_v17 = vld [vmem:[#allocation8 + $0x648] sm:$0xff] }
 0x578   : > { %6714 = vst [vmem:[%s10273_s22 + $0x6f8] sm:$0xff] %v5658_v20 }
 0x579   : > { %8292 = vmatmul.msk.f32.gmra.mxu3 %vm782_vm0, %v8782_v11  ;;  %v8799_v11 = vld [vmem:[#allocation8 + $0x748] sm:$0xff] }
 0x57a   : > { %v3429_v49 = vpop.f32.mrf.mxu0  ;;  %v3197_v25 = vpop.f32.mrf.mxu2 }
 0x57b   : > { %v5689_v61 = vsub.f32 %v3429_v49, %v11996_v24  ;;  %v5655_v3 = vsub.f32 %v3197_v25, %v12032_v16  ;;  %v8807_v49 = vld [vmem:[#allocation8 + $0x5c8] sm:$0xff]  ;;  %v8809_v25 = vld [vmem:[%s10413_s14 + $0x18] sm:$0xff] }
 0x57c   : > { %v3310_v53 = vpop.f32.mrf.mxu3  ;;  %v3539_v50 = vpop.f32.mrf.mxu1 }
 0x57d   : > { %6745 = vst [vmem:[%s10273_s22 + $0x7f0] sm:$0xff] %v5689_v61  ;;  %v5656_v47 = vsub.f32 %v3310_v53, %v12036_v8  ;;  %8326 = vmatmul.msk.f32.gmra.mxu0 %vm782_vm0, %v8784_v4  ;;  %v5674_v26 = vsub.f32 %v3539_v50, %v12017_v27  ;;  %v8808_v61 = vld [vmem:[#allocation8 + $0x5d8] sm:$0xff] }
 0x57e   : > { %6711 = vst [vmem:[%s10273_s22 + $0x6e0] sm:$0xff] %v5655_v3  ;;  %v12302_v3 = vmul.f32 %v8809_v25, %v12247_v15 }
 0x57f   : > { %6712 = vst [vmem:[%s10273_s22 + $0x6e8] sm:$0xff] %v5656_v47  ;;  %8357 = vmatmul.msk.f32.gmra.mxu1 %vm782_vm0, %v8783_v36  ;;  %8261 = vmatmul.msk.f32.gmra.mxu2 %vm782_vm0, %v8783_v36  ;;  %v8810_v47 = vld [vmem:[#allocation8 + $0x540] sm:$0xff] }
 0x580   : > { %6730 = vst [vmem:[%s10273_s22 + $0x778] sm:$0xff] %v5674_v26 }
 0x581   : > { %8293 = vmatmul.msk.f32.gmra.mxu3 %vm782_vm0, %v8783_v36  ;;  %v8806_v36 = vld [vmem:[#allocation8 + $0x5c0] sm:$0xff] }
 0x582   : > { %v3432_v21 = vpop.f32.mrf.mxu0  ;;  %v3200_v30 = vpop.f32.mrf.mxu2 }
 0x583   : > { %v5705_v46 = vsub.f32 %v3432_v21, %v11996_v24  ;;  %v5671_v34 = vsub.f32 %v3200_v30, %v12032_v16  ;;  %v8813_v30 = vld [vmem:[#allocation8 + $0x558] sm:$0xff] }
 0x584   : > { %v3313_v43 = vpop.f32.mrf.mxu3  ;;  %v3542_v62 = vpop.f32.mrf.mxu1 }
 0x585   : > { %6761 = vst [vmem:[%s10273_s22 + $0x870] sm:$0xff] %v5705_v46  ;;  %v5672_v40 = vsub.f32 %v3313_v43, %v12036_v8  ;;  %v5690_v37 = vsub.f32 %v3542_v62, %v12017_v27  ;;  %3835 = vmatmul.f32.vlgmr.msrb.gmra.mxu0 %v12254_v29  ;;  %v8812_v46 = vld [vmem:[#allocation8 + $0x548] sm:$0xff]  ;;  %v8814_v62 = vld [vmem:[#allocation8 + $0x4c0] sm:$0xff] }
 0x586   : > { %6727 = vst [vmem:[%s10273_s22 + $0x760] sm:$0xff] %v5671_v34  ;;  %4723 = vmatpush.msrb.mxu0 %v8786_v32  ;;  %v8817_v32 = vld [vmem:[#allocation8 + $0x440] sm:$0xff] }
 0x587   : > { %6728 = vst [vmem:[%s10273_s22 + $0x768] sm:$0xff] %v5672_v40  ;;  %8358 = vmatmul.msk.f32.gmra.mxu1 %vm782_vm0, %v8784_v4  ;;  %8262 = vmatmul.msk.f32.gmra.mxu2 %vm782_vm0, %v8784_v4  ;;  %v8815_v40 = vld [vmem:[#allocation8 + $0x4c8] sm:$0xff] }
 0x588   : > { %6746 = vst [vmem:[%s10273_s22 + $0x7f8] sm:$0xff] %v5690_v37  ;;  %4724 = vmatpush.msrb.mxu0 %v8787_v41  ;;  %v8816_v37 = vld [vmem:[#allocation8 + $0x4d8] sm:$0xff]  ;;  %v8818_v41 = vld [vmem:[#allocation8 + $0x448] sm:$0xff] }
 0x589   : > { %8294 = vmatmul.msk.f32.gmra.mxu3 %vm782_vm0, %v8784_v4  ;;  %v8811_v4 = vld [vmem:[#allocation8 + $0x4d0] sm:$0xff] }
 0x58a   : > { %v3435_v51 = vpop.f32.mrf.mxu0  ;;  %4725 = vmatpush.msrb.mxu0 %v8788_v31  ;;  %v3203_v59 = vpop.f32.mrf.mxu2 }
 0x58b   : > { %v5721_v48 = vsub.f32 %v3435_v51, %v11996_v24  ;;  %v5687_v35 = vsub.f32 %v3203_v59, %v12032_v16  ;;  %v8819_v51 = vld [vmem:[#allocation8 + $0x450] sm:$0xff]  ;;  %v8822_v59 = vld [vmem:[%s10413_s14 + $0x20] sm:$0xff] }
 0x58c   : > { %v3316_v44 = vpop.f32.mrf.mxu3  ;;  %v3545_v52 = vpop.f32.mrf.mxu1  ;;  %4726 = vmatpush.msrb.mxu0 %v8790_v54  ;;  %v8823_v54 = vld [vmem:[#allocation8 + $0x3c8] sm:$0xff] }
 0x58d   : > { %6777 = vst [vmem:[%s10273_s22 + $0x8f0] sm:$0xff] %v5721_v48  ;;  %v5688_v56 = vsub.f32 %v3316_v44, %v12036_v8  ;;  %v5706_v5 = vsub.f32 %v3545_v52, %v12017_v27  ;;  %3838 = vmatmul.f32.gmra.mxu0 %v12270_v13  ;;  %v8821_v48 = vld [vmem:[#allocation8 + $0x3c0] sm:$0xff] }
 0x58e   : > { %6743 = vst [vmem:[%s10273_s22 + $0x7e0] sm:$0xff] %v5687_v35  ;;  %4727 = vmatpush.msrb.mxu0 %v8791_v39  ;;  %v12330_v35 = vmul.f32 %v8822_v59, %v12247_v15 }
 0x58f   : > { %6744 = vst [vmem:[%s10273_s22 + $0x7e8] sm:$0xff] %v5688_v56  ;;  %3948 = vmatmul.f32.vlgmr.msrb.gmra.mxu1 %v12254_v29  ;;  %3609 = vmatmul.f32.vlgmr.msrb.gmra.mxu2 %v12254_v29  ;;  %v8824_v56 = vld [vmem:[#allocation8 + $0x3d0] sm:$0xff] }
 0x590   : > { %6762 = vst [vmem:[%s10273_s22 + $0x878] sm:$0xff] %v5706_v5  ;;  %4836 = vmatpush.msrb.mxu1 %v8792_v22  ;;  %4497 = vmatpush.msrb.mxu2 %v8793_v42  ;;  %v8825_v42 = vld [vmem:[#allocation8 + $0x3d8] sm:$0xff] }
 0x591   : > { %3722 = vmatmul.f32.vlgmr.msrb.gmra.mxu3 %v12254_v29  ;;  %4728 = vmatpush.msrb.mxu0 %v8798_v14  ;;  %v8831_v14 = vld [vmem:[#allocation8 + $0x2c8] sm:$0xff] }
 0x592   : > { %v3438_v1 = vpop.f32.mrf.mxu0  ;;  %4610 = vmatpush.msrb.mxu3 %v8794_v2  ;;  %4837 = vmatpush.msrb.mxu1 %v8795_v6  ;;  %v3206_v19 = vpop.f32.mrf.mxu2 }
 0x593   : > { %v5737_v60 = vsub.f32 %v3438_v1, %v11996_v24  ;;  %4498 = vmatpush.msrb.mxu2 %v8797_v55  ;;  %v5703_v0 = vsub.f32 %v3206_v19, %v12032_v16  ;;  %4729 = vmatpush.msrb.mxu0 %v8811_v4  ;;  %v8826_v1 = vld [vmem:[#allocation8 + $0x340] sm:$0xff]  ;;  %v8829_v19 = vld [vmem:[#allocation8 + $0x358] sm:$0xff] }
 0x594   : > { %v3319_v57 = vpop.f32.mrf.mxu3  ;;  %v3548_v10 = vpop.f32.mrf.mxu1  ;;  %4611 = vmatpush.msrb.mxu3 %v8799_v11  ;;  %4838 = vmatpush.msrb.mxu1 %v8800_v33  ;;  %v8830_v55 = vld [vmem:[#allocation8 + $0x2c0] sm:$0xff]  ;;  %v8835_v33 = vld [vmem:[%s10413_s14 + $0x28] sm:$0xff]  ;;  %v8842_v4 = vld [vmem:[#allocation8 + $0x1d8] sm:$0xff] }
 0x595   : > { %6793 = vst [vmem:[%s10273_s22 + $0x970] sm:$0xff] %v5737_v60  ;;  %v5704_v58 = vsub.f32 %v3319_v57, %v12036_v8  ;;  %v5722_v12 = vsub.f32 %v3548_v10, %v12017_v27  ;;  %3841 = vmatmul.f32.gmra.mxu0 %v12286_v28  ;;  %4499 = vmatpush.msrb.mxu2 %v8801_v9  ;;  %v8828_v60 = vld [vmem:[#allocation8 + $0x350] sm:$0xff]  ;;  %v8833_v10 = vld [vmem:[#allocation8 + $0x2d8] sm:$0xff]  ;;  %v8834_v11 = vld [vmem:[#allocation8 + $0x240] sm:$0xff] }
 0x596   : > { %6759 = vst [vmem:[%s10273_s22 + $0x860] sm:$0xff] %v5703_v0  ;;  %4612 = vmatpush.msrb.mxu3 %v8802_v45  ;;  %4839 = vmatpush.msrb.mxu1 %v8803_v63  ;;  %v8832_v0 = vld [vmem:[#allocation8 + $0x2d0] sm:$0xff]  ;;  %v8836_v45 = vld [vmem:[#allocation8 + $0x248] sm:$0xff] }
 0x597   : > { %6760 = vst [vmem:[%s10273_s22 + $0x868] sm:$0xff] %v5704_v58  ;;  %3951 = vmatmul.f32.gmra.mxu1 %v12270_v13  ;;  %4500 = vmatpush.msrb.mxu2 %v8804_v23  ;;  %v12358_v58 = vmul.f32 %v8835_v33, %v12247_v15  ;;  %v8837_v63 = vld [vmem:[#allocation8 + $0x250] sm:$0xff] }
 0x598   : > { %6778 = vst [vmem:[%s10273_s22 + $0x8f8] sm:$0xff] %v5722_v12  ;;  %3612 = vmatmul.f32.gmra.mxu2 %v12270_v13  ;;  %4613 = vmatpush.msrb.mxu3 %v8805_v17 }
 0x599   : > { %3725 = vmatmul.f32.gmra.mxu3 %v12270_v13  ;;  %4501 = vmatpush.msrb.mxu2 %v8806_v36 }
 0x59a   : > { %v3441_v20 = vpop.f32.mrf.mxu0  ;;  %4614 = vmatpush.msrb.mxu3 %v8807_v49  ;;  %4840 = vmatpush.msrb.mxu1 %v8808_v61  ;;  %v3209_v50 = vpop.f32.mrf.mxu2  ;;  %v8839_v49 = vld [vmem:[#allocation8 + $0x1c0] sm:$0xff] }
 0x59b   : > { %v12305_v53 = vsub.f32 %v3441_v20, %v11996_v24  ;;  %4502 = vmatpush.msrb.mxu2 %v8810_v47  ;;  %v12308_v26 = vsub.f32 %v3209_v50, %v12032_v16  ;;  %4730 = vmatpush.msrb.mxu0 %v8819_v51  ;;  %v8838_v20 = vld [vmem:[#allocation8 + $0x258] sm:$0xff]  ;;  %v8840_v50 = vld [vmem:[#allocation8 + $0x1c8] sm:$0xff]  ;;  %v8841_v47 = vld [vmem:[#allocation8 + $0x1d0] sm:$0xff] }
 0x59c   : > { %v3322_v21 = vpop.f32.mrf.mxu3  ;;  %v3551_v18 = vpop.f32.mrf.mxu1  ;;  %4615 = vmatpush.msrb.mxu3 %v8812_v46  ;;  %4841 = vmatpush.msrb.mxu1 %v8813_v30  ;;  %v8845_v46 = vld [vmem:[#allocation8 + $0x150] sm:$0xff] }
 0x59d   : > { %6809 = vst [vmem:[%s10273_s22 + $0x9f0] sm:$0xff] %v12305_v53  ;;  %v12313_v34 = vsub.f32 %v3322_v21, %v12036_v8  ;;  %v12316_v43 = vsub.f32 %v3551_v18, %v12017_v27  ;;  %3844 = vmatmul.f32.gmra.mxu0 %v12302_v3  ;;  %4503 = vmatpush.msrb.mxu2 %v8814_v62  ;;  %v8843_v21 = vld [vmem:[#allocation8 + $0x140] sm:$0xff]  ;;  %v8844_v18 = vld [vmem:[#allocation8 + $0x148] sm:$0xff]  ;;  %v8846_v62 = vld [vmem:[#allocation8 + $0x158] sm:$0xff] }
 0x59e   : > { %6775 = vst [vmem:[%s10273_s22 + $0x8e0] sm:$0xff] %v12308_v26  ;;  %4616 = vmatpush.msrb.mxu3 %v8815_v40  ;;  %4842 = vmatpush.msrb.mxu1 %v8816_v37  ;;  %v8847_v40 = vld [vmem:[#allocation8 + $0xc0] sm:$0xff]  ;;  %v8848_v37 = vld [vmem:[%s10413_s14 + $0x30] sm:$0xff] }
 0x59f   : > { %6776 = vst [vmem:[%s10273_s22 + $0x8e8] sm:$0xff] %v12313_v34  ;;  %3954 = vmatmul.f32.gmra.mxu1 %v12286_v28  ;;  %4504 = vmatpush.msrb.mxu2 %v8817_v32  ;;  %v12386_v32 = vmul.f32 %v8848_v37, %v12247_v15 }
 0x5a0   : > { %6794 = vst [vmem:[%s10273_s22 + $0x978] sm:$0xff] %v12316_v43  ;;  %3615 = vmatmul.f32.gmra.mxu2 %v12286_v28  ;;  %4617 = vmatpush.msrb.mxu3 %v8818_v41 }
 0x5a1   : > { %3728 = vmatmul.f32.gmra.mxu3 %v12286_v28  ;;  %4843 = vmatpush.msrb.mxu1 %v8820_v38  ;;  %v8850_v38 = vld [vmem:[#allocation8 + $0xd0] sm:$0xff] }
 0x5a2   : > { %v3444_v31 = vpop.f32.mrf.mxu0  ;;  %4505 = vmatpush.msrb.mxu2 %v8821_v48  ;;  %v3212_v52 = vpop.f32.mrf.mxu2  ;;  %4618 = vmatpush.msrb.mxu3 %v8823_v54  ;;  %v8851_v54 = vld [vmem:[#allocation8 + $0xd8] sm:$0xff] }
 0x5a3   : > { %v12333_v44 = vsub.f32 %v3444_v31, %v11996_v24  ;;  %4731 = vmatpush.msrb.mxu0 %v8824_v56  ;;  %v12336_v5 = vsub.f32 %v3212_v52, %v12032_v16  ;;  %4844 = vmatpush.msrb.mxu1 %v8825_v42  ;;  %v8849_v31 = vld [vmem:[#allocation8 + $0xc8] sm:$0xff]  ;;  %v8852_v56 = vld [vmem:[#allocation8 + $0x40] sm:$0xff] }
 0x5a4   : > { %v3325_v39 = vpop.f32.mrf.mxu3  ;;  %v3554_v22 = vpop.f32.mrf.mxu1  ;;  %4506 = vmatpush.msrb.mxu2 %v8826_v1  ;;  %4619 = vmatpush.msrb.mxu3 %v8827_v7  ;;  %v8853_v42 = vld [vmem:[#allocation8 + $0x48] sm:$0xff]  ;;  %v8854_v1 = vld [vmem:[#allocation8 + $0x50] sm:$0xff]  ;;  %v8855_v7 = vld [vmem:[#allocation8 + $0x58] sm:$0xff] }
 0x5a5   : > { %6825 = vst [vmem:[%s10273_s22 + $0xa70] sm:$0xff] %v12333_v44  ;;  %v12341_v2 = vsub.f32 %v3325_v39, %v12036_v8  ;;  %v12344_v6 = vsub.f32 %v3554_v22, %v12017_v27  ;;  %3847 = vmatmul.f32.gmra.mxu0 %v12330_v35  ;;  %4845 = vmatpush.msrb.mxu1 %v8829_v19  ;;  %v8856_v19 = vld [vmem:[%s10413_s14 + $0x38] sm:$0xff] }
 0x5a6   : > { %6791 = vst [vmem:[%s10273_s22 + $0x960] sm:$0xff] %v12336_v5  ;;  %4732 = vmatpush.msrb.mxu0 %v8828_v60  ;;  %4507 = vmatpush.msrb.mxu2 %v8830_v55  ;;  %v12414_v55 = vmul.f32 %v8856_v19, %v12247_v15 }
 0x5a7   : > { %6792 = vst [vmem:[%s10273_s22 + $0x968] sm:$0xff] %v12341_v2  ;;  %3957 = vmatmul.f32.gmra.mxu1 %v12302_v3  ;;  %4620 = vmatpush.msrb.mxu3 %v8831_v14 }
 0x5a8   : > { %6810 = vst [vmem:[%s10273_s22 + $0x9f8] sm:$0xff] %v12344_v6  ;;  %3618 = vmatmul.f32.gmra.mxu2 %v12302_v3  ;;  %4733 = vmatpush.msrb.mxu0 %v8832_v0 }
 0x5a9   : > { %3731 = vmatmul.f32.gmra.mxu3 %v12302_v3  ;;  %4846 = vmatpush.msrb.mxu1 %v8833_v10 }
 0x5aa   : > { %v3447_v57 = vpop.f32.mrf.mxu0  ;;  %4508 = vmatpush.msrb.mxu2 %v8834_v11  ;;  %v3215_v9 = vpop.f32.mrf.mxu2  ;;  %4621 = vmatpush.msrb.mxu3 %v8836_v45 }
 0x5ab   : > { %v12361_v12 = vsub.f32 %v3447_v57, %v11996_v24  ;;  %4734 = vmatpush.msrb.mxu0 %v8837_v63  ;;  %v12364_v23 = vsub.f32 %v3215_v9, %v12032_v16  ;;  %4847 = vmatpush.msrb.mxu1 %v8838_v20  ;;  %v8857_v63 = vld [vmem:[%s10413_s14 + $0x40] sm:$0xff] }
 0x5ac   : > { %v3328_v17 = vpop.f32.mrf.mxu3  ;;  %v3557_v36 = vpop.f32.mrf.mxu1  ;;  %4509 = vmatpush.msrb.mxu2 %v8839_v49  ;;  %4622 = vmatpush.msrb.mxu3 %v8840_v50 }
 0x5ad   : > { %6841 = vst [vmem:[%s10273_s22 + $0xaf0] sm:$0xff] %v12361_v12  ;;  %v12369_v61 = vsub.f32 %v3328_v17, %v12036_v8  ;;  %v12372_v25 = vsub.f32 %v3557_v36, %v12017_v27  ;;  %3850 = vmatmul.f32.gmra.mxu0 %v12358_v58  ;;  %4848 = vmatpush.msrb.mxu1 %v8842_v4 }
 0x5ae   : > { %6807 = vst [vmem:[%s10273_s22 + $0x9e0] sm:$0xff] %v12364_v23  ;;  %4735 = vmatpush.msrb.mxu0 %v8841_v47  ;;  %4510 = vmatpush.msrb.mxu2 %v8843_v21  ;;  %v12442_v17 = vmul.f32 %v8857_v63, %v12247_v15 }
 0x5af   : > { %6808 = vst [vmem:[%s10273_s22 + $0x9e8] sm:$0xff] %v12369_v61  ;;  %3960 = vmatmul.f32.gmra.mxu1 %v12330_v35  ;;  %4623 = vmatpush.msrb.mxu3 %v8844_v18 }
 0x5b0   : > { %6826 = vst [vmem:[%s10273_s22 + $0xa78] sm:$0xff] %v12372_v25  ;;  %3621 = vmatmul.f32.gmra.mxu2 %v12330_v35  ;;  %4736 = vmatpush.msrb.mxu0 %v8845_v46  ;;  %v8858_v46 = vld [vmem:[%s10413_s14 + $0x48] sm:$0xff] }
 0x5b1   : > { %3734 = vmatmul.f32.gmra.mxu3 %v12330_v35  ;;  %4849 = vmatpush.msrb.mxu1 %v8846_v62 }
 0x5b2   : > { %v3450_v30 = vpop.f32.mrf.mxu0  ;;  %4511 = vmatpush.msrb.mxu2 %v8847_v40  ;;  %v3218_v51 = vpop.f32.mrf.mxu2  ;;  %4624 = vmatpush.msrb.mxu3 %v8849_v31 }
 0x5b3   : > { %v12389_v41 = vsub.f32 %v3450_v30, %v11996_v24  ;;  %4737 = vmatpush.msrb.mxu0 %v8850_v38  ;;  %v12392_v48 = vsub.f32 %v3218_v51, %v12032_v16  ;;  %4850 = vmatpush.msrb.mxu1 %v8851_v54  ;;  %v12470_v30 = vmul.f32 %v8858_v46, %v12247_v15  ;;  %v8859_v54 = vld [vmem:[%s10413_s14 + $0x50] sm:$0xff] }
 0x5b4   : > { %v3331_v59 = vpop.f32.mrf.mxu3  ;;  %v3560_v52 = vpop.f32.mrf.mxu1  ;;  %4512 = vmatpush.msrb.mxu2 %v8852_v56  ;;  %4625 = vmatpush.msrb.mxu3 %v8853_v42  ;;  %v12498_v56 = vmul.f32 %v8859_v54, %v12247_v15 }
 0x5b5   : > { %6857 = vst [vmem:[%s10273_s22 + $0xb70] sm:$0xff] %v12389_v41  ;;  %v12397_v39 = vsub.f32 %v3331_v59, %v12036_v8  ;;  %v12400_v22 = vsub.f32 %v3560_v52, %v12017_v27  ;;  %3853 = vmatmul.f32.gmra.mxu0 %v12386_v32  ;;  %4851 = vmatpush.msrb.mxu1 %v8855_v7 }
 0x5b6   : > { %6823 = vst [vmem:[%s10273_s22 + $0xa60] sm:$0xff] %v12392_v48  ;;  %4738 = vmatpush.msrb.mxu0 %v8854_v1 }
 0x5b7   : > { %6824 = vst [vmem:[%s10273_s22 + $0xa68] sm:$0xff] %v12397_v39  ;;  %3963 = vmatmul.f32.gmra.mxu1 %v12358_v58 }
 0x5b8   : > { %6842 = vst [vmem:[%s10273_s22 + $0xaf8] sm:$0xff] %v12400_v22  ;;  %3624 = vmatmul.f32.gmra.mxu2 %v12358_v58 }
 0x5b9   : > { %3737 = vmatmul.f32.gmra.mxu3 %v12358_v58 }
 0x5ba   : > { %v3453_v60 = vpop.f32.mrf.mxu0  ;;  %v3221_v0 = vpop.f32.mrf.mxu2 }
 0x5bb   : > { %v12417_v14 = vsub.f32 %v3453_v60, %v11996_v24  ;;  %v12420_v57 = vsub.f32 %v3221_v0, %v12032_v16 }
 0x5bc   : > { %v3334_v10 = vpop.f32.mrf.mxu3  ;;  %v3563_v11 = vpop.f32.mrf.mxu1 }
 0x5bd   : > { %6873 = vst [vmem:[%s10273_s22 + $0xbf0] sm:$0xff] %v12417_v14  ;;  %v12425_v33 = vsub.f32 %v3334_v10, %v12036_v8  ;;  %v12428_v9 = vsub.f32 %v3563_v11, %v12017_v27  ;;  %3856 = vmatmul.f32.gmra.mxu0 %v12414_v55 }
 0x5be   : > { %6839 = vst [vmem:[%s10273_s22 + $0xae0] sm:$0xff] %v12420_v57 }
 0x5bf   : > { %14393 = vst [vmem:[#allocation17_spill] sm:$0xff] %v12425_v33  ;;  %3966 = vmatmul.f32.gmra.mxu1 %v12386_v32 }
 0x5c0   : > { %14394 = vst [vmem:[#allocation18_spill] sm:$0xff] %v12428_v9  ;;  %3627 = vmatmul.f32.gmra.mxu2 %v12386_v32 }
 0x5c1   : > { %6840 = vst [vmem:[%s10273_s22 + $0xae8] sm:$0xff] %v12425_v33  ;;  %3740 = vmatmul.f32.gmra.mxu3 %v12386_v32 }
 0x5c2   : > { %6858 = vst [vmem:[%s10273_s22 + $0xb78] sm:$0xff] %v12428_v9  ;;  %v3456_v45 = vpop.f32.mrf.mxu0  ;;  %v3224_v20 = vpop.f32.mrf.mxu2 }
 0x5c3   : > { %v12445_v36 = vsub.f32 %v3456_v45, %v11996_v24  ;;  %v12448_v49 = vsub.f32 %v3224_v20, %v12032_v16  ;;  %v8860_v45 = vld [vmem:[%s10413_s14 + $0x58] sm:$0xff] }
 0x5c4   : > { %v3337_v50 = vpop.f32.mrf.mxu3  ;;  %v3566_v47 = vpop.f32.mrf.mxu1  ;;  %v12526_v63 = vmul.f32 %v8860_v45, %v12247_v15 }
 0x5c5   : > { %14395 = vst [vmem:[#allocation19_spill] sm:$0xff] %v12445_v36  ;;  %v12453_v4 = vsub.f32 %v3337_v50, %v12036_v8  ;;  %v12456_v21 = vsub.f32 %v3566_v47, %v12017_v27  ;;  %3859 = vmatmul.f32.gmra.mxu0 %v12442_v17 }
 0x5c6   : > { %14396 = vst [vmem:[#allocation20_spill] sm:$0xff] %v12448_v49 }
 0x5c7   : > { %6889 = vst [vmem:[%s10273_s22 + $0xc70] sm:$0xff] %v12445_v36  ;;  %3969 = vmatmul.f32.gmra.mxu1 %v12414_v55 }
 0x5c8   : > { %14397 = vst [vmem:[#allocation21_spill] sm:$0xff] %v12453_v4  ;;  %3630 = vmatmul.f32.gmra.mxu2 %v12414_v55 }
 0x5c9   : > { %14398 = vst [vmem:[#allocation22_spill] sm:$0xff] %v12456_v21  ;;  %3743 = vmatmul.f32.gmra.mxu3 %v12414_v55 }
 0x5ca   : > { %6855 = vst [vmem:[%s10273_s22 + $0xb60] sm:$0xff] %v12448_v49  ;;  %v3459_v18 = vpop.f32.mrf.mxu0  ;;  %v3227_v40 = vpop.f32.mrf.mxu2 }
 0x5cb   : > { %6856 = vst [vmem:[%s10273_s22 + $0xb68] sm:$0xff] %v12453_v4  ;;  %v12473_v62 = vsub.f32 %v3459_v18, %v11996_v24  ;;  %v12476_v37 = vsub.f32 %v3227_v40, %v12032_v16 }
 0x5cc   : > { %6874 = vst [vmem:[%s10273_s22 + $0xbf8] sm:$0xff] %v12456_v21  ;;  %v3340_v51 = vpop.f32.mrf.mxu3  ;;  %v3569_v31 = vpop.f32.mrf.mxu1 }
 0x5cd   : > { %14399 = vst [vmem:[#allocation23_spill] sm:$0xff] %v12473_v62  ;;  %v12481_v38 = vsub.f32 %v3340_v51, %v12036_v8  ;;  %v12484_v59 = vsub.f32 %v3569_v31, %v12017_v27  ;;  %3862 = vmatmul.f32.gmra.mxu0 %v12470_v30 }
 0x5ce   : > { %14400 = vst [vmem:[#allocation24_spill] sm:$0xff] %v12476_v37 }
 0x5cf   : > { %6905 = vst [vmem:[%s10273_s22 + $0xcf0] sm:$0xff] %v12473_v62  ;;  %3972 = vmatmul.f32.gmra.mxu1 %v12442_v17 }
 0x5d0   : > { %14401 = vst [vmem:[#allocation25_spill] sm:$0xff] %v12481_v38  ;;  %3633 = vmatmul.f32.gmra.mxu2 %v12442_v17 }
 0x5d1   : > { %14402 = vst [vmem:[#allocation26_spill] sm:$0xff] %v12484_v59  ;;  %3746 = vmatmul.f32.gmra.mxu3 %v12442_v17 }
 0x5d2   : > { %6871 = vst [vmem:[%s10273_s22 + $0xbe0] sm:$0xff] %v12476_v37  ;;  %v3462_v52 = vpop.f32.mrf.mxu0  ;;  %v3230_v1 = vpop.f32.mrf.mxu2 }
 0x5d3   : > { %6872 = vst [vmem:[%s10273_s22 + $0xbe8] sm:$0xff] %v12481_v38  ;;  %v12501_v42 = vsub.f32 %v3462_v52, %v11996_v24  ;;  %v12504_v7 = vsub.f32 %v3230_v1, %v12032_v16  ;;  %v8861_v52 = vld [vmem:[%s10413_s14 + $0x60] sm:$0xff] }
 0x5d4   : > { %6890 = vst [vmem:[%s10273_s22 + $0xc78] sm:$0xff] %v12484_v59  ;;  %v3343_v60 = vpop.f32.mrf.mxu3  ;;  %v3572_v19 = vpop.f32.mrf.mxu1  ;;  %v12554_v54 = vmul.f32 %v8861_v52, %v12247_v15 }
 0x5d5   : > { %14403 = vst [vmem:[#allocation27_spill] sm:$0xff] %v12501_v42  ;;  %v12509_v0 = vsub.f32 %v3343_v60, %v12036_v8  ;;  %v12512_v10 = vsub.f32 %v3572_v19, %v12017_v27  ;;  %3865 = vmatmul.f32.gmra.mxu0 %v12498_v56 }
 0x5d6   : > { %14404 = vst [vmem:[#allocation28_spill] sm:$0xff] %v12504_v7 }
 0x5d7   : > { %6921 = vst [vmem:[%s10273_s22 + $0xd70] sm:$0xff] %v12501_v42  ;;  %3975 = vmatmul.f32.gmra.mxu1 %v12470_v30 }
 0x5d8   : > { %14405 = vst [vmem:[#allocation29_spill] sm:$0xff] %v12509_v0  ;;  %3636 = vmatmul.f32.gmra.mxu2 %v12470_v30 }
 0x5d9   : > { %14406 = vst [vmem:[#allocation30_spill] sm:$0xff] %v12512_v10  ;;  %3749 = vmatmul.f32.gmra.mxu3 %v12470_v30 }
 0x5da   : > { %6887 = vst [vmem:[%s10273_s22 + $0xc60] sm:$0xff] %v12504_v7  ;;  %v3465_v11 = vpop.f32.mrf.mxu0  ;;  %v3233_v50 = vpop.f32.mrf.mxu2 }
 0x5db   : > { %6888 = vst [vmem:[%s10273_s22 + $0xc68] sm:$0xff] %v12509_v0  ;;  %v12529_v20 = vsub.f32 %v3465_v11, %v11996_v24  ;;  %v12532_v47 = vsub.f32 %v3233_v50, %v12032_v16 }
 0x5dc   : > { %6906 = vst [vmem:[%s10273_s22 + $0xcf8] sm:$0xff] %v12512_v10  ;;  %v3346_v18 = vpop.f32.mrf.mxu3  ;;  %v3575_v46 = vpop.f32.mrf.mxu1 }
 0x5dd   : > { %14407 = vst [vmem:[#allocation31_spill] sm:$0xff] %v12529_v20  ;;  %v12537_v40 = vsub.f32 %v3346_v18, %v12036_v8  ;;  %v12540_v51 = vsub.f32 %v3575_v46, %v12017_v27  ;;  %3868 = vmatmul.f32.gmra.mxu0 %v12526_v63 }
 0x5de   : > { %14408 = vst [vmem:[#allocation32_spill] sm:$0xff] %v12532_v47 }
 0x5df   : > { %6937 = vst [vmem:[%s10273_s22 + $0xdf0] sm:$0xff] %v12529_v20  ;;  %3978 = vmatmul.f32.gmra.mxu1 %v12498_v56  ;;  %v8874_v20 = vld [vmem:[%s10273_s22 + $0x98] sm:$0xff] }
 0x5e0   : > { %14409 = vst [vmem:[#allocation33_spill] sm:$0xff] %v12537_v40  ;;  %3639 = vmatmul.f32.gmra.mxu2 %v12498_v56 }
 0x5e1   : > { %14410 = vst [vmem:[#allocation34_spill] sm:$0xff] %v12540_v51  ;;  %3752 = vmatmul.f32.gmra.mxu3 %v12498_v56 }
 0x5e2   : > { %6903 = vst [vmem:[%s10273_s22 + $0xce0] sm:$0xff] %v12532_v47  ;;  %v3468_v31 = vpop.f32.mrf.mxu0  ;;  %v3236_v60 = vpop.f32.mrf.mxu2  ;;  %v8869_v47 = vld [vmem:[%s10273_s22 + $0x18] sm:$0xff] }
 0x5e3   : > { %6904 = vst [vmem:[%s10273_s22 + $0xce8] sm:$0xff] %v12537_v40  ;;  %v12557_v1 = vsub.f32 %v3468_v31, %v11996_v24  ;;  %v12560_v19 = vsub.f32 %v3236_v60, %v12032_v16  ;;  %v8862_v31 = vld [vmem:[%s10413_s14 + $0x68] sm:$0xff] }
 0x5e4   : > { %6922 = vst [vmem:[%s10273_s22 + $0xd78] sm:$0xff] %v12540_v51  ;;  %v3349_v11 = vpop.f32.mrf.mxu3  ;;  %v3578_v45 = vpop.f32.mrf.mxu1  ;;  %v12582_v52 = vmul.f32 %v8862_v31, %v12247_v15 }
 0x5e5   : > { %14411 = vst [vmem:[#allocation35_spill] sm:$0xff] %v12557_v1  ;;  %v12565_v50 = vsub.f32 %v3349_v11, %v12036_v8  ;;  %v12568_v18 = vsub.f32 %v3578_v45, %v12017_v27  ;;  %3871 = vmatmul.f32.gmra.mxu0 %v12554_v54 }
 0x5e6   : > { %14412 = vst [vmem:[#allocation36_spill] sm:$0xff] %v12560_v19 }
 0x5e7   : > { %6953 = vst [vmem:[%s10273_s22 + $0xe70] sm:$0xff] %v12557_v1  ;;  %3981 = vmatmul.f32.gmra.mxu1 %v12526_v63 }
 0x5e8   : > { %14413 = vst [vmem:[#allocation37_spill] sm:$0xff] %v12565_v50  ;;  %3642 = vmatmul.f32.gmra.mxu2 %v12526_v63 }
 0x5e9   : > { %14414 = vst [vmem:[#allocation38_spill] sm:$0xff] %v12568_v18  ;;  %3755 = vmatmul.f32.gmra.mxu3 %v12526_v63 }
 0x5ea   : > { %6919 = vst [vmem:[%s10273_s22 + $0xd60] sm:$0xff] %v12560_v19  ;;  %v3471_v46 = vpop.f32.mrf.mxu0  ;;  %v3239_v11 = vpop.f32.mrf.mxu2 }
 0x5eb   : > { %6920 = vst [vmem:[%s10273_s22 + $0xd68] sm:$0xff] %v12565_v50  ;;  %v12585_v60 = vsub.f32 %v3471_v46, %v11996_v24  ;;  %v12588_v45 = vsub.f32 %v3239_v11, %v12032_v16 }
 0x5ec   : > { %6938 = vst [vmem:[%s10273_s22 + $0xdf8] sm:$0xff] %v12568_v18  ;;  %v3352_v18 = vpop.f32.mrf.mxu3  ;;  %v3581_v50 = vpop.f32.mrf.mxu1 }
 0x5ed   : > { %14415 = vst [vmem:[#allocation39_spill] sm:$0xff] %v12585_v60  ;;  %v12593_v19 = vsub.f32 %v3352_v18, %v12036_v8  ;;  %v12596_v1 = vsub.f32 %v3581_v50, %v12017_v27  ;;  %3874 = vmatmul.f32.gmra.mxu0 %v12582_v52  ;;  %v8863_v18 = vld [vmem:[%s10413_s14 + $0x70] sm:$0xff] }
 0x5ee   : > { %14416 = vst [vmem:[#allocation40_spill] sm:$0xff] %v12588_v45  ;;  %v12610_v46 = vmul.f32 %v8863_v18, %v12247_v15 }
 0x5ef   : > { %6969 = vst [vmem:[%s10273_s22 + $0xef0] sm:$0xff] %v12585_v60  ;;  %3984 = vmatmul.f32.gmra.mxu1 %v12554_v54 }
 0x5f0   : > { %14417 = vst [vmem:[#allocation41_spill] sm:$0xff] %v12593_v19  ;;  %3645 = vmatmul.f32.gmra.mxu2 %v12554_v54 }
 0x5f1   : > { %14418 = vst [vmem:[#allocation42_spill] sm:$0xff] %v12596_v1  ;;  %3758 = vmatmul.f32.gmra.mxu3 %v12554_v54 }
 0x5f2   : > { %6935 = vst [vmem:[%s10273_s22 + $0xde0] sm:$0xff] %v12588_v45  ;;  %v3474_v50 = vpop.f32.mrf.mxu0  ;;  %v3242_v11 = vpop.f32.mrf.mxu2 }
 0x5f3   : > { %6936 = vst [vmem:[%s10273_s22 + $0xde8] sm:$0xff] %v12593_v19  ;;  %v12613_v31 = vsub.f32 %v3474_v50, %v11996_v24  ;;  %v12616_v19 = vsub.f32 %v3242_v11, %v12032_v16 }
 0x5f4   : > { %6954 = vst [vmem:[%s10273_s22 + $0xe78] sm:$0xff] %v12596_v1  ;;  %v3355_v1 = vpop.f32.mrf.mxu3  ;;  %v3584_v45 = vpop.f32.mrf.mxu1 }
 0x5f5   : > { %14419 = vst [vmem:[#allocation43_spill] sm:$0xff] %v12613_v31  ;;  %v12621_v60 = vsub.f32 %v3355_v1, %v12036_v8  ;;  %v12624_v51 = vsub.f32 %v3584_v45, %v12017_v27  ;;  %3877 = vmatmul.f32.gmra.mxu0 %v12610_v46  ;;  %v8864_v45 = vld [vmem:[%s10413_s14 + $0x78] sm:$0xff] }
 0x5f6   : > { %14420 = vst [vmem:[#allocation44_spill] sm:$0xff] %v12616_v19  ;;  %v12638_v50 = vmul.f32 %v8864_v45, %v12247_v15 }
 0x5f7   : > { %6985 = vst [vmem:[%s10273_s22 + $0xf70] sm:$0xff] %v12613_v31  ;;  %3987 = vmatmul.f32.gmra.mxu1 %v12582_v52 }
 0x5f8   : > { %14421 = vst [vmem:[#allocation45_spill] sm:$0xff] %v12621_v60  ;;  %3648 = vmatmul.f32.gmra.mxu2 %v12582_v52 }
 0x5f9   : > { %14422 = vst [vmem:[#allocation46_spill] sm:$0xff] %v12624_v51  ;;  %3761 = vmatmul.f32.gmra.mxu3 %v12582_v52 }
 0x5fa   : > { %6951 = vst [vmem:[%s10273_s22 + $0xe60] sm:$0xff] %v12616_v19  ;;  %v3477_v1 = vpop.f32.mrf.mxu0  ;;  %v3245_v11 = vpop.f32.mrf.mxu2 }
 0x5fb   : > { %6952 = vst [vmem:[%s10273_s22 + $0xe68] sm:$0xff] %v12621_v60  ;;  %v12641_v18 = vsub.f32 %v3477_v1, %v11996_v24  ;;  %v12644_v60 = vsub.f32 %v3245_v11, %v12032_v16  ;;  %v8866_v1 = vld [vmem:[%s10273_s22 + $0x10] sm:$0xff] }
 0x5fc   : > { %6970 = vst [vmem:[%s10273_s22 + $0xef8] sm:$0xff] %v12624_v51  ;;  %v3358_v51 = vpop.f32.mrf.mxu3  ;;  %v3587_v19 = vpop.f32.mrf.mxu1 }
 0x5fd   : > { %14423 = vst [vmem:[#allocation47_spill] sm:$0xff] %v12641_v18  ;;  %v12649_v31 = vsub.f32 %v3358_v51, %v12036_v8  ;;  %v12652_v40 = vsub.f32 %v3587_v19, %v12017_v27  ;;  %3880 = vmatmul.f32.gmra.mxu0 %v12638_v50  ;;  %v8865_v51 = vld [vmem:[%s10413_s14 + $0x80] sm:$0xff] }
 0x5fe   : > { %14424 = vst [vmem:[#allocation48_spill] sm:$0xff] %v12644_v60  ;;  %v12666_v19 = vmul.f32 %v8865_v51, %v12247_v15 }
 0x5ff   : > { %7001 = vst [vmem:[%s10273_s22 + $0xff0] sm:$0xff] %v12641_v18  ;;  %3990 = vmatmul.f32.gmra.mxu1 %v12610_v46 }
 0x600   : > { %14425 = vst [vmem:[#allocation49_spill] sm:$0xff] %v12649_v31  ;;  %3651 = vmatmul.f32.gmra.mxu2 %v12610_v46 }
 0x601   : > { %14426 = vst [vmem:[#allocation50_spill] sm:$0xff] %v12652_v40  ;;  %3764 = vmatmul.f32.gmra.mxu3 %v12610_v46 }
 0x602   : > { %6967 = vst [vmem:[%s10273_s22 + $0xee0] sm:$0xff] %v12644_v60  ;;  %v3836_v24 = vpop.f32.mrf.mxu0  ;;  %v3248_v11 = vpop.f32.mrf.mxu2 }
 0x603   : > { %6968 = vst [vmem:[%s10273_s22 + $0xee8] sm:$0xff] %v12649_v31  ;;  %v5949_v45 = vmul.f32 %v8866_v1, %v3836_v24  ;;  %v12670_v31 = vsub.f32 %v3248_v11, %v12032_v16  ;;  %v8868_v24 = vld [vmem:[%s10273_s22 + $0x90] sm:$0xff] }
 0x604   : > { %6986 = vst [vmem:[%s10273_s22 + $0xf78] sm:$0xff] %v12652_v40  ;;  %v3361_v40 = vpop.f32.mrf.mxu3  ;;  %v3590_v60 = vpop.f32.mrf.mxu1 }
 0x605   : > { %14427 = vst [vmem:[#allocation51_spill] sm:$0xff] %v12670_v31  ;;  %v12678_v18 = vsub.f32 %v3361_v40, %v12036_v8  ;;  %v12681_v51 = vsub.f32 %v3590_v60, %v12017_v27  ;;  %3883 = vmatmul.f32.gmra.mxu0 %v12666_v19  ;;  %v8867_v40 = vld [vmem:[%s10413_s14 + $0x88] sm:$0xff] }
 0x606   : > { %7005 = vst [vmem:[%s12674_s4 + $0x10] sm:$0xff] %v5949_v45  ;;  %v12695_v60 = vmul.f32 %v8867_v40, %v12247_v15 }
 0x607   : > { %14428 = vst [vmem:[#allocation52_spill] sm:$0xff] %v12678_v18  ;;  %3993 = vmatmul.f32.gmra.mxu1 %v12638_v50 }
 0x608   : > { %14429 = vst [vmem:[#allocation53_spill] sm:$0xff] %v12681_v51  ;;  %3654 = vmatmul.f32.gmra.mxu2 %v12638_v50 }
 0x609   : > { %6983 = vst [vmem:[%s10273_s22 + $0xf60] sm:$0xff] %v12670_v31  ;;  %3767 = vmatmul.f32.gmra.mxu3 %v12638_v50 }
 0x60a   : > { %6984 = vst [vmem:[%s10273_s22 + $0xf68] sm:$0xff] %v12678_v18  ;;  %v3839_v27 = vpop.f32.mrf.mxu0  ;;  %v3251_v45 = vpop.f32.mrf.mxu2 }
 0x60b   : > { %7002 = vst [vmem:[%s10273_s22 + $0xff8] sm:$0xff] %v12681_v51  ;;  %v5965_v1 = vmul.f32 %v8868_v24, %v3839_v27  ;;  %v12699_v11 = vsub.f32 %v3251_v45, %v12032_v16  ;;  %v8872_v24 = vld [vmem:[%s10273_s22] sm:$0xff] }
 0x60c   : > { %v3364_v51 = vpop.f32.mrf.mxu3  ;;  %v3949_v18 = vpop.f32.mrf.mxu1 }
 0x60d   : > { %14430 = vst [vmem:[#allocation54_spill] sm:$0xff] %v12699_v11  ;;  %v12703_v31 = vsub.f32 %v3364_v51, %v12036_v8  ;;  %3886 = vmatmul.f32.gmra.mxu0 %v12695_v60  ;;  %v5950_v40 = vmul.f32 %v8869_v47, %v3949_v18  ;;  %v8870_v8 = vld [vmem:[%s10413_s14 + $0x90] sm:$0xff] }
 0x60e   : > { %7021 = vst [vmem:[%s12674_s4 + $0x90] sm:$0xff] %v5965_v1  ;;  %v12717_v47 = vmul.f32 %v8870_v8, %v12247_v15  ;;  %v8871_v18 = vld [vmem:[%s10273_s22 + $0x110] sm:$0xff] }
 0x60f   : > { %14431 = vst [vmem:[#allocation55_spill] sm:$0xff] %v12703_v31  ;;  %3996 = vmatmul.f32.gmra.mxu1 %v12666_v19 }
 0x610   : > { %6999 = vst [vmem:[%s10273_s22 + $0xfe0] sm:$0xff] %v12699_v11  ;;  %3657 = vmatmul.f32.gmra.mxu2 %v12666_v19 }
 0x611   : > { %7000 = vst [vmem:[%s10273_s22 + $0xfe8] sm:$0xff] %v12703_v31  ;;  %3770 = vmatmul.f32.gmra.mxu3 %v12666_v19  ;;  %v8873_v31 = vld [vmem:[%s10273_s22 + $0x8] sm:$0xff] }
 0x612   : > { %7006 = vst [vmem:[%s12674_s4 + $0x18] sm:$0xff] %v5950_v40  ;;  %v3842_v16 = vpop.f32.mrf.mxu0  ;;  %v3610_v27 = vpop.f32.mrf.mxu2 }
 0x613   : > { %v5981_v51 = vmul.f32 %v8871_v18, %v3842_v16  ;;  %v5947_v1 = vmul.f32 %v8872_v24, %v3610_v27 }
 0x614   : > { %v3723_v45 = vpop.f32.mrf.mxu3  ;;  %v3952_v40 = vpop.f32.mrf.mxu1 }
 0x615   : > { %7037 = vst [vmem:[%s12674_s4 + $0x110] sm:$0xff] %v5981_v51  ;;  %v5948_v11 = vmul.f32 %v8873_v31, %v3723_v45  ;;  %3889 = vmatmul.f32.gmra.mxu0 %v12717_v47  ;;  %v5966_v10 = vmul.f32 %v8874_v20, %v3952_v40  ;;  %v8875_v31 = vld [vmem:[%s10413_s14 + $0x98] sm:$0xff]  ;;  %v8876_v20 = vld [vmem:[%s10273_s22 + $0x190] sm:$0xff]  ;;  %v8877_v51 = vld [vmem:[%s10273_s22 + $0x80] sm:$0xff] }
 0x616   : > { %7003 = vst [vmem:[%s12674_s4] sm:$0xff] %v5947_v1  ;;  %v12733_v8 = vmul.f32 %v8875_v31, %v12247_v15  ;;  %v8878_v1 = vld [vmem:[%s10273_s22 + $0x88] sm:$0xff]  ;;  %v8879_v40 = vld [vmem:[%s10273_s22 + $0x118] sm:$0xff]  ;;  %v8880_v31 = vld [vmem:[%s10413_s14 + $0xa0] sm:$0xff] }
 0x617   : > { %7004 = vst [vmem:[%s12674_s4 + $0x8] sm:$0xff] %v5948_v11  ;;  %3999 = vmatmul.f32.gmra.mxu1 %v12695_v60 }
 0x618   : > { %7022 = vst [vmem:[%s12674_s4 + $0x98] sm:$0xff] %v5966_v10  ;;  %3660 = vmatmul.f32.gmra.mxu2 %v12695_v60 }
 0x619   : > { %3773 = vmatmul.f32.gmra.mxu3 %v12695_v60 }
 0x61a   : > { %v3845_v16 = vpop.f32.mrf.mxu0 }
 0x61b   : > { %v5997_v18 = vmul.f32 %v8876_v20, %v3845_v16  ;;  %v3613_v11 = vpop.f32.mrf.mxu2  ;;  %v12749_v20 = vmul.f32 %v8880_v31, %v12247_v15  ;;  %v8885_v31 = vld [vmem:[%s10413_s14 + $0xa8] sm:$0xff] }
 0x61c   : > { %v5963_v27 = vmul.f32 %v8877_v51, %v3613_v11  ;;  %v3726_v10 = vpop.f32.mrf.mxu3  ;;  %v3955_v24 = vpop.f32.mrf.mxu1 }
 0x61d   : > { %7053 = vst [vmem:[%s12674_s4 + $0x190] sm:$0xff] %v5997_v18  ;;  %v5964_v45 = vmul.f32 %v8878_v1, %v3726_v10  ;;  %3892 = vmatmul.f32.gmra.mxu0 %v12733_v8  ;;  %v5982_v0 = vmul.f32 %v8879_v40, %v3955_v24  ;;  %v8881_v18 = vld [vmem:[%s10273_s22 + $0x210] sm:$0xff]  ;;  %v8883_v1 = vld [vmem:[%s10273_s22 + $0x108] sm:$0xff]  ;;  %v8884_v40 = vld [vmem:[%s10273_s22 + $0x198] sm:$0xff] }
 0x61e   : > { %7019 = vst [vmem:[%s12674_s4 + $0x80] sm:$0xff] %v5963_v27  ;;  %v8882_v27 = vld [vmem:[%s10273_s22 + $0x100] sm:$0xff] }
 0x61f   : > { %7020 = vst [vmem:[%s12674_s4 + $0x88] sm:$0xff] %v5964_v45  ;;  %4002 = vmatmul.f32.gmra.mxu1 %v12717_v47 }
 0x620   : > { %7038 = vst [vmem:[%s12674_s4 + $0x118] sm:$0xff] %v5982_v0  ;;  %3663 = vmatmul.f32.gmra.mxu2 %v12717_v47 }
 0x621   : > { %3776 = vmatmul.f32.gmra.mxu3 %v12717_v47 }
 0x622   : > { %v3848_v16 = vpop.f32.mrf.mxu0 }
 0x623   : > { %v6013_v11 = vmul.f32 %v8881_v18, %v3848_v16  ;;  %v3616_v51 = vpop.f32.mrf.mxu2  ;;  %v12765_v18 = vmul.f32 %v8885_v31, %v12247_v15  ;;  %v8890_v31 = vld [vmem:[%s10413_s14 + $0xb0] sm:$0xff] }
 0x624   : > { %v5979_v10 = vmul.f32 %v8882_v27, %v3616_v51  ;;  %v3729_v0 = vpop.f32.mrf.mxu3  ;;  %v3958_v24 = vpop.f32.mrf.mxu1 }
 0x625   : > { %7069 = vst [vmem:[%s12674_s4 + $0x210] sm:$0xff] %v6013_v11  ;;  %v5980_v45 = vmul.f32 %v8883_v1, %v3729_v0  ;;  %3895 = vmatmul.f32.gmra.mxu0 %v12749_v20  ;;  %v5998_v7 = vmul.f32 %v8884_v40, %v3958_v24  ;;  %v8886_v11 = vld [vmem:[%s10273_s22 + $0x290] sm:$0xff]  ;;  %v8888_v1 = vld [vmem:[%s10273_s22 + $0x188] sm:$0xff]  ;;  %v8889_v40 = vld [vmem:[%s10273_s22 + $0x218] sm:$0xff] }
 0x626   : > { %7035 = vst [vmem:[%s12674_s4 + $0x100] sm:$0xff] %v5979_v10  ;;  %v8887_v10 = vld [vmem:[%s10273_s22 + $0x180] sm:$0xff] }
 0x627   : > { %7036 = vst [vmem:[%s12674_s4 + $0x108] sm:$0xff] %v5980_v45  ;;  %4005 = vmatmul.f32.gmra.mxu1 %v12733_v8 }
 0x628   : > { %7054 = vst [vmem:[%s12674_s4 + $0x198] sm:$0xff] %v5998_v7  ;;  %3666 = vmatmul.f32.gmra.mxu2 %v12733_v8 }
 0x629   : > { %3779 = vmatmul.f32.gmra.mxu3 %v12733_v8 }
 0x62a   : > { %v3851_v16 = vpop.f32.mrf.mxu0 }
 0x62b   : > { %v6029_v51 = vmul.f32 %v8886_v11, %v3851_v16  ;;  %v3619_v27 = vpop.f32.mrf.mxu2  ;;  %v12781_v11 = vmul.f32 %v8890_v31, %v12247_v15  ;;  %v8895_v31 = vld [vmem:[%s10413_s14 + $0xb8] sm:$0xff] }
 0x62c   : > { %v5995_v0 = vmul.f32 %v8887_v10, %v3619_v27  ;;  %v3732_v7 = vpop.f32.mrf.mxu3  ;;  %v3961_v24 = vpop.f32.mrf.mxu1 }
 0x62d   : > { %7085 = vst [vmem:[%s12674_s4 + $0x290] sm:$0xff] %v6029_v51  ;;  %v5996_v45 = vmul.f32 %v8888_v1, %v3732_v7  ;;  %3898 = vmatmul.f32.gmra.mxu0 %v12765_v18  ;;  %v6014_v42 = vmul.f32 %v8889_v40, %v3961_v24  ;;  %v8891_v51 = vld [vmem:[%s10273_s22 + $0x310] sm:$0xff]  ;;  %v8893_v1 = vld [vmem:[%s10273_s22 + $0x208] sm:$0xff]  ;;  %v8894_v40 = vld [vmem:[%s10273_s22 + $0x298] sm:$0xff] }
 0x62e   : > { %7051 = vst [vmem:[%s12674_s4 + $0x180] sm:$0xff] %v5995_v0  ;;  %v8892_v0 = vld [vmem:[%s10273_s22 + $0x200] sm:$0xff] }
 0x62f   : > { %7052 = vst [vmem:[%s12674_s4 + $0x188] sm:$0xff] %v5996_v45  ;;  %4008 = vmatmul.f32.gmra.mxu1 %v12749_v20 }
 0x630   : > { %7070 = vst [vmem:[%s12674_s4 + $0x218] sm:$0xff] %v6014_v42  ;;  %3669 = vmatmul.f32.gmra.mxu2 %v12749_v20 }
 0x631   : > { %3782 = vmatmul.f32.gmra.mxu3 %v12749_v20 }
 0x632   : > { %v3854_v16 = vpop.f32.mrf.mxu0 }
 0x633   : > { %v6045_v27 = vmul.f32 %v8891_v51, %v3854_v16  ;;  %v3622_v10 = vpop.f32.mrf.mxu2  ;;  %v12797_v51 = vmul.f32 %v8895_v31, %v12247_v15  ;;  %v8900_v31 = vld [vmem:[%s10413_s14 + $0xc0] sm:$0xff] }
 0x634   : > { %v6011_v7 = vmul.f32 %v8892_v0, %v3622_v10  ;;  %v3735_v42 = vpop.f32.mrf.mxu3  ;;  %v3964_v24 = vpop.f32.mrf.mxu1 }
 0x635   : > { %7101 = vst [vmem:[%s12674_s4 + $0x310] sm:$0xff] %v6045_v27  ;;  %v6012_v45 = vmul.f32 %v8893_v1, %v3735_v42  ;;  %3901 = vmatmul.f32.gmra.mxu0 %v12781_v11  ;;  %v6030_v59 = vmul.f32 %v8894_v40, %v3964_v24  ;;  %v8896_v27 = vld [vmem:[%s10273_s22 + $0x390] sm:$0xff]  ;;  %v8898_v1 = vld [vmem:[%s10273_s22 + $0x288] sm:$0xff]  ;;  %v8899_v40 = vld [vmem:[%s10273_s22 + $0x318] sm:$0xff] }
 0x636   : > { %7067 = vst [vmem:[%s12674_s4 + $0x200] sm:$0xff] %v6011_v7  ;;  %v8897_v7 = vld [vmem:[%s10273_s22 + $0x280] sm:$0xff] }
 0x637   : > { %7068 = vst [vmem:[%s12674_s4 + $0x208] sm:$0xff] %v6012_v45  ;;  %4011 = vmatmul.f32.gmra.mxu1 %v12765_v18 }
 0x638   : > { %7086 = vst [vmem:[%s12674_s4 + $0x298] sm:$0xff] %v6030_v59  ;;  %3672 = vmatmul.f32.gmra.mxu2 %v12765_v18 }
 0x639   : > { %3785 = vmatmul.f32.gmra.mxu3 %v12765_v18 }
 0x63a   : > { %v3857_v16 = vpop.f32.mrf.mxu0 }
 0x63b   : > { %v6061_v10 = vmul.f32 %v8896_v27, %v3857_v16  ;;  %v3625_v0 = vpop.f32.mrf.mxu2  ;;  %v12813_v27 = vmul.f32 %v8900_v31, %v12247_v15  ;;  %v8905_v31 = vld [vmem:[%s10413_s14 + $0xc8] sm:$0xff] }
 0x63c   : > { %v6027_v42 = vmul.f32 %v8897_v7, %v3625_v0  ;;  %v3738_v59 = vpop.f32.mrf.mxu3  ;;  %v3967_v24 = vpop.f32.mrf.mxu1 }
 0x63d   : > { %7117 = vst [vmem:[%s12674_s4 + $0x390] sm:$0xff] %v6061_v10  ;;  %v6028_v45 = vmul.f32 %v8898_v1, %v3738_v59  ;;  %3904 = vmatmul.f32.gmra.mxu0 %v12797_v51  ;;  %v6046_v38 = vmul.f32 %v8899_v40, %v3967_v24  ;;  %v8901_v10 = vld [vmem:[%s10273_s22 + $0x410] sm:$0xff]  ;;  %v8903_v1 = vld [vmem:[%s10273_s22 + $0x308] sm:$0xff]  ;;  %v8904_v40 = vld [vmem:[%s10273_s22 + $0x398] sm:$0xff] }
 0x63e   : > { %7083 = vst [vmem:[%s12674_s4 + $0x280] sm:$0xff] %v6027_v42  ;;  %v8902_v42 = vld [vmem:[%s10273_s22 + $0x300] sm:$0xff] }
 0x63f   : > { %7084 = vst [vmem:[%s12674_s4 + $0x288] sm:$0xff] %v6028_v45  ;;  %4014 = vmatmul.f32.gmra.mxu1 %v12781_v11 }
 0x640   : > { %7102 = vst [vmem:[%s12674_s4 + $0x318] sm:$0xff] %v6046_v38  ;;  %3675 = vmatmul.f32.gmra.mxu2 %v12781_v11 }
 0x641   : > { %3788 = vmatmul.f32.gmra.mxu3 %v12781_v11 }
 0x642   : > { %v3860_v16 = vpop.f32.mrf.mxu0 }
 0x643   : > { %v6077_v0 = vmul.f32 %v8901_v10, %v3860_v16  ;;  %v3628_v7 = vpop.f32.mrf.mxu2  ;;  %v12829_v10 = vmul.f32 %v8905_v31, %v12247_v15  ;;  %v8910_v31 = vld [vmem:[%s10413_s14 + $0xd0] sm:$0xff] }
 0x644   : > { %v6043_v59 = vmul.f32 %v8902_v42, %v3628_v7  ;;  %v3741_v38 = vpop.f32.mrf.mxu3  ;;  %v3970_v24 = vpop.f32.mrf.mxu1 }
 0x645   : > { %7133 = vst [vmem:[%s12674_s4 + $0x410] sm:$0xff] %v6077_v0  ;;  %v6044_v45 = vmul.f32 %v8903_v1, %v3741_v38  ;;  %3907 = vmatmul.f32.gmra.mxu0 %v12813_v27  ;;  %v6062_v37 = vmul.f32 %v8904_v40, %v3970_v24  ;;  %v8906_v0 = vld [vmem:[%s10273_s22 + $0x490] sm:$0xff]  ;;  %v8908_v1 = vld [vmem:[%s10273_s22 + $0x388] sm:$0xff]  ;;  %v8909_v40 = vld [vmem:[%s10273_s22 + $0x418] sm:$0xff] }
 0x646   : > { %7099 = vst [vmem:[%s12674_s4 + $0x300] sm:$0xff] %v6043_v59  ;;  %v8907_v59 = vld [vmem:[%s10273_s22 + $0x380] sm:$0xff] }
 0x647   : > { %7100 = vst [vmem:[%s12674_s4 + $0x308] sm:$0xff] %v6044_v45  ;;  %4017 = vmatmul.f32.gmra.mxu1 %v12797_v51 }
 0x648   : > { %7118 = vst [vmem:[%s12674_s4 + $0x398] sm:$0xff] %v6062_v37  ;;  %3678 = vmatmul.f32.gmra.mxu2 %v12797_v51 }
 0x649   : > { %3791 = vmatmul.f32.gmra.mxu3 %v12797_v51 }
 0x64a   : > { %v3863_v16 = vpop.f32.mrf.mxu0 }
 0x64b   : > { %v6093_v7 = vmul.f32 %v8906_v0, %v3863_v16  ;;  %v3631_v42 = vpop.f32.mrf.mxu2  ;;  %v12845_v0 = vmul.f32 %v8910_v31, %v12247_v15  ;;  %v8915_v31 = vld [vmem:[%s10413_s14 + $0xd8] sm:$0xff] }
 0x64c   : > { %v6059_v38 = vmul.f32 %v8907_v59, %v3631_v42  ;;  %v3744_v37 = vpop.f32.mrf.mxu3  ;;  %v3973_v24 = vpop.f32.mrf.mxu1 }
 0x64d   : > { %7149 = vst [vmem:[%s12674_s4 + $0x490] sm:$0xff] %v6093_v7  ;;  %v6060_v45 = vmul.f32 %v8908_v1, %v3744_v37  ;;  %3910 = vmatmul.f32.gmra.mxu0 %v12829_v10  ;;  %v6078_v62 = vmul.f32 %v8909_v40, %v3973_v24  ;;  %v8911_v7 = vld [vmem:[%s10273_s22 + $0x510] sm:$0xff]  ;;  %v8913_v1 = vld [vmem:[%s10273_s22 + $0x408] sm:$0xff]  ;;  %v8914_v40 = vld [vmem:[%s10273_s22 + $0x498] sm:$0xff] }
 0x64e   : > { %7115 = vst [vmem:[%s12674_s4 + $0x380] sm:$0xff] %v6059_v38  ;;  %v8912_v38 = vld [vmem:[%s10273_s22 + $0x400] sm:$0xff] }
 0x64f   : > { %7116 = vst [vmem:[%s12674_s4 + $0x388] sm:$0xff] %v6060_v45  ;;  %4020 = vmatmul.f32.gmra.mxu1 %v12813_v27 }
 0x650   : > { %7134 = vst [vmem:[%s12674_s4 + $0x418] sm:$0xff] %v6078_v62  ;;  %3681 = vmatmul.f32.gmra.mxu2 %v12813_v27 }
 0x651   : > { %3794 = vmatmul.f32.gmra.mxu3 %v12813_v27 }
 0x652   : > { %v3866_v16 = vpop.f32.mrf.mxu0 }
 0x653   : > { %v6109_v42 = vmul.f32 %v8911_v7, %v3866_v16  ;;  %v3634_v59 = vpop.f32.mrf.mxu2  ;;  %v12861_v7 = vmul.f32 %v8915_v31, %v12247_v15  ;;  %v8920_v31 = vld [vmem:[%s10413_s14 + $0xe0] sm:$0xff] }
 0x654   : > { %v6075_v37 = vmul.f32 %v8912_v38, %v3634_v59  ;;  %v3747_v62 = vpop.f32.mrf.mxu3  ;;  %v3976_v24 = vpop.f32.mrf.mxu1 }
 0x655   : > { %7165 = vst [vmem:[%s12674_s4 + $0x510] sm:$0xff] %v6109_v42  ;;  %v6076_v45 = vmul.f32 %v8913_v1, %v3747_v62  ;;  %3913 = vmatmul.f32.gmra.mxu0 %v12845_v0  ;;  %v6094_v21 = vmul.f32 %v8914_v40, %v3976_v24  ;;  %v8916_v42 = vld [vmem:[%s10273_s22 + $0x590] sm:$0xff]  ;;  %v8918_v1 = vld [vmem:[%s10273_s22 + $0x488] sm:$0xff]  ;;  %v8919_v40 = vld [vmem:[%s10273_s22 + $0x518] sm:$0xff] }
 0x656   : > { %7131 = vst [vmem:[%s12674_s4 + $0x400] sm:$0xff] %v6075_v37  ;;  %v8917_v37 = vld [vmem:[%s10273_s22 + $0x480] sm:$0xff] }
 0x657   : > { %7132 = vst [vmem:[%s12674_s4 + $0x408] sm:$0xff] %v6076_v45  ;;  %4023 = vmatmul.f32.gmra.mxu1 %v12829_v10 }
 0x658   : > { %7150 = vst [vmem:[%s12674_s4 + $0x498] sm:$0xff] %v6094_v21  ;;  %3684 = vmatmul.f32.gmra.mxu2 %v12829_v10 }
 0x659   : > { %3797 = vmatmul.f32.gmra.mxu3 %v12829_v10 }
 0x65a   : > { %v3869_v16 = vpop.f32.mrf.mxu0 }
 0x65b   : > { %v6125_v59 = vmul.f32 %v8916_v42, %v3869_v16  ;;  %v3637_v38 = vpop.f32.mrf.mxu2  ;;  %v12877_v42 = vmul.f32 %v8920_v31, %v12247_v15  ;;  %v8925_v31 = vld [vmem:[%s10413_s14 + $0xe8] sm:$0xff] }
 0x65c   : > { %v6091_v62 = vmul.f32 %v8917_v37, %v3637_v38  ;;  %v3750_v21 = vpop.f32.mrf.mxu3  ;;  %v3979_v24 = vpop.f32.mrf.mxu1 }
 0x65d   : > { %7181 = vst [vmem:[%s12674_s4 + $0x590] sm:$0xff] %v6125_v59  ;;  %v6092_v45 = vmul.f32 %v8918_v1, %v3750_v21  ;;  %3916 = vmatmul.f32.gmra.mxu0 %v12861_v7  ;;  %v6110_v4 = vmul.f32 %v8919_v40, %v3979_v24  ;;  %v8921_v59 = vld [vmem:[%s10273_s22 + $0x610] sm:$0xff]  ;;  %v8923_v1 = vld [vmem:[%s10273_s22 + $0x508] sm:$0xff]  ;;  %v8924_v40 = vld [vmem:[%s10273_s22 + $0x598] sm:$0xff] }
 0x65e   : > { %7147 = vst [vmem:[%s12674_s4 + $0x480] sm:$0xff] %v6091_v62  ;;  %v8922_v62 = vld [vmem:[%s10273_s22 + $0x500] sm:$0xff] }
 0x65f   : > { %7148 = vst [vmem:[%s12674_s4 + $0x488] sm:$0xff] %v6092_v45  ;;  %4026 = vmatmul.f32.gmra.mxu1 %v12845_v0 }
 0x660   : > { %7166 = vst [vmem:[%s12674_s4 + $0x518] sm:$0xff] %v6110_v4  ;;  %3687 = vmatmul.f32.gmra.mxu2 %v12845_v0 }
 0x661   : > { %3800 = vmatmul.f32.gmra.mxu3 %v12845_v0 }
 0x662   : > { %v3872_v16 = vpop.f32.mrf.mxu0 }
 0x663   : > { %v6141_v38 = vmul.f32 %v8921_v59, %v3872_v16  ;;  %v3640_v37 = vpop.f32.mrf.mxu2  ;;  %v12893_v59 = vmul.f32 %v8925_v31, %v12247_v15  ;;  %v8930_v31 = vld [vmem:[%s10413_s14 + $0xf0] sm:$0xff] }
 0x664   : > { %v6107_v21 = vmul.f32 %v8922_v62, %v3640_v37  ;;  %v3753_v4 = vpop.f32.mrf.mxu3  ;;  %v3982_v24 = vpop.f32.mrf.mxu1 }
 0x665   : > { %7197 = vst [vmem:[%s12674_s4 + $0x610] sm:$0xff] %v6141_v38  ;;  %v6108_v45 = vmul.f32 %v8923_v1, %v3753_v4  ;;  %3919 = vmatmul.f32.gmra.mxu0 %v12877_v42  ;;  %v6126_v49 = vmul.f32 %v8924_v40, %v3982_v24  ;;  %v8926_v38 = vld [vmem:[%s10273_s22 + $0x690] sm:$0xff]  ;;  %v8928_v1 = vld [vmem:[%s10273_s22 + $0x588] sm:$0xff]  ;;  %v8929_v40 = vld [vmem:[%s10273_s22 + $0x618] sm:$0xff] }
 0x666   : > { %7163 = vst [vmem:[%s12674_s4 + $0x500] sm:$0xff] %v6107_v21  ;;  %v8927_v21 = vld [vmem:[%s10273_s22 + $0x580] sm:$0xff] }
 0x667   : > { %7164 = vst [vmem:[%s12674_s4 + $0x508] sm:$0xff] %v6108_v45  ;;  %4029 = vmatmul.f32.gmra.mxu1 %v12861_v7 }
 0x668   : > { %7182 = vst [vmem:[%s12674_s4 + $0x598] sm:$0xff] %v6126_v49  ;;  %3690 = vmatmul.f32.gmra.mxu2 %v12861_v7 }
 0x669   : > { %3803 = vmatmul.f32.gmra.mxu3 %v12861_v7 }
 0x66a   : > { %v3875_v16 = vpop.f32.mrf.mxu0 }
 0x66b   : > { %v6157_v37 = vmul.f32 %v8926_v38, %v3875_v16  ;;  %v3643_v62 = vpop.f32.mrf.mxu2  ;;  %v12909_v38 = vmul.f32 %v8930_v31, %v12247_v15  ;;  %v8935_v31 = vld [vmem:[%s10413_s14 + $0xf8] sm:$0xff] }
 0x66c   : > { %v6123_v4 = vmul.f32 %v8927_v21, %v3643_v62  ;;  %v3756_v49 = vpop.f32.mrf.mxu3  ;;  %v3985_v24 = vpop.f32.mrf.mxu1 }
 0x66d   : > { %7213 = vst [vmem:[%s12674_s4 + $0x690] sm:$0xff] %v6157_v37  ;;  %v6124_v45 = vmul.f32 %v8928_v1, %v3756_v49  ;;  %3922 = vmatmul.f32.gmra.mxu0 %v12893_v59  ;;  %v6142_v36 = vmul.f32 %v8929_v40, %v3985_v24  ;;  %v8931_v37 = vld [vmem:[%s10273_s22 + $0x710] sm:$0xff]  ;;  %v8933_v1 = vld [vmem:[%s10273_s22 + $0x608] sm:$0xff]  ;;  %v8934_v40 = vld [vmem:[%s10273_s22 + $0x698] sm:$0xff] }
 0x66e   : > { %7179 = vst [vmem:[%s12674_s4 + $0x580] sm:$0xff] %v6123_v4  ;;  %v8932_v4 = vld [vmem:[%s10273_s22 + $0x600] sm:$0xff] }
 0x66f   : > { %7180 = vst [vmem:[%s12674_s4 + $0x588] sm:$0xff] %v6124_v45  ;;  %4032 = vmatmul.f32.gmra.mxu1 %v12877_v42 }
 0x670   : > { %7198 = vst [vmem:[%s12674_s4 + $0x618] sm:$0xff] %v6142_v36  ;;  %3693 = vmatmul.f32.gmra.mxu2 %v12877_v42 }
 0x671   : > { %3806 = vmatmul.f32.gmra.mxu3 %v12877_v42 }
 0x672   : > { %v3878_v16 = vpop.f32.mrf.mxu0 }
 0x673   : > { %v6173_v62 = vmul.f32 %v8931_v37, %v3878_v16  ;;  %v3646_v21 = vpop.f32.mrf.mxu2  ;;  %v12925_v37 = vmul.f32 %v8935_v31, %v12247_v15 }
 0x674   : > { %v6139_v49 = vmul.f32 %v8932_v4, %v3646_v21  ;;  %v3759_v36 = vpop.f32.mrf.mxu3  ;;  %v3988_v24 = vpop.f32.mrf.mxu1 }
 0x675   : > { %7229 = vst [vmem:[%s12674_s4 + $0x710] sm:$0xff] %v6173_v62  ;;  %v6140_v45 = vmul.f32 %v8933_v1, %v3759_v36  ;;  %3925 = vmatmul.f32.gmra.mxu0 %v12909_v38  ;;  %v6158_v9 = vmul.f32 %v8934_v40, %v3988_v24  ;;  %v8936_v62 = vld [vmem:[%s10273_s22 + $0x790] sm:$0xff]  ;;  %v8938_v1 = vld [vmem:[%s10273_s22 + $0x688] sm:$0xff]  ;;  %v8939_v40 = vld [vmem:[%s10273_s22 + $0x718] sm:$0xff] }
 0x676   : > { %7195 = vst [vmem:[%s12674_s4 + $0x600] sm:$0xff] %v6139_v49  ;;  %v8937_v49 = vld [vmem:[%s10273_s22 + $0x680] sm:$0xff] }
 0x677   : > { %7196 = vst [vmem:[%s12674_s4 + $0x608] sm:$0xff] %v6140_v45  ;;  %4035 = vmatmul.f32.gmra.mxu1 %v12893_v59 }
 0x678   : > { %7214 = vst [vmem:[%s12674_s4 + $0x698] sm:$0xff] %v6158_v9  ;;  %3696 = vmatmul.f32.gmra.mxu2 %v12893_v59 }
 0x679   : > { %3809 = vmatmul.f32.gmra.mxu3 %v12893_v59 }
 0x67a   : > { %v3881_v16 = vpop.f32.mrf.mxu0 }
 0x67b   : > { %v6189_v21 = vmul.f32 %v8936_v62, %v3881_v16  ;;  %v3649_v4 = vpop.f32.mrf.mxu2  ;;  %v8940_v16 = vld [vmem:[%s10273_s22 + $0x810] sm:$0xff] }
 0x67c   : > { %v6155_v36 = vmul.f32 %v8937_v49, %v3649_v4  ;;  %v3762_v9 = vpop.f32.mrf.mxu3  ;;  %v3991_v24 = vpop.f32.mrf.mxu1 }
 0x67d   : > { %7245 = vst [vmem:[%s12674_s4 + $0x790] sm:$0xff] %v6189_v21  ;;  %v6156_v45 = vmul.f32 %v8938_v1, %v3762_v9  ;;  %3928 = vmatmul.f32.gmra.mxu0 %v12925_v37  ;;  %v6174_v33 = vmul.f32 %v8939_v40, %v3991_v24  ;;  %v8941_v21 = vld [vmem:[%s10273_s22 + $0x700] sm:$0xff]  ;;  %v8942_v9 = vld [vmem:[%s10273_s22 + $0x708] sm:$0xff]  ;;  %v8943_v1 = vld [vmem:[%s10273_s22 + $0x798] sm:$0xff] }
 0x67e   : > { %7211 = vst [vmem:[%s12674_s4 + $0x680] sm:$0xff] %v6155_v36  ;;  %v8945_v40 = vld [vmem:[#allocation8 + $0x770] sm:$0xff] }
 0x67f   : > { %7212 = vst [vmem:[%s12674_s4 + $0x688] sm:$0xff] %v6156_v45  ;;  %4038 = vmatmul.f32.gmra.mxu1 %v12909_v38  ;;  %v8944_v45 = vld [vmem:[#allocation8 + $0x7f0] sm:$0xff] }
 0x680   : > { %7230 = vst [vmem:[%s12674_s4 + $0x718] sm:$0xff] %v6174_v33  ;;  %3699 = vmatmul.f32.gmra.mxu2 %v12909_v38 }
 0x681   : > { %3812 = vmatmul.f32.gmra.mxu3 %v12909_v38 }
 0x682   : > { %v3884_v15 = vpop.f32.mrf.mxu0 }
 0x683   : > { %v6205_v31 = vmul.f32 %v8940_v16, %v3884_v15  ;;  %v3652_v62 = vpop.f32.mrf.mxu2  ;;  %v8946_v16 = vld [vmem:[#allocation8 + $0x6f0] sm:$0xff] }
 0x684   : > { %v6171_v4 = vmul.f32 %v8941_v21, %v3652_v62  ;;  %v3765_v49 = vpop.f32.mrf.mxu3  ;;  %v3994_v36 = vpop.f32.mrf.mxu1 }
 0x685   : > { %7261 = vst [vmem:[%s12674_s4 + $0x810] sm:$0xff] %v6205_v31  ;;  %v6172_v24 = vmul.f32 %v8942_v9, %v3765_v49  ;;  %v6190_v33 = vmul.f32 %v8943_v1, %v3994_v36  ;;  %4287 = vmatmul.f32.vlgmr.msra.gmra.mxu0 %v12254_v29  ;;  %v8947_v31 = vld [vmem:[%s10273_s22 + $0x890] sm:$0xff]  ;;  %v8950_v1 = vld [vmem:[%s10273_s22 + $0x788] sm:$0xff] }
 0x686   : > { %7227 = vst [vmem:[%s12674_s4 + $0x700] sm:$0xff] %v6171_v4  ;;  %5175 = vmatpush.msra.mxu0 %v8944_v45  ;;  %v8948_v4 = vld [vmem:[%s10273_s22 + $0x780] sm:$0xff]  ;;  %v8951_v45 = vld [vmem:[%s10273_s22 + $0x818] sm:$0xff] }
 0x687   : > { %7228 = vst [vmem:[%s12674_s4 + $0x708] sm:$0xff] %v6172_v24  ;;  %4041 = vmatmul.f32.gmra.mxu1 %v12925_v37  ;;  %v8949_v24 = vld [vmem:[#allocation8 + $0x670] sm:$0xff] }
 0x688   : > { %7246 = vst [vmem:[%s12674_s4 + $0x798] sm:$0xff] %v6190_v33  ;;  %3702 = vmatmul.f32.gmra.mxu2 %v12925_v37  ;;  %5176 = vmatpush.msra.mxu0 %v8945_v40 }
 0x689   : > { %3815 = vmatmul.f32.gmra.mxu3 %v12925_v37 }
 0x68a   : > { %v3887_v15 = vpop.f32.mrf.mxu0  ;;  %5177 = vmatpush.msra.mxu0 %v8946_v16  ;;  %v8952_v16 = vld [vmem:[#allocation8 + $0x5f0] sm:$0xff] }
 0x68b   : > { %v6221_v62 = vmul.f32 %v8947_v31, %v3887_v15  ;;  %v3655_v21 = vpop.f32.mrf.mxu2  ;;  %v8953_v15 = vld [vmem:[#allocation8 + $0x7f8] sm:$0xff]  ;;  %v8954_v31 = vld [vmem:[#allocation8 + $0x7e0] sm:$0xff] }
 0x68c   : > { %v6187_v49 = vmul.f32 %v8948_v4, %v3655_v21  ;;  %v3768_v36 = vpop.f32.mrf.mxu3  ;;  %v3997_v9 = vpop.f32.mrf.mxu1  ;;  %5178 = vmatpush.msra.mxu0 %v8949_v24  ;;  %v8955_v21 = vld [vmem:[#allocation8 + $0x7e8] sm:$0xff]  ;;  %v8956_v4 = vld [vmem:[#allocation8 + $0x778] sm:$0xff]  ;;  %v8958_v24 = vld [vmem:[#allocation8 + $0x760] sm:$0xff] }
 0x68d   : > { %7277 = vst [vmem:[%s12674_s4 + $0x890] sm:$0xff] %v6221_v62  ;;  %v6188_v33 = vmul.f32 %v8950_v1, %v3768_v36  ;;  %v6206_v40 = vmul.f32 %v8951_v45, %v3997_v9  ;;  %4290 = vmatmul.f32.gmra.mxu0 %v12270_v13  ;;  %v8959_v1 = vld [vmem:[#allocation8 + $0x570] sm:$0xff] }
 0x68e   : > { %7243 = vst [vmem:[%s12674_s4 + $0x780] sm:$0xff] %v6187_v49  ;;  %5179 = vmatpush.msra.mxu0 %v8952_v16  ;;  %v8957_v49 = vld [vmem:[%s10273_s22 + $0x910] sm:$0xff] }
 0x68f   : > { %7244 = vst [vmem:[%s12674_s4 + $0x788] sm:$0xff] %v6188_v33  ;;  %4400 = vmatmul.f32.vlgmr.msra.gmra.mxu1 %v12254_v29  ;;  %v8960_v33 = vld [vmem:[%s10273_s22 + $0x800] sm:$0xff] }
 0x690   : > { %7262 = vst [vmem:[%s12674_s4 + $0x818] sm:$0xff] %v6206_v40  ;;  %4061 = vmatmul.f32.vlgmr.msra.gmra.mxu2 %v12254_v29  ;;  %5288 = vmatpush.msra.mxu1 %v8953_v15  ;;  %v8961_v15 = vld [vmem:[#allocation8 + $0x768] sm:$0xff] }
 0x691   : > { %4174 = vmatmul.f32.vlgmr.msra.gmra.mxu3 %v12254_v29  ;;  %4949 = vmatpush.msra.mxu2 %v8954_v31  ;;  %v8962_v31 = vld [vmem:[#allocation8 + $0x6f8] sm:$0xff] }
 0x692   : > { %v3890_v62 = vpop.f32.mrf.mxu0  ;;  %5062 = vmatpush.msra.mxu3 %v8955_v21  ;;  %5289 = vmatpush.msra.mxu1 %v8956_v4  ;;  %v8963_v21 = vld [vmem:[%s10273_s22 + $0x808] sm:$0xff]  ;;  %v8964_v4 = vld [vmem:[%s10273_s22 + $0x898] sm:$0xff] }
 0x693   : > { %v6237_v36 = vmul.f32 %v8957_v49, %v3890_v62  ;;  %v3658_v9 = vpop.f32.mrf.mxu2  ;;  %4950 = vmatpush.msra.mxu2 %v8958_v24  ;;  %5180 = vmatpush.msra.mxu0 %v8959_v1  ;;  %v8965_v24 = vld [vmem:[#allocation8 + $0x6e0] sm:$0xff]  ;;  %v8966_v1 = vld [vmem:[#allocation8 + $0x6e8] sm:$0xff] }
 0x694   : > { %v6203_v45 = vmul.f32 %v8960_v33, %v3658_v9  ;;  %v3771_v40 = vpop.f32.mrf.mxu3  ;;  %v4000_v16 = vpop.f32.mrf.mxu1  ;;  %5063 = vmatpush.msra.mxu3 %v8961_v15  ;;  %5290 = vmatpush.msra.mxu1 %v8962_v31  ;;  %v8967_v9 = vld [vmem:[#allocation8 + $0x678] sm:$0xff]  ;;  %v8968_v33 = vld [vmem:[#allocation8 + $0x660] sm:$0xff]  ;;  %v8973_v31 = vld [vmem:[%s10273_s22 + $0x990] sm:$0xff] }
 0x695   : > { %7293 = vst [vmem:[%s12674_s4 + $0x910] sm:$0xff] %v6237_v36  ;;  %v6204_v62 = vmul.f32 %v8963_v21, %v3771_v40  ;;  %v6222_v49 = vmul.f32 %v8964_v4, %v4000_v16  ;;  %4293 = vmatmul.f32.gmra.mxu0 %v12286_v28  ;;  %4951 = vmatpush.msra.mxu2 %v8965_v24  ;;  %v8969_v36 = vld [vmem:[#allocation8 + $0x668] sm:$0xff]  ;;  %v8970_v40 = vld [vmem:[#allocation8 + $0x5e0] sm:$0xff]  ;;  %v8972_v15 = vld [vmem:[#allocation8 + $0x5f8] sm:$0xff] }
 0x696   : > { %7259 = vst [vmem:[%s12674_s4 + $0x800] sm:$0xff] %v6203_v45  ;;  %5064 = vmatpush.msra.mxu3 %v8966_v1  ;;  %5291 = vmatpush.msra.mxu1 %v8967_v9  ;;  %v8971_v16 = vld [vmem:[#allocation8 + $0x5e8] sm:$0xff]  ;;  %v8974_v4 = vld [vmem:[#allocation8 + $0x560] sm:$0xff] }
 0x697   : > { %7260 = vst [vmem:[%s12674_s4 + $0x808] sm:$0xff] %v6204_v62  ;;  %4403 = vmatmul.f32.gmra.mxu1 %v12270_v13  ;;  %4952 = vmatpush.msra.mxu2 %v8968_v33  ;;  %v8976_v24 = vld [vmem:[%s10273_s22 + $0x880] sm:$0xff] }
 0x698   : > { %7278 = vst [vmem:[%s12674_s4 + $0x898] sm:$0xff] %v6222_v49  ;;  %4064 = vmatmul.f32.gmra.mxu2 %v12270_v13  ;;  %5065 = vmatpush.msra.mxu3 %v8969_v36  ;;  %v8975_v49 = vld [vmem:[#allocation8 + $0x4f0] sm:$0xff]  ;;  %v8977_v36 = vld [vmem:[#allocation8 + $0x568] sm:$0xff] }
 0x699   : > { %4177 = vmatmul.f32.gmra.mxu3 %v12270_v13  ;;  %4953 = vmatpush.msra.mxu2 %v8970_v40  ;;  %v8978_v40 = vld [vmem:[#allocation8 + $0x578] sm:$0xff] }
 0x69a   : > { %v3893_v45 = vpop.f32.mrf.mxu0  ;;  %5066 = vmatpush.msra.mxu3 %v8971_v16  ;;  %5292 = vmatpush.msra.mxu1 %v8972_v15  ;;  %v8979_v16 = vld [vmem:[%s10273_s22 + $0x888] sm:$0xff]  ;;  %v8980_v15 = vld [vmem:[%s10273_s22 + $0x918] sm:$0xff] }
 0x69b   : > { %v6253_v21 = vmul.f32 %v8973_v31, %v3893_v45  ;;  %v3661_v62 = vpop.f32.mrf.mxu2  ;;  %4954 = vmatpush.msra.mxu2 %v8974_v4  ;;  %5181 = vmatpush.msra.mxu0 %v8975_v49  ;;  %v8981_v4 = vld [vmem:[#allocation8 + $0x4e0] sm:$0xff]  ;;  %v8982_v49 = vld [vmem:[#allocation8 + $0x4e8] sm:$0xff] }
 0x69c   : > { %v6219_v1 = vmul.f32 %v8976_v24, %v3661_v62  ;;  %v3774_v9 = vpop.f32.mrf.mxu3  ;;  %v4003_v33 = vpop.f32.mrf.mxu1  ;;  %5067 = vmatpush.msra.mxu3 %v8977_v36  ;;  %5293 = vmatpush.msra.mxu1 %v8978_v40  ;;  %v8983_v62 = vld [vmem:[#allocation8 + $0x4f8] sm:$0xff]  ;;  %v8984_v24 = vld [vmem:[#allocation8 + $0x460] sm:$0xff]  ;;  %v8989_v40 = vld [vmem:[%s10273_s22 + $0xa10] sm:$0xff] }
 0x69d   : > { %7309 = vst [vmem:[%s12674_s4 + $0x990] sm:$0xff] %v6253_v21  ;;  %v6220_v45 = vmul.f32 %v8979_v16, %v3774_v9  ;;  %v6238_v31 = vmul.f32 %v8980_v15, %v4003_v33  ;;  %4296 = vmatmul.f32.gmra.mxu0 %v12302_v3  ;;  %4955 = vmatpush.msra.mxu2 %v8981_v4  ;;  %v8985_v21 = vld [vmem:[#allocation8 + $0x468] sm:$0xff]  ;;  %v8986_v9 = vld [vmem:[#allocation8 + $0x470] sm:$0xff]  ;;  %v8987_v33 = vld [vmem:[#allocation8 + $0x478] sm:$0xff] }
 0x69e   : > { %7275 = vst [vmem:[%s12674_s4 + $0x880] sm:$0xff] %v6219_v1  ;;  %5068 = vmatpush.msra.mxu3 %v8982_v49  ;;  %5294 = vmatpush.msra.mxu1 %v8983_v62  ;;  %v8988_v36 = vld [vmem:[#allocation8 + $0x3e0] sm:$0xff]  ;;  %v8990_v15 = vld [vmem:[#allocation8 + $0x3e8] sm:$0xff] }
 0x69f   : > { %7276 = vst [vmem:[%s12674_s4 + $0x888] sm:$0xff] %v6220_v45  ;;  %4406 = vmatmul.f32.gmra.mxu1 %v12286_v28  ;;  %4956 = vmatpush.msra.mxu2 %v8984_v24  ;;  %v8992_v4 = vld [vmem:[%s10273_s22 + $0x900] sm:$0xff] }
 0x6a0   : > { %7294 = vst [vmem:[%s12674_s4 + $0x918] sm:$0xff] %v6238_v31  ;;  %4067 = vmatmul.f32.gmra.mxu2 %v12286_v28  ;;  %5069 = vmatpush.msra.mxu3 %v8985_v21  ;;  %v8991_v31 = vld [vmem:[#allocation8 + $0x3f0] sm:$0xff]  ;;  %v8993_v21 = vld [vmem:[#allocation8 + $0x3f8] sm:$0xff] }
 0x6a1   : > { %4180 = vmatmul.f32.gmra.mxu3 %v12286_v28  ;;  %5182 = vmatpush.msra.mxu0 %v8986_v9  ;;  %v8994_v9 = vld [vmem:[#allocation8 + $0x360] sm:$0xff] }
 0x6a2   : > { %v3896_v1 = vpop.f32.mrf.mxu0  ;;  %5295 = vmatpush.msra.mxu1 %v8987_v33  ;;  %4957 = vmatpush.msra.mxu2 %v8988_v36  ;;  %v8995_v33 = vld [vmem:[%s10273_s22 + $0x908] sm:$0xff]  ;;  %v8996_v36 = vld [vmem:[%s10273_s22 + $0x998] sm:$0xff] }
 0x6a3   : > { %v6269_v16 = vmul.f32 %v8989_v40, %v3896_v1  ;;  %v3664_v45 = vpop.f32.mrf.mxu2  ;;  %5070 = vmatpush.msra.mxu3 %v8990_v15  ;;  %5183 = vmatpush.msra.mxu0 %v8991_v31  ;;  %v8997_v15 = vld [vmem:[#allocation8 + $0x368] sm:$0xff]  ;;  %v8998_v31 = vld [vmem:[#allocation8 + $0x370] sm:$0xff] }
 0x6a4   : > { %v6235_v49 = vmul.f32 %v8992_v4, %v3664_v45  ;;  %v3777_v62 = vpop.f32.mrf.mxu3  ;;  %v4006_v24 = vpop.f32.mrf.mxu1  ;;  %5296 = vmatpush.msra.mxu1 %v8993_v21  ;;  %4958 = vmatpush.msra.mxu2 %v8994_v9  ;;  %v8999_v45 = vld [vmem:[#allocation8 + $0x378] sm:$0xff]  ;;  %v9000_v4 = vld [vmem:[#allocation8 + $0x2e0] sm:$0xff]  ;;  %v9005_v9 = vld [vmem:[%s10273_s22 + $0xa90] sm:$0xff] }
 0x6a5   : > { %7325 = vst [vmem:[%s12674_s4 + $0xa10] sm:$0xff] %v6269_v16  ;;  %v6236_v1 = vmul.f32 %v8995_v33, %v3777_v62  ;;  %v6254_v40 = vmul.f32 %v8996_v36, %v4006_v24  ;;  %4299 = vmatmul.f32.gmra.mxu0 %v12330_v35  ;;  %5071 = vmatpush.msra.mxu3 %v8997_v15  ;;  %v9001_v16 = vld [vmem:[#allocation8 + $0x2e8] sm:$0xff]  ;;  %v9002_v62 = vld [vmem:[#allocation8 + $0x2f0] sm:$0xff]  ;;  %v9003_v24 = vld [vmem:[#allocation8 + $0x2f8] sm:$0xff] }
 0x6a6   : > { %7291 = vst [vmem:[%s12674_s4 + $0x900] sm:$0xff] %v6235_v49  ;;  %5184 = vmatpush.msra.mxu0 %v8998_v31  ;;  %5297 = vmatpush.msra.mxu1 %v8999_v45  ;;  %v9004_v21 = vld [vmem:[#allocation8 + $0x260] sm:$0xff]  ;;  %v9006_v36 = vld [vmem:[#allocation8 + $0x268] sm:$0xff] }
 0x6a7   : > { %7292 = vst [vmem:[%s12674_s4 + $0x908] sm:$0xff] %v6236_v1  ;;  %4409 = vmatmul.f32.gmra.mxu1 %v12302_v3  ;;  %4959 = vmatpush.msra.mxu2 %v9000_v4  ;;  %v9008_v15 = vld [vmem:[%s10273_s22 + $0x980] sm:$0xff] }
 0x6a8   : > { %7310 = vst [vmem:[%s12674_s4 + $0x998] sm:$0xff] %v6254_v40  ;;  %4070 = vmatmul.f32.gmra.mxu2 %v12302_v3  ;;  %5072 = vmatpush.msra.mxu3 %v9001_v16  ;;  %v9007_v40 = vld [vmem:[#allocation8 + $0x270] sm:$0xff]  ;;  %v9009_v16 = vld [vmem:[#allocation8 + $0x278] sm:$0xff] }
 0x6a9   : > { %4183 = vmatmul.f32.gmra.mxu3 %v12302_v3  ;;  %5185 = vmatpush.msra.mxu0 %v9002_v62  ;;  %v9010_v62 = vld [vmem:[#allocation8 + $0x1e0] sm:$0xff] }
 0x6aa   : > { %v3899_v49 = vpop.f32.mrf.mxu0  ;;  %5298 = vmatpush.msra.mxu1 %v9003_v24  ;;  %4960 = vmatpush.msra.mxu2 %v9004_v21  ;;  %v9011_v24 = vld [vmem:[%s10273_s22 + $0x988] sm:$0xff]  ;;  %v9012_v21 = vld [vmem:[%s10273_s22 + $0xa18] sm:$0xff] }
 0x6ab   : > { %v6285_v33 = vmul.f32 %v9005_v9, %v3899_v49  ;;  %v3667_v1 = vpop.f32.mrf.mxu2  ;;  %5073 = vmatpush.msra.mxu3 %v9006_v36  ;;  %5186 = vmatpush.msra.mxu0 %v9007_v40  ;;  %v9013_v36 = vld [vmem:[#allocation8 + $0x1e8] sm:$0xff]  ;;  %v9014_v40 = vld [vmem:[#allocation8 + $0x1f0] sm:$0xff] }
 0x6ac   : > { %v6251_v31 = vmul.f32 %v9008_v15, %v3667_v1  ;;  %v3780_v45 = vpop.f32.mrf.mxu3  ;;  %v4009_v4 = vpop.f32.mrf.mxu1  ;;  %5299 = vmatpush.msra.mxu1 %v9009_v16  ;;  %4961 = vmatpush.msra.mxu2 %v9010_v62  ;;  %v9015_v1 = vld [vmem:[#allocation8 + $0x1f8] sm:$0xff]  ;;  %v9016_v15 = vld [vmem:[#allocation8 + $0x160] sm:$0xff]  ;;  %v9021_v62 = vld [vmem:[%s10273_s22 + $0xb10] sm:$0xff] }
 0x6ad   : > { %7341 = vst [vmem:[%s12674_s4 + $0xa90] sm:$0xff] %v6285_v33  ;;  %v6252_v49 = vmul.f32 %v9011_v24, %v3780_v45  ;;  %v6270_v9 = vmul.f32 %v9012_v21, %v4009_v4  ;;  %4302 = vmatmul.f32.gmra.mxu0 %v12358_v58  ;;  %5074 = vmatpush.msra.mxu3 %v9013_v36  ;;  %v9017_v33 = vld [vmem:[#allocation8 + $0x168] sm:$0xff]  ;;  %v9018_v45 = vld [vmem:[#allocation8 + $0x170] sm:$0xff]  ;;  %v9019_v4 = vld [vmem:[#allocation8 + $0x178] sm:$0xff] }
 0x6ae   : > { %7307 = vst [vmem:[%s12674_s4 + $0x980] sm:$0xff] %v6251_v31  ;;  %5187 = vmatpush.msra.mxu0 %v9014_v40  ;;  %5300 = vmatpush.msra.mxu1 %v9015_v1  ;;  %v9020_v16 = vld [vmem:[#allocation8 + $0xe0] sm:$0xff]  ;;  %v9022_v21 = vld [vmem:[#allocation8 + $0xe8] sm:$0xff] }
 0x6af   : > { %7308 = vst [vmem:[%s12674_s4 + $0x988] sm:$0xff] %v6252_v49  ;;  %4412 = vmatmul.f32.gmra.mxu1 %v12330_v35  ;;  %4962 = vmatpush.msra.mxu2 %v9016_v15  ;;  %v9024_v36 = vld [vmem:[%s10273_s22 + $0xa00] sm:$0xff] }
 0x6b0   : > { %7326 = vst [vmem:[%s12674_s4 + $0xa18] sm:$0xff] %v6270_v9  ;;  %4073 = vmatmul.f32.gmra.mxu2 %v12330_v35  ;;  %5075 = vmatpush.msra.mxu3 %v9017_v33  ;;  %v9023_v9 = vld [vmem:[#allocation8 + $0xf0] sm:$0xff]  ;;  %v9025_v33 = vld [vmem:[#allocation8 + $0xf8] sm:$0xff] }
 0x6b1   : > { %4186 = vmatmul.f32.gmra.mxu3 %v12330_v35  ;;  %5188 = vmatpush.msra.mxu0 %v9018_v45  ;;  %v9026_v45 = vld [vmem:[#allocation8 + $0x60] sm:$0xff] }
 0x6b2   : > { %v3902_v31 = vpop.f32.mrf.mxu0  ;;  %5301 = vmatpush.msra.mxu1 %v9019_v4  ;;  %4963 = vmatpush.msra.mxu2 %v9020_v16  ;;  %v9027_v4 = vld [vmem:[%s10273_s22 + $0xa08] sm:$0xff]  ;;  %v9028_v16 = vld [vmem:[%s10273_s22 + $0xa98] sm:$0xff] }
 0x6b3   : > { %v6301_v24 = vmul.f32 %v9021_v62, %v3902_v31  ;;  %v3670_v49 = vpop.f32.mrf.mxu2  ;;  %5076 = vmatpush.msra.mxu3 %v9022_v21  ;;  %5189 = vmatpush.msra.mxu0 %v9023_v9  ;;  %v9029_v21 = vld [vmem:[#allocation8 + $0x68] sm:$0xff]  ;;  %v9031_v9 = vld [vmem:[#allocation8 + $0x78] sm:$0xff] }
 0x6b4   : > { %v6267_v40 = vmul.f32 %v9024_v36, %v3670_v49  ;;  %v3783_v1 = vpop.f32.mrf.mxu3  ;;  %v4012_v15 = vpop.f32.mrf.mxu1  ;;  %5302 = vmatpush.msra.mxu1 %v9025_v33  ;;  %4964 = vmatpush.msra.mxu2 %v9026_v45  ;;  %v9030_v49 = vld [vmem:[#allocation8 + $0x70] sm:$0xff] }
 0x6b5   : > { %7357 = vst [vmem:[%s12674_s4 + $0xb10] sm:$0xff] %v6301_v24  ;;  %v6268_v31 = vmul.f32 %v9027_v4, %v3783_v1  ;;  %v6286_v62 = vmul.f32 %v9028_v16, %v4012_v15  ;;  %4305 = vmatmul.f32.gmra.mxu0 %v12386_v32  ;;  %5077 = vmatpush.msra.mxu3 %v9029_v21  ;;  %v9032_v36 = vld [vmem:[%s10273_s22 + $0xb90] sm:$0xff]  ;;  %v9033_v15 = vld [vmem:[%s10273_s22 + $0xa80] sm:$0xff] }
 0x6b6   : > { %7323 = vst [vmem:[%s12674_s4 + $0xa00] sm:$0xff] %v6267_v40  ;;  %5190 = vmatpush.msra.mxu0 %v9030_v49  ;;  %5303 = vmatpush.msra.mxu1 %v9031_v9  ;;  %v9036_v9 = vld [vmem:[%s10273_s22 + $0xc10] sm:$0xff] }
 0x6b7   : > { %7324 = vst [vmem:[%s12674_s4 + $0xa08] sm:$0xff] %v6268_v31  ;;  %4415 = vmatmul.f32.gmra.mxu1 %v12358_v58  ;;  %v9034_v31 = vld [vmem:[%s10273_s22 + $0xa88] sm:$0xff] }
 0x6b8   : > { %7342 = vst [vmem:[%s12674_s4 + $0xa98] sm:$0xff] %v6286_v62  ;;  %4076 = vmatmul.f32.gmra.mxu2 %v12358_v58  ;;  %v9035_v62 = vld [vmem:[%s10273_s22 + $0xb18] sm:$0xff] }
 0x6b9   : > { %4189 = vmatmul.f32.gmra.mxu3 %v12358_v58 }
 0x6ba   : > { %v3905_v24 = vpop.f32.mrf.mxu0 }
 0x6bb   : > { %v6317_v40 = vmul.f32 %v9032_v36, %v3905_v24  ;;  %v3673_v1 = vpop.f32.mrf.mxu2 }
 0x6bc   : > { %v6283_v33 = vmul.f32 %v9033_v15, %v3673_v1  ;;  %v3786_v45 = vpop.f32.mrf.mxu3  ;;  %v4015_v4 = vpop.f32.mrf.mxu1 }
 0x6bd   : > { %7373 = vst [vmem:[%s12674_s4 + $0xb90] sm:$0xff] %v6317_v40  ;;  %v6284_v16 = vmul.f32 %v9034_v31, %v3786_v45  ;;  %v6302_v21 = vmul.f32 %v9035_v62, %v4015_v4  ;;  %4308 = vmatmul.f32.gmra.mxu0 %v12414_v55  ;;  %v9037_v40 = vld [vmem:[%s10273_s22 + $0xb00] sm:$0xff]  ;;  %v9038_v45 = vld [vmem:[%s10273_s22 + $0xb08] sm:$0xff]  ;;  %v9039_v31 = vld [vmem:[%s10273_s22 + $0xb98] sm:$0xff] }
 0x6be   : > { %7339 = vst [vmem:[%s12674_s4 + $0xa80] sm:$0xff] %v6283_v33 }
 0x6bf   : > { %7340 = vst [vmem:[%s12674_s4 + $0xa88] sm:$0xff] %v6284_v16  ;;  %4418 = vmatmul.f32.gmra.mxu1 %v12386_v32 }
 0x6c0   : > { %7358 = vst [vmem:[%s12674_s4 + $0xb18] sm:$0xff] %v6302_v21  ;;  %4079 = vmatmul.f32.gmra.mxu2 %v12386_v32  ;;  %v9040_v21 = vld [vmem:[%s10273_s22 + $0xc90] sm:$0xff] }
 0x6c1   : > { %4192 = vmatmul.f32.gmra.mxu3 %v12386_v32 }
 0x6c2   : > { %v3908_v49 = vpop.f32.mrf.mxu0 }
 0x6c3   : > { %v6333_v24 = vmul.f32 %v9036_v9, %v3908_v49  ;;  %v3676_v36 = vpop.f32.mrf.mxu2 }
 0x6c4   : > { %v6299_v1 = vmul.f32 %v9037_v40, %v3676_v36  ;;  %v3789_v15 = vpop.f32.mrf.mxu3  ;;  %v4018_v33 = vpop.f32.mrf.mxu1 }
 0x6c5   : > { %7389 = vst [vmem:[%s12674_s4 + $0xc10] sm:$0xff] %v6333_v24  ;;  %v6300_v4 = vmul.f32 %v9038_v45, %v3789_v15  ;;  %v6318_v16 = vmul.f32 %v9039_v31, %v4018_v33  ;;  %4311 = vmatmul.f32.gmra.mxu0 %v12442_v17  ;;  %v9041_v24 = vld [vmem:[%s10273_s22 + $0xb80] sm:$0xff]  ;;  %v9042_v15 = vld [vmem:[%s10273_s22 + $0xb88] sm:$0xff]  ;;  %v9043_v45 = vld [vmem:[%s10273_s22 + $0xc18] sm:$0xff] }
 0x6c6   : > { %7355 = vst [vmem:[%s12674_s4 + $0xb00] sm:$0xff] %v6299_v1 }
 0x6c7   : > { %7356 = vst [vmem:[%s12674_s4 + $0xb08] sm:$0xff] %v6300_v4  ;;  %4421 = vmatmul.f32.gmra.mxu1 %v12414_v55 }
 0x6c8   : > { %7374 = vst [vmem:[%s12674_s4 + $0xb98] sm:$0xff] %v6318_v16  ;;  %4082 = vmatmul.f32.gmra.mxu2 %v12414_v55  ;;  %v9044_v16 = vld [vmem:[%s10273_s22 + $0xd10] sm:$0xff] }
 0x6c9   : > { %4195 = vmatmul.f32.gmra.mxu3 %v12414_v55 }
 0x6ca   : > { %v3911_v62 = vpop.f32.mrf.mxu0 }
 0x6cb   : > { %v6349_v49 = vmul.f32 %v9040_v21, %v3911_v62  ;;  %v3679_v9 = vpop.f32.mrf.mxu2 }
 0x6cc   : > { %v6315_v36 = vmul.f32 %v9041_v24, %v3679_v9  ;;  %v3792_v40 = vpop.f32.mrf.mxu3  ;;  %v4021_v1 = vpop.f32.mrf.mxu1 }
 0x6cd   : > { %7405 = vst [vmem:[%s12674_s4 + $0xc90] sm:$0xff] %v6349_v49  ;;  %v6316_v33 = vmul.f32 %v9042_v15, %v3792_v40  ;;  %v6334_v4 = vmul.f32 %v9043_v45, %v4021_v1  ;;  %4314 = vmatmul.f32.gmra.mxu0 %v12470_v30  ;;  %v9045_v49 = vld [vmem:[%s10273_s22 + $0xc00] sm:$0xff]  ;;  %v9046_v40 = vld [vmem:[%s10273_s22 + $0xc08] sm:$0xff]  ;;  %v9047_v15 = vld [vmem:[%s10273_s22 + $0xc98] sm:$0xff] }
 0x6ce   : > { %7371 = vst [vmem:[%s12674_s4 + $0xb80] sm:$0xff] %v6315_v36 }
 0x6cf   : > { %7372 = vst [vmem:[%s12674_s4 + $0xb88] sm:$0xff] %v6316_v33  ;;  %4424 = vmatmul.f32.gmra.mxu1 %v12442_v17 }
 0x6d0   : > { %7390 = vst [vmem:[%s12674_s4 + $0xc18] sm:$0xff] %v6334_v4  ;;  %4085 = vmatmul.f32.gmra.mxu2 %v12442_v17  ;;  %v9048_v4 = vld [vmem:[%s10273_s22 + $0xd90] sm:$0xff] }
 0x6d1   : > { %4198 = vmatmul.f32.gmra.mxu3 %v12442_v17 }
 0x6d2   : > { %v3914_v31 = vpop.f32.mrf.mxu0 }
 0x6d3   : > { %v6365_v62 = vmul.f32 %v9044_v16, %v3914_v31  ;;  %v3682_v21 = vpop.f32.mrf.mxu2 }
 0x6d4   : > { %v6331_v9 = vmul.f32 %v9045_v49, %v3682_v21  ;;  %v3795_v24 = vpop.f32.mrf.mxu3  ;;  %v4024_v36 = vpop.f32.mrf.mxu1 }
 0x6d5   : > { %7421 = vst [vmem:[%s12674_s4 + $0xd10] sm:$0xff] %v6365_v62  ;;  %v6332_v1 = vmul.f32 %v9046_v40, %v3795_v24  ;;  %v6350_v33 = vmul.f32 %v9047_v15, %v4024_v36  ;;  %4317 = vmatmul.f32.gmra.mxu0 %v12498_v56  ;;  %v9049_v62 = vld [vmem:[%s10273_s22 + $0xc80] sm:$0xff]  ;;  %v9050_v24 = vld [vmem:[%s10273_s22 + $0xc88] sm:$0xff]  ;;  %v9051_v40 = vld [vmem:[%s10273_s22 + $0xd18] sm:$0xff] }
 0x6d6   : > { %7387 = vst [vmem:[%s12674_s4 + $0xc00] sm:$0xff] %v6331_v9 }
 0x6d7   : > { %7388 = vst [vmem:[%s12674_s4 + $0xc08] sm:$0xff] %v6332_v1  ;;  %4427 = vmatmul.f32.gmra.mxu1 %v12470_v30 }
 0x6d8   : > { %7406 = vst [vmem:[%s12674_s4 + $0xc98] sm:$0xff] %v6350_v33  ;;  %4088 = vmatmul.f32.gmra.mxu2 %v12470_v30  ;;  %v9052_v33 = vld [vmem:[%s10273_s22 + $0xe10] sm:$0xff] }
 0x6d9   : > { %4201 = vmatmul.f32.gmra.mxu3 %v12470_v30 }
 0x6da   : > { %v3917_v45 = vpop.f32.mrf.mxu0 }
 0x6db   : > { %v6381_v31 = vmul.f32 %v9048_v4, %v3917_v45  ;;  %v3685_v16 = vpop.f32.mrf.mxu2 }
 0x6dc   : > { %v6347_v21 = vmul.f32 %v9049_v62, %v3685_v16  ;;  %v3798_v49 = vpop.f32.mrf.mxu3  ;;  %v4027_v9 = vpop.f32.mrf.mxu1 }
 0x6dd   : > { %7437 = vst [vmem:[%s12674_s4 + $0xd90] sm:$0xff] %v6381_v31  ;;  %v6348_v36 = vmul.f32 %v9050_v24, %v3798_v49  ;;  %v6366_v1 = vmul.f32 %v9051_v40, %v4027_v9  ;;  %4320 = vmatmul.f32.gmra.mxu0 %v12526_v63  ;;  %v9053_v31 = vld [vmem:[%s10273_s22 + $0xd00] sm:$0xff]  ;;  %v9054_v49 = vld [vmem:[%s10273_s22 + $0xd08] sm:$0xff]  ;;  %v9055_v24 = vld [vmem:[%s10273_s22 + $0xd98] sm:$0xff] }
 0x6de   : > { %7403 = vst [vmem:[%s12674_s4 + $0xc80] sm:$0xff] %v6347_v21 }
 0x6df   : > { %7404 = vst [vmem:[%s12674_s4 + $0xc88] sm:$0xff] %v6348_v36  ;;  %4430 = vmatmul.f32.gmra.mxu1 %v12498_v56 }
 0x6e0   : > { %7422 = vst [vmem:[%s12674_s4 + $0xd18] sm:$0xff] %v6366_v1  ;;  %4091 = vmatmul.f32.gmra.mxu2 %v12498_v56  ;;  %v9056_v1 = vld [vmem:[%s10273_s22 + $0xe90] sm:$0xff] }
 0x6e1   : > { %4204 = vmatmul.f32.gmra.mxu3 %v12498_v56 }
 0x6e2   : > { %v3920_v15 = vpop.f32.mrf.mxu0 }
 0x6e3   : > { %v6397_v45 = vmul.f32 %v9052_v33, %v3920_v15  ;;  %v3688_v4 = vpop.f32.mrf.mxu2 }
 0x6e4   : > { %v6363_v16 = vmul.f32 %v9053_v31, %v3688_v4  ;;  %v3801_v62 = vpop.f32.mrf.mxu3  ;;  %v4030_v21 = vpop.f32.mrf.mxu1 }
 0x6e5   : > { %7453 = vst [vmem:[%s12674_s4 + $0xe10] sm:$0xff] %v6397_v45  ;;  %v6364_v9 = vmul.f32 %v9054_v49, %v3801_v62  ;;  %v6382_v36 = vmul.f32 %v9055_v24, %v4030_v21  ;;  %4323 = vmatmul.f32.gmra.mxu0 %v12554_v54  ;;  %v9057_v45 = vld [vmem:[%s10273_s22 + $0xd80] sm:$0xff]  ;;  %v9058_v62 = vld [vmem:[%s10273_s22 + $0xd88] sm:$0xff]  ;;  %v9059_v49 = vld [vmem:[%s10273_s22 + $0xe18] sm:$0xff] }
 0x6e6   : > { %7419 = vst [vmem:[%s12674_s4 + $0xd00] sm:$0xff] %v6363_v16 }
 0x6e7   : > { %7420 = vst [vmem:[%s12674_s4 + $0xd08] sm:$0xff] %v6364_v9  ;;  %4433 = vmatmul.f32.gmra.mxu1 %v12526_v63 }
 0x6e8   : > { %7438 = vst [vmem:[%s12674_s4 + $0xd98] sm:$0xff] %v6382_v36  ;;  %4094 = vmatmul.f32.gmra.mxu2 %v12526_v63  ;;  %v9060_v36 = vld [vmem:[%s10273_s22 + $0xf10] sm:$0xff] }
 0x6e9   : > { %4207 = vmatmul.f32.gmra.mxu3 %v12526_v63 }
 0x6ea   : > { %v3923_v40 = vpop.f32.mrf.mxu0 }
 0x6eb   : > { %v6413_v15 = vmul.f32 %v9056_v1, %v3923_v40  ;;  %v3691_v33 = vpop.f32.mrf.mxu2 }
 0x6ec   : > { %v6379_v4 = vmul.f32 %v9057_v45, %v3691_v33  ;;  %v3804_v31 = vpop.f32.mrf.mxu3  ;;  %v4033_v16 = vpop.f32.mrf.mxu1 }
 0x6ed   : > { %7469 = vst [vmem:[%s12674_s4 + $0xe90] sm:$0xff] %v6413_v15  ;;  %v6380_v21 = vmul.f32 %v9058_v62, %v3804_v31  ;;  %v6398_v9 = vmul.f32 %v9059_v49, %v4033_v16  ;;  %4326 = vmatmul.f32.gmra.mxu0 %v12582_v52  ;;  %v9061_v15 = vld [vmem:[%s10273_s22 + $0xe00] sm:$0xff]  ;;  %v9062_v31 = vld [vmem:[%s10273_s22 + $0xe08] sm:$0xff]  ;;  %v9063_v62 = vld [vmem:[%s10273_s22 + $0xe98] sm:$0xff] }
 0x6ee   : > { %7435 = vst [vmem:[%s12674_s4 + $0xd80] sm:$0xff] %v6379_v4 }
 0x6ef   : > { %7436 = vst [vmem:[%s12674_s4 + $0xd88] sm:$0xff] %v6380_v21  ;;  %4436 = vmatmul.f32.gmra.mxu1 %v12554_v54 }
 0x6f0   : > { %7454 = vst [vmem:[%s12674_s4 + $0xe18] sm:$0xff] %v6398_v9  ;;  %4097 = vmatmul.f32.gmra.mxu2 %v12554_v54  ;;  %v9064_v9 = vld [vmem:[%s10273_s22 + $0xf90] sm:$0xff] }
 0x6f1   : > { %4210 = vmatmul.f32.gmra.mxu3 %v12554_v54 }
 0x6f2   : > { %v3926_v24 = vpop.f32.mrf.mxu0 }
 0x6f3   : > { %v6429_v40 = vmul.f32 %v9060_v36, %v3926_v24  ;;  %v3694_v1 = vpop.f32.mrf.mxu2 }
 0x6f4   : > { %v6395_v33 = vmul.f32 %v9061_v15, %v3694_v1  ;;  %v3807_v45 = vpop.f32.mrf.mxu3  ;;  %v4036_v4 = vpop.f32.mrf.mxu1 }
 0x6f5   : > { %7485 = vst [vmem:[%s12674_s4 + $0xf10] sm:$0xff] %v6429_v40  ;;  %v6396_v16 = vmul.f32 %v9062_v31, %v3807_v45  ;;  %v6414_v21 = vmul.f32 %v9063_v62, %v4036_v4  ;;  %4329 = vmatmul.f32.gmra.mxu0 %v12610_v46  ;;  %v9065_v40 = vld [vmem:[%s10273_s22 + $0xe80] sm:$0xff]  ;;  %v9066_v45 = vld [vmem:[%s10273_s22 + $0xe88] sm:$0xff]  ;;  %v9067_v31 = vld [vmem:[%s10273_s22 + $0xf18] sm:$0xff] }
 0x6f6   : > { %7451 = vst [vmem:[%s12674_s4 + $0xe00] sm:$0xff] %v6395_v33 }
 0x6f7   : > { %7452 = vst [vmem:[%s12674_s4 + $0xe08] sm:$0xff] %v6396_v16  ;;  %4439 = vmatmul.f32.gmra.mxu1 %v12582_v52 }
 0x6f8   : > { %7470 = vst [vmem:[%s12674_s4 + $0xe98] sm:$0xff] %v6414_v21  ;;  %4100 = vmatmul.f32.gmra.mxu2 %v12582_v52  ;;  %v9068_v21 = vld [vmem:[%s10273_s22 + $0x30] sm:$0xff] }
 0x6f9   : > { %4213 = vmatmul.f32.gmra.mxu3 %v12582_v52 }
 0x6fa   : > { %v3929_v49 = vpop.f32.mrf.mxu0 }
 0x6fb   : > { %v6445_v24 = vmul.f32 %v9064_v9, %v3929_v49  ;;  %v3697_v36 = vpop.f32.mrf.mxu2 }
 0x6fc   : > { %v6411_v1 = vmul.f32 %v9065_v40, %v3697_v36  ;;  %v3810_v15 = vpop.f32.mrf.mxu3  ;;  %v4039_v33 = vpop.f32.mrf.mxu1 }
 0x6fd   : > { %7501 = vst [vmem:[%s12674_s4 + $0xf90] sm:$0xff] %v6445_v24  ;;  %v6412_v4 = vmul.f32 %v9066_v45, %v3810_v15  ;;  %v6430_v16 = vmul.f32 %v9067_v31, %v4039_v33  ;;  %4332 = vmatmul.f32.gmra.mxu0 %v12638_v50  ;;  %v9069_v24 = vld [vmem:[%s10273_s22 + $0xf00] sm:$0xff]  ;;  %v9070_v15 = vld [vmem:[%s10273_s22 + $0xf08] sm:$0xff]  ;;  %v9071_v45 = vld [vmem:[%s10273_s22 + $0xf98] sm:$0xff] }
 0x6fe   : > { %7467 = vst [vmem:[%s12674_s4 + $0xe80] sm:$0xff] %v6411_v1 }
 0x6ff   : > { %7468 = vst [vmem:[%s12674_s4 + $0xe88] sm:$0xff] %v6412_v4  ;;  %4442 = vmatmul.f32.gmra.mxu1 %v12610_v46 }
 0x700   : > { %7486 = vst [vmem:[%s12674_s4 + $0xf18] sm:$0xff] %v6430_v16  ;;  %4103 = vmatmul.f32.gmra.mxu2 %v12610_v46  ;;  %v9072_v16 = vld [vmem:[%s10273_s22 + $0xb0] sm:$0xff] }
 0x701   : > { %4216 = vmatmul.f32.gmra.mxu3 %v12610_v46 }
 0x702   : > { %v4288_v62 = vpop.f32.mrf.mxu0 }
 0x703   : > { %v5953_v49 = vmul.f32 %v9068_v21, %v4288_v62  ;;  %v3700_v9 = vpop.f32.mrf.mxu2 }
 0x704   : > { %v6427_v36 = vmul.f32 %v9069_v24, %v3700_v9  ;;  %v3813_v40 = vpop.f32.mrf.mxu3  ;;  %v4042_v1 = vpop.f32.mrf.mxu1 }
 0x705   : > { %7009 = vst [vmem:[%s12674_s4 + $0x30] sm:$0xff] %v5953_v49  ;;  %v6428_v33 = vmul.f32 %v9070_v15, %v3813_v40  ;;  %v6446_v4 = vmul.f32 %v9071_v45, %v4042_v1  ;;  %4335 = vmatmul.f32.gmra.mxu0 %v12666_v19  ;;  %v9073_v49 = vld [vmem:[%s10273_s22 + $0xf80] sm:$0xff]  ;;  %v9074_v40 = vld [vmem:[%s10273_s22 + $0xf88] sm:$0xff]  ;;  %v9075_v15 = vld [vmem:[%s10273_s22 + $0x38] sm:$0xff] }
 0x706   : > { %7483 = vst [vmem:[%s12674_s4 + $0xf00] sm:$0xff] %v6427_v36 }
 0x707   : > { %7484 = vst [vmem:[%s12674_s4 + $0xf08] sm:$0xff] %v6428_v33  ;;  %4445 = vmatmul.f32.gmra.mxu1 %v12638_v50 }
 0x708   : > { %7502 = vst [vmem:[%s12674_s4 + $0xf98] sm:$0xff] %v6446_v4  ;;  %4106 = vmatmul.f32.gmra.mxu2 %v12638_v50  ;;  %v9076_v4 = vld [vmem:[%s10273_s22 + $0x130] sm:$0xff] }
 0x709   : > { %4219 = vmatmul.f32.gmra.mxu3 %v12638_v50 }
 0x70a   : > { %v4291_v31 = vpop.f32.mrf.mxu0 }
 0x70b   : > { %v5969_v62 = vmul.f32 %v9072_v16, %v4291_v31  ;;  %v3703_v21 = vpop.f32.mrf.mxu2 }
 0x70c   : > { %v6443_v9 = vmul.f32 %v9073_v49, %v3703_v21  ;;  %v3816_v24 = vpop.f32.mrf.mxu3  ;;  %v4401_v36 = vpop.f32.mrf.mxu1 }
 0x70d   : > { %7025 = vst [vmem:[%s12674_s4 + $0xb0] sm:$0xff] %v5969_v62  ;;  %v6444_v1 = vmul.f32 %v9074_v40, %v3816_v24  ;;  %4338 = vmatmul.f32.gmra.mxu0 %v12695_v60  ;;  %v5954_v33 = vmul.f32 %v9075_v15, %v4401_v36  ;;  %v9077_v62 = vld [vmem:[%s10273_s22 + $0x20] sm:$0xff]  ;;  %v9078_v24 = vld [vmem:[%s10273_s22 + $0x28] sm:$0xff]  ;;  %v9079_v40 = vld [vmem:[%s10273_s22 + $0xb8] sm:$0xff] }
 0x70e   : > { %7499 = vst [vmem:[%s12674_s4 + $0xf80] sm:$0xff] %v6443_v9 }
 0x70f   : > { %7500 = vst [vmem:[%s12674_s4 + $0xf88] sm:$0xff] %v6444_v1  ;;  %4448 = vmatmul.f32.gmra.mxu1 %v12666_v19 }
 0x710   : > { %7010 = vst [vmem:[%s12674_s4 + $0x38] sm:$0xff] %v5954_v33  ;;  %4109 = vmatmul.f32.gmra.mxu2 %v12666_v19  ;;  %v9080_v33 = vld [vmem:[%s10273_s22 + $0x1b0] sm:$0xff] }
 0x711   : > { %4222 = vmatmul.f32.gmra.mxu3 %v12666_v19 }
 0x712   : > { %v4294_v45 = vpop.f32.mrf.mxu0 }
 0x713   : > { %v5985_v31 = vmul.f32 %v9076_v4, %v4294_v45  ;;  %v4062_v16 = vpop.f32.mrf.mxu2 }
 0x714   : > { %v5951_v21 = vmul.f32 %v9077_v62, %v4062_v16  ;;  %v4175_v49 = vpop.f32.mrf.mxu3  ;;  %v4404_v9 = vpop.f32.mrf.mxu1 }
 0x715   : > { %7041 = vst [vmem:[%s12674_s4 + $0x130] sm:$0xff] %v5985_v31  ;;  %v5952_v36 = vmul.f32 %v9078_v24, %v4175_v49  ;;  %4341 = vmatmul.f32.gmra.mxu0 %v12717_v47  ;;  %v5970_v1 = vmul.f32 %v9079_v40, %v4404_v9  ;;  %v9081_v31 = vld [vmem:[%s10273_s22 + $0xa0] sm:$0xff]  ;;  %v9082_v49 = vld [vmem:[%s10273_s22 + $0xa8] sm:$0xff]  ;;  %v9083_v24 = vld [vmem:[%s10273_s22 + $0x138] sm:$0xff] }
 0x716   : > { %7007 = vst [vmem:[%s12674_s4 + $0x20] sm:$0xff] %v5951_v21 }
 0x717   : > { %7008 = vst [vmem:[%s12674_s4 + $0x28] sm:$0xff] %v5952_v36  ;;  %4451 = vmatmul.f32.gmra.mxu1 %v12695_v60 }
 0x718   : > { %7026 = vst [vmem:[%s12674_s4 + $0xb8] sm:$0xff] %v5970_v1  ;;  %4112 = vmatmul.f32.gmra.mxu2 %v12695_v60  ;;  %v9084_v1 = vld [vmem:[%s10273_s22 + $0x230] sm:$0xff] }
 0x719   : > { %4225 = vmatmul.f32.gmra.mxu3 %v12695_v60 }
 0x71a   : > { %v4297_v15 = vpop.f32.mrf.mxu0 }
 0x71b   : > { %v6001_v45 = vmul.f32 %v9080_v33, %v4297_v15  ;;  %v4065_v4 = vpop.f32.mrf.mxu2 }
 0x71c   : > { %v5967_v16 = vmul.f32 %v9081_v31, %v4065_v4  ;;  %v4178_v62 = vpop.f32.mrf.mxu3  ;;  %v4407_v21 = vpop.f32.mrf.mxu1 }
 0x71d   : > { %7057 = vst [vmem:[%s12674_s4 + $0x1b0] sm:$0xff] %v6001_v45  ;;  %v5968_v9 = vmul.f32 %v9082_v49, %v4178_v62  ;;  %4344 = vmatmul.f32.gmra.mxu0 %v12733_v8  ;;  %v5986_v36 = vmul.f32 %v9083_v24, %v4407_v21  ;;  %v9085_v45 = vld [vmem:[%s10273_s22 + $0x120] sm:$0xff]  ;;  %v9086_v62 = vld [vmem:[%s10273_s22 + $0x128] sm:$0xff]  ;;  %v9087_v49 = vld [vmem:[%s10273_s22 + $0x1b8] sm:$0xff] }
 0x71e   : > { %7023 = vst [vmem:[%s12674_s4 + $0xa0] sm:$0xff] %v5967_v16 }
 0x71f   : > { %7024 = vst [vmem:[%s12674_s4 + $0xa8] sm:$0xff] %v5968_v9  ;;  %4454 = vmatmul.f32.gmra.mxu1 %v12717_v47 }
 0x720   : > { %7042 = vst [vmem:[%s12674_s4 + $0x138] sm:$0xff] %v5986_v36  ;;  %4115 = vmatmul.f32.gmra.mxu2 %v12717_v47  ;;  %v9088_v36 = vld [vmem:[%s10273_s22 + $0x2b0] sm:$0xff] }
 0x721   : > { %4228 = vmatmul.f32.gmra.mxu3 %v12717_v47 }
 0x722   : > { %v4300_v40 = vpop.f32.mrf.mxu0 }
 0x723   : > { %v6017_v15 = vmul.f32 %v9084_v1, %v4300_v40  ;;  %v4068_v33 = vpop.f32.mrf.mxu2 }
 0x724   : > { %v5983_v4 = vmul.f32 %v9085_v45, %v4068_v33  ;;  %v4181_v31 = vpop.f32.mrf.mxu3  ;;  %v4410_v16 = vpop.f32.mrf.mxu1 }
 0x725   : > { %7073 = vst [vmem:[%s12674_s4 + $0x230] sm:$0xff] %v6017_v15  ;;  %v5984_v21 = vmul.f32 %v9086_v62, %v4181_v31  ;;  %4347 = vmatmul.f32.gmra.mxu0 %v12749_v20  ;;  %v6002_v9 = vmul.f32 %v9087_v49, %v4410_v16  ;;  %v9089_v15 = vld [vmem:[%s10273_s22 + $0x1a0] sm:$0xff]  ;;  %v9090_v31 = vld [vmem:[%s10273_s22 + $0x1a8] sm:$0xff]  ;;  %v9091_v62 = vld [vmem:[%s10273_s22 + $0x238] sm:$0xff] }
 0x726   : > { %7039 = vst [vmem:[%s12674_s4 + $0x120] sm:$0xff] %v5983_v4 }
 0x727   : > { %7040 = vst [vmem:[%s12674_s4 + $0x128] sm:$0xff] %v5984_v21  ;;  %4457 = vmatmul.f32.gmra.mxu1 %v12733_v8 }
 0x728   : > { %7058 = vst [vmem:[%s12674_s4 + $0x1b8] sm:$0xff] %v6002_v9  ;;  %4118 = vmatmul.f32.gmra.mxu2 %v12733_v8  ;;  %v9092_v9 = vld [vmem:[%s10273_s22 + $0x330] sm:$0xff] }
 0x729   : > { %4231 = vmatmul.f32.gmra.mxu3 %v12733_v8 }
 0x72a   : > { %v4303_v24 = vpop.f32.mrf.mxu0 }
 0x72b   : > { %v6033_v40 = vmul.f32 %v9088_v36, %v4303_v24  ;;  %v4071_v1 = vpop.f32.mrf.mxu2 }
 0x72c   : > { %v5999_v33 = vmul.f32 %v9089_v15, %v4071_v1  ;;  %v4184_v45 = vpop.f32.mrf.mxu3  ;;  %v4413_v4 = vpop.f32.mrf.mxu1 }
 0x72d   : > { %7089 = vst [vmem:[%s12674_s4 + $0x2b0] sm:$0xff] %v6033_v40  ;;  %v6000_v16 = vmul.f32 %v9090_v31, %v4184_v45  ;;  %4350 = vmatmul.f32.gmra.mxu0 %v12765_v18  ;;  %v6018_v21 = vmul.f32 %v9091_v62, %v4413_v4  ;;  %v9093_v40 = vld [vmem:[%s10273_s22 + $0x220] sm:$0xff]  ;;  %v9094_v45 = vld [vmem:[%s10273_s22 + $0x228] sm:$0xff]  ;;  %v9095_v31 = vld [vmem:[%s10273_s22 + $0x2b8] sm:$0xff] }
 0x72e   : > { %7055 = vst [vmem:[%s12674_s4 + $0x1a0] sm:$0xff] %v5999_v33 }
 0x72f   : > { %7056 = vst [vmem:[%s12674_s4 + $0x1a8] sm:$0xff] %v6000_v16  ;;  %4460 = vmatmul.f32.gmra.mxu1 %v12749_v20 }
 0x730   : > { %7074 = vst [vmem:[%s12674_s4 + $0x238] sm:$0xff] %v6018_v21  ;;  %4121 = vmatmul.f32.gmra.mxu2 %v12749_v20  ;;  %v9096_v21 = vld [vmem:[%s10273_s22 + $0x3b0] sm:$0xff] }
 0x731   : > { %4234 = vmatmul.f32.gmra.mxu3 %v12749_v20 }
 0x732   : > { %v4306_v49 = vpop.f32.mrf.mxu0 }
 0x733   : > { %v6049_v24 = vmul.f32 %v9092_v9, %v4306_v49  ;;  %v4074_v36 = vpop.f32.mrf.mxu2 }
 0x734   : > { %v6015_v1 = vmul.f32 %v9093_v40, %v4074_v36  ;;  %v4187_v15 = vpop.f32.mrf.mxu3  ;;  %v4416_v33 = vpop.f32.mrf.mxu1 }
 0x735   : > { %7105 = vst [vmem:[%s12674_s4 + $0x330] sm:$0xff] %v6049_v24  ;;  %v6016_v4 = vmul.f32 %v9094_v45, %v4187_v15  ;;  %4353 = vmatmul.f32.gmra.mxu0 %v12781_v11  ;;  %v6034_v16 = vmul.f32 %v9095_v31, %v4416_v33  ;;  %v9097_v24 = vld [vmem:[%s10273_s22 + $0x2a0] sm:$0xff]  ;;  %v9098_v15 = vld [vmem:[%s10273_s22 + $0x2a8] sm:$0xff]  ;;  %v9099_v45 = vld [vmem:[%s10273_s22 + $0x338] sm:$0xff] }
 0x736   : > { %7071 = vst [vmem:[%s12674_s4 + $0x220] sm:$0xff] %v6015_v1 }
 0x737   : > { %7072 = vst [vmem:[%s12674_s4 + $0x228] sm:$0xff] %v6016_v4  ;;  %4463 = vmatmul.f32.gmra.mxu1 %v12765_v18 }
 0x738   : > { %7090 = vst [vmem:[%s12674_s4 + $0x2b8] sm:$0xff] %v6034_v16  ;;  %4124 = vmatmul.f32.gmra.mxu2 %v12765_v18  ;;  %v9100_v16 = vld [vmem:[%s10273_s22 + $0x430] sm:$0xff] }
 0x739   : > { %4237 = vmatmul.f32.gmra.mxu3 %v12765_v18 }
 0x73a   : > { %v4309_v62 = vpop.f32.mrf.mxu0 }
 0x73b   : > { %v6065_v49 = vmul.f32 %v9096_v21, %v4309_v62  ;;  %v4077_v9 = vpop.f32.mrf.mxu2 }
 0x73c   : > { %v6031_v36 = vmul.f32 %v9097_v24, %v4077_v9  ;;  %v4190_v40 = vpop.f32.mrf.mxu3  ;;  %v4419_v1 = vpop.f32.mrf.mxu1 }
 0x73d   : > { %7121 = vst [vmem:[%s12674_s4 + $0x3b0] sm:$0xff] %v6065_v49  ;;  %v6032_v33 = vmul.f32 %v9098_v15, %v4190_v40  ;;  %4356 = vmatmul.f32.gmra.mxu0 %v12797_v51  ;;  %v6050_v4 = vmul.f32 %v9099_v45, %v4419_v1  ;;  %v9101_v49 = vld [vmem:[%s10273_s22 + $0x320] sm:$0xff]  ;;  %v9102_v40 = vld [vmem:[%s10273_s22 + $0x328] sm:$0xff]  ;;  %v9103_v15 = vld [vmem:[%s10273_s22 + $0x3b8] sm:$0xff] }
 0x73e   : > { %7087 = vst [vmem:[%s12674_s4 + $0x2a0] sm:$0xff] %v6031_v36 }
 0x73f   : > { %7088 = vst [vmem:[%s12674_s4 + $0x2a8] sm:$0xff] %v6032_v33  ;;  %4466 = vmatmul.f32.gmra.mxu1 %v12781_v11 }
 0x740   : > { %7106 = vst [vmem:[%s12674_s4 + $0x338] sm:$0xff] %v6050_v4  ;;  %4127 = vmatmul.f32.gmra.mxu2 %v12781_v11  ;;  %v9104_v4 = vld [vmem:[%s10273_s22 + $0x4b0] sm:$0xff] }
 0x741   : > { %4240 = vmatmul.f32.gmra.mxu3 %v12781_v11 }
 0x742   : > { %v4312_v31 = vpop.f32.mrf.mxu0 }
 0x743   : > { %v6081_v62 = vmul.f32 %v9100_v16, %v4312_v31  ;;  %v4080_v21 = vpop.f32.mrf.mxu2 }
 0x744   : > { %v6047_v9 = vmul.f32 %v9101_v49, %v4080_v21  ;;  %v4193_v24 = vpop.f32.mrf.mxu3  ;;  %v4422_v36 = vpop.f32.mrf.mxu1 }
 0x745   : > { %7137 = vst [vmem:[%s12674_s4 + $0x430] sm:$0xff] %v6081_v62  ;;  %v6048_v1 = vmul.f32 %v9102_v40, %v4193_v24  ;;  %4359 = vmatmul.f32.gmra.mxu0 %v12813_v27  ;;  %v6066_v33 = vmul.f32 %v9103_v15, %v4422_v36  ;;  %v9105_v62 = vld [vmem:[%s10273_s22 + $0x3a0] sm:$0xff]  ;;  %v9106_v24 = vld [vmem:[%s10273_s22 + $0x3a8] sm:$0xff]  ;;  %v9107_v40 = vld [vmem:[%s10273_s22 + $0x438] sm:$0xff] }
 0x746   : > { %7103 = vst [vmem:[%s12674_s4 + $0x320] sm:$0xff] %v6047_v9 }
 0x747   : > { %7104 = vst [vmem:[%s12674_s4 + $0x328] sm:$0xff] %v6048_v1  ;;  %4469 = vmatmul.f32.gmra.mxu1 %v12797_v51 }
 0x748   : > { %7122 = vst [vmem:[%s12674_s4 + $0x3b8] sm:$0xff] %v6066_v33  ;;  %4130 = vmatmul.f32.gmra.mxu2 %v12797_v51  ;;  %v9108_v33 = vld [vmem:[%s10273_s22 + $0x530] sm:$0xff] }
 0x749   : > { %4243 = vmatmul.f32.gmra.mxu3 %v12797_v51 }
 0x74a   : > { %v4315_v45 = vpop.f32.mrf.mxu0 }
 0x74b   : > { %v6097_v31 = vmul.f32 %v9104_v4, %v4315_v45  ;;  %v4083_v16 = vpop.f32.mrf.mxu2 }
 0x74c   : > { %v6063_v21 = vmul.f32 %v9105_v62, %v4083_v16  ;;  %v4196_v49 = vpop.f32.mrf.mxu3  ;;  %v4425_v9 = vpop.f32.mrf.mxu1 }
 0x74d   : > { %7153 = vst [vmem:[%s12674_s4 + $0x4b0] sm:$0xff] %v6097_v31  ;;  %v6064_v36 = vmul.f32 %v9106_v24, %v4196_v49  ;;  %4362 = vmatmul.f32.gmra.mxu0 %v12829_v10  ;;  %v6082_v1 = vmul.f32 %v9107_v40, %v4425_v9  ;;  %v9109_v31 = vld [vmem:[%s10273_s22 + $0x420] sm:$0xff]  ;;  %v9110_v49 = vld [vmem:[%s10273_s22 + $0x428] sm:$0xff]  ;;  %v9111_v24 = vld [vmem:[%s10273_s22 + $0x4b8] sm:$0xff] }
 0x74e   : > { %7119 = vst [vmem:[%s12674_s4 + $0x3a0] sm:$0xff] %v6063_v21 }
 0x74f   : > { %7120 = vst [vmem:[%s12674_s4 + $0x3a8] sm:$0xff] %v6064_v36  ;;  %4472 = vmatmul.f32.gmra.mxu1 %v12813_v27 }
 0x750   : > { %7138 = vst [vmem:[%s12674_s4 + $0x438] sm:$0xff] %v6082_v1  ;;  %4133 = vmatmul.f32.gmra.mxu2 %v12813_v27  ;;  %v9112_v1 = vld [vmem:[%s10273_s22 + $0x5b0] sm:$0xff] }
 0x751   : > { %4246 = vmatmul.f32.gmra.mxu3 %v12813_v27 }
 0x752   : > { %v4318_v15 = vpop.f32.mrf.mxu0 }
 0x753   : > { %v6113_v45 = vmul.f32 %v9108_v33, %v4318_v15  ;;  %v4086_v4 = vpop.f32.mrf.mxu2 }
 0x754   : > { %v6079_v16 = vmul.f32 %v9109_v31, %v4086_v4  ;;  %v4199_v62 = vpop.f32.mrf.mxu3  ;;  %v4428_v21 = vpop.f32.mrf.mxu1 }
 0x755   : > { %7169 = vst [vmem:[%s12674_s4 + $0x530] sm:$0xff] %v6113_v45  ;;  %v6080_v9 = vmul.f32 %v9110_v49, %v4199_v62  ;;  %4365 = vmatmul.f32.gmra.mxu0 %v12845_v0  ;;  %v6098_v36 = vmul.f32 %v9111_v24, %v4428_v21  ;;  %v9113_v45 = vld [vmem:[%s10273_s22 + $0x4a0] sm:$0xff]  ;;  %v9114_v62 = vld [vmem:[%s10273_s22 + $0x4a8] sm:$0xff]  ;;  %v9115_v49 = vld [vmem:[%s10273_s22 + $0x538] sm:$0xff] }
 0x756   : > { %7135 = vst [vmem:[%s12674_s4 + $0x420] sm:$0xff] %v6079_v16 }
 0x757   : > { %7136 = vst [vmem:[%s12674_s4 + $0x428] sm:$0xff] %v6080_v9  ;;  %4475 = vmatmul.f32.gmra.mxu1 %v12829_v10 }
 0x758   : > { %7154 = vst [vmem:[%s12674_s4 + $0x4b8] sm:$0xff] %v6098_v36  ;;  %4136 = vmatmul.f32.gmra.mxu2 %v12829_v10  ;;  %v9116_v36 = vld [vmem:[%s10273_s22 + $0x630] sm:$0xff] }
 0x759   : > { %4249 = vmatmul.f32.gmra.mxu3 %v12829_v10 }
 0x75a   : > { %v4321_v40 = vpop.f32.mrf.mxu0 }
 0x75b   : > { %v6129_v15 = vmul.f32 %v9112_v1, %v4321_v40  ;;  %v4089_v33 = vpop.f32.mrf.mxu2 }
 0x75c   : > { %v6095_v4 = vmul.f32 %v9113_v45, %v4089_v33  ;;  %v4202_v31 = vpop.f32.mrf.mxu3  ;;  %v4431_v16 = vpop.f32.mrf.mxu1 }
 0x75d   : > { %7185 = vst [vmem:[%s12674_s4 + $0x5b0] sm:$0xff] %v6129_v15  ;;  %v6096_v21 = vmul.f32 %v9114_v62, %v4202_v31  ;;  %4368 = vmatmul.f32.gmra.mxu0 %v12861_v7  ;;  %v6114_v9 = vmul.f32 %v9115_v49, %v4431_v16  ;;  %v9117_v15 = vld [vmem:[%s10273_s22 + $0x520] sm:$0xff]  ;;  %v9118_v31 = vld [vmem:[%s10273_s22 + $0x528] sm:$0xff]  ;;  %v9119_v62 = vld [vmem:[%s10273_s22 + $0x5b8] sm:$0xff] }
 0x75e   : > { %7151 = vst [vmem:[%s12674_s4 + $0x4a0] sm:$0xff] %v6095_v4 }
 0x75f   : > { %7152 = vst [vmem:[%s12674_s4 + $0x4a8] sm:$0xff] %v6096_v21  ;;  %4478 = vmatmul.f32.gmra.mxu1 %v12845_v0 }
 0x760   : > { %7170 = vst [vmem:[%s12674_s4 + $0x538] sm:$0xff] %v6114_v9  ;;  %4139 = vmatmul.f32.gmra.mxu2 %v12845_v0  ;;  %v9120_v9 = vld [vmem:[%s10273_s22 + $0x6b0] sm:$0xff] }
 0x761   : > { %4252 = vmatmul.f32.gmra.mxu3 %v12845_v0 }
 0x762   : > { %v4324_v24 = vpop.f32.mrf.mxu0 }
 0x763   : > { %v6145_v40 = vmul.f32 %v9116_v36, %v4324_v24  ;;  %v4092_v1 = vpop.f32.mrf.mxu2 }
 0x764   : > { %v6111_v33 = vmul.f32 %v9117_v15, %v4092_v1  ;;  %v4205_v45 = vpop.f32.mrf.mxu3  ;;  %v4434_v4 = vpop.f32.mrf.mxu1 }
 0x765   : > { %7201 = vst [vmem:[%s12674_s4 + $0x630] sm:$0xff] %v6145_v40  ;;  %v6112_v16 = vmul.f32 %v9118_v31, %v4205_v45  ;;  %4371 = vmatmul.f32.gmra.mxu0 %v12877_v42  ;;  %v6130_v21 = vmul.f32 %v9119_v62, %v4434_v4  ;;  %v9121_v40 = vld [vmem:[%s10273_s22 + $0x5a0] sm:$0xff]  ;;  %v9122_v45 = vld [vmem:[%s10273_s22 + $0x5a8] sm:$0xff]  ;;  %v9123_v31 = vld [vmem:[%s10273_s22 + $0x638] sm:$0xff] }
 0x766   : > { %7167 = vst [vmem:[%s12674_s4 + $0x520] sm:$0xff] %v6111_v33 }
 0x767   : > { %7168 = vst [vmem:[%s12674_s4 + $0x528] sm:$0xff] %v6112_v16  ;;  %4481 = vmatmul.f32.gmra.mxu1 %v12861_v7 }
 0x768   : > { %7186 = vst [vmem:[%s12674_s4 + $0x5b8] sm:$0xff] %v6130_v21  ;;  %4142 = vmatmul.f32.gmra.mxu2 %v12861_v7  ;;  %v9124_v21 = vld [vmem:[%s10273_s22 + $0x730] sm:$0xff] }
 0x769   : > { %4255 = vmatmul.f32.gmra.mxu3 %v12861_v7 }
 0x76a   : > { %v4327_v49 = vpop.f32.mrf.mxu0 }
 0x76b   : > { %v6161_v24 = vmul.f32 %v9120_v9, %v4327_v49  ;;  %v4095_v36 = vpop.f32.mrf.mxu2 }
 0x76c   : > { %v6127_v1 = vmul.f32 %v9121_v40, %v4095_v36  ;;  %v4208_v15 = vpop.f32.mrf.mxu3  ;;  %v4437_v33 = vpop.f32.mrf.mxu1 }
 0x76d   : > { %7217 = vst [vmem:[%s12674_s4 + $0x6b0] sm:$0xff] %v6161_v24  ;;  %v6128_v4 = vmul.f32 %v9122_v45, %v4208_v15  ;;  %4374 = vmatmul.f32.gmra.mxu0 %v12893_v59  ;;  %v6146_v16 = vmul.f32 %v9123_v31, %v4437_v33  ;;  %v9125_v24 = vld [vmem:[%s10273_s22 + $0x620] sm:$0xff]  ;;  %v9126_v15 = vld [vmem:[%s10273_s22 + $0x628] sm:$0xff]  ;;  %v9127_v45 = vld [vmem:[%s10273_s22 + $0x6b8] sm:$0xff] }
 0x76e   : > { %7183 = vst [vmem:[%s12674_s4 + $0x5a0] sm:$0xff] %v6127_v1 }
 0x76f   : > { %7184 = vst [vmem:[%s12674_s4 + $0x5a8] sm:$0xff] %v6128_v4  ;;  %4484 = vmatmul.f32.gmra.mxu1 %v12877_v42 }
 0x770   : > { %7202 = vst [vmem:[%s12674_s4 + $0x638] sm:$0xff] %v6146_v16  ;;  %4145 = vmatmul.f32.gmra.mxu2 %v12877_v42  ;;  %v9128_v16 = vld [vmem:[%s10273_s22 + $0x7b0] sm:$0xff] }
 0x771   : > { %4258 = vmatmul.f32.gmra.mxu3 %v12877_v42 }
 0x772   : > { %v4330_v62 = vpop.f32.mrf.mxu0 }
 0x773   : > { %v6177_v49 = vmul.f32 %v9124_v21, %v4330_v62  ;;  %v4098_v9 = vpop.f32.mrf.mxu2 }
 0x774   : > { %v6143_v36 = vmul.f32 %v9125_v24, %v4098_v9  ;;  %v4211_v40 = vpop.f32.mrf.mxu3  ;;  %v4440_v1 = vpop.f32.mrf.mxu1 }
 0x775   : > { %7233 = vst [vmem:[%s12674_s4 + $0x730] sm:$0xff] %v6177_v49  ;;  %v6144_v33 = vmul.f32 %v9126_v15, %v4211_v40  ;;  %4377 = vmatmul.f32.gmra.mxu0 %v12909_v38  ;;  %v6162_v4 = vmul.f32 %v9127_v45, %v4440_v1  ;;  %v9129_v49 = vld [vmem:[%s10273_s22 + $0x6a0] sm:$0xff]  ;;  %v9130_v40 = vld [vmem:[%s10273_s22 + $0x6a8] sm:$0xff]  ;;  %v9131_v15 = vld [vmem:[%s10273_s22 + $0x738] sm:$0xff] }
 0x776   : > { %7199 = vst [vmem:[%s12674_s4 + $0x620] sm:$0xff] %v6143_v36 }
 0x777   : > { %7200 = vst [vmem:[%s12674_s4 + $0x628] sm:$0xff] %v6144_v33  ;;  %4487 = vmatmul.f32.gmra.mxu1 %v12893_v59 }
 0x778   : > { %7218 = vst [vmem:[%s12674_s4 + $0x6b8] sm:$0xff] %v6162_v4  ;;  %4148 = vmatmul.f32.gmra.mxu2 %v12893_v59  ;;  %v9132_v4 = vld [vmem:[%s10273_s22 + $0x830] sm:$0xff] }
 0x779   : > { %4261 = vmatmul.f32.gmra.mxu3 %v12893_v59 }
 0x77a   : > { %v4333_v31 = vpop.f32.mrf.mxu0 }
 0x77b   : > { %v6193_v62 = vmul.f32 %v9128_v16, %v4333_v31  ;;  %v4101_v21 = vpop.f32.mrf.mxu2 }
 0x77c   : > { %v6159_v9 = vmul.f32 %v9129_v49, %v4101_v21  ;;  %v4214_v24 = vpop.f32.mrf.mxu3  ;;  %v4443_v36 = vpop.f32.mrf.mxu1 }
 0x77d   : > { %7249 = vst [vmem:[%s12674_s4 + $0x7b0] sm:$0xff] %v6193_v62  ;;  %v6160_v1 = vmul.f32 %v9130_v40, %v4214_v24  ;;  %4380 = vmatmul.f32.gmra.mxu0 %v12925_v37  ;;  %v6178_v33 = vmul.f32 %v9131_v15, %v4443_v36  ;;  %v9133_v62 = vld [vmem:[%s10273_s22 + $0x720] sm:$0xff]  ;;  %v9134_v24 = vld [vmem:[%s10273_s22 + $0x728] sm:$0xff]  ;;  %v9135_v40 = vld [vmem:[%s10273_s22 + $0x7b8] sm:$0xff] }
 0x77e   : > { %7215 = vst [vmem:[%s12674_s4 + $0x6a0] sm:$0xff] %v6159_v9 }
 0x77f   : > { %7216 = vst [vmem:[%s12674_s4 + $0x6a8] sm:$0xff] %v6160_v1  ;;  %4490 = vmatmul.f32.gmra.mxu1 %v12909_v38 }
 0x780   : > { %7234 = vst [vmem:[%s12674_s4 + $0x738] sm:$0xff] %v6178_v33  ;;  %4151 = vmatmul.f32.gmra.mxu2 %v12909_v38  ;;  %v9136_v33 = vld [vmem:[%s10273_s22 + $0x8b0] sm:$0xff] }
 0x781   : > { %4264 = vmatmul.f32.gmra.mxu3 %v12909_v38 }
 0x782   : > { %v4336_v45 = vpop.f32.mrf.mxu0 }
 0x783   : > { %v6209_v31 = vmul.f32 %v9132_v4, %v4336_v45  ;;  %v4104_v16 = vpop.f32.mrf.mxu2 }
 0x784   : > { %v6175_v21 = vmul.f32 %v9133_v62, %v4104_v16  ;;  %v4217_v49 = vpop.f32.mrf.mxu3  ;;  %v4446_v9 = vpop.f32.mrf.mxu1 }
 0x785   : > { %7265 = vst [vmem:[%s12674_s4 + $0x830] sm:$0xff] %v6209_v31  ;;  %v6176_v36 = vmul.f32 %v9134_v24, %v4217_v49  ;;  %v6194_v1 = vmul.f32 %v9135_v40, %v4446_v9  ;;  %4739 = vmatmul.f32.vlgmr.msrb.gmra.mxu0 %v12254_v29  ;;  %v9137_v31 = vld [vmem:[%s10273_s22 + $0x7a0] sm:$0xff]  ;;  %v9138_v49 = vld [vmem:[%s10273_s22 + $0x7a8] sm:$0xff]  ;;  %v9139_v24 = vld [vmem:[%s10273_s22 + $0x838] sm:$0xff] }
 0x786   : > { %7231 = vst [vmem:[%s12674_s4 + $0x720] sm:$0xff] %v6175_v21 }
 0x787   : > { %7232 = vst [vmem:[%s12674_s4 + $0x728] sm:$0xff] %v6176_v36  ;;  %4493 = vmatmul.f32.gmra.mxu1 %v12925_v37 }
 0x788   : > { %7250 = vst [vmem:[%s12674_s4 + $0x7b8] sm:$0xff] %v6194_v1  ;;  %4154 = vmatmul.f32.gmra.mxu2 %v12925_v37  ;;  %v9140_v1 = vld [vmem:[%s10273_s22 + $0x930] sm:$0xff] }
 0x789   : > { %4267 = vmatmul.f32.gmra.mxu3 %v12925_v37 }
 0x78a   : > { %v4339_v15 = vpop.f32.mrf.mxu0 }
 0x78b   : > { %v6225_v45 = vmul.f32 %v9136_v33, %v4339_v15  ;;  %v4107_v4 = vpop.f32.mrf.mxu2 }
 0x78c   : > { %v6191_v16 = vmul.f32 %v9137_v31, %v4107_v4  ;;  %v4220_v62 = vpop.f32.mrf.mxu3  ;;  %v4449_v21 = vpop.f32.mrf.mxu1 }
 0x78d   : > { %7281 = vst [vmem:[%s12674_s4 + $0x8b0] sm:$0xff] %v6225_v45  ;;  %v6192_v9 = vmul.f32 %v9138_v49, %v4220_v62  ;;  %v6210_v36 = vmul.f32 %v9139_v24, %v4449_v21  ;;  %4742 = vmatmul.f32.gmra.mxu0 %v12270_v13  ;;  %v9141_v45 = vld [vmem:[%s10273_s22 + $0x820] sm:$0xff]  ;;  %v9142_v62 = vld [vmem:[%s10273_s22 + $0x828] sm:$0xff]  ;;  %v9143_v49 = vld [vmem:[%s10273_s22 + $0x8b8] sm:$0xff] }
 0x78e   : > { %7247 = vst [vmem:[%s12674_s4 + $0x7a0] sm:$0xff] %v6191_v16 }
 0x78f   : > { %7248 = vst [vmem:[%s12674_s4 + $0x7a8] sm:$0xff] %v6192_v9  ;;  %4852 = vmatmul.f32.vlgmr.msrb.gmra.mxu1 %v12254_v29 }
 0x790   : > { %7266 = vst [vmem:[%s12674_s4 + $0x838] sm:$0xff] %v6210_v36  ;;  %4513 = vmatmul.f32.vlgmr.msrb.gmra.mxu2 %v12254_v29  ;;  %v9144_v36 = vld [vmem:[%s10273_s22 + $0x9b0] sm:$0xff] }
 0x791   : > { %4626 = vmatmul.f32.vlgmr.msrb.gmra.mxu3 %v12254_v29 }
 0x792   : > { %v4342_v40 = vpop.f32.mrf.mxu0 }
 0x793   : > { %v6241_v15 = vmul.f32 %v9140_v1, %v4342_v40  ;;  %v4110_v33 = vpop.f32.mrf.mxu2 }
 0x794   : > { %v6207_v4 = vmul.f32 %v9141_v45, %v4110_v33  ;;  %v4223_v31 = vpop.f32.mrf.mxu3  ;;  %v4452_v16 = vpop.f32.mrf.mxu1 }
 0x795   : > { %7297 = vst [vmem:[%s12674_s4 + $0x930] sm:$0xff] %v6241_v15  ;;  %v6208_v21 = vmul.f32 %v9142_v62, %v4223_v31  ;;  %v6226_v9 = vmul.f32 %v9143_v49, %v4452_v16  ;;  %4745 = vmatmul.f32.gmra.mxu0 %v12286_v28  ;;  %v9145_v15 = vld [vmem:[%s10273_s22 + $0x8a0] sm:$0xff]  ;;  %v9146_v31 = vld [vmem:[%s10273_s22 + $0x8a8] sm:$0xff]  ;;  %v9147_v62 = vld [vmem:[%s10273_s22 + $0x938] sm:$0xff] }
 0x796   : > { %7263 = vst [vmem:[%s12674_s4 + $0x820] sm:$0xff] %v6207_v4 }
 0x797   : > { %7264 = vst [vmem:[%s12674_s4 + $0x828] sm:$0xff] %v6208_v21  ;;  %4855 = vmatmul.f32.gmra.mxu1 %v12270_v13 }
 0x798   : > { %7282 = vst [vmem:[%s12674_s4 + $0x8b8] sm:$0xff] %v6226_v9  ;;  %4516 = vmatmul.f32.gmra.mxu2 %v12270_v13  ;;  %v9148_v9 = vld [vmem:[%s10273_s22 + $0xa30] sm:$0xff] }
 0x799   : > { %4629 = vmatmul.f32.gmra.mxu3 %v12270_v13 }
 0x79a   : > { %v4345_v24 = vpop.f32.mrf.mxu0 }
 0x79b   : > { %v6257_v40 = vmul.f32 %v9144_v36, %v4345_v24  ;;  %v4113_v1 = vpop.f32.mrf.mxu2 }
 0x79c   : > { %v6223_v33 = vmul.f32 %v9145_v15, %v4113_v1  ;;  %v4226_v45 = vpop.f32.mrf.mxu3  ;;  %v4455_v4 = vpop.f32.mrf.mxu1 }
 0x79d   : > { %7313 = vst [vmem:[%s12674_s4 + $0x9b0] sm:$0xff] %v6257_v40  ;;  %v6224_v16 = vmul.f32 %v9146_v31, %v4226_v45  ;;  %v6242_v21 = vmul.f32 %v9147_v62, %v4455_v4  ;;  %4748 = vmatmul.f32.gmra.mxu0 %v12302_v3  ;;  %v9149_v40 = vld [vmem:[%s10273_s22 + $0x920] sm:$0xff]  ;;  %v9150_v45 = vld [vmem:[%s10273_s22 + $0x928] sm:$0xff]  ;;  %v9151_v31 = vld [vmem:[%s10273_s22 + $0x9b8] sm:$0xff] }
 0x79e   : > { %7279 = vst [vmem:[%s12674_s4 + $0x8a0] sm:$0xff] %v6223_v33 }
 0x79f   : > { %7280 = vst [vmem:[%s12674_s4 + $0x8a8] sm:$0xff] %v6224_v16  ;;  %4858 = vmatmul.f32.gmra.mxu1 %v12286_v28 }
 0x7a0   : > { %7298 = vst [vmem:[%s12674_s4 + $0x938] sm:$0xff] %v6242_v21  ;;  %4519 = vmatmul.f32.gmra.mxu2 %v12286_v28  ;;  %v9152_v21 = vld [vmem:[%s10273_s22 + $0xab0] sm:$0xff] }
 0x7a1   : > { %4632 = vmatmul.f32.gmra.mxu3 %v12286_v28 }
 0x7a2   : > { %v4348_v49 = vpop.f32.mrf.mxu0 }
 0x7a3   : > { %v6273_v24 = vmul.f32 %v9148_v9, %v4348_v49  ;;  %v4116_v36 = vpop.f32.mrf.mxu2 }
 0x7a4   : > { %v6239_v1 = vmul.f32 %v9149_v40, %v4116_v36  ;;  %v4229_v15 = vpop.f32.mrf.mxu3  ;;  %v4458_v33 = vpop.f32.mrf.mxu1 }
 0x7a5   : > { %7329 = vst [vmem:[%s12674_s4 + $0xa30] sm:$0xff] %v6273_v24  ;;  %v6240_v4 = vmul.f32 %v9150_v45, %v4229_v15  ;;  %v6258_v16 = vmul.f32 %v9151_v31, %v4458_v33  ;;  %4751 = vmatmul.f32.gmra.mxu0 %v12330_v35  ;;  %v9153_v24 = vld [vmem:[%s10273_s22 + $0x9a0] sm:$0xff]  ;;  %v9154_v15 = vld [vmem:[%s10273_s22 + $0x9a8] sm:$0xff]  ;;  %v9155_v45 = vld [vmem:[%s10273_s22 + $0xa38] sm:$0xff] }
 0x7a6   : > { %7295 = vst [vmem:[%s12674_s4 + $0x920] sm:$0xff] %v6239_v1 }
 0x7a7   : > { %7296 = vst [vmem:[%s12674_s4 + $0x928] sm:$0xff] %v6240_v4  ;;  %4861 = vmatmul.f32.gmra.mxu1 %v12302_v3 }
 0x7a8   : > { %7314 = vst [vmem:[%s12674_s4 + $0x9b8] sm:$0xff] %v6258_v16  ;;  %4522 = vmatmul.f32.gmra.mxu2 %v12302_v3  ;;  %v9156_v16 = vld [vmem:[%s10273_s22 + $0xb30] sm:$0xff] }
 0x7a9   : > { %4635 = vmatmul.f32.gmra.mxu3 %v12302_v3 }
 0x7aa   : > { %v4351_v62 = vpop.f32.mrf.mxu0 }
 0x7ab   : > { %v6289_v49 = vmul.f32 %v9152_v21, %v4351_v62  ;;  %v4119_v9 = vpop.f32.mrf.mxu2 }
 0x7ac   : > { %v6255_v36 = vmul.f32 %v9153_v24, %v4119_v9  ;;  %v4232_v40 = vpop.f32.mrf.mxu3  ;;  %v4461_v1 = vpop.f32.mrf.mxu1 }
 0x7ad   : > { %7345 = vst [vmem:[%s12674_s4 + $0xab0] sm:$0xff] %v6289_v49  ;;  %v6256_v33 = vmul.f32 %v9154_v15, %v4232_v40  ;;  %v6274_v4 = vmul.f32 %v9155_v45, %v4461_v1  ;;  %4754 = vmatmul.f32.gmra.mxu0 %v12358_v58  ;;  %v9157_v49 = vld [vmem:[%s10273_s22 + $0xa20] sm:$0xff]  ;;  %v9158_v40 = vld [vmem:[%s10273_s22 + $0xa28] sm:$0xff]  ;;  %v9159_v15 = vld [vmem:[%s10273_s22 + $0xab8] sm:$0xff] }
 0x7ae   : > { %7311 = vst [vmem:[%s12674_s4 + $0x9a0] sm:$0xff] %v6255_v36 }
 0x7af   : > { %7312 = vst [vmem:[%s12674_s4 + $0x9a8] sm:$0xff] %v6256_v33  ;;  %4864 = vmatmul.f32.gmra.mxu1 %v12330_v35 }
 0x7b0   : > { %7330 = vst [vmem:[%s12674_s4 + $0xa38] sm:$0xff] %v6274_v4  ;;  %4525 = vmatmul.f32.gmra.mxu2 %v12330_v35  ;;  %v9160_v4 = vld [vmem:[%s10273_s22 + $0xbb0] sm:$0xff] }
 0x7b1   : > { %4638 = vmatmul.f32.gmra.mxu3 %v12330_v35 }
 0x7b2   : > { %v4354_v31 = vpop.f32.mrf.mxu0 }
 0x7b3   : > { %v6305_v62 = vmul.f32 %v9156_v16, %v4354_v31  ;;  %v4122_v21 = vpop.f32.mrf.mxu2 }
 0x7b4   : > { %v6271_v9 = vmul.f32 %v9157_v49, %v4122_v21  ;;  %v4235_v24 = vpop.f32.mrf.mxu3  ;;  %v4464_v36 = vpop.f32.mrf.mxu1 }
 0x7b5   : > { %7361 = vst [vmem:[%s12674_s4 + $0xb30] sm:$0xff] %v6305_v62  ;;  %v6272_v1 = vmul.f32 %v9158_v40, %v4235_v24  ;;  %v6290_v33 = vmul.f32 %v9159_v15, %v4464_v36  ;;  %4757 = vmatmul.f32.gmra.mxu0 %v12386_v32  ;;  %v9161_v62 = vld [vmem:[%s10273_s22 + $0xaa0] sm:$0xff]  ;;  %v9162_v24 = vld [vmem:[%s10273_s22 + $0xaa8] sm:$0xff]  ;;  %v9163_v40 = vld [vmem:[%s10273_s22 + $0xb38] sm:$0xff] }
 0x7b6   : > { %7327 = vst [vmem:[%s12674_s4 + $0xa20] sm:$0xff] %v6271_v9 }
 0x7b7   : > { %7328 = vst [vmem:[%s12674_s4 + $0xa28] sm:$0xff] %v6272_v1  ;;  %4867 = vmatmul.f32.gmra.mxu1 %v12358_v58 }
 0x7b8   : > { %7346 = vst [vmem:[%s12674_s4 + $0xab8] sm:$0xff] %v6290_v33  ;;  %4528 = vmatmul.f32.gmra.mxu2 %v12358_v58  ;;  %v9164_v33 = vld [vmem:[%s10273_s22 + $0xc30] sm:$0xff] }
 0x7b9   : > { %4641 = vmatmul.f32.gmra.mxu3 %v12358_v58 }
 0x7ba   : > { %v4357_v45 = vpop.f32.mrf.mxu0 }
 0x7bb   : > { %v6321_v31 = vmul.f32 %v9160_v4, %v4357_v45  ;;  %v4125_v16 = vpop.f32.mrf.mxu2 }
 0x7bc   : > { %v6287_v21 = vmul.f32 %v9161_v62, %v4125_v16  ;;  %v4238_v49 = vpop.f32.mrf.mxu3  ;;  %v4467_v9 = vpop.f32.mrf.mxu1 }
 0x7bd   : > { %7377 = vst [vmem:[%s12674_s4 + $0xbb0] sm:$0xff] %v6321_v31  ;;  %v6288_v36 = vmul.f32 %v9162_v24, %v4238_v49  ;;  %v6306_v1 = vmul.f32 %v9163_v40, %v4467_v9  ;;  %4760 = vmatmul.f32.gmra.mxu0 %v12414_v55  ;;  %v9165_v31 = vld [vmem:[%s10273_s22 + $0xb20] sm:$0xff]  ;;  %v9166_v49 = vld [vmem:[%s10273_s22 + $0xb28] sm:$0xff]  ;;  %v9167_v24 = vld [vmem:[%s10273_s22 + $0xbb8] sm:$0xff] }
 0x7be   : > { %7343 = vst [vmem:[%s12674_s4 + $0xaa0] sm:$0xff] %v6287_v21 }
 0x7bf   : > { %7344 = vst [vmem:[%s12674_s4 + $0xaa8] sm:$0xff] %v6288_v36  ;;  %4870 = vmatmul.f32.gmra.mxu1 %v12386_v32 }
 0x7c0   : > { %7362 = vst [vmem:[%s12674_s4 + $0xb38] sm:$0xff] %v6306_v1  ;;  %4531 = vmatmul.f32.gmra.mxu2 %v12386_v32  ;;  %v9168_v1 = vld [vmem:[%s10273_s22 + $0xcb0] sm:$0xff] }
 0x7c1   : > { %4644 = vmatmul.f32.gmra.mxu3 %v12386_v32 }
 0x7c2   : > { %v4360_v15 = vpop.f32.mrf.mxu0 }
 0x7c3   : > { %v6337_v45 = vmul.f32 %v9164_v33, %v4360_v15  ;;  %v4128_v4 = vpop.f32.mrf.mxu2 }
 0x7c4   : > { %v6303_v16 = vmul.f32 %v9165_v31, %v4128_v4  ;;  %v4241_v62 = vpop.f32.mrf.mxu3  ;;  %v4470_v21 = vpop.f32.mrf.mxu1 }
 0x7c5   : > { %7393 = vst [vmem:[%s12674_s4 + $0xc30] sm:$0xff] %v6337_v45  ;;  %v6304_v9 = vmul.f32 %v9166_v49, %v4241_v62  ;;  %v6322_v36 = vmul.f32 %v9167_v24, %v4470_v21  ;;  %4763 = vmatmul.f32.gmra.mxu0 %v12442_v17  ;;  %v9169_v45 = vld [vmem:[%s10273_s22 + $0xba0] sm:$0xff]  ;;  %v9170_v62 = vld [vmem:[%s10273_s22 + $0xba8] sm:$0xff]  ;;  %v9171_v49 = vld [vmem:[%s10273_s22 + $0xc38] sm:$0xff] }
 0x7c6   : > { %7359 = vst [vmem:[%s12674_s4 + $0xb20] sm:$0xff] %v6303_v16 }
 0x7c7   : > { %7360 = vst [vmem:[%s12674_s4 + $0xb28] sm:$0xff] %v6304_v9  ;;  %4873 = vmatmul.f32.gmra.mxu1 %v12414_v55 }
 0x7c8   : > { %7378 = vst [vmem:[%s12674_s4 + $0xbb8] sm:$0xff] %v6322_v36  ;;  %4534 = vmatmul.f32.gmra.mxu2 %v12414_v55  ;;  %v9172_v36 = vld [vmem:[%s10273_s22 + $0xd30] sm:$0xff] }
 0x7c9   : > { %4647 = vmatmul.f32.gmra.mxu3 %v12414_v55 }
 0x7ca   : > { %v4363_v40 = vpop.f32.mrf.mxu0 }
 0x7cb   : > { %v6353_v15 = vmul.f32 %v9168_v1, %v4363_v40  ;;  %v4131_v33 = vpop.f32.mrf.mxu2 }
 0x7cc   : > { %v6319_v4 = vmul.f32 %v9169_v45, %v4131_v33  ;;  %v4244_v31 = vpop.f32.mrf.mxu3  ;;  %v4473_v16 = vpop.f32.mrf.mxu1 }
 0x7cd   : > { %7409 = vst [vmem:[%s12674_s4 + $0xcb0] sm:$0xff] %v6353_v15  ;;  %v6320_v21 = vmul.f32 %v9170_v62, %v4244_v31  ;;  %v6338_v9 = vmul.f32 %v9171_v49, %v4473_v16  ;;  %4766 = vmatmul.f32.gmra.mxu0 %v12470_v30  ;;  %v9173_v15 = vld [vmem:[%s10273_s22 + $0xc20] sm:$0xff]  ;;  %v9174_v31 = vld [vmem:[%s10273_s22 + $0xc28] sm:$0xff]  ;;  %v9175_v62 = vld [vmem:[%s10273_s22 + $0xcb8] sm:$0xff] }
 0x7ce   : > { %7375 = vst [vmem:[%s12674_s4 + $0xba0] sm:$0xff] %v6319_v4 }
 0x7cf   : > { %7376 = vst [vmem:[%s12674_s4 + $0xba8] sm:$0xff] %v6320_v21  ;;  %4876 = vmatmul.f32.gmra.mxu1 %v12442_v17 }
 0x7d0   : > { %7394 = vst [vmem:[%s12674_s4 + $0xc38] sm:$0xff] %v6338_v9  ;;  %4537 = vmatmul.f32.gmra.mxu2 %v12442_v17  ;;  %v9176_v9 = vld [vmem:[%s10273_s22 + $0xdb0] sm:$0xff] }
 0x7d1   : > { %4650 = vmatmul.f32.gmra.mxu3 %v12442_v17 }
 0x7d2   : > { %v4366_v24 = vpop.f32.mrf.mxu0 }
 0x7d3   : > { %v6369_v40 = vmul.f32 %v9172_v36, %v4366_v24  ;;  %v4134_v1 = vpop.f32.mrf.mxu2 }
 0x7d4   : > { %v6335_v33 = vmul.f32 %v9173_v15, %v4134_v1  ;;  %v4247_v45 = vpop.f32.mrf.mxu3  ;;  %v4476_v4 = vpop.f32.mrf.mxu1 }
 0x7d5   : > { %7425 = vst [vmem:[%s12674_s4 + $0xd30] sm:$0xff] %v6369_v40  ;;  %v6336_v16 = vmul.f32 %v9174_v31, %v4247_v45  ;;  %v6354_v21 = vmul.f32 %v9175_v62, %v4476_v4  ;;  %4769 = vmatmul.f32.gmra.mxu0 %v12498_v56  ;;  %v9177_v40 = vld [vmem:[%s10273_s22 + $0xca0] sm:$0xff]  ;;  %v9178_v45 = vld [vmem:[%s10273_s22 + $0xca8] sm:$0xff]  ;;  %v9179_v31 = vld [vmem:[%s10273_s22 + $0xd38] sm:$0xff] }
 0x7d6   : > { %7391 = vst [vmem:[%s12674_s4 + $0xc20] sm:$0xff] %v6335_v33 }
 0x7d7   : > { %7392 = vst [vmem:[%s12674_s4 + $0xc28] sm:$0xff] %v6336_v16  ;;  %4879 = vmatmul.f32.gmra.mxu1 %v12470_v30 }
 0x7d8   : > { %7410 = vst [vmem:[%s12674_s4 + $0xcb8] sm:$0xff] %v6354_v21  ;;  %4540 = vmatmul.f32.gmra.mxu2 %v12470_v30  ;;  %v9180_v21 = vld [vmem:[%s10273_s22 + $0xe30] sm:$0xff] }
 0x7d9   : > { %4653 = vmatmul.f32.gmra.mxu3 %v12470_v30 }
 0x7da   : > { %v4369_v49 = vpop.f32.mrf.mxu0 }
 0x7db   : > { %v6385_v24 = vmul.f32 %v9176_v9, %v4369_v49  ;;  %v4137_v36 = vpop.f32.mrf.mxu2 }
 0x7dc   : > { %v6351_v1 = vmul.f32 %v9177_v40, %v4137_v36  ;;  %v4250_v15 = vpop.f32.mrf.mxu3  ;;  %v4479_v33 = vpop.f32.mrf.mxu1 }
 0x7dd   : > { %7441 = vst [vmem:[%s12674_s4 + $0xdb0] sm:$0xff] %v6385_v24  ;;  %v6352_v4 = vmul.f32 %v9178_v45, %v4250_v15  ;;  %v6370_v16 = vmul.f32 %v9179_v31, %v4479_v33  ;;  %4772 = vmatmul.f32.gmra.mxu0 %v12526_v63  ;;  %v9181_v24 = vld [vmem:[%s10273_s22 + $0xd20] sm:$0xff]  ;;  %v9182_v15 = vld [vmem:[%s10273_s22 + $0xd28] sm:$0xff]  ;;  %v9183_v45 = vld [vmem:[%s10273_s22 + $0xdb8] sm:$0xff] }
 0x7de   : > { %7407 = vst [vmem:[%s12674_s4 + $0xca0] sm:$0xff] %v6351_v1 }
 0x7df   : > { %7408 = vst [vmem:[%s12674_s4 + $0xca8] sm:$0xff] %v6352_v4  ;;  %4882 = vmatmul.f32.gmra.mxu1 %v12498_v56 }
 0x7e0   : > { %7426 = vst [vmem:[%s12674_s4 + $0xd38] sm:$0xff] %v6370_v16  ;;  %4543 = vmatmul.f32.gmra.mxu2 %v12498_v56  ;;  %v9184_v16 = vld [vmem:[%s10273_s22 + $0xeb0] sm:$0xff] }
 0x7e1   : > { %4656 = vmatmul.f32.gmra.mxu3 %v12498_v56 }
 0x7e2   : > { %v4372_v62 = vpop.f32.mrf.mxu0 }
 0x7e3   : > { %v6401_v49 = vmul.f32 %v9180_v21, %v4372_v62  ;;  %v4140_v9 = vpop.f32.mrf.mxu2 }
 0x7e4   : > { %v6367_v36 = vmul.f32 %v9181_v24, %v4140_v9  ;;  %v4253_v40 = vpop.f32.mrf.mxu3  ;;  %v4482_v1 = vpop.f32.mrf.mxu1 }
 0x7e5   : > { %7457 = vst [vmem:[%s12674_s4 + $0xe30] sm:$0xff] %v6401_v49  ;;  %v6368_v33 = vmul.f32 %v9182_v15, %v4253_v40  ;;  %v6386_v4 = vmul.f32 %v9183_v45, %v4482_v1  ;;  %4775 = vmatmul.f32.gmra.mxu0 %v12554_v54  ;;  %v9185_v49 = vld [vmem:[%s10273_s22 + $0xda0] sm:$0xff]  ;;  %v9186_v40 = vld [vmem:[%s10273_s22 + $0xda8] sm:$0xff]  ;;  %v9187_v15 = vld [vmem:[%s10273_s22 + $0xe38] sm:$0xff] }
 0x7e6   : > { %7423 = vst [vmem:[%s12674_s4 + $0xd20] sm:$0xff] %v6367_v36 }
 0x7e7   : > { %7424 = vst [vmem:[%s12674_s4 + $0xd28] sm:$0xff] %v6368_v33  ;;  %4885 = vmatmul.f32.gmra.mxu1 %v12526_v63 }
 0x7e8   : > { %7442 = vst [vmem:[%s12674_s4 + $0xdb8] sm:$0xff] %v6386_v4  ;;  %4546 = vmatmul.f32.gmra.mxu2 %v12526_v63  ;;  %v9188_v4 = vld [vmem:[%s10273_s22 + $0xf30] sm:$0xff] }
 0x7e9   : > { %4659 = vmatmul.f32.gmra.mxu3 %v12526_v63 }
 0x7ea   : > { %v4375_v31 = vpop.f32.mrf.mxu0 }
 0x7eb   : > { %v6417_v62 = vmul.f32 %v9184_v16, %v4375_v31  ;;  %v4143_v21 = vpop.f32.mrf.mxu2 }
 0x7ec   : > { %v6383_v9 = vmul.f32 %v9185_v49, %v4143_v21  ;;  %v4256_v24 = vpop.f32.mrf.mxu3  ;;  %v4485_v36 = vpop.f32.mrf.mxu1 }
 0x7ed   : > { %7473 = vst [vmem:[%s12674_s4 + $0xeb0] sm:$0xff] %v6417_v62  ;;  %v6384_v1 = vmul.f32 %v9186_v40, %v4256_v24  ;;  %v6402_v33 = vmul.f32 %v9187_v15, %v4485_v36  ;;  %4778 = vmatmul.f32.gmra.mxu0 %v12582_v52  ;;  %v9189_v62 = vld [vmem:[%s10273_s22 + $0xe20] sm:$0xff]  ;;  %v9190_v24 = vld [vmem:[%s10273_s22 + $0xe28] sm:$0xff]  ;;  %v9191_v40 = vld [vmem:[%s10273_s22 + $0xeb8] sm:$0xff] }
 0x7ee   : > { %7439 = vst [vmem:[%s12674_s4 + $0xda0] sm:$0xff] %v6383_v9 }
 0x7ef   : > { %7440 = vst [vmem:[%s12674_s4 + $0xda8] sm:$0xff] %v6384_v1  ;;  %4888 = vmatmul.f32.gmra.mxu1 %v12554_v54 }
 0x7f0   : > { %7458 = vst [vmem:[%s12674_s4 + $0xe38] sm:$0xff] %v6402_v33  ;;  %4549 = vmatmul.f32.gmra.mxu2 %v12554_v54  ;;  %v9192_v33 = vld [vmem:[%s10273_s22 + $0xfb0] sm:$0xff] }
 0x7f1   : > { %4662 = vmatmul.f32.gmra.mxu3 %v12554_v54 }
 0x7f2   : > { %v4378_v45 = vpop.f32.mrf.mxu0 }
 0x7f3   : > { %v6433_v31 = vmul.f32 %v9188_v4, %v4378_v45  ;;  %v4146_v16 = vpop.f32.mrf.mxu2 }
 0x7f4   : > { %v6399_v21 = vmul.f32 %v9189_v62, %v4146_v16  ;;  %v4259_v49 = vpop.f32.mrf.mxu3  ;;  %v4488_v9 = vpop.f32.mrf.mxu1 }
 0x7f5   : > { %7489 = vst [vmem:[%s12674_s4 + $0xf30] sm:$0xff] %v6433_v31  ;;  %v6400_v36 = vmul.f32 %v9190_v24, %v4259_v49  ;;  %v6418_v1 = vmul.f32 %v9191_v40, %v4488_v9  ;;  %4781 = vmatmul.f32.gmra.mxu0 %v12610_v46  ;;  %v9193_v31 = vld [vmem:[%s10273_s22 + $0xea0] sm:$0xff]  ;;  %v9194_v49 = vld [vmem:[%s10273_s22 + $0xea8] sm:$0xff]  ;;  %v9195_v24 = vld [vmem:[%s10273_s22 + $0xf38] sm:$0xff] }
 0x7f6   : > { %7455 = vst [vmem:[%s12674_s4 + $0xe20] sm:$0xff] %v6399_v21 }
 0x7f7   : > { %7456 = vst [vmem:[%s12674_s4 + $0xe28] sm:$0xff] %v6400_v36  ;;  %4891 = vmatmul.f32.gmra.mxu1 %v12582_v52 }
 0x7f8   : > { %7474 = vst [vmem:[%s12674_s4 + $0xeb8] sm:$0xff] %v6418_v1  ;;  %4552 = vmatmul.f32.gmra.mxu2 %v12582_v52  ;;  %v9196_v1 = vld [vmem:[%s10273_s22 + $0x50] sm:$0xff] }
 0x7f9   : > { %4665 = vmatmul.f32.gmra.mxu3 %v12582_v52 }
 0x7fa   : > { %v4381_v15 = vpop.f32.mrf.mxu0 }
 0x7fb   : > { %v6449_v45 = vmul.f32 %v9192_v33, %v4381_v15  ;;  %v4149_v4 = vpop.f32.mrf.mxu2 }
 0x7fc   : > { %v6415_v16 = vmul.f32 %v9193_v31, %v4149_v4  ;;  %v4262_v62 = vpop.f32.mrf.mxu3  ;;  %v4491_v21 = vpop.f32.mrf.mxu1 }
 0x7fd   : > { %7505 = vst [vmem:[%s12674_s4 + $0xfb0] sm:$0xff] %v6449_v45  ;;  %v6416_v9 = vmul.f32 %v9194_v49, %v4262_v62  ;;  %v6434_v36 = vmul.f32 %v9195_v24, %v4491_v21  ;;  %4784 = vmatmul.f32.gmra.mxu0 %v12638_v50  ;;  %v9197_v45 = vld [vmem:[%s10273_s22 + $0xf20] sm:$0xff]  ;;  %v9198_v62 = vld [vmem:[%s10273_s22 + $0xf28] sm:$0xff]  ;;  %v9199_v49 = vld [vmem:[%s10273_s22 + $0xfb8] sm:$0xff] }
 0x7fe   : > { %7471 = vst [vmem:[%s12674_s4 + $0xea0] sm:$0xff] %v6415_v16 }
 0x7ff   : > { %7472 = vst [vmem:[%s12674_s4 + $0xea8] sm:$0xff] %v6416_v9  ;;  %4894 = vmatmul.f32.gmra.mxu1 %v12610_v46 }
 0x800   : > { %7490 = vst [vmem:[%s12674_s4 + $0xf38] sm:$0xff] %v6434_v36  ;;  %4555 = vmatmul.f32.gmra.mxu2 %v12610_v46  ;;  %v9200_v36 = vld [vmem:[%s10273_s22 + $0xd0] sm:$0xff] }
 0x801   : > { %4668 = vmatmul.f32.gmra.mxu3 %v12610_v46 }
 0x802   : > { %v4740_v40 = vpop.f32.mrf.mxu0 }
 0x803   : > { %v5957_v15 = vmul.f32 %v9196_v1, %v4740_v40  ;;  %v4152_v33 = vpop.f32.mrf.mxu2 }
 0x804   : > { %v6431_v4 = vmul.f32 %v9197_v45, %v4152_v33  ;;  %v4265_v31 = vpop.f32.mrf.mxu3  ;;  %v4494_v16 = vpop.f32.mrf.mxu1 }
 0x805   : > { %7013 = vst [vmem:[%s12674_s4 + $0x50] sm:$0xff] %v5957_v15  ;;  %v6432_v21 = vmul.f32 %v9198_v62, %v4265_v31  ;;  %v6450_v9 = vmul.f32 %v9199_v49, %v4494_v16  ;;  %4787 = vmatmul.f32.gmra.mxu0 %v12666_v19  ;;  %v9201_v15 = vld [vmem:[%s10273_s22 + $0xfa0] sm:$0xff]  ;;  %v9202_v31 = vld [vmem:[%s10273_s22 + $0xfa8] sm:$0xff]  ;;  %v9203_v62 = vld [vmem:[%s10273_s22 + $0x58] sm:$0xff] }
 0x806   : > { %7487 = vst [vmem:[%s12674_s4 + $0xf20] sm:$0xff] %v6431_v4 }
 0x807   : > { %7488 = vst [vmem:[%s12674_s4 + $0xf28] sm:$0xff] %v6432_v21  ;;  %4897 = vmatmul.f32.gmra.mxu1 %v12638_v50 }
 0x808   : > { %7506 = vst [vmem:[%s12674_s4 + $0xfb8] sm:$0xff] %v6450_v9  ;;  %4558 = vmatmul.f32.gmra.mxu2 %v12638_v50  ;;  %v9204_v9 = vld [vmem:[%s10273_s22 + $0x150] sm:$0xff] }
 0x809   : > { %4671 = vmatmul.f32.gmra.mxu3 %v12638_v50 }
 0x80a   : > { %v4743_v24 = vpop.f32.mrf.mxu0 }
 0x80b   : > { %v5973_v40 = vmul.f32 %v9200_v36, %v4743_v24  ;;  %v4155_v1 = vpop.f32.mrf.mxu2 }
 0x80c   : > { %v6447_v33 = vmul.f32 %v9201_v15, %v4155_v1  ;;  %v4268_v45 = vpop.f32.mrf.mxu3  ;;  %v4853_v4 = vpop.f32.mrf.mxu1 }
 0x80d   : > { %7029 = vst [vmem:[%s12674_s4 + $0xd0] sm:$0xff] %v5973_v40  ;;  %v6448_v16 = vmul.f32 %v9202_v31, %v4268_v45  ;;  %4790 = vmatmul.f32.gmra.mxu0 %v12695_v60  ;;  %v5958_v21 = vmul.f32 %v9203_v62, %v4853_v4  ;;  %v9205_v40 = vld [vmem:[%s10273_s22 + $0x40] sm:$0xff]  ;;  %v9206_v45 = vld [vmem:[%s10273_s22 + $0x48] sm:$0xff]  ;;  %v9207_v31 = vld [vmem:[%s10273_s22 + $0xd8] sm:$0xff] }
 0x80e   : > { %7503 = vst [vmem:[%s12674_s4 + $0xfa0] sm:$0xff] %v6447_v33 }
 0x80f   : > { %7504 = vst [vmem:[%s12674_s4 + $0xfa8] sm:$0xff] %v6448_v16  ;;  %4900 = vmatmul.f32.gmra.mxu1 %v12666_v19 }
 0x810   : > { %7014 = vst [vmem:[%s12674_s4 + $0x58] sm:$0xff] %v5958_v21  ;;  %4561 = vmatmul.f32.gmra.mxu2 %v12666_v19  ;;  %v9208_v21 = vld [vmem:[%s10273_s22 + $0x1d0] sm:$0xff] }
 0x811   : > { %4674 = vmatmul.f32.gmra.mxu3 %v12666_v19 }
 0x812   : > { %v4746_v49 = vpop.f32.mrf.mxu0 }
 0x813   : > { %v5989_v24 = vmul.f32 %v9204_v9, %v4746_v49  ;;  %v4514_v36 = vpop.f32.mrf.mxu2 }
 0x814   : > { %v5955_v1 = vmul.f32 %v9205_v40, %v4514_v36  ;;  %v4627_v15 = vpop.f32.mrf.mxu3  ;;  %v4856_v33 = vpop.f32.mrf.mxu1 }
 0x815   : > { %7045 = vst [vmem:[%s12674_s4 + $0x150] sm:$0xff] %v5989_v24  ;;  %v5956_v4 = vmul.f32 %v9206_v45, %v4627_v15  ;;  %4793 = vmatmul.f32.gmra.mxu0 %v12717_v47  ;;  %v5974_v16 = vmul.f32 %v9207_v31, %v4856_v33  ;;  %v9209_v24 = vld [vmem:[%s10273_s22 + $0xc0] sm:$0xff]  ;;  %v9210_v15 = vld [vmem:[%s10273_s22 + $0xc8] sm:$0xff]  ;;  %v9211_v45 = vld [vmem:[%s10273_s22 + $0x158] sm:$0xff] }
 0x816   : > { %7011 = vst [vmem:[%s12674_s4 + $0x40] sm:$0xff] %v5955_v1 }
 0x817   : > { %7012 = vst [vmem:[%s12674_s4 + $0x48] sm:$0xff] %v5956_v4  ;;  %4903 = vmatmul.f32.gmra.mxu1 %v12695_v60 }
 0x818   : > { %7030 = vst [vmem:[%s12674_s4 + $0xd8] sm:$0xff] %v5974_v16  ;;  %4564 = vmatmul.f32.gmra.mxu2 %v12695_v60  ;;  %v9212_v16 = vld [vmem:[%s10273_s22 + $0x250] sm:$0xff] }
 0x819   : > { %4677 = vmatmul.f32.gmra.mxu3 %v12695_v60 }
 0x81a   : > { %v4749_v62 = vpop.f32.mrf.mxu0 }
 0x81b   : > { %v6005_v49 = vmul.f32 %v9208_v21, %v4749_v62  ;;  %v4517_v9 = vpop.f32.mrf.mxu2 }
 0x81c   : > { %v5971_v36 = vmul.f32 %v9209_v24, %v4517_v9  ;;  %v4630_v40 = vpop.f32.mrf.mxu3  ;;  %v4859_v1 = vpop.f32.mrf.mxu1 }
 0x81d   : > { %7061 = vst [vmem:[%s12674_s4 + $0x1d0] sm:$0xff] %v6005_v49  ;;  %v5972_v33 = vmul.f32 %v9210_v15, %v4630_v40  ;;  %4796 = vmatmul.f32.gmra.mxu0 %v12733_v8  ;;  %v5990_v4 = vmul.f32 %v9211_v45, %v4859_v1  ;;  %v9213_v49 = vld [vmem:[%s10273_s22 + $0x140] sm:$0xff]  ;;  %v9214_v40 = vld [vmem:[%s10273_s22 + $0x148] sm:$0xff]  ;;  %v9215_v15 = vld [vmem:[%s10273_s22 + $0x1d8] sm:$0xff] }
 0x81e   : > { %7027 = vst [vmem:[%s12674_s4 + $0xc0] sm:$0xff] %v5971_v36 }
 0x81f   : > { %7028 = vst [vmem:[%s12674_s4 + $0xc8] sm:$0xff] %v5972_v33  ;;  %4906 = vmatmul.f32.gmra.mxu1 %v12717_v47 }
 0x820   : > { %7046 = vst [vmem:[%s12674_s4 + $0x158] sm:$0xff] %v5990_v4  ;;  %4567 = vmatmul.f32.gmra.mxu2 %v12717_v47  ;;  %v9216_v4 = vld [vmem:[%s10273_s22 + $0x2d0] sm:$0xff] }
 0x821   : > { %4680 = vmatmul.f32.gmra.mxu3 %v12717_v47 }
 0x822   : > { %v4752_v31 = vpop.f32.mrf.mxu0 }
 0x823   : > { %v6021_v62 = vmul.f32 %v9212_v16, %v4752_v31  ;;  %v4520_v21 = vpop.f32.mrf.mxu2 }
 0x824   : > { %v5987_v9 = vmul.f32 %v9213_v49, %v4520_v21  ;;  %v4633_v24 = vpop.f32.mrf.mxu3  ;;  %v4862_v36 = vpop.f32.mrf.mxu1 }
 0x825   : > { %7077 = vst [vmem:[%s12674_s4 + $0x250] sm:$0xff] %v6021_v62  ;;  %v5988_v1 = vmul.f32 %v9214_v40, %v4633_v24  ;;  %4799 = vmatmul.f32.gmra.mxu0 %v12749_v20  ;;  %v6006_v33 = vmul.f32 %v9215_v15, %v4862_v36  ;;  %v9217_v62 = vld [vmem:[%s10273_s22 + $0x1c0] sm:$0xff]  ;;  %v9218_v24 = vld [vmem:[%s10273_s22 + $0x1c8] sm:$0xff]  ;;  %v9219_v40 = vld [vmem:[%s10273_s22 + $0x258] sm:$0xff] }
 0x826   : > { %7043 = vst [vmem:[%s12674_s4 + $0x140] sm:$0xff] %v5987_v9 }
 0x827   : > { %7044 = vst [vmem:[%s12674_s4 + $0x148] sm:$0xff] %v5988_v1  ;;  %4909 = vmatmul.f32.gmra.mxu1 %v12733_v8 }
 0x828   : > { %7062 = vst [vmem:[%s12674_s4 + $0x1d8] sm:$0xff] %v6006_v33  ;;  %4570 = vmatmul.f32.gmra.mxu2 %v12733_v8  ;;  %v9220_v33 = vld [vmem:[%s10273_s22 + $0x350] sm:$0xff] }
 0x829   : > { %4683 = vmatmul.f32.gmra.mxu3 %v12733_v8 }
 0x82a   : > { %v4755_v45 = vpop.f32.mrf.mxu0 }
 0x82b   : > { %v6037_v31 = vmul.f32 %v9216_v4, %v4755_v45  ;;  %v4523_v16 = vpop.f32.mrf.mxu2 }
 0x82c   : > { %v6003_v21 = vmul.f32 %v9217_v62, %v4523_v16  ;;  %v4636_v49 = vpop.f32.mrf.mxu3  ;;  %v4865_v9 = vpop.f32.mrf.mxu1 }
 0x82d   : > { %7093 = vst [vmem:[%s12674_s4 + $0x2d0] sm:$0xff] %v6037_v31  ;;  %v6004_v36 = vmul.f32 %v9218_v24, %v4636_v49  ;;  %4802 = vmatmul.f32.gmra.mxu0 %v12765_v18  ;;  %v6022_v1 = vmul.f32 %v9219_v40, %v4865_v9  ;;  %v9221_v31 = vld [vmem:[%s10273_s22 + $0x240] sm:$0xff]  ;;  %v9222_v49 = vld [vmem:[%s10273_s22 + $0x248] sm:$0xff]  ;;  %v9223_v24 = vld [vmem:[%s10273_s22 + $0x2d8] sm:$0xff] }
 0x82e   : > { %7059 = vst [vmem:[%s12674_s4 + $0x1c0] sm:$0xff] %v6003_v21 }
 0x82f   : > { %7060 = vst [vmem:[%s12674_s4 + $0x1c8] sm:$0xff] %v6004_v36  ;;  %4912 = vmatmul.f32.gmra.mxu1 %v12749_v20 }
 0x830   : > { %7078 = vst [vmem:[%s12674_s4 + $0x258] sm:$0xff] %v6022_v1  ;;  %4573 = vmatmul.f32.gmra.mxu2 %v12749_v20  ;;  %v9224_v1 = vld [vmem:[%s10273_s22 + $0x3d0] sm:$0xff] }
 0x831   : > { %4686 = vmatmul.f32.gmra.mxu3 %v12749_v20 }
 0x832   : > { %v4758_v15 = vpop.f32.mrf.mxu0 }
 0x833   : > { %v6053_v45 = vmul.f32 %v9220_v33, %v4758_v15  ;;  %v4526_v4 = vpop.f32.mrf.mxu2 }
 0x834   : > { %v6019_v16 = vmul.f32 %v9221_v31, %v4526_v4  ;;  %v4639_v62 = vpop.f32.mrf.mxu3  ;;  %v4868_v21 = vpop.f32.mrf.mxu1 }
 0x835   : > { %7109 = vst [vmem:[%s12674_s4 + $0x350] sm:$0xff] %v6053_v45  ;;  %v6020_v9 = vmul.f32 %v9222_v49, %v4639_v62  ;;  %4805 = vmatmul.f32.gmra.mxu0 %v12781_v11  ;;  %v6038_v36 = vmul.f32 %v9223_v24, %v4868_v21  ;;  %v9225_v45 = vld [vmem:[%s10273_s22 + $0x2c0] sm:$0xff]  ;;  %v9226_v62 = vld [vmem:[%s10273_s22 + $0x2c8] sm:$0xff]  ;;  %v9227_v49 = vld [vmem:[%s10273_s22 + $0x358] sm:$0xff] }
 0x836   : > { %7075 = vst [vmem:[%s12674_s4 + $0x240] sm:$0xff] %v6019_v16 }
 0x837   : > { %7076 = vst [vmem:[%s12674_s4 + $0x248] sm:$0xff] %v6020_v9  ;;  %4915 = vmatmul.f32.gmra.mxu1 %v12765_v18 }
 0x838   : > { %7094 = vst [vmem:[%s12674_s4 + $0x2d8] sm:$0xff] %v6038_v36  ;;  %4576 = vmatmul.f32.gmra.mxu2 %v12765_v18  ;;  %v9228_v36 = vld [vmem:[%s10273_s22 + $0x450] sm:$0xff] }
 0x839   : > { %4689 = vmatmul.f32.gmra.mxu3 %v12765_v18 }
 0x83a   : > { %v4761_v40 = vpop.f32.mrf.mxu0 }
 0x83b   : > { %v6069_v15 = vmul.f32 %v9224_v1, %v4761_v40  ;;  %v4529_v33 = vpop.f32.mrf.mxu2 }
 0x83c   : > { %v6035_v4 = vmul.f32 %v9225_v45, %v4529_v33  ;;  %v4642_v31 = vpop.f32.mrf.mxu3  ;;  %v4871_v16 = vpop.f32.mrf.mxu1 }
 0x83d   : > { %7125 = vst [vmem:[%s12674_s4 + $0x3d0] sm:$0xff] %v6069_v15  ;;  %v6036_v21 = vmul.f32 %v9226_v62, %v4642_v31  ;;  %4808 = vmatmul.f32.gmra.mxu0 %v12797_v51  ;;  %v6054_v9 = vmul.f32 %v9227_v49, %v4871_v16  ;;  %v9229_v15 = vld [vmem:[%s10273_s22 + $0x340] sm:$0xff]  ;;  %v9230_v31 = vld [vmem:[%s10273_s22 + $0x348] sm:$0xff]  ;;  %v9231_v62 = vld [vmem:[%s10273_s22 + $0x3d8] sm:$0xff] }
 0x83e   : > { %7091 = vst [vmem:[%s12674_s4 + $0x2c0] sm:$0xff] %v6035_v4 }
 0x83f   : > { %7092 = vst [vmem:[%s12674_s4 + $0x2c8] sm:$0xff] %v6036_v21  ;;  %4918 = vmatmul.f32.gmra.mxu1 %v12781_v11 }
 0x840   : > { %7110 = vst [vmem:[%s12674_s4 + $0x358] sm:$0xff] %v6054_v9  ;;  %4579 = vmatmul.f32.gmra.mxu2 %v12781_v11  ;;  %v9232_v9 = vld [vmem:[%s10273_s22 + $0x4d0] sm:$0xff] }
 0x841   : > { %4692 = vmatmul.f32.gmra.mxu3 %v12781_v11 }
 0x842   : > { %v4764_v24 = vpop.f32.mrf.mxu0 }
 0x843   : > { %v6085_v40 = vmul.f32 %v9228_v36, %v4764_v24  ;;  %v4532_v1 = vpop.f32.mrf.mxu2 }
 0x844   : > { %v6051_v33 = vmul.f32 %v9229_v15, %v4532_v1  ;;  %v4645_v45 = vpop.f32.mrf.mxu3  ;;  %v4874_v4 = vpop.f32.mrf.mxu1 }
 0x845   : > { %7141 = vst [vmem:[%s12674_s4 + $0x450] sm:$0xff] %v6085_v40  ;;  %v6052_v16 = vmul.f32 %v9230_v31, %v4645_v45  ;;  %4811 = vmatmul.f32.gmra.mxu0 %v12813_v27  ;;  %v6070_v21 = vmul.f32 %v9231_v62, %v4874_v4  ;;  %v9233_v40 = vld [vmem:[%s10273_s22 + $0x3c0] sm:$0xff]  ;;  %v9234_v45 = vld [vmem:[%s10273_s22 + $0x3c8] sm:$0xff]  ;;  %v9235_v31 = vld [vmem:[%s10273_s22 + $0x458] sm:$0xff] }
 0x846   : > { %7107 = vst [vmem:[%s12674_s4 + $0x340] sm:$0xff] %v6051_v33 }
 0x847   : > { %7108 = vst [vmem:[%s12674_s4 + $0x348] sm:$0xff] %v6052_v16  ;;  %4921 = vmatmul.f32.gmra.mxu1 %v12797_v51 }
 0x848   : > { %7126 = vst [vmem:[%s12674_s4 + $0x3d8] sm:$0xff] %v6070_v21  ;;  %4582 = vmatmul.f32.gmra.mxu2 %v12797_v51  ;;  %v9236_v21 = vld [vmem:[%s10273_s22 + $0x550] sm:$0xff] }
 0x849   : > { %4695 = vmatmul.f32.gmra.mxu3 %v12797_v51 }
 0x84a   : > { %v4767_v49 = vpop.f32.mrf.mxu0 }
 0x84b   : > { %v6101_v24 = vmul.f32 %v9232_v9, %v4767_v49  ;;  %v4535_v36 = vpop.f32.mrf.mxu2 }
 0x84c   : > { %v6067_v1 = vmul.f32 %v9233_v40, %v4535_v36  ;;  %v4648_v15 = vpop.f32.mrf.mxu3  ;;  %v4877_v33 = vpop.f32.mrf.mxu1 }
 0x84d   : > { %7157 = vst [vmem:[%s12674_s4 + $0x4d0] sm:$0xff] %v6101_v24  ;;  %v6068_v4 = vmul.f32 %v9234_v45, %v4648_v15  ;;  %4814 = vmatmul.f32.gmra.mxu0 %v12829_v10  ;;  %v6086_v16 = vmul.f32 %v9235_v31, %v4877_v33  ;;  %v9237_v24 = vld [vmem:[%s10273_s22 + $0x440] sm:$0xff]  ;;  %v9238_v15 = vld [vmem:[%s10273_s22 + $0x448] sm:$0xff]  ;;  %v9239_v45 = vld [vmem:[%s10273_s22 + $0x4d8] sm:$0xff] }
 0x84e   : > { %7123 = vst [vmem:[%s12674_s4 + $0x3c0] sm:$0xff] %v6067_v1 }
 0x84f   : > { %7124 = vst [vmem:[%s12674_s4 + $0x3c8] sm:$0xff] %v6068_v4  ;;  %4924 = vmatmul.f32.gmra.mxu1 %v12813_v27 }
 0x850   : > { %7142 = vst [vmem:[%s12674_s4 + $0x458] sm:$0xff] %v6086_v16  ;;  %4585 = vmatmul.f32.gmra.mxu2 %v12813_v27  ;;  %v9240_v16 = vld [vmem:[%s10273_s22 + $0x5d0] sm:$0xff] }
 0x851   : > { %4698 = vmatmul.f32.gmra.mxu3 %v12813_v27 }
 0x852   : > { %v4770_v62 = vpop.f32.mrf.mxu0 }
 0x853   : > { %v6117_v49 = vmul.f32 %v9236_v21, %v4770_v62  ;;  %v4538_v9 = vpop.f32.mrf.mxu2 }
 0x854   : > { %v6083_v36 = vmul.f32 %v9237_v24, %v4538_v9  ;;  %v4651_v40 = vpop.f32.mrf.mxu3  ;;  %v4880_v1 = vpop.f32.mrf.mxu1 }
 0x855   : > { %7173 = vst [vmem:[%s12674_s4 + $0x550] sm:$0xff] %v6117_v49  ;;  %v6084_v33 = vmul.f32 %v9238_v15, %v4651_v40  ;;  %4817 = vmatmul.f32.gmra.mxu0 %v12845_v0  ;;  %v6102_v4 = vmul.f32 %v9239_v45, %v4880_v1  ;;  %v9241_v49 = vld [vmem:[%s10273_s22 + $0x4c0] sm:$0xff]  ;;  %v9242_v40 = vld [vmem:[%s10273_s22 + $0x4c8] sm:$0xff]  ;;  %v9243_v15 = vld [vmem:[%s10273_s22 + $0x558] sm:$0xff] }
 0x856   : > { %7139 = vst [vmem:[%s12674_s4 + $0x440] sm:$0xff] %v6083_v36 }
 0x857   : > { %7140 = vst [vmem:[%s12674_s4 + $0x448] sm:$0xff] %v6084_v33  ;;  %4927 = vmatmul.f32.gmra.mxu1 %v12829_v10 }
 0x858   : > { %7158 = vst [vmem:[%s12674_s4 + $0x4d8] sm:$0xff] %v6102_v4  ;;  %4588 = vmatmul.f32.gmra.mxu2 %v12829_v10  ;;  %v9244_v4 = vld [vmem:[%s10273_s22 + $0x650] sm:$0xff] }
 0x859   : > { %4701 = vmatmul.f32.gmra.mxu3 %v12829_v10 }
 0x85a   : > { %v4773_v31 = vpop.f32.mrf.mxu0 }
 0x85b   : > { %v6133_v62 = vmul.f32 %v9240_v16, %v4773_v31  ;;  %v4541_v21 = vpop.f32.mrf.mxu2 }
 0x85c   : > { %v6099_v9 = vmul.f32 %v9241_v49, %v4541_v21  ;;  %v4654_v24 = vpop.f32.mrf.mxu3  ;;  %v4883_v36 = vpop.f32.mrf.mxu1 }
 0x85d   : > { %7189 = vst [vmem:[%s12674_s4 + $0x5d0] sm:$0xff] %v6133_v62  ;;  %v6100_v1 = vmul.f32 %v9242_v40, %v4654_v24  ;;  %4820 = vmatmul.f32.gmra.mxu0 %v12861_v7  ;;  %v6118_v33 = vmul.f32 %v9243_v15, %v4883_v36  ;;  %v9245_v62 = vld [vmem:[%s10273_s22 + $0x540] sm:$0xff]  ;;  %v9246_v24 = vld [vmem:[%s10273_s22 + $0x548] sm:$0xff]  ;;  %v9247_v40 = vld [vmem:[%s10273_s22 + $0x5d8] sm:$0xff] }
 0x85e   : > { %7155 = vst [vmem:[%s12674_s4 + $0x4c0] sm:$0xff] %v6099_v9 }
 0x85f   : > { %7156 = vst [vmem:[%s12674_s4 + $0x4c8] sm:$0xff] %v6100_v1  ;;  %4930 = vmatmul.f32.gmra.mxu1 %v12845_v0 }
 0x860   : > { %7174 = vst [vmem:[%s12674_s4 + $0x558] sm:$0xff] %v6118_v33  ;;  %4591 = vmatmul.f32.gmra.mxu2 %v12845_v0  ;;  %v9248_v33 = vld [vmem:[%s10273_s22 + $0x6d0] sm:$0xff] }
 0x861   : > { %4704 = vmatmul.f32.gmra.mxu3 %v12845_v0 }
 0x862   : > { %v4776_v45 = vpop.f32.mrf.mxu0 }
 0x863   : > { %v6149_v31 = vmul.f32 %v9244_v4, %v4776_v45  ;;  %v4544_v16 = vpop.f32.mrf.mxu2 }
 0x864   : > { %v6115_v21 = vmul.f32 %v9245_v62, %v4544_v16  ;;  %v4657_v49 = vpop.f32.mrf.mxu3  ;;  %v4886_v9 = vpop.f32.mrf.mxu1 }
 0x865   : > { %7205 = vst [vmem:[%s12674_s4 + $0x650] sm:$0xff] %v6149_v31  ;;  %v6116_v36 = vmul.f32 %v9246_v24, %v4657_v49  ;;  %4823 = vmatmul.f32.gmra.mxu0 %v12877_v42  ;;  %v6134_v1 = vmul.f32 %v9247_v40, %v4886_v9  ;;  %v9249_v31 = vld [vmem:[%s10273_s22 + $0x5c0] sm:$0xff]  ;;  %v9250_v49 = vld [vmem:[%s10273_s22 + $0x5c8] sm:$0xff]  ;;  %v9251_v24 = vld [vmem:[%s10273_s22 + $0x658] sm:$0xff] }
 0x866   : > { %7171 = vst [vmem:[%s12674_s4 + $0x540] sm:$0xff] %v6115_v21 }
 0x867   : > { %7172 = vst [vmem:[%s12674_s4 + $0x548] sm:$0xff] %v6116_v36  ;;  %4933 = vmatmul.f32.gmra.mxu1 %v12861_v7 }
 0x868   : > { %7190 = vst [vmem:[%s12674_s4 + $0x5d8] sm:$0xff] %v6134_v1  ;;  %4594 = vmatmul.f32.gmra.mxu2 %v12861_v7  ;;  %v9252_v1 = vld [vmem:[%s10273_s22 + $0x750] sm:$0xff] }
 0x869   : > { %4707 = vmatmul.f32.gmra.mxu3 %v12861_v7 }
 0x86a   : > { %v4779_v15 = vpop.f32.mrf.mxu0 }
 0x86b   : > { %v6165_v45 = vmul.f32 %v9248_v33, %v4779_v15  ;;  %v4547_v4 = vpop.f32.mrf.mxu2 }
 0x86c   : > { %v6131_v16 = vmul.f32 %v9249_v31, %v4547_v4  ;;  %v4660_v62 = vpop.f32.mrf.mxu3  ;;  %v4889_v21 = vpop.f32.mrf.mxu1 }
 0x86d   : > { %7221 = vst [vmem:[%s12674_s4 + $0x6d0] sm:$0xff] %v6165_v45  ;;  %v6132_v9 = vmul.f32 %v9250_v49, %v4660_v62  ;;  %4826 = vmatmul.f32.gmra.mxu0 %v12893_v59  ;;  %v6150_v36 = vmul.f32 %v9251_v24, %v4889_v21  ;;  %v9253_v45 = vld [vmem:[%s10273_s22 + $0x640] sm:$0xff]  ;;  %v9254_v62 = vld [vmem:[%s10273_s22 + $0x648] sm:$0xff]  ;;  %v9255_v49 = vld [vmem:[%s10273_s22 + $0x6d8] sm:$0xff] }
 0x86e   : > { %7187 = vst [vmem:[%s12674_s4 + $0x5c0] sm:$0xff] %v6131_v16 }
 0x86f   : > { %7188 = vst [vmem:[%s12674_s4 + $0x5c8] sm:$0xff] %v6132_v9  ;;  %4936 = vmatmul.f32.gmra.mxu1 %v12877_v42 }
 0x870   : > { %7206 = vst [vmem:[%s12674_s4 + $0x658] sm:$0xff] %v6150_v36  ;;  %4597 = vmatmul.f32.gmra.mxu2 %v12877_v42  ;;  %v9256_v36 = vld [vmem:[%s10273_s22 + $0x7d0] sm:$0xff] }
 0x871   : > { %4710 = vmatmul.f32.gmra.mxu3 %v12877_v42 }
 0x872   : > { %v4782_v40 = vpop.f32.mrf.mxu0 }
 0x873   : > { %v6181_v15 = vmul.f32 %v9252_v1, %v4782_v40  ;;  %v4550_v33 = vpop.f32.mrf.mxu2 }
 0x874   : > { %v6147_v4 = vmul.f32 %v9253_v45, %v4550_v33  ;;  %v4663_v31 = vpop.f32.mrf.mxu3  ;;  %v4892_v16 = vpop.f32.mrf.mxu1 }
 0x875   : > { %7237 = vst [vmem:[%s12674_s4 + $0x750] sm:$0xff] %v6181_v15  ;;  %v6148_v21 = vmul.f32 %v9254_v62, %v4663_v31  ;;  %4829 = vmatmul.f32.gmra.mxu0 %v12909_v38  ;;  %v6166_v9 = vmul.f32 %v9255_v49, %v4892_v16  ;;  %v9257_v15 = vld [vmem:[%s10273_s22 + $0x6c0] sm:$0xff]  ;;  %v9258_v31 = vld [vmem:[%s10273_s22 + $0x6c8] sm:$0xff]  ;;  %v9259_v62 = vld [vmem:[%s10273_s22 + $0x758] sm:$0xff] }
 0x876   : > { %7203 = vst [vmem:[%s12674_s4 + $0x640] sm:$0xff] %v6147_v4 }
 0x877   : > { %7204 = vst [vmem:[%s12674_s4 + $0x648] sm:$0xff] %v6148_v21  ;;  %4939 = vmatmul.f32.gmra.mxu1 %v12893_v59 }
 0x878   : > { %7222 = vst [vmem:[%s12674_s4 + $0x6d8] sm:$0xff] %v6166_v9  ;;  %4600 = vmatmul.f32.gmra.mxu2 %v12893_v59  ;;  %v9260_v9 = vld [vmem:[%s10273_s22 + $0x850] sm:$0xff] }
 0x879   : > { %4713 = vmatmul.f32.gmra.mxu3 %v12893_v59 }
 0x87a   : > { %v4785_v24 = vpop.f32.mrf.mxu0 }
 0x87b   : > { %v6197_v40 = vmul.f32 %v9256_v36, %v4785_v24  ;;  %v4553_v1 = vpop.f32.mrf.mxu2 }
 0x87c   : > { %v6163_v33 = vmul.f32 %v9257_v15, %v4553_v1  ;;  %v4666_v45 = vpop.f32.mrf.mxu3  ;;  %v4895_v4 = vpop.f32.mrf.mxu1 }
 0x87d   : > { %7253 = vst [vmem:[%s12674_s4 + $0x7d0] sm:$0xff] %v6197_v40  ;;  %v6164_v16 = vmul.f32 %v9258_v31, %v4666_v45  ;;  %4832 = vmatmul.f32.gmra.mxu0 %v12925_v37  ;;  %v6182_v21 = vmul.f32 %v9259_v62, %v4895_v4  ;;  %v9261_v40 = vld [vmem:[%s10273_s22 + $0x740] sm:$0xff]  ;;  %v9262_v45 = vld [vmem:[%s10273_s22 + $0x748] sm:$0xff]  ;;  %v9263_v31 = vld [vmem:[%s10273_s22 + $0x7d8] sm:$0xff] }
 0x87e   : > { %7219 = vst [vmem:[%s12674_s4 + $0x6c0] sm:$0xff] %v6163_v33 }
 0x87f   : > { %7220 = vst [vmem:[%s12674_s4 + $0x6c8] sm:$0xff] %v6164_v16  ;;  %4942 = vmatmul.f32.gmra.mxu1 %v12909_v38 }
 0x880   : > { %7238 = vst [vmem:[%s12674_s4 + $0x758] sm:$0xff] %v6182_v21  ;;  %4603 = vmatmul.f32.gmra.mxu2 %v12909_v38  ;;  %v9264_v21 = vld [vmem:[%s10273_s22 + $0x8d0] sm:$0xff] }
 0x881   : > { %4716 = vmatmul.f32.gmra.mxu3 %v12909_v38 }
 0x882   : > { %v4788_v49 = vpop.f32.mrf.mxu0 }
 0x883   : > { %v6213_v24 = vmul.f32 %v9260_v9, %v4788_v49  ;;  %v4556_v36 = vpop.f32.mrf.mxu2 }
 0x884   : > { %v6179_v1 = vmul.f32 %v9261_v40, %v4556_v36  ;;  %v4669_v15 = vpop.f32.mrf.mxu3  ;;  %v4898_v33 = vpop.f32.mrf.mxu1 }
 0x885   : > { %7269 = vst [vmem:[%s12674_s4 + $0x850] sm:$0xff] %v6213_v24  ;;  %v6180_v4 = vmul.f32 %v9262_v45, %v4669_v15  ;;  %v6198_v16 = vmul.f32 %v9263_v31, %v4898_v33  ;;  %5191 = vmatmul.f32.vlgmr.msra.gmra.mxu0 %v12254_v29  ;;  %v9265_v24 = vld [vmem:[%s10273_s22 + $0x7c0] sm:$0xff]  ;;  %v9266_v15 = vld [vmem:[%s10273_s22 + $0x7c8] sm:$0xff]  ;;  %v9267_v45 = vld [vmem:[%s10273_s22 + $0x858] sm:$0xff] }
 0x886   : > { %7235 = vst [vmem:[%s12674_s4 + $0x740] sm:$0xff] %v6179_v1 }
 0x887   : > { %7236 = vst [vmem:[%s12674_s4 + $0x748] sm:$0xff] %v6180_v4  ;;  %4945 = vmatmul.f32.gmra.mxu1 %v12925_v37 }
 0x888   : > { %7254 = vst [vmem:[%s12674_s4 + $0x7d8] sm:$0xff] %v6198_v16  ;;  %4606 = vmatmul.f32.gmra.mxu2 %v12925_v37  ;;  %v9268_v16 = vld [vmem:[%s10273_s22 + $0x950] sm:$0xff] }
 0x889   : > { %4719 = vmatmul.f32.gmra.mxu3 %v12925_v37 }
 0x88a   : > { %v4791_v62 = vpop.f32.mrf.mxu0 }
 0x88b   : > { %v6229_v49 = vmul.f32 %v9264_v21, %v4791_v62  ;;  %v4559_v9 = vpop.f32.mrf.mxu2 }
 0x88c   : > { %v6195_v36 = vmul.f32 %v9265_v24, %v4559_v9  ;;  %v4672_v40 = vpop.f32.mrf.mxu3  ;;  %v4901_v1 = vpop.f32.mrf.mxu1 }
 0x88d   : > { %7285 = vst [vmem:[%s12674_s4 + $0x8d0] sm:$0xff] %v6229_v49  ;;  %v6196_v33 = vmul.f32 %v9266_v15, %v4672_v40  ;;  %v6214_v4 = vmul.f32 %v9267_v45, %v4901_v1  ;;  %5194 = vmatmul.f32.gmra.mxu0 %v12270_v13  ;;  %v9269_v49 = vld [vmem:[%s10273_s22 + $0x840] sm:$0xff]  ;;  %v9270_v40 = vld [vmem:[%s10273_s22 + $0x848] sm:$0xff]  ;;  %v9271_v15 = vld [vmem:[%s10273_s22 + $0x8d8] sm:$0xff] }
 0x88e   : > { %7251 = vst [vmem:[%s12674_s4 + $0x7c0] sm:$0xff] %v6195_v36  ;;  %v9272_v45 = vld [vmem:[%s10273_s22 + $0x9d0] sm:$0xff] }
 0x88f   : > { %7252 = vst [vmem:[%s12674_s4 + $0x7c8] sm:$0xff] %v6196_v33  ;;  %5304 = vmatmul.f32.vlgmr.msra.gmra.mxu1 %v12254_v29 }
 0x890   : > { %7270 = vst [vmem:[%s12674_s4 + $0x858] sm:$0xff] %v6214_v4  ;;  %4965 = vmatmul.f32.vlgmr.msra.gmra.mxu2 %v12254_v29 }
 0x891   : > { %5078 = vmatmul.f32.vlgmr.msra.gmra.mxu3 %v12254_v29 }
 0x892   : > { %v4794_v31 = vpop.f32.mrf.mxu0 }
 0x893   : > { %v6245_v62 = vmul.f32 %v9268_v16, %v4794_v31  ;;  %v4562_v21 = vpop.f32.mrf.mxu2  ;;  %v9273_v16 = vld [vmem:[%s10273_s22 + $0x8c0] sm:$0xff] }
 0x894   : > { %v6211_v9 = vmul.f32 %v9269_v49, %v4562_v21  ;;  %v4675_v24 = vpop.f32.mrf.mxu3  ;;  %v4904_v36 = vpop.f32.mrf.mxu1 }
 0x895   : > { %7301 = vst [vmem:[%s12674_s4 + $0x950] sm:$0xff] %v6245_v62  ;;  %v6212_v1 = vmul.f32 %v9270_v40, %v4675_v24  ;;  %v6230_v33 = vmul.f32 %v9271_v15, %v4904_v36  ;;  %5197 = vmatmul.f32.gmra.mxu0 %v12286_v28  ;;  %v9275_v36 = vld [vmem:[%s10273_s22 + $0x958] sm:$0xff] }
 0x896   : > { %7267 = vst [vmem:[%s12674_s4 + $0x840] sm:$0xff] %v6211_v9  ;;  %v9274_v9 = vld [vmem:[%s10273_s22 + $0x8c8] sm:$0xff] }
 0x897   : > { %7268 = vst [vmem:[%s12674_s4 + $0x848] sm:$0xff] %v6212_v1  ;;  %5307 = vmatmul.f32.gmra.mxu1 %v12270_v13  ;;  %v9276_v1 = vld [vmem:[%s10273_s22 + $0xa50] sm:$0xff] }
 0x898   : > { %7286 = vst [vmem:[%s12674_s4 + $0x8d8] sm:$0xff] %v6230_v33  ;;  %4968 = vmatmul.f32.gmra.mxu2 %v12270_v13 }
 0x899   : > { %5081 = vmatmul.f32.gmra.mxu3 %v12270_v13 }
 0x89a   : > { %v4797_v29 = vpop.f32.mrf.mxu0 }
 0x89b   : > { %v6261_v4 = vmul.f32 %v9272_v45, %v4797_v29  ;;  %v4565_v31 = vpop.f32.mrf.mxu2  ;;  %v9277_v29 = vld [vmem:[%s10273_s22 + $0x940] sm:$0xff] }
 0x89c   : > { %v6227_v62 = vmul.f32 %v9273_v16, %v4565_v31  ;;  %v4678_v21 = vpop.f32.mrf.mxu3  ;;  %v4907_v49 = vpop.f32.mrf.mxu1  ;;  %v9278_v16 = vld [vmem:[%s10273_s22 + $0x948] sm:$0xff] }
 0x89d   : > { %7317 = vst [vmem:[%s12674_s4 + $0x9d0] sm:$0xff] %v6261_v4  ;;  %v6228_v24 = vmul.f32 %v9274_v9, %v4678_v21  ;;  %v6246_v40 = vmul.f32 %v9275_v36, %v4907_v49  ;;  %5200 = vmatmul.f32.gmra.mxu0 %v12302_v3  ;;  %v9279_v21 = vld [vmem:[%s10273_s22 + $0x9d8] sm:$0xff]  ;;  %v9280_v9 = vld [vmem:[%s10273_s22 + $0xad0] sm:$0xff] }
 0x89e   : > { %7283 = vst [vmem:[%s12674_s4 + $0x8c0] sm:$0xff] %v6227_v62 }
 0x89f   : > { %7284 = vst [vmem:[%s12674_s4 + $0x8c8] sm:$0xff] %v6228_v24  ;;  %5310 = vmatmul.f32.gmra.mxu1 %v12286_v28 }
 0x8a0   : > { %7302 = vst [vmem:[%s12674_s4 + $0x958] sm:$0xff] %v6246_v40  ;;  %4971 = vmatmul.f32.gmra.mxu2 %v12286_v28  ;;  %v9281_v40 = vld [vmem:[%s10273_s22 + $0x9c0] sm:$0xff] }
 0x8a1   : > { %5084 = vmatmul.f32.gmra.mxu3 %v12286_v28 }
 0x8a2   : > { %v4800_v13 = vpop.f32.mrf.mxu0 }
 0x8a3   : > { %v6277_v15 = vmul.f32 %v9276_v1, %v4800_v13  ;;  %v4568_v33 = vpop.f32.mrf.mxu2 }
 0x8a4   : > { %v6243_v45 = vmul.f32 %v9277_v29, %v4568_v33  ;;  %v4681_v4 = vpop.f32.mrf.mxu3  ;;  %v4910_v31 = vpop.f32.mrf.mxu1  ;;  %v9282_v33 = vld [vmem:[%s10273_s22 + $0x9c8] sm:$0xff] }
 0x8a5   : > { %7333 = vst [vmem:[%s12674_s4 + $0xa50] sm:$0xff] %v6277_v15  ;;  %v6244_v62 = vmul.f32 %v9278_v16, %v4681_v4  ;;  %v6262_v49 = vmul.f32 %v9279_v21, %v4910_v31  ;;  %5203 = vmatmul.f32.gmra.mxu0 %v12330_v35  ;;  %v9284_v31 = vld [vmem:[%s10273_s22 + $0xb50] sm:$0xff]  ;;  %v9285_v21 = vld [vmem:[%s10273_s22 + $0xa40] sm:$0xff] }
 0x8a6   : > { %7299 = vst [vmem:[%s12674_s4 + $0x940] sm:$0xff] %v6243_v45  ;;  %v9283_v45 = vld [vmem:[%s10273_s22 + $0xa58] sm:$0xff] }
 0x8a7   : > { %7300 = vst [vmem:[%s12674_s4 + $0x948] sm:$0xff] %v6244_v62  ;;  %5313 = vmatmul.f32.gmra.mxu1 %v12302_v3 }
 0x8a8   : > { %7318 = vst [vmem:[%s12674_s4 + $0x9d8] sm:$0xff] %v6262_v49  ;;  %4974 = vmatmul.f32.gmra.mxu2 %v12302_v3 }
 0x8a9   : > { %5087 = vmatmul.f32.gmra.mxu3 %v12302_v3 }
 0x8aa   : > { %v4803_v28 = vpop.f32.mrf.mxu0 }
 0x8ab   : > { %v6293_v24 = vmul.f32 %v9280_v9, %v4803_v28  ;;  %v4571_v36 = vpop.f32.mrf.mxu2 }
 0x8ac   : > { %v6259_v13 = vmul.f32 %v9281_v40, %v4571_v36  ;;  %v4684_v1 = vpop.f32.mrf.mxu3  ;;  %v4913_v15 = vpop.f32.mrf.mxu1  ;;  %v9287_v40 = vld [vmem:[%s10273_s22 + $0xad8] sm:$0xff] }
 0x8ad   : > { %7349 = vst [vmem:[%s12674_s4 + $0xad0] sm:$0xff] %v6293_v24  ;;  %v6260_v29 = vmul.f32 %v9282_v33, %v4684_v1  ;;  %v6278_v4 = vmul.f32 %v9283_v45, %v4913_v15  ;;  %5206 = vmatmul.f32.gmra.mxu0 %v12358_v58  ;;  %v9286_v24 = vld [vmem:[%s10273_s22 + $0xa48] sm:$0xff]  ;;  %v9288_v1 = vld [vmem:[%s10273_s22 + $0xbd0] sm:$0xff] }
 0x8ae   : > { %7315 = vst [vmem:[%s12674_s4 + $0x9c0] sm:$0xff] %v6259_v13 }
 0x8af   : > { %7316 = vst [vmem:[%s12674_s4 + $0x9c8] sm:$0xff] %v6260_v29  ;;  %5316 = vmatmul.f32.gmra.mxu1 %v12330_v35  ;;  %v9289_v29 = vld [vmem:[%s10273_s22 + $0xac0] sm:$0xff] }
 0x8b0   : > { %7334 = vst [vmem:[%s12674_s4 + $0xa58] sm:$0xff] %v6278_v4  ;;  %4977 = vmatmul.f32.gmra.mxu2 %v12330_v35 }
 0x8b1   : > { %5090 = vmatmul.f32.gmra.mxu3 %v12330_v35 }
 0x8b2   : > { %v4806_v3 = vpop.f32.mrf.mxu0 }
 0x8b3   : > { %v6309_v16 = vmul.f32 %v9284_v31, %v4806_v3  ;;  %v4574_v62 = vpop.f32.mrf.mxu2  ;;  %v9290_v31 = vld [vmem:[%s10273_s22 + $0xac8] sm:$0xff] }
 0x8b4   : > { %v6275_v49 = vmul.f32 %v9285_v21, %v4574_v62  ;;  %v4687_v28 = vpop.f32.mrf.mxu3  ;;  %v4916_v9 = vpop.f32.mrf.mxu1  ;;  %v9291_v62 = vld [vmem:[%s10273_s22 + $0xb58] sm:$0xff] }
 0x8b5   : > { %7365 = vst [vmem:[%s12674_s4 + $0xb50] sm:$0xff] %v6309_v16  ;;  %v6276_v36 = vmul.f32 %v9286_v24, %v4687_v28  ;;  %v6294_v13 = vmul.f32 %v9287_v40, %v4916_v9  ;;  %5209 = vmatmul.f32.gmra.mxu0 %v12386_v32  ;;  %v9293_v24 = vld [vmem:[%s10273_s22 + $0xb40] sm:$0xff] }
 0x8b6   : > { %7331 = vst [vmem:[%s12674_s4 + $0xa40] sm:$0xff] %v6275_v49  ;;  %v9292_v49 = vld [vmem:[%s10273_s22 + $0xc50] sm:$0xff] }
 0x8b7   : > { %7332 = vst [vmem:[%s12674_s4 + $0xa48] sm:$0xff] %v6276_v36  ;;  %5319 = vmatmul.f32.gmra.mxu1 %v12358_v58 }
 0x8b8   : > { %7350 = vst [vmem:[%s12674_s4 + $0xad8] sm:$0xff] %v6294_v13  ;;  %4980 = vmatmul.f32.gmra.mxu2 %v12358_v58 }
 0x8b9   : > { %5093 = vmatmul.f32.gmra.mxu3 %v12358_v58 }
 0x8ba   : > { %v4809_v35 = vpop.f32.mrf.mxu0 }
 0x8bb   : > { %v6325_v15 = vmul.f32 %v9288_v1, %v4809_v35  ;;  %v4577_v33 = vpop.f32.mrf.mxu2  ;;  %v9294_v35 = vld [vmem:[%s10273_s22 + $0xb48] sm:$0xff] }
 0x8bc   : > { %v6291_v45 = vmul.f32 %v9289_v29, %v4577_v33  ;;  %v4690_v4 = vpop.f32.mrf.mxu3  ;;  %v4919_v3 = vpop.f32.mrf.mxu1  ;;  %v9296_v29 = vld [vmem:[%s10273_s22 + $0xcd0] sm:$0xff] }
 0x8bd   : > { %7381 = vst [vmem:[%s12674_s4 + $0xbd0] sm:$0xff] %v6325_v15  ;;  %v6292_v16 = vmul.f32 %v9290_v31, %v4690_v4  ;;  %v6310_v21 = vmul.f32 %v9291_v62, %v4919_v3  ;;  %5212 = vmatmul.f32.gmra.mxu0 %v12414_v55  ;;  %v9295_v15 = vld [vmem:[%s10273_s22 + $0xbd8] sm:$0xff]  ;;  %v9297_v3 = vld [vmem:[%s10273_s22 + $0xbc0] sm:$0xff] }
 0x8be   : > { %7347 = vst [vmem:[%s12674_s4 + $0xac0] sm:$0xff] %v6291_v45 }
 0x8bf   : > { %7348 = vst [vmem:[%s12674_s4 + $0xac8] sm:$0xff] %v6292_v16  ;;  %5322 = vmatmul.f32.gmra.mxu1 %v12386_v32 }
 0x8c0   : > { %7366 = vst [vmem:[%s12674_s4 + $0xb58] sm:$0xff] %v6310_v21  ;;  %4983 = vmatmul.f32.gmra.mxu2 %v12386_v32  ;;  %v9298_v21 = vld [vmem:[%s10273_s22 + $0xbc8] sm:$0xff] }
 0x8c1   : > { %5096 = vmatmul.f32.gmra.mxu3 %v12386_v32 }
 0x8c2   : > { %v4812_v58 = vpop.f32.mrf.mxu0 }
 0x8c3   : > { %v6341_v28 = vmul.f32 %v9292_v49, %v4812_v58  ;;  %v4580_v9 = vpop.f32.mrf.mxu2  ;;  %v9299_v49 = vld [vmem:[%s10273_s22 + $0xc58] sm:$0xff] }
 0x8c4   : > { %v6307_v36 = vmul.f32 %v9293_v24, %v4580_v9  ;;  %v4693_v40 = vpop.f32.mrf.mxu3  ;;  %v4922_v13 = vpop.f32.mrf.mxu1  ;;  %v9300_v9 = vld [vmem:[%s10273_s22 + $0xd50] sm:$0xff] }
 0x8c5   : > { %7397 = vst [vmem:[%s12674_s4 + $0xc50] sm:$0xff] %v6341_v28  ;;  %v6308_v1 = vmul.f32 %v9294_v35, %v4693_v40  ;;  %v6326_v33 = vmul.f32 %v9295_v15, %v4922_v13  ;;  %5215 = vmatmul.f32.gmra.mxu0 %v12442_v17  ;;  %v9301_v40 = vld [vmem:[%s10273_s22 + $0xc40] sm:$0xff]  ;;  %v9302_v15 = vld [vmem:[%s10273_s22 + $0xc48] sm:$0xff] }
 0x8c6   : > { %7363 = vst [vmem:[%s12674_s4 + $0xb40] sm:$0xff] %v6307_v36 }
 0x8c7   : > { %7364 = vst [vmem:[%s12674_s4 + $0xb48] sm:$0xff] %v6308_v1  ;;  %5325 = vmatmul.f32.gmra.mxu1 %v12414_v55 }
 0x8c8   : > { %7382 = vst [vmem:[%s12674_s4 + $0xbd8] sm:$0xff] %v6326_v33  ;;  %4986 = vmatmul.f32.gmra.mxu2 %v12414_v55 }
 0x8c9   : > { %5099 = vmatmul.f32.gmra.mxu3 %v12414_v55 }
 0x8ca   : > { %v4815_v32 = vpop.f32.mrf.mxu0 }
 0x8cb   : > { %v6357_v45 = vmul.f32 %v9296_v29, %v4815_v32  ;;  %v4583_v4 = vpop.f32.mrf.mxu2  ;;  %v9303_v32 = vld [vmem:[%s10273_s22 + $0xcd8] sm:$0xff] }
 0x8cc   : > { %v6323_v31 = vmul.f32 %v9297_v3, %v4583_v4  ;;  %v4696_v16 = vpop.f32.mrf.mxu3  ;;  %v4925_v62 = vpop.f32.mrf.mxu1 }
 0x8cd   : > { %7413 = vst [vmem:[%s12674_s4 + $0xcd0] sm:$0xff] %v6357_v45  ;;  %v6324_v58 = vmul.f32 %v9298_v21, %v4696_v16  ;;  %v6342_v28 = vmul.f32 %v9299_v49, %v4925_v62  ;;  %5218 = vmatmul.f32.gmra.mxu0 %v12470_v30  ;;  %v9304_v45 = vld [vmem:[%s10273_s22 + $0xdd0] sm:$0xff] }
 0x8ce   : > { %7379 = vst [vmem:[%s12674_s4 + $0xbc0] sm:$0xff] %v6323_v31  ;;  %v9305_v31 = vld [vmem:[%s10273_s22 + $0xcc0] sm:$0xff] }
 0x8cf   : > { %7380 = vst [vmem:[%s12674_s4 + $0xbc8] sm:$0xff] %v6324_v58  ;;  %5328 = vmatmul.f32.gmra.mxu1 %v12442_v17  ;;  %v9306_v58 = vld [vmem:[%s10273_s22 + $0xcc8] sm:$0xff] }
 0x8d0   : > { %7398 = vst [vmem:[%s12674_s4 + $0xc58] sm:$0xff] %v6342_v28  ;;  %4989 = vmatmul.f32.gmra.mxu2 %v12442_v17  ;;  %v9307_v28 = vld [vmem:[%s10273_s22 + $0xd58] sm:$0xff] }
 0x8d1   : > { %5102 = vmatmul.f32.gmra.mxu3 %v12442_v17 }
 0x8d2   : > { %v4818_v55 = vpop.f32.mrf.mxu0 }
 0x8d3   : > { %v6373_v24 = vmul.f32 %v9300_v9, %v4818_v55  ;;  %v4586_v36 = vpop.f32.mrf.mxu2  ;;  %v9308_v9 = vld [vmem:[%s10273_s22 + $0xe50] sm:$0xff] }
 0x8d4   : > { %v6339_v13 = vmul.f32 %v9301_v40, %v4586_v36  ;;  %v4699_v35 = vpop.f32.mrf.mxu3  ;;  %v4928_v1 = vpop.f32.mrf.mxu1  ;;  %v9309_v40 = vld [vmem:[%s10273_s22 + $0xd40] sm:$0xff] }
 0x8d5   : > { %7429 = vst [vmem:[%s12674_s4 + $0xd50] sm:$0xff] %v6373_v24  ;;  %v6340_v33 = vmul.f32 %v9302_v15, %v4699_v35  ;;  %v6358_v29 = vmul.f32 %v9303_v32, %v4928_v1  ;;  %5221 = vmatmul.f32.gmra.mxu0 %v12498_v56  ;;  %v9310_v15 = vld [vmem:[%s10273_s22 + $0xd48] sm:$0xff]  ;;  %v9311_v32 = vld [vmem:[%s10273_s22 + $0xdd8] sm:$0xff] }
 0x8d6   : > { %7395 = vst [vmem:[%s12674_s4 + $0xc40] sm:$0xff] %v6339_v13 }
 0x8d7   : > { %7396 = vst [vmem:[%s12674_s4 + $0xc48] sm:$0xff] %v6340_v33  ;;  %5331 = vmatmul.f32.gmra.mxu1 %v12470_v30 }
 0x8d8   : > { %7414 = vst [vmem:[%s12674_s4 + $0xcd8] sm:$0xff] %v6358_v29  ;;  %4992 = vmatmul.f32.gmra.mxu2 %v12470_v30 }
 0x8d9   : > { %5105 = vmatmul.f32.gmra.mxu3 %v12470_v30 }
 0x8da   : > { %v4821_v17 = vpop.f32.mrf.mxu0 }
 0x8db   : > { %v6389_v4 = vmul.f32 %v9304_v45, %v4821_v17  ;;  %v4589_v3 = vpop.f32.mrf.mxu2  ;;  %v9312_v17 = vld [vmem:[%s10273_s22 + $0xed0] sm:$0xff] }
 0x8dc   : > { %v6355_v16 = vmul.f32 %v9305_v31, %v4589_v3  ;;  %v4702_v62 = vpop.f32.mrf.mxu3  ;;  %v4931_v21 = vpop.f32.mrf.mxu1  ;;  %v9313_v3 = vld [vmem:[%s10273_s22 + $0xdc0] sm:$0xff] }
 0x8dd   : > { %7445 = vst [vmem:[%s12674_s4 + $0xdd0] sm:$0xff] %v6389_v4  ;;  %v6356_v49 = vmul.f32 %v9306_v58, %v4702_v62  ;;  %v6374_v55 = vmul.f32 %v9307_v28, %v4931_v21  ;;  %5224 = vmatmul.f32.gmra.mxu0 %v12526_v63  ;;  %v9314_v21 = vld [vmem:[%s10273_s22 + $0xdc8] sm:$0xff] }
 0x8de   : > { %7411 = vst [vmem:[%s12674_s4 + $0xcc0] sm:$0xff] %v6355_v16 }
 0x8df   : > { %7412 = vst [vmem:[%s12674_s4 + $0xcc8] sm:$0xff] %v6356_v49  ;;  %5334 = vmatmul.f32.gmra.mxu1 %v12498_v56  ;;  %v9315_v49 = vld [vmem:[%s10273_s22 + $0xe58] sm:$0xff] }
 0x8e0   : > { %7430 = vst [vmem:[%s12674_s4 + $0xd58] sm:$0xff] %v6374_v55  ;;  %4995 = vmatmul.f32.gmra.mxu2 %v12498_v56  ;;  %v9316_v55 = vld [vmem:[%s10273_s22 + $0xf50] sm:$0xff] }
 0x8e1   : > { %5108 = vmatmul.f32.gmra.mxu3 %v12498_v56 }
 0x8e2   : > { %v4824_v30 = vpop.f32.mrf.mxu0 }
 0x8e3   : > { %v6405_v24 = vmul.f32 %v9308_v9, %v4824_v30  ;;  %v4592_v36 = vpop.f32.mrf.mxu2 }
 0x8e4   : > { %v6371_v13 = vmul.f32 %v9309_v40, %v4592_v36  ;;  %v4705_v35 = vpop.f32.mrf.mxu3  ;;  %v4934_v1 = vpop.f32.mrf.mxu1 }
 0x8e5   : > { %7461 = vst [vmem:[%s12674_s4 + $0xe50] sm:$0xff] %v6405_v24  ;;  %v6372_v33 = vmul.f32 %v9310_v15, %v4705_v35  ;;  %v6390_v29 = vmul.f32 %v9311_v32, %v4934_v1  ;;  %5227 = vmatmul.f32.gmra.mxu0 %v12554_v54  ;;  %v9317_v24 = vld [vmem:[%s10273_s22 + $0xe40] sm:$0xff]  ;;  %v9318_v35 = vld [vmem:[%s10273_s22 + $0xe48] sm:$0xff]  ;;  %v9319_v15 = vld [vmem:[%s10273_s22 + $0xed8] sm:$0xff] }
 0x8e6   : > { %7427 = vst [vmem:[%s12674_s4 + $0xd40] sm:$0xff] %v6371_v13  ;;  %v9320_v32 = vld [vmem:[%s10273_s22 + $0xfd0] sm:$0xff] }
 0x8e7   : > { %7428 = vst [vmem:[%s12674_s4 + $0xd48] sm:$0xff] %v6372_v33  ;;  %5337 = vmatmul.f32.gmra.mxu1 %v12526_v63 }
 0x8e8   : > { %7446 = vst [vmem:[%s12674_s4 + $0xdd8] sm:$0xff] %v6390_v29  ;;  %4998 = vmatmul.f32.gmra.mxu2 %v12526_v63 }
 0x8e9   : > { %5111 = vmatmul.f32.gmra.mxu3 %v12526_v63 }
 0x8ea   : > { %v4827_v56 = vpop.f32.mrf.mxu0 }
 0x8eb   : > { %v6421_v45 = vmul.f32 %v9312_v17, %v4827_v56  ;;  %v4595_v4 = vpop.f32.mrf.mxu2  ;;  %v9321_v17 = vld [vmem:[%s10273_s22 + $0xec0] sm:$0xff] }
 0x8ec   : > { %v6387_v31 = vmul.f32 %v9313_v3, %v4595_v4  ;;  %v4708_v16 = vpop.f32.mrf.mxu3  ;;  %v4937_v62 = vpop.f32.mrf.mxu1 }
 0x8ed   : > { %7477 = vst [vmem:[%s12674_s4 + $0xed0] sm:$0xff] %v6421_v45  ;;  %v6388_v58 = vmul.f32 %v9314_v21, %v4708_v16  ;;  %v6406_v28 = vmul.f32 %v9315_v49, %v4937_v62  ;;  %5230 = vmatmul.f32.gmra.mxu0 %v12582_v52  ;;  %v9323_v62 = vld [vmem:[%s10273_s22 + $0xf58] sm:$0xff] }
 0x8ee   : > { %7443 = vst [vmem:[%s12674_s4 + $0xdc0] sm:$0xff] %v6387_v31  ;;  %v9322_v31 = vld [vmem:[%s10273_s22 + $0xec8] sm:$0xff] }
 0x8ef   : > { %7444 = vst [vmem:[%s12674_s4 + $0xdc8] sm:$0xff] %v6388_v58  ;;  %5340 = vmatmul.f32.gmra.mxu1 %v12554_v54  ;;  %v9324_v58 = vld [vmem:[%s10273_s22 + $0x70] sm:$0xff] }
 0x8f0   : > { %7462 = vst [vmem:[%s12674_s4 + $0xe58] sm:$0xff] %v6406_v28  ;;  %5001 = vmatmul.f32.gmra.mxu2 %v12554_v54 }
 0x8f1   : > { %5114 = vmatmul.f32.gmra.mxu3 %v12554_v54 }
 0x8f2   : > { %v4830_v63 = vpop.f32.mrf.mxu0 }
 0x8f3   : > { %v6437_v30 = vmul.f32 %v9316_v55, %v4830_v63  ;;  %v4598_v9 = vpop.f32.mrf.mxu2  ;;  %v9325_v63 = vld [vmem:[%s10273_s22 + $0xf40] sm:$0xff] }
 0x8f4   : > { %v6403_v36 = vmul.f32 %v9317_v24, %v4598_v9  ;;  %v4711_v40 = vpop.f32.mrf.mxu3  ;;  %v4940_v13 = vpop.f32.mrf.mxu1  ;;  %v9326_v24 = vld [vmem:[%s10273_s22 + $0xf48] sm:$0xff] }
 0x8f5   : > { %7493 = vst [vmem:[%s12674_s4 + $0xf50] sm:$0xff] %v6437_v30  ;;  %v6404_v1 = vmul.f32 %v9318_v35, %v4711_v40  ;;  %v6422_v33 = vmul.f32 %v9319_v15, %v4940_v13  ;;  %5233 = vmatmul.f32.gmra.mxu0 %v12610_v46  ;;  %v9327_v40 = vld [vmem:[%s10273_s22 + $0xfd8] sm:$0xff]  ;;  %v9328_v35 = vld [vmem:[%s10273_s22 + $0xf0] sm:$0xff] }
 0x8f6   : > { %7459 = vst [vmem:[%s12674_s4 + $0xe40] sm:$0xff] %v6403_v36 }
 0x8f7   : > { %7460 = vst [vmem:[%s12674_s4 + $0xe48] sm:$0xff] %v6404_v1  ;;  %5343 = vmatmul.f32.gmra.mxu1 %v12582_v52 }
 0x8f8   : > { %7478 = vst [vmem:[%s12674_s4 + $0xed8] sm:$0xff] %v6422_v33  ;;  %5004 = vmatmul.f32.gmra.mxu2 %v12582_v52  ;;  %v9329_v33 = vld [vmem:[%s10273_s22 + $0xfc0] sm:$0xff] }
 0x8f9   : > { %5117 = vmatmul.f32.gmra.mxu3 %v12582_v52 }
 0x8fa   : > { %v4833_v54 = vpop.f32.mrf.mxu0 }
 0x8fb   : > { %v6453_v29 = vmul.f32 %v9320_v32, %v4833_v54  ;;  %v4601_v56 = vpop.f32.mrf.mxu2 }
 0x8fc   : > { %v6419_v45 = vmul.f32 %v9321_v17, %v4601_v56  ;;  %v4714_v4 = vpop.f32.mrf.mxu3  ;;  %v4943_v3 = vpop.f32.mrf.mxu1  ;;  %v9330_v56 = vld [vmem:[%s10273_s22 + $0xfc8] sm:$0xff] }
 0x8fd   : > { %7509 = vst [vmem:[%s12674_s4 + $0xfd0] sm:$0xff] %v6453_v29  ;;  %v6420_v16 = vmul.f32 %v9322_v31, %v4714_v4  ;;  %v6438_v21 = vmul.f32 %v9323_v62, %v4943_v3  ;;  %5236 = vmatmul.f32.gmra.mxu0 %v12638_v50  ;;  %v9332_v3 = vld [vmem:[%s10273_s22 + $0x170] sm:$0xff]  ;;  %v9333_v62 = vld [vmem:[%s10273_s22 + $0x60] sm:$0xff] }
 0x8fe   : > { %7475 = vst [vmem:[%s12674_s4 + $0xec0] sm:$0xff] %v6419_v45  ;;  %v9331_v45 = vld [vmem:[%s10273_s22 + $0x78] sm:$0xff] }
 0x8ff   : > { %7476 = vst [vmem:[%s12674_s4 + $0xec8] sm:$0xff] %v6420_v16  ;;  %5346 = vmatmul.f32.gmra.mxu1 %v12610_v46 }
 0x900   : > { %7494 = vst [vmem:[%s12674_s4 + $0xf58] sm:$0xff] %v6438_v21  ;;  %5007 = vmatmul.f32.gmra.mxu2 %v12610_v46 }
 0x901   : > { %5120 = vmatmul.f32.gmra.mxu3 %v12610_v46 }
 0x902   : > { %v5192_v52 = vpop.f32.mrf.mxu0 }
 0x903   : > { %v5961_v49 = vmul.f32 %v9324_v58, %v5192_v52  ;;  %v4604_v28 = vpop.f32.mrf.mxu2 }
 0x904   : > { %v6435_v55 = vmul.f32 %v9325_v63, %v4604_v28  ;;  %v4717_v30 = vpop.f32.mrf.mxu3  ;;  %v4946_v9 = vpop.f32.mrf.mxu1  ;;  %v9335_v63 = vld [vmem:[%s10273_s22 + $0xf8] sm:$0xff] }
 0x905   : > { %7017 = vst [vmem:[%s12674_s4 + $0x70] sm:$0xff] %v5961_v49  ;;  %v6436_v36 = vmul.f32 %v9326_v24, %v4717_v30  ;;  %v6454_v13 = vmul.f32 %v9327_v40, %v4946_v9  ;;  %5239 = vmatmul.f32.gmra.mxu0 %v12666_v19  ;;  %v9334_v49 = vld [vmem:[%s10273_s22 + $0x68] sm:$0xff]  ;;  %v9336_v30 = vld [vmem:[%s10273_s22 + $0x1f0] sm:$0xff] }
 0x906   : > { %7491 = vst [vmem:[%s12674_s4 + $0xf40] sm:$0xff] %v6435_v55 }
 0x907   : > { %7492 = vst [vmem:[%s12674_s4 + $0xf48] sm:$0xff] %v6436_v36  ;;  %5349 = vmatmul.f32.gmra.mxu1 %v12638_v50  ;;  %v9337_v36 = vld [vmem:[%s10273_s22 + $0xe0] sm:$0xff] }
 0x908   : > { %7510 = vst [vmem:[%s12674_s4 + $0xfd8] sm:$0xff] %v6454_v13  ;;  %5010 = vmatmul.f32.gmra.mxu2 %v12638_v50 }
 0x909   : > { %5123 = vmatmul.f32.gmra.mxu3 %v12638_v50 }
 0x90a   : > { %v5195_v46 = vpop.f32.mrf.mxu0 }
 0x90b   : > { %v5977_v1 = vmul.f32 %v9328_v35, %v5195_v46  ;;  %v4607_v15 = vpop.f32.mrf.mxu2  ;;  %v9338_v35 = vld [vmem:[%s10273_s22 + $0xe8] sm:$0xff] }
 0x90c   : > { %v6451_v54 = vmul.f32 %v9329_v33, %v4607_v15  ;;  %v4720_v32 = vpop.f32.mrf.mxu3  ;;  %v5305_v29 = vpop.f32.mrf.mxu1  ;;  %v9339_v15 = vld [vmem:[%s10273_s22 + $0x178] sm:$0xff] }
 0x90d   : > { %7033 = vst [vmem:[%s12674_s4 + $0xf0] sm:$0xff] %v5977_v1  ;;  %v6452_v17 = vmul.f32 %v9330_v56, %v4720_v32  ;;  %5242 = vmatmul.f32.gmra.mxu0 %v12695_v60  ;;  %v5962_v50 = vmul.f32 %v9331_v45, %v5305_v29  ;;  %v9341_v56 = vld [vmem:[%s10273_s22 + $0x160] sm:$0xff] }
 0x90e   : > { %7507 = vst [vmem:[%s12674_s4 + $0xfc0] sm:$0xff] %v6451_v54  ;;  %v9340_v54 = vld [vmem:[%s10273_s22 + $0x270] sm:$0xff] }
 0x90f   : > { %7508 = vst [vmem:[%s12674_s4 + $0xfc8] sm:$0xff] %v6452_v17  ;;  %5352 = vmatmul.f32.gmra.mxu1 %v12666_v19 }
 0x910   : > { %7018 = vst [vmem:[%s12674_s4 + $0x78] sm:$0xff] %v5962_v50  ;;  %5013 = vmatmul.f32.gmra.mxu2 %v12666_v19 }
 0x911   : > { %5126 = vmatmul.f32.gmra.mxu3 %v12666_v19 }
 0x912   : > { %v5198_v4 = vpop.f32.mrf.mxu0 }
 0x913   : > { %v5993_v31 = vmul.f32 %v9332_v3, %v5198_v4  ;;  %v4966_v16 = vpop.f32.mrf.mxu2  ;;  %v9342_v4 = vld [vmem:[%s10273_s22 + $0x168] sm:$0xff] }
 0x914   : > { %v5959_v21 = vmul.f32 %v9333_v62, %v4966_v16  ;;  %v5079_v52 = vpop.f32.mrf.mxu3  ;;  %v5308_v58 = vpop.f32.mrf.mxu1  ;;  %v9344_v62 = vld [vmem:[%s10273_s22 + $0x2f0] sm:$0xff] }
 0x915   : > { %7049 = vst [vmem:[%s12674_s4 + $0x170] sm:$0xff] %v5993_v31  ;;  %v5960_v28 = vmul.f32 %v9334_v49, %v5079_v52  ;;  %5245 = vmatmul.f32.gmra.mxu0 %v12717_v47  ;;  %v5978_v19 = vmul.f32 %v9335_v63, %v5308_v58  ;;  %v9343_v31 = vld [vmem:[%s10273_s22 + $0x1f8] sm:$0xff]  ;;  %v9345_v58 = vld [vmem:[%s10273_s22 + $0x1e0] sm:$0xff] }
 0x916   : > { %7015 = vst [vmem:[%s12674_s4 + $0x60] sm:$0xff] %v5959_v21 }
 0x917   : > { %7016 = vst [vmem:[%s12674_s4 + $0x68] sm:$0xff] %v5960_v28  ;;  %5355 = vmatmul.f32.gmra.mxu1 %v12695_v60 }
 0x918   : > { %7034 = vst [vmem:[%s12674_s4 + $0xf8] sm:$0xff] %v5978_v19  ;;  %5016 = vmatmul.f32.gmra.mxu2 %v12695_v60  ;;  %v9346_v19 = vld [vmem:[%s10273_s22 + $0x1e8] sm:$0xff] }
 0x919   : > { %5129 = vmatmul.f32.gmra.mxu3 %v12695_v60 }
 0x91a   : > { %v5201_v55 = vpop.f32.mrf.mxu0 }
 0x91b   : > { %v6009_v9 = vmul.f32 %v9336_v30, %v5201_v55  ;;  %v4969_v24 = vpop.f32.mrf.mxu2  ;;  %v9347_v30 = vld [vmem:[%s10273_s22 + $0x278] sm:$0xff] }
 0x91c   : > { %v5975_v40 = vmul.f32 %v9337_v36, %v4969_v24  ;;  %v5082_v13 = vpop.f32.mrf.mxu3  ;;  %v5311_v46 = vpop.f32.mrf.mxu1  ;;  %v9348_v24 = vld [vmem:[%s10273_s22 + $0x370] sm:$0xff] }
 0x91d   : > { %7065 = vst [vmem:[%s12674_s4 + $0x1f0] sm:$0xff] %v6009_v9  ;;  %v5976_v1 = vmul.f32 %v9338_v35, %v5082_v13  ;;  %5248 = vmatmul.f32.gmra.mxu0 %v12733_v8  ;;  %v5994_v60 = vmul.f32 %v9339_v15, %v5311_v46  ;;  %v9349_v13 = vld [vmem:[%s10273_s22 + $0x260] sm:$0xff]  ;;  %v9350_v15 = vld [vmem:[%s10273_s22 + $0x268] sm:$0xff] }
 0x91e   : > { %7031 = vst [vmem:[%s12674_s4 + $0xe0] sm:$0xff] %v5975_v40 }
 0x91f   : > { %7032 = vst [vmem:[%s12674_s4 + $0xe8] sm:$0xff] %v5976_v1  ;;  %5358 = vmatmul.f32.gmra.mxu1 %v12717_v47 }
 0x920   : > { %7050 = vst [vmem:[%s12674_s4 + $0x178] sm:$0xff] %v5994_v60  ;;  %5019 = vmatmul.f32.gmra.mxu2 %v12717_v47 }
 0x921   : > { %5132 = vmatmul.f32.gmra.mxu3 %v12717_v47 }
 0x922   : > { %v5204_v33 = vpop.f32.mrf.mxu0 }
 0x923   : > { %v6025_v32 = vmul.f32 %v9340_v54, %v5204_v33  ;;  %v4972_v29 = vpop.f32.mrf.mxu2  ;;  %v9351_v33 = vld [vmem:[%s10273_s22 + $0x2f8] sm:$0xff] }
 0x924   : > { %v5991_v17 = vmul.f32 %v9341_v56, %v4972_v29  ;;  %v5085_v45 = vpop.f32.mrf.mxu3  ;;  %v5314_v50 = vpop.f32.mrf.mxu1 }
 0x925   : > { %7081 = vst [vmem:[%s12674_s4 + $0x270] sm:$0xff] %v6025_v32  ;;  %v5992_v3 = vmul.f32 %v9342_v4, %v5085_v45  ;;  %5251 = vmatmul.f32.gmra.mxu0 %v12749_v20  ;;  %v6010_v47 = vmul.f32 %v9343_v31, %v5314_v50  ;;  %v9352_v32 = vld [vmem:[%s10273_s22 + $0x3f0] sm:$0xff] }
 0x926   : > { %7047 = vst [vmem:[%s12674_s4 + $0x160] sm:$0xff] %v5991_v17  ;;  %v9353_v17 = vld [vmem:[%s10273_s22 + $0x2e0] sm:$0xff] }
 0x927   : > { %7048 = vst [vmem:[%s12674_s4 + $0x168] sm:$0xff] %v5992_v3  ;;  %5361 = vmatmul.f32.gmra.mxu1 %v12733_v8  ;;  %v9354_v3 = vld [vmem:[%s10273_s22 + $0x2e8] sm:$0xff] }
 0x928   : > { %7066 = vst [vmem:[%s12674_s4 + $0x1f8] sm:$0xff] %v6010_v47  ;;  %5022 = vmatmul.f32.gmra.mxu2 %v12733_v8  ;;  %v9355_v47 = vld [vmem:[%s10273_s22 + $0x378] sm:$0xff] }
 0x929   : > { %5135 = vmatmul.f32.gmra.mxu3 %v12733_v8 }
 0x92a   : > { %v5207_v16 = vpop.f32.mrf.mxu0 }
 0x92b   : > { %v6041_v21 = vmul.f32 %v9344_v62, %v5207_v16  ;;  %v4975_v52 = vpop.f32.mrf.mxu2  ;;  %v9356_v62 = vld [vmem:[%s10273_s22 + $0x470] sm:$0xff] }
 0x92c   : > { %v6007_v49 = vmul.f32 %v9345_v58, %v4975_v52  ;;  %v5088_v28 = vpop.f32.mrf.mxu3  ;;  %v5317_v63 = vpop.f32.mrf.mxu1  ;;  %v9357_v58 = vld [vmem:[%s10273_s22 + $0x360] sm:$0xff] }
 0x92d   : > { %7097 = vst [vmem:[%s12674_s4 + $0x2f0] sm:$0xff] %v6041_v21  ;;  %v6008_v55 = vmul.f32 %v9346_v19, %v5088_v28  ;;  %5254 = vmatmul.f32.gmra.mxu0 %v12765_v18  ;;  %v6026_v8 = vmul.f32 %v9347_v30, %v5317_v63  ;;  %v9358_v19 = vld [vmem:[%s10273_s22 + $0x368] sm:$0xff]  ;;  %v9359_v30 = vld [vmem:[%s10273_s22 + $0x3f8] sm:$0xff] }
 0x92e   : > { %7063 = vst [vmem:[%s12674_s4 + $0x1e0] sm:$0xff] %v6007_v49 }
 0x92f   : > { %7064 = vst [vmem:[%s12674_s4 + $0x1e8] sm:$0xff] %v6008_v55  ;;  %5364 = vmatmul.f32.gmra.mxu1 %v12749_v20 }
 0x930   : > { %7082 = vst [vmem:[%s12674_s4 + $0x278] sm:$0xff] %v6026_v8  ;;  %5025 = vmatmul.f32.gmra.mxu2 %v12749_v20 }
 0x931   : > { %5138 = vmatmul.f32.gmra.mxu3 %v12749_v20 }
 0x932   : > { %v5210_v9 = vpop.f32.mrf.mxu0 }
 0x933   : > { %v6057_v36 = vmul.f32 %v9348_v24, %v5210_v9  ;;  %v4978_v40 = vpop.f32.mrf.mxu2  ;;  %v9360_v9 = vld [vmem:[%s10273_s22 + $0x4f0] sm:$0xff] }
 0x934   : > { %v6023_v46 = vmul.f32 %v9349_v13, %v4978_v40  ;;  %v5091_v35 = vpop.f32.mrf.mxu3  ;;  %v5320_v1 = vpop.f32.mrf.mxu1  ;;  %v9361_v40 = vld [vmem:[%s10273_s22 + $0x3e0] sm:$0xff] }
 0x935   : > { %7113 = vst [vmem:[%s12674_s4 + $0x370] sm:$0xff] %v6057_v36  ;;  %v6024_v60 = vmul.f32 %v9350_v15, %v5091_v35  ;;  %5257 = vmatmul.f32.gmra.mxu0 %v12781_v11  ;;  %v6042_v20 = vmul.f32 %v9351_v33, %v5320_v1  ;;  %v9362_v1 = vld [vmem:[%s10273_s22 + $0x3e8] sm:$0xff] }
 0x936   : > { %7079 = vst [vmem:[%s12674_s4 + $0x260] sm:$0xff] %v6023_v46 }
 0x937   : > { %7080 = vst [vmem:[%s12674_s4 + $0x268] sm:$0xff] %v6024_v60  ;;  %5367 = vmatmul.f32.gmra.mxu1 %v12765_v18  ;;  %v9363_v60 = vld [vmem:[%s10273_s22 + $0x478] sm:$0xff] }
 0x938   : > { %7098 = vst [vmem:[%s12674_s4 + $0x2f8] sm:$0xff] %v6042_v20  ;;  %5028 = vmatmul.f32.gmra.mxu2 %v12765_v18  ;;  %v9364_v20 = vld [vmem:[%s10273_s22 + $0x570] sm:$0xff] }
 0x939   : > { %5141 = vmatmul.f32.gmra.mxu3 %v12765_v18 }
 0x93a   : > { %v5213_v54 = vpop.f32.mrf.mxu0 }
 0x93b   : > { %v6073_v29 = vmul.f32 %v9352_v32, %v5213_v54  ;;  %v4981_v56 = vpop.f32.mrf.mxu2 }
 0x93c   : > { %v6039_v45 = vmul.f32 %v9353_v17, %v4981_v56  ;;  %v5094_v50 = vpop.f32.mrf.mxu3  ;;  %v5323_v4 = vpop.f32.mrf.mxu1 }
 0x93d   : > { %7129 = vst [vmem:[%s12674_s4 + $0x3f0] sm:$0xff] %v6073_v29  ;;  %v6040_v31 = vmul.f32 %v9354_v3, %v5094_v50  ;;  %5260 = vmatmul.f32.gmra.mxu0 %v12797_v51  ;;  %v6058_v18 = vmul.f32 %v9355_v47, %v5323_v4  ;;  %v9365_v29 = vld [vmem:[%s10273_s22 + $0x460] sm:$0xff]  ;;  %v9366_v50 = vld [vmem:[%s10273_s22 + $0x468] sm:$0xff]  ;;  %v9367_v3 = vld [vmem:[%s10273_s22 + $0x4f8] sm:$0xff] }
 0x93e   : > { %7095 = vst [vmem:[%s12674_s4 + $0x2e0] sm:$0xff] %v6039_v45  ;;  %v9368_v47 = vld [vmem:[%s10273_s22 + $0x5f0] sm:$0xff] }
 0x93f   : > { %7096 = vst [vmem:[%s12674_s4 + $0x2e8] sm:$0xff] %v6040_v31  ;;  %5370 = vmatmul.f32.gmra.mxu1 %v12781_v11 }
 0x940   : > { %7114 = vst [vmem:[%s12674_s4 + $0x378] sm:$0xff] %v6058_v18  ;;  %5031 = vmatmul.f32.gmra.mxu2 %v12781_v11 }
 0x941   : > { %5144 = vmatmul.f32.gmra.mxu3 %v12781_v11 }
 0x942   : > { %v5216_v16 = vpop.f32.mrf.mxu0 }
 0x943   : > { %v6089_v21 = vmul.f32 %v9356_v62, %v5216_v16  ;;  %v4984_v52 = vpop.f32.mrf.mxu2  ;;  %v9369_v62 = vld [vmem:[%s10273_s22 + $0x4e0] sm:$0xff] }
 0x944   : > { %v6055_v49 = vmul.f32 %v9357_v58, %v4984_v52  ;;  %v5097_v28 = vpop.f32.mrf.mxu3  ;;  %v5326_v63 = vpop.f32.mrf.mxu1 }
 0x945   : > { %7145 = vst [vmem:[%s12674_s4 + $0x470] sm:$0xff] %v6089_v21  ;;  %v6056_v55 = vmul.f32 %v9358_v19, %v5097_v28  ;;  %5263 = vmatmul.f32.gmra.mxu0 %v12813_v27  ;;  %v6074_v11 = vmul.f32 %v9359_v30, %v5326_v63  ;;  %v9371_v63 = vld [vmem:[%s10273_s22 + $0x578] sm:$0xff] }
 0x946   : > { %7111 = vst [vmem:[%s12674_s4 + $0x360] sm:$0xff] %v6055_v49  ;;  %v9370_v49 = vld [vmem:[%s10273_s22 + $0x4e8] sm:$0xff] }
 0x947   : > { %7112 = vst [vmem:[%s12674_s4 + $0x368] sm:$0xff] %v6056_v55  ;;  %5373 = vmatmul.f32.gmra.mxu1 %v12797_v51  ;;  %v9372_v55 = vld [vmem:[%s10273_s22 + $0x670] sm:$0xff] }
 0x948   : > { %7130 = vst [vmem:[%s12674_s4 + $0x3f8] sm:$0xff] %v6074_v11  ;;  %5034 = vmatmul.f32.gmra.mxu2 %v12797_v51 }
 0x949   : > { %5147 = vmatmul.f32.gmra.mxu3 %v12797_v51 }
 0x94a   : > { %v5219_v8 = vpop.f32.mrf.mxu0 }
 0x94b   : > { %v6105_v24 = vmul.f32 %v9360_v9, %v5219_v8  ;;  %v4987_v36 = vpop.f32.mrf.mxu2  ;;  %v9373_v8 = vld [vmem:[%s10273_s22 + $0x560] sm:$0xff] }
 0x94c   : > { %v6071_v13 = vmul.f32 %v9361_v40, %v4987_v36  ;;  %v5100_v46 = vpop.f32.mrf.mxu3  ;;  %v5329_v35 = vpop.f32.mrf.mxu1  ;;  %v9374_v40 = vld [vmem:[%s10273_s22 + $0x568] sm:$0xff] }
 0x94d   : > { %7161 = vst [vmem:[%s12674_s4 + $0x4f0] sm:$0xff] %v6105_v24  ;;  %v6072_v15 = vmul.f32 %v9362_v1, %v5100_v46  ;;  %5266 = vmatmul.f32.gmra.mxu0 %v12829_v10  ;;  %v6090_v51 = vmul.f32 %v9363_v60, %v5329_v35  ;;  %v9375_v46 = vld [vmem:[%s10273_s22 + $0x5f8] sm:$0xff]  ;;  %v9376_v1 = vld [vmem:[%s10273_s22 + $0x6f0] sm:$0xff] }
 0x94e   : > { %7127 = vst [vmem:[%s12674_s4 + $0x3e0] sm:$0xff] %v6071_v13 }
 0x94f   : > { %7128 = vst [vmem:[%s12674_s4 + $0x3e8] sm:$0xff] %v6072_v15  ;;  %5376 = vmatmul.f32.gmra.mxu1 %v12813_v27 }
 0x950   : > { %7146 = vst [vmem:[%s12674_s4 + $0x478] sm:$0xff] %v6090_v51  ;;  %5037 = vmatmul.f32.gmra.mxu2 %v12813_v27  ;;  %v9377_v51 = vld [vmem:[%s10273_s22 + $0x5e0] sm:$0xff] }
 0x951   : > { %5150 = vmatmul.f32.gmra.mxu3 %v12813_v27 }
 0x952   : > { %v5222_v33 = vpop.f32.mrf.mxu0 }
 0x953   : > { %v6121_v54 = vmul.f32 %v9364_v20, %v5222_v33  ;;  %v4990_v32 = vpop.f32.mrf.mxu2 }
 0x954   : > { %v6087_v56 = vmul.f32 %v9365_v29, %v4990_v32  ;;  %v5103_v17 = vpop.f32.mrf.mxu3  ;;  %v5332_v45 = vpop.f32.mrf.mxu1  ;;  %v9378_v32 = vld [vmem:[%s10273_s22 + $0x5e8] sm:$0xff] }
 0x955   : > { %7177 = vst [vmem:[%s12674_s4 + $0x570] sm:$0xff] %v6121_v54  ;;  %v6088_v4 = vmul.f32 %v9366_v50, %v5103_v17  ;;  %5269 = vmatmul.f32.gmra.mxu0 %v12845_v0  ;;  %v6106_v27 = vmul.f32 %v9367_v3, %v5332_v45  ;;  %v9380_v45 = vld [vmem:[%s10273_s22 + $0x770] sm:$0xff]  ;;  %v9381_v3 = vld [vmem:[%s10273_s22 + $0x660] sm:$0xff] }
 0x956   : > { %7143 = vst [vmem:[%s12674_s4 + $0x460] sm:$0xff] %v6087_v56  ;;  %v9379_v56 = vld [vmem:[%s10273_s22 + $0x678] sm:$0xff] }
 0x957   : > { %7144 = vst [vmem:[%s12674_s4 + $0x468] sm:$0xff] %v6088_v4  ;;  %5379 = vmatmul.f32.gmra.mxu1 %v12829_v10 }
 0x958   : > { %7162 = vst [vmem:[%s12674_s4 + $0x4f8] sm:$0xff] %v6106_v27  ;;  %5040 = vmatmul.f32.gmra.mxu2 %v12829_v10 }
 0x959   : > { %5153 = vmatmul.f32.gmra.mxu3 %v12829_v10 }
 0x95a   : > { %v5225_v31 = vpop.f32.mrf.mxu0 }
 0x95b   : > { %v6137_v18 = vmul.f32 %v9368_v47, %v5225_v31  ;;  %v4993_v16 = vpop.f32.mrf.mxu2 }
 0x95c   : > { %v6103_v21 = vmul.f32 %v9369_v62, %v4993_v16  ;;  %v5106_v52 = vpop.f32.mrf.mxu3  ;;  %v5335_v58 = vpop.f32.mrf.mxu1  ;;  %v9383_v62 = vld [vmem:[%s10273_s22 + $0x6f8] sm:$0xff] }
 0x95d   : > { %7193 = vst [vmem:[%s12674_s4 + $0x5f0] sm:$0xff] %v6137_v18  ;;  %v6104_v28 = vmul.f32 %v9370_v49, %v5106_v52  ;;  %5272 = vmatmul.f32.gmra.mxu0 %v12861_v7  ;;  %v6122_v10 = vmul.f32 %v9371_v63, %v5335_v58  ;;  %v9382_v18 = vld [vmem:[%s10273_s22 + $0x668] sm:$0xff]  ;;  %v9384_v52 = vld [vmem:[%s10273_s22 + $0x7f0] sm:$0xff] }
 0x95e   : > { %7159 = vst [vmem:[%s12674_s4 + $0x4e0] sm:$0xff] %v6103_v21 }
 0x95f   : > { %7160 = vst [vmem:[%s12674_s4 + $0x4e8] sm:$0xff] %v6104_v28  ;;  %5382 = vmatmul.f32.gmra.mxu1 %v12845_v0  ;;  %v9385_v28 = vld [vmem:[%s10273_s22 + $0x6e0] sm:$0xff] }
 0x960   : > { %7178 = vst [vmem:[%s12674_s4 + $0x578] sm:$0xff] %v6122_v10  ;;  %5043 = vmatmul.f32.gmra.mxu2 %v12845_v0 }
 0x961   : > { %5156 = vmatmul.f32.gmra.mxu3 %v12845_v0 }
 0x962   : > { %v5228_v19 = vpop.f32.mrf.mxu0 }
 0x963   : > { %v6153_v30 = vmul.f32 %v9372_v55, %v5228_v19  ;;  %v4996_v11 = vpop.f32.mrf.mxu2  ;;  %v9386_v55 = vld [vmem:[%s10273_s22 + $0x6e8] sm:$0xff] }
 0x964   : > { %v6119_v9 = vmul.f32 %v9373_v8, %v4996_v11  ;;  %v5109_v24 = vpop.f32.mrf.mxu3  ;;  %v5338_v36 = vpop.f32.mrf.mxu1  ;;  %v9387_v11 = vld [vmem:[%s10273_s22 + $0x778] sm:$0xff] }
 0x965   : > { %7209 = vst [vmem:[%s12674_s4 + $0x670] sm:$0xff] %v6153_v30  ;;  %v6120_v13 = vmul.f32 %v9374_v40, %v5109_v24  ;;  %5275 = vmatmul.f32.gmra.mxu0 %v12877_v42  ;;  %v6138_v0 = vmul.f32 %v9375_v46, %v5338_v36  ;;  %v9389_v40 = vld [vmem:[%s10273_s22 + $0x760] sm:$0xff] }
 0x966   : > { %7175 = vst [vmem:[%s12674_s4 + $0x560] sm:$0xff] %v6119_v9  ;;  %v9388_v9 = vld [vmem:[%s10273_s22 + $0x870] sm:$0xff] }
 0x967   : > { %7176 = vst [vmem:[%s12674_s4 + $0x568] sm:$0xff] %v6120_v13  ;;  %5385 = vmatmul.f32.gmra.mxu1 %v12861_v7 }
 0x968   : > { %7194 = vst [vmem:[%s12674_s4 + $0x5f8] sm:$0xff] %v6138_v0  ;;  %5046 = vmatmul.f32.gmra.mxu2 %v12861_v7 }
 0x969   : > { %5159 = vmatmul.f32.gmra.mxu3 %v12861_v7 }
 0x96a   : > { %v5231_v35 = vpop.f32.mrf.mxu0 }
 0x96b   : > { %v6169_v15 = vmul.f32 %v9376_v1, %v5231_v35  ;;  %v4999_v60 = vpop.f32.mrf.mxu2  ;;  %v9390_v35 = vld [vmem:[%s10273_s22 + $0x768] sm:$0xff] }
 0x96c   : > { %v6135_v33 = vmul.f32 %v9377_v51, %v4999_v60  ;;  %v5112_v20 = vpop.f32.mrf.mxu3  ;;  %v5341_v54 = vpop.f32.mrf.mxu1  ;;  %v9392_v51 = vld [vmem:[%s10273_s22 + $0x8f0] sm:$0xff] }
 0x96d   : > { %7225 = vst [vmem:[%s12674_s4 + $0x6f0] sm:$0xff] %v6169_v15  ;;  %v6136_v29 = vmul.f32 %v9378_v32, %v5112_v20  ;;  %5278 = vmatmul.f32.gmra.mxu0 %v12893_v59  ;;  %v6154_v7 = vmul.f32 %v9379_v56, %v5341_v54  ;;  %v9391_v15 = vld [vmem:[%s10273_s22 + $0x7f8] sm:$0xff]  ;;  %v9393_v54 = vld [vmem:[%s10273_s22 + $0x7e0] sm:$0xff] }
 0x96e   : > { %7191 = vst [vmem:[%s12674_s4 + $0x5e0] sm:$0xff] %v6135_v33 }
 0x96f   : > { %7192 = vst [vmem:[%s12674_s4 + $0x5e8] sm:$0xff] %v6136_v29  ;;  %5388 = vmatmul.f32.gmra.mxu1 %v12877_v42 }
 0x970   : > { %7210 = vst [vmem:[%s12674_s4 + $0x678] sm:$0xff] %v6154_v7  ;;  %5049 = vmatmul.f32.gmra.mxu2 %v12877_v42  ;;  %v9394_v7 = vld [vmem:[%s10273_s22 + $0x7e8] sm:$0xff] }
 0x971   : > { %5162 = vmatmul.f32.gmra.mxu3 %v12877_v42 }
 0x972   : > { %v5234_v17 = vpop.f32.mrf.mxu0 }
 0x973   : > { %v6185_v50 = vmul.f32 %v9380_v45, %v5234_v17  ;;  %v5002_v4 = vpop.f32.mrf.mxu2  ;;  %v9395_v45 = vld [vmem:[%s10273_s22 + $0x878] sm:$0xff] }
 0x974   : > { %v6151_v27 = vmul.f32 %v9381_v3, %v5002_v4  ;;  %v5115_v31 = vpop.f32.mrf.mxu3  ;;  %v5344_v47 = vpop.f32.mrf.mxu1  ;;  %v9396_v4 = vld [vmem:[%s10273_s22 + $0x970] sm:$0xff] }
 0x975   : > { %7241 = vst [vmem:[%s12674_s4 + $0x770] sm:$0xff] %v6185_v50  ;;  %v6152_v16 = vmul.f32 %v9382_v18, %v5115_v31  ;;  %5281 = vmatmul.f32.gmra.mxu0 %v12909_v38  ;;  %v6170_v42 = vmul.f32 %v9383_v62, %v5344_v47  ;;  %v9397_v31 = vld [vmem:[%s10273_s22 + $0x860] sm:$0xff]  ;;  %v9398_v62 = vld [vmem:[%s10273_s22 + $0x868] sm:$0xff] }
 0x976   : > { %7207 = vst [vmem:[%s12674_s4 + $0x660] sm:$0xff] %v6151_v27 }
 0x977   : > { %7208 = vst [vmem:[%s12674_s4 + $0x668] sm:$0xff] %v6152_v16  ;;  %5391 = vmatmul.f32.gmra.mxu1 %v12893_v59 }
 0x978   : > { %7226 = vst [vmem:[%s12674_s4 + $0x6f8] sm:$0xff] %v6170_v42  ;;  %5052 = vmatmul.f32.gmra.mxu2 %v12893_v59 }
 0x979   : > { %5165 = vmatmul.f32.gmra.mxu3 %v12893_v59 }
 0x97a   : > { %v5237_v21 = vpop.f32.mrf.mxu0 }
 0x97b   : > { %v6201_v58 = vmul.f32 %v9384_v52, %v5237_v21  ;;  %v5005_v49 = vpop.f32.mrf.mxu2  ;;  %v9399_v21 = vld [vmem:[%s10273_s22 + $0x8f8] sm:$0xff] }
 0x97c   : > { %v6167_v63 = vmul.f32 %v9385_v28, %v5005_v49  ;;  %v5118_v10 = vpop.f32.mrf.mxu3  ;;  %v5347_v19 = vpop.f32.mrf.mxu1 }
 0x97d   : > { %7257 = vst [vmem:[%s12674_s4 + $0x7f0] sm:$0xff] %v6201_v58  ;;  %v6168_v30 = vmul.f32 %v9386_v55, %v5118_v10  ;;  %5284 = vmatmul.f32.gmra.mxu0 %v12925_v37  ;;  %v6186_v59 = vmul.f32 %v9387_v11, %v5347_v19 }
 0x97e   : > { %7223 = vst [vmem:[%s12674_s4 + $0x6e0] sm:$0xff] %v6167_v63 }
 0x97f   : > { %7224 = vst [vmem:[%s12674_s4 + $0x6e8] sm:$0xff] %v6168_v30  ;;  %5394 = vmatmul.f32.gmra.mxu1 %v12909_v38 }
 0x980   : > { %7242 = vst [vmem:[%s12674_s4 + $0x778] sm:$0xff] %v6186_v59  ;;  %5055 = vmatmul.f32.gmra.mxu2 %v12909_v38 }
 0x981   : > { %5168 = vmatmul.f32.gmra.mxu3 %v12909_v38 }
 0x982   : > { %v5240_v8 = vpop.f32.mrf.mxu0 }
 0x983   : > { %v6217_v24 = vmul.f32 %v9388_v9, %v5240_v8  ;;  %v5008_v36 = vpop.f32.mrf.mxu2 }
 0x984   : > { %v6183_v13 = vmul.f32 %v9389_v40, %v5008_v36  ;;  %v5121_v46 = vpop.f32.mrf.mxu3  ;;  %v5350_v0 = vpop.f32.mrf.mxu1 }
 0x985   : > { %7273 = vst [vmem:[%s12674_s4 + $0x870] sm:$0xff] %v6217_v24  ;;  %v6184_v1 = vmul.f32 %v9390_v35, %v5121_v46  ;;  %v6202_v60 = vmul.f32 %v9391_v15, %v5350_v0 }
 0x986   : > { %7239 = vst [vmem:[%s12674_s4 + $0x760] sm:$0xff] %v6183_v13 }
 0x987   : > { %7240 = vst [vmem:[%s12674_s4 + $0x768] sm:$0xff] %v6184_v1  ;;  %5397 = vmatmul.f32.gmra.mxu1 %v12925_v37 }
 0x988   : > { %7258 = vst [vmem:[%s12674_s4 + $0x7f8] sm:$0xff] %v6202_v60  ;;  %5058 = vmatmul.f32.gmra.mxu2 %v12925_v37 }
 0x989   : > { %5171 = vmatmul.f32.gmra.mxu3 %v12925_v37 }
 0x98a   : > { %v5243_v38 = vpop.f32.mrf.mxu0 }
 0x98b   : > { %v6233_v33 = vmul.f32 %v9392_v51, %v5243_v38  ;;  %v5011_v20 = vpop.f32.mrf.mxu2 }
 0x98c   : > { %v6199_v32 = vmul.f32 %v9393_v54, %v5011_v20  ;;  %v5124_v29 = vpop.f32.mrf.mxu3  ;;  %v5353_v56 = vpop.f32.mrf.mxu1 }
 0x98d   : > { %7289 = vst [vmem:[%s12674_s4 + $0x8f0] sm:$0xff] %v6233_v33  ;;  %v6200_v17 = vmul.f32 %v9394_v7, %v5124_v29  ;;  %v6218_v37 = vmul.f32 %v9395_v45, %v5353_v56 }
 0x98e   : > { %7255 = vst [vmem:[%s12674_s4 + $0x7e0] sm:$0xff] %v6199_v32 }
 0x98f   : > { %7256 = vst [vmem:[%s12674_s4 + $0x7e8] sm:$0xff] %v6200_v17 }
 0x990   : > { %7274 = vst [vmem:[%s12674_s4 + $0x878] sm:$0xff] %v6218_v37 }
 0x992   : > { %v5246_v50 = vpop.f32.mrf.mxu0 }
 0x993   : > { %v6249_v3 = vmul.f32 %v9396_v4, %v5246_v50  ;;  %v5014_v27 = vpop.f32.mrf.mxu2 }
 0x994   : > { %v6215_v47 = vmul.f32 %v9397_v31, %v5014_v27  ;;  %v5127_v18 = vpop.f32.mrf.mxu3  ;;  %v5356_v16 = vpop.f32.mrf.mxu1 }
 0x995   : > { %7305 = vst [vmem:[%s12674_s4 + $0x970] sm:$0xff] %v6249_v3  ;;  %v6216_v42 = vmul.f32 %v9398_v62, %v5127_v18  ;;  %v6234_v52 = vmul.f32 %v9399_v21, %v5356_v16 }
 0x996   : > { %7271 = vst [vmem:[%s12674_s4 + $0x860] sm:$0xff] %v6215_v47 }
 0x997   : > { %7272 = vst [vmem:[%s12674_s4 + $0x868] sm:$0xff] %v6216_v42 }
 0x998   : > { %7290 = vst [vmem:[%s12674_s4 + $0x8f8] sm:$0xff] %v6234_v52 }
 0x999   : > { %9517 = shalt.err (!%p9514_p2)
}
 0x99a   : > { %s9642_s14 = smov 2048   ;;  %s9643_s28 = smov 4096   ;;  %v5249_v58 = vpop.f32.mrf.mxu0 }
 0x99b   : > { %s9644_s24 = smov 128   ;;  %v6265_v49 = vmul.f32 %v12305_v53, %v5249_v58  ;;  %v5017_v28 = vpop.f32.mrf.mxu2  ;;  %s7516_s1 = scalar_lea.sflag [#allocation5], %s9787_s27 }
 0x99c   : > { %8388 = dma.vmem_to_hbm [thread:$0]  (%p9765_p0), %s14120_s19, 65536, %s14122_s21, %s14137_s20, %s9642_s14, %s9643_s28, %s9644_s24   ;;  %v6231_v63 = vmul.f32 %v12308_v26, %v5017_v28  ;;  %v5130_v10 = vpop.f32.mrf.mxu3  ;;  %v5359_v19 = vpop.f32.mrf.mxu1 }
 0x99d   : > { %s9532_s2 = sshra.s32 %s7543_s16, 4  ;;  %s9538_s19 = scalar_lea.hbm %s14334_s6, 512  ;;  %s9533_s2 = int_to_ptr.hbm [resolvable:$true] %s9532_s2 }
 0x99e   : > { %s9534_s3 = scalar_lea.hbm %s9533_s2, 256  ;;  %p9539_p1 = scmp.lt.s32.totalorder %s9533_s2, %s14334_s6 }
 0x99f   : > { %p9535_p4 = scmp.ne.s32.totalorder %s9533_s2, %s9534_s3  ;;  %p9540_p3 = scmp.lt.s32.totalorder %s9538_s19, %s9534_s3 }
 0x9a1   : > { %p9536_p7 = pnand %p9535_p4, %p9765_p0  ;;  %p9541_p8 = por %p9540_p3, %p9539_p1 }
 0x9a3   : > { %p9537_p11 = pneg %p9536_p7 }
 0x9a5   : > { %p9542_p9 = pnand %p9541_p8, %p9537_p11 }
 0x9a7   : > { %9545 = shalt.err (!%p9542_p9)
}
 0x9a8   : > { %s9645_s27 = smov 256   ;;  %s9646_s23 = smov 8   ;;  %7321 = vst [vmem:[%s12674_s4 + $0x9f0] sm:$0xff] %v6265_v49  ;;  %v6232_v53 = vmul.f32 %v12313_v34, %v5130_v10  ;;  %v6250_v26 = vmul.f32 %v12316_v43, %v5359_v19  ;;  %v5252_v55 = vpop.f32.mrf.mxu0  ;;  %v5020_v11 = vpop.f32.mrf.mxu2  ;;  %v14432_v33 = vld [vmem:[#allocation17_spill] sm:$0xff]  ;;  %v14433_v20 = vld [vmem:[#allocation18_spill] sm:$0xff]  ;;  %v14434_v32 = vld [vmem:[#allocation19_spill] sm:$0xff] }
 0x9a9   : > { %8387 = dma.vmem_to_hbm [thread:$0]  (%p9765_p0), %s14135_s5, 4096, %s7543_s16, %s7516_s1, %s9644_s24, %s9645_s27, %s9646_s23   ;;  %v6281_v30 = vmul.f32 %v12333_v44, %v5252_v55  ;;  %v6247_v59 = vmul.f32 %v12336_v5, %v5020_v11  ;;  %v5133_v8 = vpop.f32.mrf.mxu3  ;;  %v5362_v9 = vpop.f32.mrf.mxu1  ;;  %v14435_v56 = vld [vmem:[#allocation20_spill] sm:$0xff]  ;;  %v14436_v45 = vld [vmem:[#allocation21_spill] sm:$0xff]  ;;  %v14437_v50 = vld [vmem:[#allocation22_spill] sm:$0xff] }
 0x9aa   : > { %7287 = vst [vmem:[%s12674_s4 + $0x8e0] sm:$0xff] %v6231_v63  ;;  %v6248_v34 = vmul.f32 %v12341_v2, %v5133_v8  ;;  %v6266_v43 = vmul.f32 %v12344_v6, %v5362_v9  ;;  %v14438_v27 = vld [vmem:[#allocation23_spill] sm:$0xff]  ;;  %v14439_v18 = vld [vmem:[#allocation24_spill] sm:$0xff]  ;;  %v14440_v21 = vld [vmem:[#allocation25_spill] sm:$0xff]  ;;  %s14469_s5 = sshll.u32 %s9628_s10, 7  ;;  %s7580_s3 = sshll.u32 %s12674_s4, 4  ;;  %s7581_s3 = int_to_ptr.vmem [resolvable:$true] %s7580_s3 }
 0x9ab   : > { %7288 = vst [vmem:[%s12674_s4 + $0x8e8] sm:$0xff] %v6232_v53  ;;  %v14441_v58 = vld [vmem:[#allocation26_spill] sm:$0xff]  ;;  %v14442_v63 = vld [vmem:[#allocation27_spill] sm:$0xff]  ;;  %v14443_v53 = vld [vmem:[#allocation28_spill] sm:$0xff]  ;;  %s7579_s1 = scalar_lea.hbm %s14336_s8, %s14469_s5  ;;  %s9566_s21 = scalar_lea.hbm %s14336_s8, 8192 }
 0x9ac   : > { %7306 = vst [vmem:[%s12674_s4 + $0x978] sm:$0xff] %v6250_v26  ;;  %v14444_v11 = vld [vmem:[#allocation29_spill] sm:$0xff]  ;;  %v14445_v8 = vld [vmem:[#allocation30_spill] sm:$0xff]  ;;  %s7582_s2 = sshll.u32 %s7579_s1, 4  ;;  %s7583_s2 = int_to_ptr.hbm [resolvable:$true] %s7582_s2 }
 0x9ad   : > { %7337 = vst [vmem:[%s12674_s4 + $0xa70] sm:$0xff] %v6281_v30  ;;  %s9560_s13 = sshra.s32 %s7583_s2, 4  ;;  %s9561_s13 = int_to_ptr.hbm [resolvable:$true] %s9560_s13 }
 0x9ae   : > { %7303 = vst [vmem:[%s12674_s4 + $0x960] sm:$0xff] %v6247_v59  ;;  %s9562_s10 = scalar_lea.hbm %s9561_s13, 4096  ;;  %p9567_p2 = scmp.lt.s32.totalorder %s9561_s13, %s14336_s8 }
 0x9af   : > { %7304 = vst [vmem:[%s12674_s4 + $0x968] sm:$0xff] %v6248_v34  ;;  %p9563_p10 = scmp.ne.s32.totalorder %s9561_s13, %s9562_s10  ;;  %p9568_p4 = scmp.lt.s32.totalorder %s9566_s21, %s9562_s10 }
 0x9b0   : > { %7322 = vst [vmem:[%s12674_s4 + $0x9f8] sm:$0xff] %v6266_v43  ;;  %v5255_v24 = vpop.f32.mrf.mxu0  ;;  %v5023_v36 = vpop.f32.mrf.mxu2  ;;  %v14446_v43 = vld [vmem:[#allocation31_spill] sm:$0xff] }
 0x9b1   : > { %v6297_v44 = vmul.f32 %v12361_v12, %v5255_v24  ;;  %v6263_v5 = vmul.f32 %v12364_v23, %v5023_v36  ;;  %v5136_v40 = vpop.f32.mrf.mxu3  ;;  %v5365_v13 = vpop.f32.mrf.mxu1  ;;  %v14447_v36 = vld [vmem:[#allocation32_spill] sm:$0xff]  ;;  %p9564_p12 = pnand %p9563_p10, %p9765_p0  ;;  %p9569_p7 = por %p9568_p4, %p9567_p2 }
 0x9b2   : > { %v6264_v2 = vmul.f32 %v12369_v61, %v5136_v40  ;;  %v6282_v6 = vmul.f32 %v12372_v25, %v5365_v13 }
 0x9b3   : > { %7353 = vst [vmem:[%s12674_s4 + $0xaf0] sm:$0xff] %v6297_v44  ;;  %p9565_p13 = pneg %p9564_p12 }
 0x9b4   : > { %7319 = vst [vmem:[%s12674_s4 + $0x9e0] sm:$0xff] %v6263_v5 }
 0x9b5   : > { %7320 = vst [vmem:[%s12674_s4 + $0x9e8] sm:$0xff] %v6264_v2  ;;  %v14448_v2 = vld [vmem:[#allocation33_spill] sm:$0xff]  ;;  %p9570_p11 = pnand %p9569_p7, %p9565_p13 }
 0x9b6   : > { %7338 = vst [vmem:[%s12674_s4 + $0xa78] sm:$0xff] %v6282_v6 }
 0x9b8   : > { %v5258_v46 = vpop.f32.mrf.mxu0  ;;  %v5026_v0 = vpop.f32.mrf.mxu2 }
 0x9b9   : > { %v6313_v12 = vmul.f32 %v12389_v41, %v5258_v46  ;;  %v6279_v23 = vmul.f32 %v12392_v48, %v5026_v0  ;;  %v5139_v35 = vpop.f32.mrf.mxu3  ;;  %v5368_v1 = vpop.f32.mrf.mxu1  ;;  %v14449_v46 = vld [vmem:[#allocation34_spill] sm:$0xff] }
 0x9ba   : > { %v6280_v61 = vmul.f32 %v12397_v39, %v5139_v35  ;;  %v6298_v25 = vmul.f32 %v12400_v22, %v5368_v1 }
 0x9bb   : > { %7369 = vst [vmem:[%s12674_s4 + $0xb70] sm:$0xff] %v6313_v12 }
 0x9bc   : > { %7335 = vst [vmem:[%s12674_s4 + $0xa60] sm:$0xff] %v6279_v23  ;;  %v14450_v23 = vld [vmem:[#allocation35_spill] sm:$0xff] }
 0x9bd   : > { %7336 = vst [vmem:[%s12674_s4 + $0xa68] sm:$0xff] %v6280_v61  ;;  %v14451_v61 = vld [vmem:[#allocation36_spill] sm:$0xff] }
 0x9be   : > { %7354 = vst [vmem:[%s12674_s4 + $0xaf8] sm:$0xff] %v6298_v25 }
 0x9c0   : > { %v5261_v15 = vpop.f32.mrf.mxu0  ;;  %v5029_v60 = vpop.f32.mrf.mxu2 }
 0x9c1   : > { %v6329_v41 = vmul.f32 %v12417_v14, %v5261_v15  ;;  %v6295_v48 = vmul.f32 %v12420_v57, %v5029_v60  ;;  %v5142_v38 = vpop.f32.mrf.mxu3  ;;  %v5371_v51 = vpop.f32.mrf.mxu1  ;;  %v14452_v60 = vld [vmem:[#allocation37_spill] sm:$0xff] }
 0x9c2   : > { %v6296_v39 = vmul.f32 %v14432_v33, %v5142_v38  ;;  %v6314_v22 = vmul.f32 %v14433_v20, %v5371_v51  ;;  %v14453_v38 = vld [vmem:[#allocation38_spill] sm:$0xff] }
 0x9c3   : > { %7385 = vst [vmem:[%s12674_s4 + $0xbf0] sm:$0xff] %v6329_v41 }
 0x9c4   : > { %7351 = vst [vmem:[%s12674_s4 + $0xae0] sm:$0xff] %v6295_v48 }
 0x9c5   : > { %7352 = vst [vmem:[%s12674_s4 + $0xae8] sm:$0xff] %v6296_v39  ;;  %v14454_v39 = vld [vmem:[#allocation39_spill] sm:$0xff] }
 0x9c6   : > { %7370 = vst [vmem:[%s12674_s4 + $0xb78] sm:$0xff] %v6314_v22 }
 0x9c8   : > { %v5264_v54 = vpop.f32.mrf.mxu0  ;;  %v5032_v29 = vpop.f32.mrf.mxu2 }
 0x9c9   : > { %v6345_v14 = vmul.f32 %v14434_v32, %v5264_v54  ;;  %v6311_v57 = vmul.f32 %v14435_v56, %v5032_v29  ;;  %v5145_v7 = vpop.f32.mrf.mxu3  ;;  %v5374_v17 = vpop.f32.mrf.mxu1  ;;  %v14455_v54 = vld [vmem:[#allocation40_spill] sm:$0xff]  ;;  %v14456_v56 = vld [vmem:[#allocation41_spill] sm:$0xff] }
 0x9ca   : > { %v6312_v37 = vmul.f32 %v14436_v45, %v5145_v7  ;;  %v6330_v4 = vmul.f32 %v14437_v50, %v5374_v17  ;;  %v14457_v7 = vld [vmem:[#allocation42_spill] sm:$0xff] }
 0x9cb   : > { %7401 = vst [vmem:[%s12674_s4 + $0xc70] sm:$0xff] %v6345_v14 }
 0x9cc   : > { %7367 = vst [vmem:[%s12674_s4 + $0xb60] sm:$0xff] %v6311_v57 }
 0x9cd   : > { %7368 = vst [vmem:[%s12674_s4 + $0xb68] sm:$0xff] %v6312_v37  ;;  %v14458_v37 = vld [vmem:[#allocation43_spill] sm:$0xff] }
 0x9ce   : > { %7386 = vst [vmem:[%s12674_s4 + $0xbf8] sm:$0xff] %v6330_v4 }
 0x9d0   : > { %v5267_v3 = vpop.f32.mrf.mxu0  ;;  %v5035_v47 = vpop.f32.mrf.mxu2 }
 0x9d1   : > { %v6361_v31 = vmul.f32 %v14438_v27, %v5267_v3  ;;  %v6327_v16 = vmul.f32 %v14439_v18, %v5035_v47  ;;  %v5148_v62 = vpop.f32.mrf.mxu3  ;;  %v5377_v42 = vpop.f32.mrf.mxu1  ;;  %v14459_v3 = vld [vmem:[#allocation44_spill] sm:$0xff]  ;;  %v14460_v18 = vld [vmem:[#allocation45_spill] sm:$0xff] }
 0x9d2   : > { %v6328_v52 = vmul.f32 %v14440_v21, %v5148_v62  ;;  %v6346_v49 = vmul.f32 %v14441_v58, %v5377_v42  ;;  %v14461_v62 = vld [vmem:[#allocation46_spill] sm:$0xff] }
 0x9d3   : > { %7417 = vst [vmem:[%s12674_s4 + $0xcf0] sm:$0xff] %v6361_v31 }
 0x9d4   : > { %7383 = vst [vmem:[%s12674_s4 + $0xbe0] sm:$0xff] %v6327_v16 }
 0x9d5   : > { %7384 = vst [vmem:[%s12674_s4 + $0xbe8] sm:$0xff] %v6328_v52  ;;  %v14462_v52 = vld [vmem:[#allocation47_spill] sm:$0xff] }
 0x9d6   : > { %7402 = vst [vmem:[%s12674_s4 + $0xc78] sm:$0xff] %v6346_v49 }
 0x9d8   : > { %v5270_v28 = vpop.f32.mrf.mxu0  ;;  %v5038_v19 = vpop.f32.mrf.mxu2 }
 0x9d9   : > { %v6377_v10 = vmul.f32 %v14442_v63, %v5270_v28  ;;  %v6343_v26 = vmul.f32 %v14443_v53, %v5038_v19  ;;  %v5151_v55 = vpop.f32.mrf.mxu3  ;;  %v5380_v30 = vpop.f32.mrf.mxu1  ;;  %v14463_v28 = vld [vmem:[#allocation48_spill] sm:$0xff]  ;;  %v14464_v53 = vld [vmem:[#allocation49_spill] sm:$0xff] }
 0x9da   : > { %v6344_v59 = vmul.f32 %v14444_v11, %v5151_v55  ;;  %v6362_v9 = vmul.f32 %v14445_v8, %v5380_v30  ;;  %v14465_v55 = vld [vmem:[#allocation50_spill] sm:$0xff] }
 0x9db   : > { %7433 = vst [vmem:[%s12674_s4 + $0xd70] sm:$0xff] %v6377_v10 }
 0x9dc   : > { %7399 = vst [vmem:[%s12674_s4 + $0xc60] sm:$0xff] %v6343_v26 }
 0x9dd   : > { %7400 = vst [vmem:[%s12674_s4 + $0xc68] sm:$0xff] %v6344_v59  ;;  %v14466_v59 = vld [vmem:[#allocation51_spill] sm:$0xff] }
 0x9de   : > { %7418 = vst [vmem:[%s12674_s4 + $0xcf8] sm:$0xff] %v6362_v9 }
 0x9e0   : > { %v5273_v34 = vpop.f32.mrf.mxu0  ;;  %v5041_v44 = vpop.f32.mrf.mxu2 }
 0x9e1   : > { %v6393_v24 = vmul.f32 %v14446_v43, %v5273_v34  ;;  %v6359_v5 = vmul.f32 %v14447_v36, %v5041_v44  ;;  %v5154_v40 = vpop.f32.mrf.mxu3  ;;  %v5383_v13 = vpop.f32.mrf.mxu1  ;;  %v14467_v43 = vld [vmem:[#allocation52_spill] sm:$0xff]  ;;  %v14468_v44 = vld [vmem:[#allocation53_spill] sm:$0xff] }
 0x9e2   : > { %v6360_v6 = vmul.f32 %v14448_v2, %v5154_v40  ;;  %v6378_v12 = vmul.f32 %v14449_v46, %v5383_v13  ;;  %v14470_v40 = vld [vmem:[#allocation54_spill] sm:$0xff] }
 0x9e3   : > { %7449 = vst [vmem:[%s12674_s4 + $0xdf0] sm:$0xff] %v6393_v24 }
 0x9e4   : > { %7415 = vst [vmem:[%s12674_s4 + $0xce0] sm:$0xff] %v6359_v5 }
 0x9e5   : > { %7416 = vst [vmem:[%s12674_s4 + $0xce8] sm:$0xff] %v6360_v6  ;;  %v14471_v6 = vld [vmem:[#allocation55_spill] sm:$0xff] }
 0x9e6   : > { %7434 = vst [vmem:[%s12674_s4 + $0xd78] sm:$0xff] %v6378_v12 }
 0x9e8   : > { %v5276_v0 = vpop.f32.mrf.mxu0  ;;  %v5044_v1 = vpop.f32.mrf.mxu2 }
 0x9e9   : > { %v6409_v35 = vmul.f32 %v14450_v23, %v5276_v0  ;;  %v6375_v25 = vmul.f32 %v14451_v61, %v5044_v1  ;;  %v5157_v15 = vpop.f32.mrf.mxu3  ;;  %v5386_v41 = vpop.f32.mrf.mxu1 }
 0x9ea   : > { %v6376_v48 = vmul.f32 %v14452_v60, %v5157_v15  ;;  %v6394_v51 = vmul.f32 %v14453_v38, %v5386_v41 }
 0x9eb   : > { %7465 = vst [vmem:[%s12674_s4 + $0xe70] sm:$0xff] %v6409_v35 }
 0x9ec   : > { %7431 = vst [vmem:[%s12674_s4 + $0xd60] sm:$0xff] %v6375_v25 }
 0x9ed   : > { %7432 = vst [vmem:[%s12674_s4 + $0xd68] sm:$0xff] %v6376_v48 }
 0x9ee   : > { %7450 = vst [vmem:[%s12674_s4 + $0xdf8] sm:$0xff] %v6394_v51 }
 0x9f0   : > { %v5279_v33 = vpop.f32.mrf.mxu0  ;;  %v5047_v22 = vpop.f32.mrf.mxu2 }
 0x9f1   : > { %v6425_v20 = vmul.f32 %v14454_v39, %v5279_v33  ;;  %v6391_v32 = vmul.f32 %v14455_v54, %v5047_v22  ;;  %v5160_v14 = vpop.f32.mrf.mxu3  ;;  %v5389_v29 = vpop.f32.mrf.mxu1 }
 0x9f2   : > { %v6392_v57 = vmul.f32 %v14456_v56, %v5160_v14  ;;  %v6410_v17 = vmul.f32 %v14457_v7, %v5389_v29 }
 0x9f3   : > { %7481 = vst [vmem:[%s12674_s4 + $0xef0] sm:$0xff] %v6425_v20 }
 0x9f4   : > { %7447 = vst [vmem:[%s12674_s4 + $0xde0] sm:$0xff] %v6391_v32 }
 0x9f5   : > { %7448 = vst [vmem:[%s12674_s4 + $0xde8] sm:$0xff] %v6392_v57 }
 0x9f6   : > { %7466 = vst [vmem:[%s12674_s4 + $0xe78] sm:$0xff] %v6410_v17 }
 0x9f8   : > { %v5282_v45 = vpop.f32.mrf.mxu0  ;;  %v5050_v4 = vpop.f32.mrf.mxu2 }
 0x9f9   : > { %v6441_v50 = vmul.f32 %v14458_v37, %v5282_v45  ;;  %v6407_v27 = vmul.f32 %v14459_v3, %v5050_v4  ;;  %v5163_v31 = vpop.f32.mrf.mxu3  ;;  %v5392_v47 = vpop.f32.mrf.mxu1 }
 0x9fa   : > { %v6408_v16 = vmul.f32 %v14460_v18, %v5163_v31  ;;  %v6426_v42 = vmul.f32 %v14461_v62, %v5392_v47 }
 0x9fb   : > { %7497 = vst [vmem:[%s12674_s4 + $0xf70] sm:$0xff] %v6441_v50 }
 0x9fc   : > { %7463 = vst [vmem:[%s12674_s4 + $0xe60] sm:$0xff] %v6407_v27 }
 0x9fd   : > { %7464 = vst [vmem:[%s12674_s4 + $0xe68] sm:$0xff] %v6408_v16 }
 0x9fe   : > { %7482 = vst [vmem:[%s12674_s4 + $0xef8] sm:$0xff] %v6426_v42 }
 0xa00   : > { %v5285_v21 = vpop.f32.mrf.mxu0  ;;  %v5053_v49 = vpop.f32.mrf.mxu2 }
 0xa01   : > { %v6457_v58 = vmul.f32 %v14462_v52, %v5285_v21  ;;  %v6423_v63 = vmul.f32 %v14463_v28, %v5053_v49  ;;  %v5166_v10 = vpop.f32.mrf.mxu3  ;;  %v5395_v19 = vpop.f32.mrf.mxu1 }
 0xa02   : > { %v6424_v26 = vmul.f32 %v14464_v53, %v5166_v10  ;;  %v6442_v30 = vmul.f32 %v14465_v55, %v5395_v19 }
 0xa03   : > { %7513 = vst [vmem:[%s12674_s4 + $0xff0] sm:$0xff] %v6457_v58 }
 0xa04   : > { %7479 = vst [vmem:[%s12674_s4 + $0xee0] sm:$0xff] %v6423_v63 }
 0xa05   : > { %7480 = vst [vmem:[%s12674_s4 + $0xee8] sm:$0xff] %v6424_v26 }
 0xa06   : > { %7498 = vst [vmem:[%s12674_s4 + $0xf78] sm:$0xff] %v6442_v30 }
 0xa08   : > { %v5056_v11 = vpop.f32.mrf.mxu2 }
 0xa09   : > { %v6439_v8 = vmul.f32 %v14466_v59, %v5056_v11  ;;  %v5169_v9 = vpop.f32.mrf.mxu3  ;;  %v5398_v34 = vpop.f32.mrf.mxu1 }
 0xa0a   : > { %v6440_v24 = vmul.f32 %v14467_v43, %v5169_v9  ;;  %v6458_v36 = vmul.f32 %v14468_v44, %v5398_v34 }
 0xa0b   : > { %7495 = vst [vmem:[%s12674_s4 + $0xf60] sm:$0xff] %v6439_v8 }
 0xa0c   : > { %7496 = vst [vmem:[%s12674_s4 + $0xf68] sm:$0xff] %v6440_v24 }
 0xa0d   : > { %7514 = vst [vmem:[%s12674_s4 + $0xff8] sm:$0xff] %v6458_v36 }
 0xa10   : > { %v5059_v5 = vpop.f32.mrf.mxu2 }
 0xa11   : > { %v6455_v13 = vmul.f32 %v14470_v40, %v5059_v5  ;;  %v5172_v2 = vpop.f32.mrf.mxu3 }
 0xa12   : > { %v6456_v46 = vmul.f32 %v14471_v6, %v5172_v2 }
 0xa13   : > { %7511 = vst [vmem:[%s12674_s4 + $0xfe0] sm:$0xff] %v6455_v13 }
 0xa14   : > { %7512 = vst [vmem:[%s12674_s4 + $0xfe8] sm:$0xff] %v6456_v46 }
 0xa15   : > { %9573 = shalt.err (!%p9570_p11)
}
 0xa16   : > { %8389 = dma.vmem_to_hbm [thread:$0]  (%p9765_p0), %s7581_s3, 65536, %s7583_s2, %s14137_s20, %s9642_s14, %s9643_s28, %s9644_s24  }
 0xa17 PF: > { %s7597_s4 = sand.u32 1, %s9616_s29   ;;  %p8405_p1 = pnand %p7787_p6, %p9774_p5 }
 0xa18   : > { %s7598_s23 = scalar_lea.sflag [#allocation5], %s7597_s4 }
 0xa19   : > { %p8406_p3 = pneg %p8405_p1 }
 0xa1b   : > { %9607 = dma.done.wait (%p8406_p3), %s7598_s23, 4096  }
 0xa1c   : > { %9609 = vsyncadd (%p8406_p3), %s7598_s23, 4294963200  ;;  %s14472_s5 = sadd.s32 4294967294, %s9636_s12  }
 0xa1d   : > { %s7607_s15 = sand.u32 1, %s14472_s5  }
 0xa1e   : > { %s7608_s16 = scalar_lea.sflag [#allocation11], %s7607_s15 }
 0xa1f   : > { %9611 = dma.done.wait (%p8406_p3), %s7608_s16, 131072  }
 0xa20   : > { %9613 = vsyncadd (%p8406_p3), %s7608_s16, 4294836224  ;;  %s30_s12 = sadd.s32 1, %s9636_s12   ;;  %s14473_s29 = smov %s9620_s30 }
 0xa21   : > { %p27_p0 = scmp.ge.s32.totalorder %s30_s12, 4   ;;  %s14474_s30 = smov %s9624_s9 }
 0xa22   : > { %s14475_s9 = smov %s9772_s17  ;;  %s14476_s10 = smov %s9632_s11 }
 0xa23   : > { %s14477_s11 = smov %s14479_s26  ;;  %29 = sbr.rel (!%p27_p0) target bundleno = 16 (0x10), region = 135 }
 0xa28   :  { %7624 = vsyncpa [#allocation4], 1 }
 0xa29   :  { %7626 = vsyncpa [#allocation4 + $0x1], 1 }
 0xa2a   :  { %7627 = vsyncpa [#allocation7], 1 }
 0xa2b   :  { %7628 = vsyncpa [#allocation5], 1 }
 0xa2c   :  { %7630 = vsyncpa [#allocation5 + $0x1], 1 }
 0xa2d   :  { %7631 = vsyncpa [#allocation11], 1 }
 0xa2e   :  { %7633 = vsyncpa [#allocation11 + $0x1], 1 }

</bundles_post_ra>
